<compile_context>
chip_gen: v7x
topology: tpu7x:2x2x1
jax: 0.10.0
libtpu: 0.0.40
codegen_flags: <defaults>
</compile_context>

<pallas_src>
import functools

import jax
import jax.numpy as jnp
from jax.experimental import pallas as pl
from jax.experimental.pallas import tpu as pltpu

EPS = 1e-5


def _vmem_spec():
    return pl.BlockSpec(memory_space=pltpu.MemorySpace.VMEM)


# ---------------------------------------------------------------------------
# Fused kernel: BN1+ReLU (batch stats, pad-masked)  ->  depthwise 5x5 stride-2
#               ->  BN2+ReLU  ->  1x1 conv (MXU)  ->  BN3.
# Inputs p{b}{d} are the even/odd (row, col) phases of the zero-padded RAW
# input, so the stride-2 window walk needs only static contiguous slices.
# ---------------------------------------------------------------------------
def fused_block_kernel(p00_ref, p01_ref, p10_ref, p11_ref,
                       dw_ref, pw_ref,
                       g1_ref, b1_ref, g2_ref, b2_ref, g3_ref, b3_ref,
                       o_ref, *, n, h, w, c, cout):
    kh = kw = 5
    ho, wo = h // 2, w // 2
    hp2, wp2 = ho + 2, wo + 2                       # padded-phase extents

    phases = ((p00_ref[...], p01_ref[...]),
              (p10_ref[...], p11_ref[...]))         # each (n, hp2, wp2, c)

    # ---- BN1: batch stats from the raw padded phases (pads are exact zeros,
    #      so sums over the padded tensor equal sums over the interior) -------
    inv1 = 1.0 / float(n * h * w)
    s1 = jnp.zeros((1, 1, 1, c), jnp.float32)
    ss1 = jnp.zeros((1, 1, 1, c), jnp.float32)
    for bp in range(2):
        for dp in range(2):
            ph = phases[bp][dp]
            s1 = s1 + jnp.sum(ph, axis=(0, 1, 2), keepdims=True)
            ss1 = ss1 + jnp.sum(ph * ph, axis=(0, 1, 2), keepdims=True)
    mean1 = s1 * inv1
    var1 = ss1 * inv1 - mean1 * mean1
    scale1 = g1_ref[...] * jax.lax.rsqrt(var1 + EPS)     # (1,1,1,c)
    shift1 = b1_ref[...] - mean1 * scale1                # (1,1,1,c)

    # mask that restores the zero conv-padding ring after BN1+ReLU
    # (in every phase the pad positions are exactly the first/last H row and
    #  first/last W column)
    ph_shape = (n, hp2, wp2, c)
    ih = jax.lax.broadcasted_iota(jnp.int32, ph_shape, 1)
    iw = jax.lax.broadcasted_iota(jnp.int32, ph_shape, 2)
    interior = (ih > 0) & (ih < hp2 - 1) & (iw > 0) & (iw < wp2 - 1)

    # ---- BN1 apply + ReLU + pad mask (folded scale/shift, one pass) --------
    y = [[None, None], [None, None]]
    for bp in range(2):
        for dp in range(2):
            act = jnp.maximum(phases[bp][dp] * scale1 + shift1, 0.0)
            y[bp][dp] = jnp.where(interior, act, 0.0)

    # ---- depthwise 5x5 stride-2 conv: hoist the W (sublane) slice out of the
    #      tap loop; H slices are on an outer dim and therefore free ----------
    dwv = dw_ref[...]                                    # (25, c)
    acc = jnp.zeros((n, ho, wo, c), jnp.float32)
    for sx in range(kw):                                 # kernel column
        dp, cc = sx % 2, sx // 2
        for bp in range(2):                              # row parity
            slab = y[bp][dp][:, :, cc:cc + wo, :]        # (n, hp2, wo, c)
            for ry in range(bp, kh, 2):                  # kernel rows of parity bp
                a = ry // 2
                tap = dwv[ry * kw + sx: ry * kw + sx + 1, :]     # (1, c)
                acc = acc + slab[:, a:a + ho, :, :] * tap

    # ---- BN2 (batch stats, folded) + ReLU -----------------------------------
    inv2 = 1.0 / float(n * ho * wo)
    s2 = jnp.sum(acc, axis=(0, 1, 2), keepdims=True)
    ss2 = jnp.sum(acc * acc, axis=(0, 1, 2), keepdims=True)
    mean2 = s2 * inv2
    var2 = ss2 * inv2 - mean2 * mean2
    scale2 = g2_ref[...] * jax.lax.rsqrt(var2 + EPS)
    shift2 = b2_ref[...] - mean2 * scale2
    y2 = jnp.maximum(acc * scale2 + shift2, 0.0)         # (n, ho, wo, c)

    # ---- 1x1 conv == channel matmul on the MXU ------------------------------
    y2_2d = y2.reshape(n * ho * wo, c)                   # free: wo is 8-aligned here
    z = jnp.dot(y2_2d, pw_ref[...], preferred_element_type=jnp.float32)  # (M, cout)

    # ---- BN3 (batch stats, folded) ------------------------------------------
    s3 = jnp.sum(z, axis=0, keepdims=True)
    ss3 = jnp.sum(z * z, axis=0, keepdims=True)
    mean3 = s3 * inv2
    var3 = ss3 * inv2 - mean3 * mean3
    scale3 = g3_ref[...] * jax.lax.rsqrt(var3 + EPS)
    shift3 = b3_ref[...] - mean3 * scale3
    o_ref[...] = z * scale3 + shift3


# ---------------------------------------------------------------------------
# Wrapper: NCHW in / NCHW out.  Only layout glue stays in XLA: the NCHW->NHWC
# transpose required by the PyTorch interface plus the zero-pad / polyphase
# split (XLA fuses these into strided-slice fusions of the raw input).
# ---------------------------------------------------------------------------
@jax.jit
def mnasnet_block(x_nchw, params):
    n, c, h, w = x_nchw.shape
    assert h % 2 == 0 and w % 2 == 0
    cout = params["pw_pt"].shape[0]                      # 32
    ho, wo = h // 2, w // 2

    x = jnp.transpose(x_nchw, (0, 2, 3, 1)).astype(jnp.float32)    # NHWC
    xp = jnp.pad(x, ((0, 0), (2, 2), (2, 2), (0, 0)))              # pad=2 (zeros)
    p00 = xp[:, 0::2, 0::2, :]
    p01 = xp[:, 0::2, 1::2, :]
    p10 = xp[:, 1::2, 0::2, :]
    p11 = xp[:, 1::2, 1::2, :]

    # weights in kernel-friendly layouts
    dw = jnp.transpose(params["dw_pt"][:, 0], (1, 2, 0)).reshape(25, c)   # (25, C)
    pw = jnp.transpose(params["pw_pt"][:, :, 0, 0])                        # (C, 32)

    kern = functools.partial(fused_block_kernel, n=n, h=h, w=w, c=c, cout=cout)
    out2d = pl.pallas_call(
        kern,
        out_shape=jax.ShapeDtypeStruct((n * ho * wo, cout), jnp.float32),
        in_specs=[_vmem_spec()] * 12,
        out_specs=_vmem_spec(),
    )(p00, p01, p10, p11, dw, pw,
      params["g1"].reshape(1, c), params["b1"].reshape(1, c),
      params["g2"].reshape(1, c), params["b2"].reshape(1, c),
      params["g3"].reshape(1, cout), params["b3"].reshape(1, cout))

    out = out2d.reshape(n, ho, wo, cout)
    return jnp.transpose(out, (0, 3, 1, 2))              # back to NCHW


# ---------------------------------------------------------------------------
# Pure-JAX reference (same training-mode BN semantics) for verification.
# ---------------------------------------------------------------------------
def reference(x, params):
    c = x.shape[1]

    def bn_train(t, g, b):
        mu = jnp.mean(t, axis=(0, 2, 3), keepdims=True)
        var = jnp.mean((t - mu) ** 2, axis=(0, 2, 3), keepdims=True)
        return ((t - mu) * jax.lax.rsqrt(var + EPS)
                * g.reshape(1, -1, 1, 1) + b.reshape(1, -1, 1, 1))

    y = jnp.maximum(bn_train(x, params["g1"], params["b1"]), 0.0)
    y = jax.lax.conv_general_dilated(
        y, params["dw_pt"], window_strides=(2, 2),
        padding=((2, 2), (2, 2)), feature_group_count=c,
        dimension_numbers=("NCHW", "OIHW", "NCHW"))
    y = jnp.maximum(bn_train(y, params["g2"], params["b2"]), 0.0)
    y = jax.lax.conv_general_dilated(
        y, params["pw_pt"], window_strides=(1, 1), padding="VALID",
        dimension_numbers=("NCHW", "OIHW", "NCHW"))
    return bn_train(y, params["g3"], params["b3"])


if __name__ == "__main__":
    key = jax.random.PRNGKey(0)
    ks = jax.random.split(key, 10)

    # small shapes consistent with the module: C=72 fixed by the weights
    N, C, H, W = 2, 72, 16, 16
    x = jax.random.normal(ks[0], (N, C, H, W), jnp.float32)

    params = {
        "g1": 1.0 + 0.1 * jax.random.normal(ks[1], (C,), jnp.float32),
        "b1": 0.1 * jax.random.normal(ks[2], (C,), jnp.float32),
        "dw_pt": 0.1 * jax.random.normal(ks[3], (C, 1, 5, 5), jnp.float32),
        "g2": 1.0 + 0.1 * jax.random.normal(ks[4], (C,), jnp.float32),
        "b2": 0.1 * jax.random.normal(ks[5], (C,), jnp.float32),
        "pw_pt": 0.1 * jax.random.normal(ks[6], (32, C, 1, 1), jnp.float32),
        "g3": 1.0 + 0.1 * jax.random.normal(ks[7], (32,), jnp.float32),
        "b3": 0.1 * jax.random.normal(ks[8], (32,), jnp.float32),
    }

    out = jax.block_until_ready(mnasnet_block(x, params))
    ref = jax.block_until_ready(reference(x, params))

    assert out.shape == ref.shape == (N, 32, H // 2, W // 2), out.shape
    err = float(jnp.max(jnp.abs(out - ref)))
    assert err < 1e-2, f"max abs error too large: {err}"

    print("KERNEL_OK")
</pallas_src>

<mosaic_0001>
module attributes {stable_mosaic.version = 11 : i64} {
  func.func @fused_block_kernel(%arg0: memref<2x10x10x72xf32, #tpu.memory_space<vmem>>, %arg1: memref<2x10x10x72xf32, #tpu.memory_space<vmem>>, %arg2: memref<2x10x10x72xf32, #tpu.memory_space<vmem>>, %arg3: memref<2x10x10x72xf32, #tpu.memory_space<vmem>>, %arg4: memref<25x72xf32, #tpu.memory_space<vmem>>, %arg5: memref<72x32xf32, #tpu.memory_space<vmem>>, %arg6: memref<1x72xf32, #tpu.memory_space<vmem>>, %arg7: memref<1x72xf32, #tpu.memory_space<vmem>>, %arg8: memref<1x72xf32, #tpu.memory_space<vmem>>, %arg9: memref<1x72xf32, #tpu.memory_space<vmem>>, %arg10: memref<1x32xf32, #tpu.memory_space<vmem>>, %arg11: memref<1x32xf32, #tpu.memory_space<vmem>>, %arg12: memref<128x32xf32, #tpu.memory_space<vmem>>) attributes {dimension_semantics = [], scalar_prefetch = 0 : i64, scratch_operands = 0 : i64, tpu.core_type = #tpu.core_type<tc>} {
    %c0 = arith.constant 0 : index
    %c0_0 = arith.constant 0 : index
    %c0_1 = arith.constant 0 : index
    %c0_2 = arith.constant 0 : index
    %0 = vector.load %arg0[%c0, %c0_0, %c0_1, %c0_2] : memref<2x10x10x72xf32, #tpu.memory_space<vmem>>, vector<2x10x10x72xf32>
    %c0_3 = arith.constant 0 : index
    %c0_4 = arith.constant 0 : index
    %c0_5 = arith.constant 0 : index
    %c0_6 = arith.constant 0 : index
    %1 = vector.load %arg1[%c0_3, %c0_4, %c0_5, %c0_6] : memref<2x10x10x72xf32, #tpu.memory_space<vmem>>, vector<2x10x10x72xf32>
    %c0_7 = arith.constant 0 : index
    %c0_8 = arith.constant 0 : index
    %c0_9 = arith.constant 0 : index
    %c0_10 = arith.constant 0 : index
    %2 = vector.load %arg2[%c0_7, %c0_8, %c0_9, %c0_10] : memref<2x10x10x72xf32, #tpu.memory_space<vmem>>, vector<2x10x10x72xf32>
    %c0_11 = arith.constant 0 : index
    %c0_12 = arith.constant 0 : index
    %c0_13 = arith.constant 0 : index
    %c0_14 = arith.constant 0 : index
    %3 = vector.load %arg3[%c0_11, %c0_12, %c0_13, %c0_14] : memref<2x10x10x72xf32, #tpu.memory_space<vmem>>, vector<2x10x10x72xf32>
    %cst = arith.constant 0.000000e+00 : f32
    %4 = vector.broadcast %cst : f32 to vector<1x1x1x72xf32>
    %cst_15 = arith.constant 0.000000e+00 : f32
    %5 = vector.broadcast %cst_15 : f32 to vector<1x1x1x72xf32>
    %cst_16 = arith.constant dense<0.000000e+00> : vector<72xf32>
    %6 = vector.multi_reduction <add>, %0, %cst_16 [0, 1, 2] : vector<2x10x10x72xf32> to vector<72xf32>
    %7 = vector.shape_cast %6 : vector<72xf32> to vector<1x1x1x72xf32>
    %8 = arith.addf %4, %7 : vector<1x1x1x72xf32>
    %9 = arith.mulf %0, %0 : vector<2x10x10x72xf32>
    %cst_17 = arith.constant dense<0.000000e+00> : vector<72xf32>
    %10 = vector.multi_reduction <add>, %9, %cst_17 [0, 1, 2] : vector<2x10x10x72xf32> to vector<72xf32>
    %11 = vector.shape_cast %10 : vector<72xf32> to vector<1x1x1x72xf32>
    %12 = arith.addf %5, %11 : vector<1x1x1x72xf32>
    %cst_18 = arith.constant dense<0.000000e+00> : vector<72xf32>
    %13 = vector.multi_reduction <add>, %1, %cst_18 [0, 1, 2] : vector<2x10x10x72xf32> to vector<72xf32>
    %14 = vector.shape_cast %13 : vector<72xf32> to vector<1x1x1x72xf32>
    %15 = arith.addf %8, %14 : vector<1x1x1x72xf32>
    %16 = arith.mulf %1, %1 : vector<2x10x10x72xf32>
    %cst_19 = arith.constant dense<0.000000e+00> : vector<72xf32>
    %17 = vector.multi_reduction <add>, %16, %cst_19 [0, 1, 2] : vector<2x10x10x72xf32> to vector<72xf32>
    %18 = vector.shape_cast %17 : vector<72xf32> to vector<1x1x1x72xf32>
    %19 = arith.addf %12, %18 : vector<1x1x1x72xf32>
    %cst_20 = arith.constant dense<0.000000e+00> : vector<72xf32>
    %20 = vector.multi_reduction <add>, %2, %cst_20 [0, 1, 2] : vector<2x10x10x72xf32> to vector<72xf32>
    %21 = vector.shape_cast %20 : vector<72xf32> to vector<1x1x1x72xf32>
    %22 = arith.addf %15, %21 : vector<1x1x1x72xf32>
    %23 = arith.mulf %2, %2 : vector<2x10x10x72xf32>
    %cst_21 = arith.constant dense<0.000000e+00> : vector<72xf32>
    %24 = vector.multi_reduction <add>, %23, %cst_21 [0, 1, 2] : vector<2x10x10x72xf32> to vector<72xf32>
    %25 = vector.shape_cast %24 : vector<72xf32> to vector<1x1x1x72xf32>
    %26 = arith.addf %19, %25 : vector<1x1x1x72xf32>
    %cst_22 = arith.constant dense<0.000000e+00> : vector<72xf32>
    %27 = vector.multi_reduction <add>, %3, %cst_22 [0, 1, 2] : vector<2x10x10x72xf32> to vector<72xf32>
    %28 = vector.shape_cast %27 : vector<72xf32> to vector<1x1x1x72xf32>
    %29 = arith.addf %22, %28 : vector<1x1x1x72xf32>
    %30 = arith.mulf %3, %3 : vector<2x10x10x72xf32>
    %cst_23 = arith.constant dense<0.000000e+00> : vector<72xf32>
    %31 = vector.multi_reduction <add>, %30, %cst_23 [0, 1, 2] : vector<2x10x10x72xf32> to vector<72xf32>
    %32 = vector.shape_cast %31 : vector<72xf32> to vector<1x1x1x72xf32>
    %33 = arith.addf %26, %32 : vector<1x1x1x72xf32>
    %cst_24 = arith.constant 0.001953125 : f32
    %34 = vector.broadcast %cst_24 : f32 to vector<1x1x1x72xf32>
    %35 = arith.mulf %29, %34 : vector<1x1x1x72xf32>
    %cst_25 = arith.constant 0.001953125 : f32
    %36 = vector.broadcast %cst_25 : f32 to vector<1x1x1x72xf32>
    %37 = arith.mulf %33, %36 : vector<1x1x1x72xf32>
    %38 = arith.mulf %35, %35 : vector<1x1x1x72xf32>
    %39 = arith.subf %37, %38 : vector<1x1x1x72xf32>
    %c0_26 = arith.constant 0 : index
    %c0_27 = arith.constant 0 : index
    %40 = vector.load %arg6[%c0_26, %c0_27] : memref<1x72xf32, #tpu.memory_space<vmem>>, vector<1x72xf32>
    %cst_28 = arith.constant 9.99999974E-6 : f32
    %41 = vector.broadcast %cst_28 : f32 to vector<1x1x1x72xf32>
    %42 = arith.addf %39, %41 : vector<1x1x1x72xf32>
    %43 = math.rsqrt %42 : vector<1x1x1x72xf32>
    %44 = vector.shape_cast %40 : vector<1x72xf32> to vector<1x1x1x72xf32>
    %45 = arith.mulf %44, %43 : vector<1x1x1x72xf32>
    %c0_29 = arith.constant 0 : index
    %c0_30 = arith.constant 0 : index
    %46 = vector.load %arg7[%c0_29, %c0_30] : memref<1x72xf32, #tpu.memory_space<vmem>>, vector<1x72xf32>
    %47 = arith.mulf %35, %45 : vector<1x1x1x72xf32>
    %48 = vector.shape_cast %46 : vector<1x72xf32> to vector<1x1x1x72xf32>
    %49 = arith.subf %48, %47 : vector<1x1x1x72xf32>
    %50 = tpu.iota {dimensions = array<i32: 1>} : vector<2x10x10x72xi32>
    %51 = tpu.iota {dimensions = array<i32: 2>} : vector<2x10x10x72xi32>
    %c0_i32 = arith.constant 0 : i32
    %52 = vector.broadcast %c0_i32 : i32 to vector<2x10x10x72xi32>
    %53 = arith.cmpi sgt, %50, %52 : vector<2x10x10x72xi32>
    %c9_i32 = arith.constant 9 : i32
    %54 = vector.broadcast %c9_i32 : i32 to vector<2x10x10x72xi32>
    %55 = arith.cmpi slt, %50, %54 : vector<2x10x10x72xi32>
    %56 = arith.andi %53, %55 : vector<2x10x10x72xi1>
    %c0_i32_31 = arith.constant 0 : i32
    %57 = vector.broadcast %c0_i32_31 : i32 to vector<2x10x10x72xi32>
    %58 = arith.cmpi sgt, %51, %57 : vector<2x10x10x72xi32>
    %59 = arith.andi %56, %58 : vector<2x10x10x72xi1>
    %c9_i32_32 = arith.constant 9 : i32
    %60 = vector.broadcast %c9_i32_32 : i32 to vector<2x10x10x72xi32>
    %61 = arith.cmpi slt, %51, %60 : vector<2x10x10x72xi32>
    %62 = arith.andi %59, %61 : vector<2x10x10x72xi1>
    %63 = vector.broadcast %45 : vector<1x1x1x72xf32> to vector<2x10x10x72xf32>
    %64 = arith.mulf %0, %63 : vector<2x10x10x72xf32>
    %65 = vector.broadcast %49 : vector<1x1x1x72xf32> to vector<2x10x10x72xf32>
    %66 = arith.addf %64, %65 : vector<2x10x10x72xf32>
    %cst_33 = arith.constant 0.000000e+00 : f32
    %67 = vector.broadcast %cst_33 : f32 to vector<2x10x10x72xf32>
    %68 = arith.maximumf %66, %67 : vector<2x10x10x72xf32>
    %cst_34 = arith.constant 0.000000e+00 : f32
    %69 = vector.broadcast %cst_34 : f32 to vector<2x10x10x72xf32>
    %70 = arith.select %62, %68, %69 : vector<2x10x10x72xi1>, vector<2x10x10x72xf32>
    %71 = vector.broadcast %45 : vector<1x1x1x72xf32> to vector<2x10x10x72xf32>
    %72 = arith.mulf %1, %71 : vector<2x10x10x72xf32>
    %73 = vector.broadcast %49 : vector<1x1x1x72xf32> to vector<2x10x10x72xf32>
    %74 = arith.addf %72, %73 : vector<2x10x10x72xf32>
    %cst_35 = arith.constant 0.000000e+00 : f32
    %75 = vector.broadcast %cst_35 : f32 to vector<2x10x10x72xf32>
    %76 = arith.maximumf %74, %75 : vector<2x10x10x72xf32>
    %cst_36 = arith.constant 0.000000e+00 : f32
    %77 = vector.broadcast %cst_36 : f32 to vector<2x10x10x72xf32>
    %78 = arith.select %62, %76, %77 : vector<2x10x10x72xi1>, vector<2x10x10x72xf32>
    %79 = vector.broadcast %45 : vector<1x1x1x72xf32> to vector<2x10x10x72xf32>
    %80 = arith.mulf %2, %79 : vector<2x10x10x72xf32>
    %81 = vector.broadcast %49 : vector<1x1x1x72xf32> to vector<2x10x10x72xf32>
    %82 = arith.addf %80, %81 : vector<2x10x10x72xf32>
    %cst_37 = arith.constant 0.000000e+00 : f32
    %83 = vector.broadcast %cst_37 : f32 to vector<2x10x10x72xf32>
    %84 = arith.maximumf %82, %83 : vector<2x10x10x72xf32>
    %cst_38 = arith.constant 0.000000e+00 : f32
    %85 = vector.broadcast %cst_38 : f32 to vector<2x10x10x72xf32>
    %86 = arith.select %62, %84, %85 : vector<2x10x10x72xi1>, vector<2x10x10x72xf32>
    %87 = vector.broadcast %45 : vector<1x1x1x72xf32> to vector<2x10x10x72xf32>
    %88 = arith.mulf %3, %87 : vector<2x10x10x72xf32>
    %89 = vector.broadcast %49 : vector<1x1x1x72xf32> to vector<2x10x10x72xf32>
    %90 = arith.addf %88, %89 : vector<2x10x10x72xf32>
    %cst_39 = arith.constant 0.000000e+00 : f32
    %91 = vector.broadcast %cst_39 : f32 to vector<2x10x10x72xf32>
    %92 = arith.maximumf %90, %91 : vector<2x10x10x72xf32>
    %cst_40 = arith.constant 0.000000e+00 : f32
    %93 = vector.broadcast %cst_40 : f32 to vector<2x10x10x72xf32>
    %94 = arith.select %62, %92, %93 : vector<2x10x10x72xi1>, vector<2x10x10x72xf32>
    %c0_41 = arith.constant 0 : index
    %c0_42 = arith.constant 0 : index
    %95 = vector.load %arg4[%c0_41, %c0_42] : memref<25x72xf32, #tpu.memory_space<vmem>>, vector<25x72xf32>
    %cst_43 = arith.constant 0.000000e+00 : f32
    %96 = vector.broadcast %cst_43 : f32 to vector<2x8x8x72xf32>
    %97 = vector.extract_strided_slice %70 {offsets = [0, 0, 0, 0], sizes = [2, 10, 8, 72], strides = [1, 1, 1, 1]} : vector<2x10x10x72xf32> to vector<2x10x8x72xf32>
    %98 = vector.extract_strided_slice %95 {offsets = [0, 0], sizes = [1, 72], strides = [1, 1]} : vector<25x72xf32> to vector<1x72xf32>
    %99 = vector.extract_strided_slice %97 {offsets = [0, 0, 0, 0], sizes = [2, 8, 8, 72], strides = [1, 1, 1, 1]} : vector<2x10x8x72xf32> to vector<2x8x8x72xf32>
    %100 = vector.shape_cast %98 : vector<1x72xf32> to vector<1x1x1x72xf32>
    %101 = vector.broadcast %100 : vector<1x1x1x72xf32> to vector<2x8x8x72xf32>
    %102 = arith.mulf %99, %101 : vector<2x8x8x72xf32>
    %103 = arith.addf %96, %102 : vector<2x8x8x72xf32>
    %104 = vector.extract_strided_slice %95 {offsets = [10, 0], sizes = [1, 72], strides = [1, 1]} : vector<25x72xf32> to vector<1x72xf32>
    %105 = vector.extract_strided_slice %97 {offsets = [0, 1, 0, 0], sizes = [2, 8, 8, 72], strides = [1, 1, 1, 1]} : vector<2x10x8x72xf32> to vector<2x8x8x72xf32>
    %106 = vector.shape_cast %104 : vector<1x72xf32> to vector<1x1x1x72xf32>
    %107 = vector.broadcast %106 : vector<1x1x1x72xf32> to vector<2x8x8x72xf32>
    %108 = arith.mulf %105, %107 : vector<2x8x8x72xf32>
    %109 = arith.addf %103, %108 : vector<2x8x8x72xf32>
    %110 = vector.extract_strided_slice %95 {offsets = [20, 0], sizes = [1, 72], strides = [1, 1]} : vector<25x72xf32> to vector<1x72xf32>
    %111 = vector.extract_strided_slice %97 {offsets = [0, 2, 0, 0], sizes = [2, 8, 8, 72], strides = [1, 1, 1, 1]} : vector<2x10x8x72xf32> to vector<2x8x8x72xf32>
    %112 = vector.shape_cast %110 : vector<1x72xf32> to vector<1x1x1x72xf32>
    %113 = vector.broadcast %112 : vector<1x1x1x72xf32> to vector<2x8x8x72xf32>
    %114 = arith.mulf %111, %113 : vector<2x8x8x72xf32>
    %115 = arith.addf %109, %114 : vector<2x8x8x72xf32>
    %116 = vector.extract_strided_slice %86 {offsets = [0, 0, 0, 0], sizes = [2, 10, 8, 72], strides = [1, 1, 1, 1]} : vector<2x10x10x72xf32> to vector<2x10x8x72xf32>
    %117 = vector.extract_strided_slice %95 {offsets = [5, 0], sizes = [1, 72], strides = [1, 1]} : vector<25x72xf32> to vector<1x72xf32>
    %118 = vector.extract_strided_slice %116 {offsets = [0, 0, 0, 0], sizes = [2, 8, 8, 72], strides = [1, 1, 1, 1]} : vector<2x10x8x72xf32> to vector<2x8x8x72xf32>
    %119 = vector.shape_cast %117 : vector<1x72xf32> to vector<1x1x1x72xf32>
    %120 = vector.broadcast %119 : vector<1x1x1x72xf32> to vector<2x8x8x72xf32>
    %121 = arith.mulf %118, %120 : vector<2x8x8x72xf32>
    %122 = arith.addf %115, %121 : vector<2x8x8x72xf32>
    %123 = vector.extract_strided_slice %95 {offsets = [15, 0], sizes = [1, 72], strides = [1, 1]} : vector<25x72xf32> to vector<1x72xf32>
    %124 = vector.extract_strided_slice %116 {offsets = [0, 1, 0, 0], sizes = [2, 8, 8, 72], strides = [1, 1, 1, 1]} : vector<2x10x8x72xf32> to vector<2x8x8x72xf32>
    %125 = vector.shape_cast %123 : vector<1x72xf32> to vector<1x1x1x72xf32>
    %126 = vector.broadcast %125 : vector<1x1x1x72xf32> to vector<2x8x8x72xf32>
    %127 = arith.mulf %124, %126 : vector<2x8x8x72xf32>
    %128 = arith.addf %122, %127 : vector<2x8x8x72xf32>
    %129 = vector.extract_strided_slice %78 {offsets = [0, 0, 0, 0], sizes = [2, 10, 8, 72], strides = [1, 1, 1, 1]} : vector<2x10x10x72xf32> to vector<2x10x8x72xf32>
    %130 = vector.extract_strided_slice %95 {offsets = [1, 0], sizes = [1, 72], strides = [1, 1]} : vector<25x72xf32> to vector<1x72xf32>
    %131 = vector.extract_strided_slice %129 {offsets = [0, 0, 0, 0], sizes = [2, 8, 8, 72], strides = [1, 1, 1, 1]} : vector<2x10x8x72xf32> to vector<2x8x8x72xf32>
    %132 = vector.shape_cast %130 : vector<1x72xf32> to vector<1x1x1x72xf32>
    %133 = vector.broadcast %132 : vector<1x1x1x72xf32> to vector<2x8x8x72xf32>
    %134 = arith.mulf %131, %133 : vector<2x8x8x72xf32>
    %135 = arith.addf %128, %134 : vector<2x8x8x72xf32>
    %136 = vector.extract_strided_slice %95 {offsets = [11, 0], sizes = [1, 72], strides = [1, 1]} : vector<25x72xf32> to vector<1x72xf32>
    %137 = vector.extract_strided_slice %129 {offsets = [0, 1, 0, 0], sizes = [2, 8, 8, 72], strides = [1, 1, 1, 1]} : vector<2x10x8x72xf32> to vector<2x8x8x72xf32>
    %138 = vector.shape_cast %136 : vector<1x72xf32> to vector<1x1x1x72xf32>
    %139 = vector.broadcast %138 : vector<1x1x1x72xf32> to vector<2x8x8x72xf32>
    %140 = arith.mulf %137, %139 : vector<2x8x8x72xf32>
    %141 = arith.addf %135, %140 : vector<2x8x8x72xf32>
    %142 = vector.extract_strided_slice %95 {offsets = [21, 0], sizes = [1, 72], strides = [1, 1]} : vector<25x72xf32> to vector<1x72xf32>
    %143 = vector.extract_strided_slice %129 {offsets = [0, 2, 0, 0], sizes = [2, 8, 8, 72], strides = [1, 1, 1, 1]} : vector<2x10x8x72xf32> to vector<2x8x8x72xf32>
    %144 = vector.shape_cast %142 : vector<1x72xf32> to vector<1x1x1x72xf32>
    %145 = vector.broadcast %144 : vector<1x1x1x72xf32> to vector<2x8x8x72xf32>
    %146 = arith.mulf %143, %145 : vector<2x8x8x72xf32>
    %147 = arith.addf %141, %146 : vector<2x8x8x72xf32>
    %148 = vector.extract_strided_slice %94 {offsets = [0, 0, 0, 0], sizes = [2, 10, 8, 72], strides = [1, 1, 1, 1]} : vector<2x10x10x72xf32> to vector<2x10x8x72xf32>
    %149 = vector.extract_strided_slice %95 {offsets = [6, 0], sizes = [1, 72], strides = [1, 1]} : vector<25x72xf32> to vector<1x72xf32>
    %150 = vector.extract_strided_slice %148 {offsets = [0, 0, 0, 0], sizes = [2, 8, 8, 72], strides = [1, 1, 1, 1]} : vector<2x10x8x72xf32> to vector<2x8x8x72xf32>
    %151 = vector.shape_cast %149 : vector<1x72xf32> to vector<1x1x1x72xf32>
    %152 = vector.broadcast %151 : vector<1x1x1x72xf32> to vector<2x8x8x72xf32>
    %153 = arith.mulf %150, %152 : vector<2x8x8x72xf32>
    %154 = arith.addf %147, %153 : vector<2x8x8x72xf32>
    %155 = vector.extract_strided_slice %95 {offsets = [16, 0], sizes = [1, 72], strides = [1, 1]} : vector<25x72xf32> to vector<1x72xf32>
    %156 = vector.extract_strided_slice %148 {offsets = [0, 1, 0, 0], sizes = [2, 8, 8, 72], strides = [1, 1, 1, 1]} : vector<2x10x8x72xf32> to vector<2x8x8x72xf32>
    %157 = vector.shape_cast %155 : vector<1x72xf32> to vector<1x1x1x72xf32>
    %158 = vector.broadcast %157 : vector<1x1x1x72xf32> to vector<2x8x8x72xf32>
    %159 = arith.mulf %156, %158 : vector<2x8x8x72xf32>
    %160 = arith.addf %154, %159 : vector<2x8x8x72xf32>
    %161 = vector.extract_strided_slice %70 {offsets = [0, 0, 1, 0], sizes = [2, 10, 8, 72], strides = [1, 1, 1, 1]} : vector<2x10x10x72xf32> to vector<2x10x8x72xf32>
    %162 = vector.extract_strided_slice %95 {offsets = [2, 0], sizes = [1, 72], strides = [1, 1]} : vector<25x72xf32> to vector<1x72xf32>
    %163 = vector.extract_strided_slice %161 {offsets = [0, 0, 0, 0], sizes = [2, 8, 8, 72], strides = [1, 1, 1, 1]} : vector<2x10x8x72xf32> to vector<2x8x8x72xf32>
    %164 = vector.shape_cast %162 : vector<1x72xf32> to vector<1x1x1x72xf32>
    %165 = vector.broadcast %164 : vector<1x1x1x72xf32> to vector<2x8x8x72xf32>
    %166 = arith.mulf %163, %165 : vector<2x8x8x72xf32>
    %167 = arith.addf %160, %166 : vector<2x8x8x72xf32>
    %168 = vector.extract_strided_slice %95 {offsets = [12, 0], sizes = [1, 72], strides = [1, 1]} : vector<25x72xf32> to vector<1x72xf32>
    %169 = vector.extract_strided_slice %161 {offsets = [0, 1, 0, 0], sizes = [2, 8, 8, 72], strides = [1, 1, 1, 1]} : vector<2x10x8x72xf32> to vector<2x8x8x72xf32>
    %170 = vector.shape_cast %168 : vector<1x72xf32> to vector<1x1x1x72xf32>
    %171 = vector.broadcast %170 : vector<1x1x1x72xf32> to vector<2x8x8x72xf32>
    %172 = arith.mulf %169, %171 : vector<2x8x8x72xf32>
    %173 = arith.addf %167, %172 : vector<2x8x8x72xf32>
    %174 = vector.extract_strided_slice %95 {offsets = [22, 0], sizes = [1, 72], strides = [1, 1]} : vector<25x72xf32> to vector<1x72xf32>
    %175 = vector.extract_strided_slice %161 {offsets = [0, 2, 0, 0], sizes = [2, 8, 8, 72], strides = [1, 1, 1, 1]} : vector<2x10x8x72xf32> to vector<2x8x8x72xf32>
    %176 = vector.shape_cast %174 : vector<1x72xf32> to vector<1x1x1x72xf32>
    %177 = vector.broadcast %176 : vector<1x1x1x72xf32> to vector<2x8x8x72xf32>
    %178 = arith.mulf %175, %177 : vector<2x8x8x72xf32>
    %179 = arith.addf %173, %178 : vector<2x8x8x72xf32>
    %180 = vector.extract_strided_slice %86 {offsets = [0, 0, 1, 0], sizes = [2, 10, 8, 72], strides = [1, 1, 1, 1]} : vector<2x10x10x72xf32> to vector<2x10x8x72xf32>
    %181 = vector.extract_strided_slice %95 {offsets = [7, 0], sizes = [1, 72], strides = [1, 1]} : vector<25x72xf32> to vector<1x72xf32>
    %182 = vector.extract_strided_slice %180 {offsets = [0, 0, 0, 0], sizes = [2, 8, 8, 72], strides = [1, 1, 1, 1]} : vector<2x10x8x72xf32> to vector<2x8x8x72xf32>
    %183 = vector.shape_cast %181 : vector<1x72xf32> to vector<1x1x1x72xf32>
    %184 = vector.broadcast %183 : vector<1x1x1x72xf32> to vector<2x8x8x72xf32>
    %185 = arith.mulf %182, %184 : vector<2x8x8x72xf32>
    %186 = arith.addf %179, %185 : vector<2x8x8x72xf32>
    %187 = vector.extract_strided_slice %95 {offsets = [17, 0], sizes = [1, 72], strides = [1, 1]} : vector<25x72xf32> to vector<1x72xf32>
    %188 = vector.extract_strided_slice %180 {offsets = [0, 1, 0, 0], sizes = [2, 8, 8, 72], strides = [1, 1, 1, 1]} : vector<2x10x8x72xf32> to vector<2x8x8x72xf32>
    %189 = vector.shape_cast %187 : vector<1x72xf32> to vector<1x1x1x72xf32>
    %190 = vector.broadcast %189 : vector<1x1x1x72xf32> to vector<2x8x8x72xf32>
    %191 = arith.mulf %188, %190 : vector<2x8x8x72xf32>
    %192 = arith.addf %186, %191 : vector<2x8x8x72xf32>
    %193 = vector.extract_strided_slice %78 {offsets = [0, 0, 1, 0], sizes = [2, 10, 8, 72], strides = [1, 1, 1, 1]} : vector<2x10x10x72xf32> to vector<2x10x8x72xf32>
    %194 = vector.extract_strided_slice %95 {offsets = [3, 0], sizes = [1, 72], strides = [1, 1]} : vector<25x72xf32> to vector<1x72xf32>
    %195 = vector.extract_strided_slice %193 {offsets = [0, 0, 0, 0], sizes = [2, 8, 8, 72], strides = [1, 1, 1, 1]} : vector<2x10x8x72xf32> to vector<2x8x8x72xf32>
    %196 = vector.shape_cast %194 : vector<1x72xf32> to vector<1x1x1x72xf32>
    %197 = vector.broadcast %196 : vector<1x1x1x72xf32> to vector<2x8x8x72xf32>
    %198 = arith.mulf %195, %197 : vector<2x8x8x72xf32>
    %199 = arith.addf %192, %198 : vector<2x8x8x72xf32>
    %200 = vector.extract_strided_slice %95 {offsets = [13, 0], sizes = [1, 72], strides = [1, 1]} : vector<25x72xf32> to vector<1x72xf32>
    %201 = vector.extract_strided_slice %193 {offsets = [0, 1, 0, 0], sizes = [2, 8, 8, 72], strides = [1, 1, 1, 1]} : vector<2x10x8x72xf32> to vector<2x8x8x72xf32>
    %202 = vector.shape_cast %200 : vector<1x72xf32> to vector<1x1x1x72xf32>
    %203 = vector.broadcast %202 : vector<1x1x1x72xf32> to vector<2x8x8x72xf32>
    %204 = arith.mulf %201, %203 : vector<2x8x8x72xf32>
    %205 = arith.addf %199, %204 : vector<2x8x8x72xf32>
    %206 = vector.extract_strided_slice %95 {offsets = [23, 0], sizes = [1, 72], strides = [1, 1]} : vector<25x72xf32> to vector<1x72xf32>
    %207 = vector.extract_strided_slice %193 {offsets = [0, 2, 0, 0], sizes = [2, 8, 8, 72], strides = [1, 1, 1, 1]} : vector<2x10x8x72xf32> to vector<2x8x8x72xf32>
    %208 = vector.shape_cast %206 : vector<1x72xf32> to vector<1x1x1x72xf32>
    %209 = vector.broadcast %208 : vector<1x1x1x72xf32> to vector<2x8x8x72xf32>
    %210 = arith.mulf %207, %209 : vector<2x8x8x72xf32>
    %211 = arith.addf %205, %210 : vector<2x8x8x72xf32>
    %212 = vector.extract_strided_slice %94 {offsets = [0, 0, 1, 0], sizes = [2, 10, 8, 72], strides = [1, 1, 1, 1]} : vector<2x10x10x72xf32> to vector<2x10x8x72xf32>
    %213 = vector.extract_strided_slice %95 {offsets = [8, 0], sizes = [1, 72], strides = [1, 1]} : vector<25x72xf32> to vector<1x72xf32>
    %214 = vector.extract_strided_slice %212 {offsets = [0, 0, 0, 0], sizes = [2, 8, 8, 72], strides = [1, 1, 1, 1]} : vector<2x10x8x72xf32> to vector<2x8x8x72xf32>
    %215 = vector.shape_cast %213 : vector<1x72xf32> to vector<1x1x1x72xf32>
    %216 = vector.broadcast %215 : vector<1x1x1x72xf32> to vector<2x8x8x72xf32>
    %217 = arith.mulf %214, %216 : vector<2x8x8x72xf32>
    %218 = arith.addf %211, %217 : vector<2x8x8x72xf32>
    %219 = vector.extract_strided_slice %95 {offsets = [18, 0], sizes = [1, 72], strides = [1, 1]} : vector<25x72xf32> to vector<1x72xf32>
    %220 = vector.extract_strided_slice %212 {offsets = [0, 1, 0, 0], sizes = [2, 8, 8, 72], strides = [1, 1, 1, 1]} : vector<2x10x8x72xf32> to vector<2x8x8x72xf32>
    %221 = vector.shape_cast %219 : vector<1x72xf32> to vector<1x1x1x72xf32>
    %222 = vector.broadcast %221 : vector<1x1x1x72xf32> to vector<2x8x8x72xf32>
    %223 = arith.mulf %220, %222 : vector<2x8x8x72xf32>
    %224 = arith.addf %218, %223 : vector<2x8x8x72xf32>
    %225 = vector.extract_strided_slice %70 {offsets = [0, 0, 2, 0], sizes = [2, 10, 8, 72], strides = [1, 1, 1, 1]} : vector<2x10x10x72xf32> to vector<2x10x8x72xf32>
    %226 = vector.extract_strided_slice %95 {offsets = [4, 0], sizes = [1, 72], strides = [1, 1]} : vector<25x72xf32> to vector<1x72xf32>
    %227 = vector.extract_strided_slice %225 {offsets = [0, 0, 0, 0], sizes = [2, 8, 8, 72], strides = [1, 1, 1, 1]} : vector<2x10x8x72xf32> to vector<2x8x8x72xf32>
    %228 = vector.shape_cast %226 : vector<1x72xf32> to vector<1x1x1x72xf32>
    %229 = vector.broadcast %228 : vector<1x1x1x72xf32> to vector<2x8x8x72xf32>
    %230 = arith.mulf %227, %229 : vector<2x8x8x72xf32>
    %231 = arith.addf %224, %230 : vector<2x8x8x72xf32>
    %232 = vector.extract_strided_slice %95 {offsets = [14, 0], sizes = [1, 72], strides = [1, 1]} : vector<25x72xf32> to vector<1x72xf32>
    %233 = vector.extract_strided_slice %225 {offsets = [0, 1, 0, 0], sizes = [2, 8, 8, 72], strides = [1, 1, 1, 1]} : vector<2x10x8x72xf32> to vector<2x8x8x72xf32>
    %234 = vector.shape_cast %232 : vector<1x72xf32> to vector<1x1x1x72xf32>
    %235 = vector.broadcast %234 : vector<1x1x1x72xf32> to vector<2x8x8x72xf32>
    %236 = arith.mulf %233, %235 : vector<2x8x8x72xf32>
    %237 = arith.addf %231, %236 : vector<2x8x8x72xf32>
    %238 = vector.extract_strided_slice %95 {offsets = [24, 0], sizes = [1, 72], strides = [1, 1]} : vector<25x72xf32> to vector<1x72xf32>
    %239 = vector.extract_strided_slice %225 {offsets = [0, 2, 0, 0], sizes = [2, 8, 8, 72], strides = [1, 1, 1, 1]} : vector<2x10x8x72xf32> to vector<2x8x8x72xf32>
    %240 = vector.shape_cast %238 : vector<1x72xf32> to vector<1x1x1x72xf32>
    %241 = vector.broadcast %240 : vector<1x1x1x72xf32> to vector<2x8x8x72xf32>
    %242 = arith.mulf %239, %241 : vector<2x8x8x72xf32>
    %243 = arith.addf %237, %242 : vector<2x8x8x72xf32>
    %244 = vector.extract_strided_slice %86 {offsets = [0, 0, 2, 0], sizes = [2, 10, 8, 72], strides = [1, 1, 1, 1]} : vector<2x10x10x72xf32> to vector<2x10x8x72xf32>
    %245 = vector.extract_strided_slice %95 {offsets = [9, 0], sizes = [1, 72], strides = [1, 1]} : vector<25x72xf32> to vector<1x72xf32>
    %246 = vector.extract_strided_slice %244 {offsets = [0, 0, 0, 0], sizes = [2, 8, 8, 72], strides = [1, 1, 1, 1]} : vector<2x10x8x72xf32> to vector<2x8x8x72xf32>
    %247 = vector.shape_cast %245 : vector<1x72xf32> to vector<1x1x1x72xf32>
    %248 = vector.broadcast %247 : vector<1x1x1x72xf32> to vector<2x8x8x72xf32>
    %249 = arith.mulf %246, %248 : vector<2x8x8x72xf32>
    %250 = arith.addf %243, %249 : vector<2x8x8x72xf32>
    %251 = vector.extract_strided_slice %95 {offsets = [19, 0], sizes = [1, 72], strides = [1, 1]} : vector<25x72xf32> to vector<1x72xf32>
    %252 = vector.extract_strided_slice %244 {offsets = [0, 1, 0, 0], sizes = [2, 8, 8, 72], strides = [1, 1, 1, 1]} : vector<2x10x8x72xf32> to vector<2x8x8x72xf32>
    %253 = vector.shape_cast %251 : vector<1x72xf32> to vector<1x1x1x72xf32>
    %254 = vector.broadcast %253 : vector<1x1x1x72xf32> to vector<2x8x8x72xf32>
    %255 = arith.mulf %252, %254 : vector<2x8x8x72xf32>
    %256 = arith.addf %250, %255 : vector<2x8x8x72xf32>
    %cst_44 = arith.constant dense<0.000000e+00> : vector<72xf32>
    %257 = vector.multi_reduction <add>, %256, %cst_44 [0, 1, 2] : vector<2x8x8x72xf32> to vector<72xf32>
    %258 = vector.shape_cast %257 : vector<72xf32> to vector<1x1x1x72xf32>
    %259 = arith.mulf %256, %256 : vector<2x8x8x72xf32>
    %cst_45 = arith.constant dense<0.000000e+00> : vector<72xf32>
    %260 = vector.multi_reduction <add>, %259, %cst_45 [0, 1, 2] : vector<2x8x8x72xf32> to vector<72xf32>
    %261 = vector.shape_cast %260 : vector<72xf32> to vector<1x1x1x72xf32>
    %cst_46 = arith.constant 7.812500e-03 : f32
    %262 = vector.broadcast %cst_46 : f32 to vector<1x1x1x72xf32>
    %263 = arith.mulf %258, %262 : vector<1x1x1x72xf32>
    %cst_47 = arith.constant 7.812500e-03 : f32
    %264 = vector.broadcast %cst_47 : f32 to vector<1x1x1x72xf32>
    %265 = arith.mulf %261, %264 : vector<1x1x1x72xf32>
    %266 = arith.mulf %263, %263 : vector<1x1x1x72xf32>
    %267 = arith.subf %265, %266 : vector<1x1x1x72xf32>
    %c0_48 = arith.constant 0 : index
    %c0_49 = arith.constant 0 : index
    %268 = vector.load %arg8[%c0_48, %c0_49] : memref<1x72xf32, #tpu.memory_space<vmem>>, vector<1x72xf32>
    %cst_50 = arith.constant 9.99999974E-6 : f32
    %269 = vector.broadcast %cst_50 : f32 to vector<1x1x1x72xf32>
    %270 = arith.addf %267, %269 : vector<1x1x1x72xf32>
    %271 = math.rsqrt %270 : vector<1x1x1x72xf32>
    %272 = vector.shape_cast %268 : vector<1x72xf32> to vector<1x1x1x72xf32>
    %273 = arith.mulf %272, %271 : vector<1x1x1x72xf32>
    %c0_51 = arith.constant 0 : index
    %c0_52 = arith.constant 0 : index
    %274 = vector.load %arg9[%c0_51, %c0_52] : memref<1x72xf32, #tpu.memory_space<vmem>>, vector<1x72xf32>
    %275 = arith.mulf %263, %273 : vector<1x1x1x72xf32>
    %276 = vector.shape_cast %274 : vector<1x72xf32> to vector<1x1x1x72xf32>
    %277 = arith.subf %276, %275 : vector<1x1x1x72xf32>
    %278 = vector.broadcast %273 : vector<1x1x1x72xf32> to vector<2x8x8x72xf32>
    %279 = arith.mulf %256, %278 : vector<2x8x8x72xf32>
    %280 = vector.broadcast %277 : vector<1x1x1x72xf32> to vector<2x8x8x72xf32>
    %281 = arith.addf %279, %280 : vector<2x8x8x72xf32>
    %cst_53 = arith.constant 0.000000e+00 : f32
    %282 = vector.broadcast %cst_53 : f32 to vector<2x8x8x72xf32>
    %283 = arith.maximumf %281, %282 : vector<2x8x8x72xf32>
    %284 = vector.shape_cast %283 : vector<2x8x8x72xf32> to vector<128x72xf32>
    %c0_54 = arith.constant 0 : index
    %c0_55 = arith.constant 0 : index
    %285 = vector.load %arg5[%c0_54, %c0_55] : memref<72x32xf32, #tpu.memory_space<vmem>>, vector<72x32xf32>
    %cst_56 = arith.constant dense<0.000000e+00> : vector<128x32xf32>
    %286 = tpu.matmul %284, %285, %cst_56 {dimension_numbers = #tpu.dot_dimension_numbers<[1], [0], [0], [1], [0, 0, 1, 1], [], []>} : vector<128x72xf32>, vector<72x32xf32>, vector<128x32xf32> -> vector<128x32xf32>
    %cst_57 = arith.constant dense<0.000000e+00> : vector<32xf32>
    %287 = vector.multi_reduction <add>, %286, %cst_57 [0] : vector<128x32xf32> to vector<32xf32>
    %288 = vector.shape_cast %287 : vector<32xf32> to vector<1x32xf32>
    %289 = arith.mulf %286, %286 : vector<128x32xf32>
    %cst_58 = arith.constant dense<0.000000e+00> : vector<32xf32>
    %290 = vector.multi_reduction <add>, %289, %cst_58 [0] : vector<128x32xf32> to vector<32xf32>
    %291 = vector.shape_cast %290 : vector<32xf32> to vector<1x32xf32>
    %cst_59 = arith.constant 7.812500e-03 : f32
    %292 = vector.broadcast %cst_59 : f32 to vector<1x32xf32>
    %293 = arith.mulf %288, %292 : vector<1x32xf32>
    %cst_60 = arith.constant 7.812500e-03 : f32
    %294 = vector.broadcast %cst_60 : f32 to vector<1x32xf32>
    %295 = arith.mulf %291, %294 : vector<1x32xf32>
    %296 = arith.mulf %293, %293 : vector<1x32xf32>
    %297 = arith.subf %295, %296 : vector<1x32xf32>
    %c0_61 = arith.constant 0 : index
    %c0_62 = arith.constant 0 : index
    %298 = vector.load %arg10[%c0_61, %c0_62] : memref<1x32xf32, #tpu.memory_space<vmem>>, vector<1x32xf32>
    %cst_63 = arith.constant 9.99999974E-6 : f32
    %299 = vector.broadcast %cst_63 : f32 to vector<1x32xf32>
    %300 = arith.addf %297, %299 : vector<1x32xf32>
    %301 = math.rsqrt %300 : vector<1x32xf32>
    %302 = arith.mulf %298, %301 : vector<1x32xf32>
    %c0_64 = arith.constant 0 : index
    %c0_65 = arith.constant 0 : index
    %303 = vector.load %arg11[%c0_64, %c0_65] : memref<1x32xf32, #tpu.memory_space<vmem>>, vector<1x32xf32>
    %304 = arith.mulf %293, %302 : vector<1x32xf32>
    %305 = arith.subf %303, %304 : vector<1x32xf32>
    %306 = vector.broadcast %302 : vector<1x32xf32> to vector<128x32xf32>
    %307 = arith.mulf %286, %306 : vector<128x32xf32>
    %308 = vector.broadcast %305 : vector<1x32xf32> to vector<128x32xf32>
    %309 = arith.addf %307, %308 : vector<128x32xf32>
    %c0_66 = arith.constant 0 : index
    %c0_67 = arith.constant 0 : index
    %310 = vector.load %arg12[%c0_66, %c0_67] : memref<128x32xf32, #tpu.memory_space<vmem>>, vector<128x32xf32>
    tpu.vector_store %arg12[%c0_66, %c0_67], %309 {strides = array<i32>} : memref<128x32xf32, #tpu.memory_space<vmem>>, vector<128x32xf32>,
    return
  }
}

</mosaic_0001>

<bundles_post_ra>
// kernel: mnasnet_block.1
= control target key start
LH: loop header
LB: loop body
LE: loop exit
PB: predicated region body
PF: predicated region fallthrough
CT: control target
= control target key end

     0   :  { %17 = vsyncpa [#allocation3], 0  ;;  %vm202_vm0 = vcmask 588800   ;;  %vm204_vm1 = vcmask 582656   ;;  %vm2130_vm4 = vcmask 1046528   ;;  %vm3611_vm5 = vcmask 1045504   ;;  %s11156_s0 = inlined_call_operand.vmem [shape: f32[2,10,10,72], index: 0, kind: input, shape index: {}]   ;;  %s11157_s1 = inlined_call_operand.vmem [shape: f32[2,10,10,72], index: 1, kind: input, shape index: {}]   ;;  %s11158_s2 = inlined_call_operand.vmem [shape: f32[2,10,10,72], index: 2, kind: input, shape index: {}]   ;;  %s11159_s3 = inlined_call_operand.vmem [shape: f32[2,10,10,72], index: 3, kind: input, shape index: {}]   ;;  %s11160_s4 = inlined_call_operand.vmem [shape: f32[25,72], index: 4, kind: input, shape index: {}]   ;;  %s11161_s5 = inlined_call_operand.vmem [shape: f32[72,32], index: 5, kind: input, shape index: {}]   ;;  %s11162_s6 = inlined_call_operand.vmem [shape: f32[1,72], index: 6, kind: input, shape index: {}]   ;;  %s11163_s7 = inlined_call_operand.vmem [shape: f32[1,72], index: 7, kind: input, shape index: {}]   ;;  %s11164_s8 = inlined_call_operand.vmem [shape: f32[1,72], index: 8, kind: input, shape index: {}]   ;;  %s11165_s9 = inlined_call_operand.vmem [shape: f32[1,72], index: 9, kind: input, shape index: {}]   ;;  %s11166_s10 = inlined_call_operand.vmem [shape: f32[1,32], index: 10, kind: input, shape index: {}]   ;;  %s11167_s11 = inlined_call_operand.vmem [shape: f32[1,32], index: 11, kind: input, shape index: {}]   ;;  %s11168_s12 = inlined_call_operand.hbm [shape: f32[128,32], index: 12, kind: output, shape index: {}]  }
   0x1   :  { %v42_v0 = vld [vmem:[%s11156_s0] sm:$0xff]  ;;  %v43_v1 = vld [vmem:[%s11156_s0 + $0x8] sm:$0x3]  ;;  %v44_v2 = vld [vmem:[%s11156_s0 + $0x10] sm:$0xff]  ;;  %vm4647_vm6 = vcmask 261120  }
   0x2   :  { %v45_v3 = vld [vmem:[%s11156_s0 + $0x18] sm:$0x3]  ;;  %v203_v4 = vsel %vm202_vm0, %v42_v0, 0.0  ;;  %v205_v5 = vsel %vm204_vm1, %v43_v1, 0.0  ;;  %v46_v6 = vld [vmem:[%s11156_s0 + $0x20] sm:$0xff]  ;;  %v207_v8 = vsel %vm202_vm0, %v44_v2, 0.0  ;;  %v290_v41 = vmul.f32 %v42_v0, %v42_v0 }
   0x3   :  { %v206_v7 = vadd.f32 %v205_v5, %v203_v4  ;;  %v209_v9 = vsel %vm204_vm1, %v45_v3, 0.0  ;;  %v47_v10 = vld [vmem:[%s11156_s0 + $0x28] sm:$0x3]  ;;  %v211_v12 = vsel %vm202_vm0, %v46_v6, 0.0  ;;  %v48_v13 = vld [vmem:[%s11156_s0 + $0x30] sm:$0xff]  ;;  %v5203_v19 = vld [vmem:[%s11156_s0 + $0x40] sm:$0xff]  ;;  %v291_v42 = vmul.f32 %v43_v1, %v43_v1 }
   0x4   :  { %v213_v15 = vsel %vm204_vm1, %v47_v10, 0.0  ;;  %v49_v16 = vld [vmem:[%s11156_s0 + $0x38] sm:$0x3]  ;;  %v215_v18 = vsel %vm202_vm0, %v48_v13, 0.0  ;;  %v5209_v22 = vld [vmem:[%s11156_s0 + $0x48] sm:$0x3]  ;;  %v292_v46 = vmul.f32 %v44_v2, %v44_v2  ;;  %v293_v53 = vmul.f32 %v45_v3, %v45_v3 }
   0x5   :  { %v208_v11 = vadd.f32 %v207_v8, %v206_v7  ;;  %v217_v21 = vsel %vm204_vm1, %v49_v16, 0.0  ;;  %v219_v24 = vsel %vm202_vm0, %v5203_v19, 0.0  ;;  %v52_v25 = vld [vmem:[%s11156_s0 + $0x50] sm:$0xff]  ;;  %v221_v27 = vsel %vm204_vm1, %v5209_v22, 0.0  ;;  %v53_v29 = vld [vmem:[%s11156_s0 + $0x58] sm:$0x3] }
   0x6   :  { %v223_v30 = vsel %vm202_vm0, %v52_v25, 0.0  ;;  %v225_v33 = vsel %vm204_vm1, %v53_v29, 0.0  ;;  %v54_v34 = vld [vmem:[%s11156_s0 + $0x60] sm:$0xff]  ;;  %v55_v37 = vld [vmem:[%s11156_s0 + $0x68] sm:$0x3]  ;;  %v56_v40 = vld [vmem:[%s11156_s0 + $0x70] sm:$0xff]  ;;  %v294_v59 = vmul.f32 %v46_v6, %v46_v6  ;;  %v295_v1 = vmul.f32 %v47_v10, %v47_v10 }
   0x7   :  { %v210_v14 = vadd.f32 %v209_v9, %v208_v11  ;;  %v227_v36 = vsel %vm202_vm0, %v54_v34, 0.0  ;;  %v229_v39 = vsel %vm204_vm1, %v55_v37, 0.0  ;;  %v231_v44 = vsel %vm202_vm0, %v56_v40, 0.0  ;;  %v57_v45 = vld [vmem:[%s11156_s0 + $0x78] sm:$0x3]  ;;  %v58_v52 = vld [vmem:[%s11156_s0 + $0x80] sm:$0xff] }
   0x8   :  { %v330_v47 = vsel %vm202_vm0, %v290_v41, 0.0  ;;  %v331_v48 = vsel %vm204_vm1, %v291_v42, 0.0  ;;  %v233_v50 = vsel %vm204_vm1, %v57_v45, 0.0  ;;  %v333_v54 = vsel %vm202_vm0, %v292_v46, 0.0  ;;  %v59_v58 = vld [vmem:[%s11156_s0 + $0x88] sm:$0x3] }
   0x9   :  { %v212_v17 = vadd.f32 %v211_v12, %v210_v14  ;;  %v332_v51 = vadd.f32 %v331_v48, %v330_v47  ;;  %v235_v56 = vsel %vm202_vm0, %v58_v52, 0.0  ;;  %v335_v60 = vsel %vm204_vm1, %v293_v53, 0.0  ;;  %v60_v0 = vld [vmem:[%s11156_s0 + $0x90] sm:$0xff]  ;;  %v61_v6 = vld [vmem:[%s11156_s0 + $0x98] sm:$0x3]  ;;  %v62_v10 = vld [vmem:[%s11156_s0 + $0xa0] sm:$0xff] }
   0xa   :  { %v237_v62 = vsel %vm204_vm1, %v59_v58, 0.0  ;;  %v337_v2 = vsel %vm202_vm0, %v294_v59, 0.0  ;;  %v239_v4 = vsel %vm202_vm0, %v60_v0, 0.0  ;;  %v296_v7 = vmul.f32 %v48_v13, %v48_v13  ;;  %v63_v13 = vld [vmem:[%s11156_s0 + $0xa8] sm:$0x3]  ;;  %v72_v47 = vld [vmem:[%s11156_s0 + $0xf0] sm:$0xff] }
   0xb   :  { %v214_v20 = vadd.f32 %v213_v15, %v212_v17  ;;  %v334_v57 = vadd.f32 %v333_v54, %v332_v51  ;;  %v339_v8 = vsel %vm204_vm1, %v295_v1, 0.0  ;;  %v241_v11 = vsel %vm204_vm1, %v61_v6, 0.0  ;;  %v71_v46 = vld [vmem:[%s11156_s0 + $0xe8] sm:$0x3]  ;;  %v74_v53 = vld [vmem:[%s11156_s0 + $0x100] sm:$0xff]  ;;  %v84_v1 = vld [vmem:[%s11157_s1 + $0x10] sm:$0xff] }
   0xc   :  { %v297_v14 = vmul.f32 %v49_v16, %v49_v16  ;;  %v341_v15 = vsel %vm202_vm0, %v296_v7, 0.0  ;;  %v5276_v16 = vmul.f32 %v53_v29, %v53_v29  ;;  %v5293_v29 = vmul.f32 %v57_v45, %v57_v45  ;;  %v70_v45 = vld [vmem:[%s11156_s0 + $0xe0] sm:$0xff] }
   0xd   :  { %v216_v23 = vadd.f32 %v215_v18, %v214_v20  ;;  %v336_v63 = vadd.f32 %v335_v60, %v334_v57  ;;  %v243_v18 = vsel %vm202_vm0, %v62_v10, 0.0  ;;  %v5317_v41 = vmul.f32 %v60_v0, %v60_v0  ;;  %v5366_v0 = vld [vmem:[%s11156_s0 + $0x118] sm:$0x3] }
   0xe   :  { %v5319_v42 = vmul.f32 %v61_v6, %v61_v6  ;;  %v5333_v48 = vmul.f32 %v63_v13, %v63_v13  ;;  %v5381_v6 = vld [vmem:[%s11156_s0 + $0x120] sm:$0xff] }
   0xf   :  { %v218_v26 = vadd.f32 %v217_v21, %v216_v23  ;;  %v338_v5 = vadd.f32 %v337_v2, %v336_v63  ;;  %v298_v21 = vmul.f32 %v5203_v19, %v5203_v19  ;;  %v343_v23 = vsel %vm204_vm1, %v297_v14, 0.0  ;;  %v66_v19 = vld [vmem:[%s11156_s0 + $0xc0] sm:$0xff]  ;;  %v76_v63 = vld [vmem:[%s11156_s0 + $0x110] sm:$0xff]  ;;  %v5400_v14 = vld [vmem:[%s11156_s0 + $0x138] sm:$0x3] }
  0x10   :  { %v5339_v51 = vmul.f32 %v66_v19, %v66_v19  ;;  %v5371_v2 = vmul.f32 %v70_v45, %v70_v45 }
  0x11   :  { %v220_v28 = vadd.f32 %v219_v24, %v218_v26  ;;  %v340_v12 = vadd.f32 %v339_v8, %v338_v5  ;;  %v299_v24 = vmul.f32 %v5209_v22, %v5209_v22  ;;  %v5274_v26 = vmul.f32 %v52_v25, %v52_v25 }
  0x12   :  { %v5289_v22 = vmul.f32 %v55_v37, %v55_v37  ;;  %v5291_v25 = vmul.f32 %v56_v40, %v56_v40  ;;  %v5307_v37 = vmul.f32 %v59_v58, %v59_v58  ;;  %v5315_v40 = vld [vmem:[%s11157_s1 + $0x8] sm:$0x3]  ;;  %v251_v8 = vsel %vm202_vm0, %v66_v19, 0.0 }
  0x13   :  { %v222_v31 = vadd.f32 %v221_v27, %v220_v28  ;;  %v342_v20 = vadd.f32 %v341_v15, %v340_v12  ;;  %v5278_v27 = vmul.f32 %v54_v34, %v54_v34  ;;  %v64_v28 = vld [vmem:[%s11156_s0 + $0xb0] sm:$0xff]  ;;  %v69_v34 = vld [vmem:[%s11156_s0 + $0xd8] sm:$0x3]  ;;  %v75_v58 = vld [vmem:[%s11156_s0 + $0x108] sm:$0x3]  ;;  %v347_v5 = vsel %vm204_vm1, %v299_v24, 0.0 }
  0x14   :  { %v5351_v57 = vmul.f32 %v69_v34, %v69_v34  ;;  %v247_v59 = vsel %vm202_vm0, %v64_v28, 0.0  ;;  %v79_v12 = vld [vmem:[%s11156_s0 + $0x128] sm:$0x3]  ;;  %v419_v24 = vsel %vm202_vm0, %v84_v1, 0.0  ;;  %v5419_v19 = vsel %vm204_vm1, %v69_v34, 0.0  ;;  %v86_v34 = vld [vmem:[%s11157_s1 + $0x20] sm:$0xff] }
  0x15   :  { %v224_v32 = vadd.f32 %v223_v30, %v222_v31  ;;  %v65_v30 = vld [vmem:[%s11156_s0 + $0xb8] sm:$0x3] }
  0x16   :  { %v249_v7 = vsel %vm204_vm1, %v65_v30, 0.0 }
  0x17   :  { %v226_v35 = vadd.f32 %v225_v33, %v224_v32  ;;  %v67_v32 = vld [vmem:[%s11156_s0 + $0xc8] sm:$0x3]  ;;  %v68_v33 = vld [vmem:[%s11156_s0 + $0xd0] sm:$0xff] }
  0x19   :  { %v228_v38 = vadd.f32 %v227_v36, %v226_v35  ;;  %v245_v35 = vsel %vm204_vm1, %v63_v13, 0.0  ;;  %v5305_v36 = vmul.f32 %v58_v52, %v58_v52  ;;  %v73_v52 = vld [vmem:[%s11156_s0 + $0xf8] sm:$0x3]  ;;  %v5405_v13 = vmul.f32 %v76_v63, %v76_v63 }
  0x1b   :  { %v230_v43 = vadd.f32 %v229_v39, %v228_v38  ;;  %v344_v38 = vadd.f32 %v343_v23, %v342_v20  ;;  %v82_v39 = vld [vmem:[%s11157_s1] sm:$0xff]  ;;  %11412 = vst [vmem:[#allocation7_spill] sm:$0xff] %v5405_v13 }
  0x1d   :  { %v232_v49 = vadd.f32 %v231_v44, %v230_v43  ;;  %v5321_v43 = vmul.f32 %v62_v10, %v62_v10  ;;  %v345_v44 = vsel %vm202_vm0, %v298_v21, 0.0  ;;  %v5395_v10 = vld [vmem:[%s11156_s0 + $0x130] sm:$0xff]  ;;  %v5409_v21 = vmul.f32 %v5366_v0, %v5366_v0 }
  0x1e   :  { %v346_v60 = vadd.f32 %v345_v44, %v344_v38  ;;  %v5430_v38 = vmul.f32 %v79_v12, %v79_v12  ;;  %v5434_v44 = vmul.f32 %v5395_v10, %v5395_v10 }
  0x1f   :  { %v234_v55 = vadd.f32 %v233_v50, %v232_v49  ;;  %v5335_v49 = vmul.f32 %v64_v28, %v64_v28  ;;  %v5337_v50 = vmul.f32 %v65_v30, %v65_v30  ;;  %11413 = vst [vmem:[#allocation8_spill] sm:$0xff] %v5409_v21  ;;  %v85_v28 = vld [vmem:[%s11157_s1 + $0x18] sm:$0x3]  ;;  %v5416_v30 = vsel %vm202_vm0, %v68_v33, 0.0 }
  0x20   :  { %v348_v23 = vadd.f32 %v347_v5, %v346_v60  ;;  %11415 = vst [vmem:[#allocation10_spill] sm:$0xff] %v5430_v38  ;;  %11416 = vst [vmem:[#allocation11_spill] sm:$0xff] %v5434_v44  ;;  %v502_v60 = vmul.f32 %v82_v39, %v82_v39  ;;  %v503_v44 = vmul.f32 %v5315_v40, %v5315_v40  ;;  %v5507_v38 = vld [vmem:[%s11157_s1 + $0x58] sm:$0x3] }
  0x21   :  { %v236_v61 = vadd.f32 %v235_v56, %v234_v55  ;;  %v5347_v55 = vmul.f32 %v67_v32, %v67_v32  ;;  %v5349_v56 = vmul.f32 %v68_v33, %v68_v33  ;;  %v5438_v33 = vmul.f32 %v5400_v14, %v5400_v14 }
  0x23   :  { %v238_v3 = vadd.f32 %v237_v62, %v236_v61  ;;  %v416_v61 = vsel %vm202_vm0, %v82_v39, 0.0  ;;  %v417_v62 = vsel %vm204_vm1, %v5315_v40, 0.0  ;;  %11417 = vst [vmem:[#allocation12_spill] sm:$0xff] %v5438_v33  ;;  %v421_v33 = vsel %vm204_vm1, %v85_v28, 0.0  ;;  %v5468_v39 = vld [vmem:[%s11157_s1 + $0x40] sm:$0xff] }
  0x24   :  { %v418_v20 = vadd.f32 %v417_v62, %v416_v61  ;;  %v5452_v61 = vld [vmem:[%s11157_s1 + $0x30] sm:$0xff]  ;;  %v5455_v62 = vsel %vm202_vm0, %v72_v47, 0.0  ;;  %v5478_v40 = vsel %vm202_vm0, %v74_v53, 0.0 }
  0x25   :  { %v240_v9 = vadd.f32 %v239_v4, %v238_v3  ;;  %v5373_v3 = vmul.f32 %v71_v46, %v71_v46  ;;  %v5375_v4 = vmul.f32 %v72_v47, %v72_v47  ;;  %v351_v47 = vsel %vm204_vm1, %v5276_v16, 0.0  ;;  %v5495_v16 = vld [vmem:[%s11157_s1 + $0x50] sm:$0xff] }
  0x27   :  { %v242_v17 = vadd.f32 %v241_v11, %v240_v9  ;;  %v5385_v9 = vmul.f32 %v73_v52, %v73_v52  ;;  %v5387_v11 = vmul.f32 %v74_v53, %v74_v53  ;;  %v5498_v53 = vsel %vm202_vm0, %v76_v63, 0.0 }
  0x28   :  { %11419 = vst [vmem:[#allocation14_spill] sm:$0xff] %v5498_v53  ;;  %v542_v53 = vsel %vm202_vm0, %v502_v60, 0.0  ;;  %v5554_v60 = vmul.f32 %v5495_v16, %v5495_v16 }
  0x29   :  { %v244_v31 = vadd.f32 %v243_v18, %v242_v17  ;;  %11410 = vst [vmem:[#allocation5_spill] sm:$0xff] %v5387_v11  ;;  %v253_v17 = vsel %vm204_vm1, %v67_v32, 0.0  ;;  %v5403_v18 = vmul.f32 %v75_v58, %v75_v58  ;;  %v349_v32 = vsel %vm202_vm0, %v5274_v26, 0.0  ;;  %v87_v26 = vld [vmem:[%s11157_s1 + $0x28] sm:$0x3] }
  0x2a   :  { %v350_v5 = vadd.f32 %v349_v32, %v348_v23  ;;  %v5481_v23 = vsel %vm204_vm1, %v75_v58, 0.0  ;;  %v5485_v32 = vmul.f32 %v87_v26, %v87_v26  ;;  %11423 = vst [vmem:[#allocation18_spill] sm:$0xff] %v5554_v60  ;;  %v5573_v60 = vmul.f32 %v5507_v38, %v5507_v38 }
  0x2b   :  { %v246_v54 = vadd.f32 %v245_v35, %v244_v31  ;;  %11411 = vst [vmem:[#allocation6_spill] sm:$0xff] %v5403_v18  ;;  %v5423_v31 = vmul.f32 %v5381_v6, %v5381_v6  ;;  %v5428_v35 = vsel %vm202_vm0, %v70_v45, 0.0  ;;  %11418 = vst [vmem:[#allocation13_spill] sm:$0xff] %v5481_v23  ;;  %v5582_v23 = vld [vmem:[%s11157_s1 + $0x90] sm:$0xff]  ;;  %v5587_v18 = vld [vmem:[%s11157_s1 + $0x98] sm:$0x3] }
  0x2c   :  { %v352_v21 = vadd.f32 %v351_v47, %v350_v5  ;;  %v543_v5 = vsel %vm204_vm1, %v503_v44, 0.0  ;;  %v5539_v47 = vld [vmem:[%s11157_s1 + $0x70] sm:$0xff]  ;;  %11426 = vst [vmem:[#allocation21_spill] sm:$0xff] %v5573_v60  ;;  %11428 = vst [vmem:[#allocation23_spill] sm:$0xff] %v5587_v18  ;;  %v5601_v60 = vsel %vm204_vm1, %v5400_v14, 0.0  ;;  %v355_v11 = vsel %vm204_vm1, %v5289_v22, 0.0 }
  0x2d   :  { %v248_v15 = vadd.f32 %v247_v59, %v246_v54  ;;  %11414 = vst [vmem:[#allocation9_spill] sm:$0xff] %v5423_v31  ;;  %v5447_v54 = vsel %vm204_vm1, %v71_v46, 0.0  ;;  %v420_v59 = vadd.f32 %v419_v24, %v418_v20  ;;  %v5463_v46 = vld [vmem:[%s11157_s1 + $0x38] sm:$0x3]  ;;  %v5475_v20 = vmul.f32 %v85_v28, %v85_v28  ;;  %v5512_v31 = vld [vmem:[%s11157_s1 + $0x60] sm:$0xff]  ;;  %11430 = vst [vmem:[#allocation25_spill] sm:$0xff] %v5601_v60 }
  0x2e   :  { %v5483_v24 = vmul.f32 %v86_v34, %v86_v34  ;;  %v5502_v28 = vmul.f32 %v5452_v61, %v5452_v61  ;;  %v5517_v63 = vmul.f32 %v5463_v46, %v5463_v46  ;;  %v5577_v13 = vmul.f32 %v5512_v31, %v5512_v31  ;;  %v5623_v22 = vld [vmem:[%s11157_s1 + $0xb8] sm:$0x3]  ;;  %v5644_v60 = vld [vmem:[%s11157_s1 + $0xc0] sm:$0xff] }
  0x2f   :  { %v250_v45 = vadd.f32 %v249_v7, %v248_v15  ;;  %v5471_v7 = vsel %vm204_vm1, %v73_v52, 0.0  ;;  %v504_v15 = vmul.f32 %v84_v1, %v84_v1  ;;  %v5490_v52 = vld [vmem:[%s11157_s1 + $0x48] sm:$0x3]  ;;  %v422_v58 = vadd.f32 %v421_v33, %v420_v59  ;;  %11432 = vst [vmem:[#allocation27_spill] sm:$0xff] %v5623_v22  ;;  %11437 = vst [vmem:[#allocation32_spill] sm:$0xff] %v5644_v60 }
  0x30   :  { %v5521_v33 = vmul.f32 %v5468_v39, %v5468_v39  ;;  %v353_v59 = vsel %vm202_vm0, %v5278_v27, 0.0  ;;  %v5546_v27 = vsel %vm204_vm1, %v79_v12, 0.0  ;;  %v5550_v44 = vmul.f32 %v5490_v52, %v5490_v52  ;;  %v5569_v12 = vld [vmem:[%s11157_s1 + $0x88] sm:$0x3]  ;;  %11427 = vst [vmem:[#allocation22_spill] sm:$0xff] %v5577_v13  ;;  %v5597_v13 = vld [vmem:[%s11157_s1 + $0xa0] sm:$0xff] }
  0x31   :  { %v252_v1 = vadd.f32 %v251_v8, %v250_v45  ;;  %v423_v8 = vsel %vm202_vm0, %v86_v34, 0.0  ;;  %v5525_v45 = vsel %vm204_vm1, %v5366_v0, 0.0  ;;  %v5534_v34 = vld [vmem:[%s11157_s1 + $0x68] sm:$0x3]  ;;  %v5543_v0 = vsel %vm202_vm0, %v5381_v6, 0.0  ;;  %11422 = vst [vmem:[#allocation17_spill] sm:$0xff] %v5546_v27 }
  0x32   :  { %11420 = vst [vmem:[#allocation15_spill] sm:$0xff] %v5525_v45  ;;  %11421 = vst [vmem:[#allocation16_spill] sm:$0xff] %v5543_v0  ;;  %v5559_v45 = vld [vmem:[%s11157_s1 + $0x78] sm:$0x3]  ;;  %v5564_v6 = vld [vmem:[%s11157_s1 + $0x80] sm:$0xff]  ;;  %v424_v0 = vadd.f32 %v423_v8, %v422_v58  ;;  %v425_v58 = vsel %vm204_vm1, %v87_v26, 0.0  ;;  %v544_v8 = vadd.f32 %v543_v5, %v542_v53  ;;  %v5627_v14 = vmul.f32 %v5539_v47, %v5539_v47 }
  0x33   :  { %11424 = vst [vmem:[#allocation19_spill] sm:$0xff] %v5564_v6  ;;  %11425 = vst [vmem:[#allocation20_spill] sm:$0xff] %v5569_v12  ;;  %v254_v27 = vadd.f32 %v253_v17, %v252_v1  ;;  %v5591_v17 = vsel %vm202_vm0, %v5395_v10, 0.0  ;;  %v354_v1 = vadd.f32 %v353_v59, %v352_v21  ;;  %v5607_v10 = vmul.f32 %v5534_v34, %v5534_v34  ;;  %v5613_v26 = vld [vmem:[%s11157_s1 + $0xa8] sm:$0x3]  ;;  %v5618_v53 = vld [vmem:[%s11157_s1 + $0xb0] sm:$0xff] }
  0x34   :  { %11429 = vst [vmem:[#allocation24_spill] sm:$0xff] %v5591_v17  ;;  %v545_v21 = vsel %vm202_vm0, %v504_v15, 0.0  ;;  %11433 = vst [vmem:[#allocation28_spill] sm:$0xff] %v5627_v14  ;;  %v5631_v15 = vmul.f32 %v5559_v45, %v5559_v45  ;;  %v5635_v59 = vmul.f32 %v5564_v6, %v5564_v6  ;;  %v5639_v5 = vmul.f32 %v5569_v12, %v5569_v12  ;;  %v5649_v17 = vld [vmem:[%s11157_s1 + $0xc8] sm:$0x3]  ;;  %v5673_v6 = vld [vmem:[%s11157_s1 + $0xe0] sm:$0xff] }
  0x35   :  { %11431 = vst [vmem:[#allocation26_spill] sm:$0xff] %v5607_v10  ;;  %11438 = vst [vmem:[#allocation33_spill] sm:$0xff] %v5649_v17  ;;  %v426_v14 = vadd.f32 %v425_v58, %v424_v0  ;;  %v5663_v10 = vmul.f32 %v5587_v18, %v5587_v18  ;;  %v5668_v12 = vld [vmem:[%s11157_s1 + $0xd8] sm:$0x3]  ;;  %v427_v0 = vsel %vm202_vm0, %v5452_v61, 0.0  ;;  %v546_v58 = vadd.f32 %v545_v21, %v544_v8  ;;  %v5696_v61 = vld [vmem:[%s11158_s2] sm:$0xff] }
  0x36   :  { %11434 = vst [vmem:[#allocation29_spill] sm:$0xff] %v5631_v15  ;;  %11435 = vst [vmem:[#allocation30_spill] sm:$0xff] %v5635_v59  ;;  %v5654_v15 = vld [vmem:[%s11157_s1 + $0xd0] sm:$0xff]  ;;  %v256_v59 = vadd.f32 %v5416_v30, %v254_v27  ;;  %v356_v30 = vadd.f32 %v355_v11, %v354_v1  ;;  %v5679_v27 = vmul.f32 %v5597_v13, %v5597_v13  ;;  %v547_v11 = vsel %vm204_vm1, %v5475_v20, 0.0 }
  0x37   :  { %11436 = vst [vmem:[#allocation31_spill] sm:$0xff] %v5639_v5  ;;  %11439 = vst [vmem:[#allocation34_spill] sm:$0xff] %v5654_v15  ;;  %v5659_v5 = vmul.f32 %v5582_v23, %v5582_v23  ;;  %v5689_v18 = vmul.f32 %v5618_v53, %v5618_v53  ;;  %v5706_v1 = vld [vmem:[%s11158_s2 + $0x10] sm:$0xff]  ;;  %v5710_v8 = vmul.f32 %v5623_v22, %v5623_v22  ;;  %v359_v22 = vsel %vm204_vm1, %v5293_v29, 0.0  ;;  %v5768_v29 = vld [vmem:[%s11157_s1 + $0x100] sm:$0xff] }
  0x38   :  { %11441 = vst [vmem:[#allocation36_spill] sm:$0xff] %v5663_v10  ;;  %11442 = vst [vmem:[#allocation37_spill] sm:$0xff] %v5668_v12  ;;  %v357_v10 = vsel %vm202_vm0, %v5291_v25, 0.0  ;;  %v5701_v25 = vld [vmem:[%s11158_s2 + $0x8] sm:$0x3]  ;;  %v5714_v20 = vmul.f32 %v5644_v60, %v5644_v60  ;;  %v5718_v21 = vmul.f32 %v5649_v17, %v5649_v17 }
  0x39   :  { %11440 = vst [vmem:[#allocation35_spill] sm:$0xff] %v5659_v5  ;;  %11443 = vst [vmem:[#allocation38_spill] sm:$0xff] %v5673_v6  ;;  %v5685_v5 = vmul.f32 %v5613_v26, %v5613_v26  ;;  %v5751_v17 = vld [vmem:[%s11158_s2 + $0x18] sm:$0x3]  ;;  %v358_v60 = vadd.f32 %v357_v10, %v356_v30 }
  0x3a   :  { %11444 = vst [vmem:[#allocation39_spill] sm:$0xff] %v5679_v27  ;;  %11446 = vst [vmem:[#allocation41_spill] sm:$0xff] %v5689_v18  ;;  %v5722_v18 = vmul.f32 %v5654_v15, %v5654_v15  ;;  %v428_v27 = vadd.f32 %v427_v0, %v426_v14  ;;  %v5746_v15 = vmul.f32 %v5673_v6, %v5673_v6  ;;  %v628_v0 = vsel %vm202_vm0, %v5696_v61, 0.0  ;;  %v5795_v6 = vld [vmem:[%s11157_s1 + $0x110] sm:$0xff] }
  0x3b   :  { %11445 = vst [vmem:[#allocation40_spill] sm:$0xff] %v5685_v5  ;;  %11447 = vst [vmem:[#allocation42_spill] sm:$0xff] %v5710_v8  ;;  %v5727_v5 = vld [vmem:[%s11157_s1 + $0xe8] sm:$0x3]  ;;  %v5732_v8 = vld [vmem:[%s11157_s1 + $0xf0] sm:$0xff]  ;;  %v548_v14 = vadd.f32 %v547_v11, %v546_v58 }
  0x3c   :  { %11448 = vst [vmem:[#allocation43_spill] sm:$0xff] %v5714_v20  ;;  %11449 = vst [vmem:[#allocation44_spill] sm:$0xff] %v5718_v21  ;;  %v5737_v20 = vld [vmem:[%s11157_s1 + $0xf8] sm:$0x3]  ;;  %v258_v21 = vadd.f32 %v5419_v19, %v256_v59  ;;  %v429_v19 = vsel %vm204_vm1, %v5463_v46, 0.0  ;;  %v549_v59 = vsel %vm202_vm0, %v5483_v24, 0.0  ;;  %v5777_v24 = vmul.f32 %v5727_v5, %v5727_v5 }
  0x3d   :  { %11450 = vst [vmem:[#allocation45_spill] sm:$0xff] %v5722_v18  ;;  %11451 = vst [vmem:[#allocation46_spill] sm:$0xff] %v5727_v5  ;;  %v5742_v18 = vmul.f32 %v5668_v12, %v5668_v12  ;;  %v5773_v46 = vld [vmem:[%s11158_s2 + $0x20] sm:$0xff]  ;;  %v5781_v10 = vmul.f32 %v5732_v8, %v5732_v8  ;;  %v5785_v30 = vmul.f32 %v5737_v20, %v5737_v20  ;;  %v5790_v11 = vld [vmem:[%s11157_s1 + $0x108] sm:$0x3] }
  0x3e   :  { %11452 = vst [vmem:[#allocation47_spill] sm:$0xff] %v5732_v8  ;;  %11453 = vst [vmem:[#allocation48_spill] sm:$0xff] %v5737_v20  ;;  %v430_v8 = vadd.f32 %v429_v19, %v428_v27  ;;  %v431_v20 = vsel %vm202_vm0, %v5468_v39, 0.0  ;;  %v550_v5 = vadd.f32 %v549_v59, %v548_v14  ;;  %v551_v27 = vsel %vm204_vm1, %v5485_v32, 0.0  ;;  %v5842_v19 = vld [vmem:[%s11157_s1 + $0x120] sm:$0xff] }
  0x3f   :  { %11454 = vst [vmem:[#allocation49_spill] sm:$0xff] %v5742_v18  ;;  %11455 = vst [vmem:[#allocation50_spill] sm:$0xff] %v5746_v15  ;;  %v629_v15 = vsel %vm204_vm1, %v5701_v25, 0.0  ;;  %v631_v18 = vsel %vm202_vm0, %v5706_v1, 0.0  ;;  %v5833_v39 = vmul.f32 %v5790_v11, %v5790_v11  ;;  %v5837_v32 = vmul.f32 %v5795_v6, %v5795_v6  ;;  %v5847_v14 = vld [vmem:[%s11157_s1 + $0x128] sm:$0x3] }
  0x40   :  { %11456 = vst [vmem:[#allocation51_spill] sm:$0xff] %v5777_v24  ;;  %11457 = vst [vmem:[#allocation52_spill] sm:$0xff] %v5781_v10  ;;  %v630_v58 = vadd.f32 %v629_v15, %v628_v0  ;;  %v260_v24 = vadd.f32 %v5428_v35, %v258_v21  ;;  %v361_v10 = vsel %vm202_vm0, %v5305_v36, 0.0  ;;  %v5805_v15 = vld [vmem:[%s11158_s2 + $0x28] sm:$0x3]  ;;  %v360_v0 = vadd.f32 %v359_v22, %v358_v60 }
  0x41   :  { %11458 = vst [vmem:[#allocation53_spill] sm:$0xff] %v5785_v30  ;;  %11459 = vst [vmem:[#allocation54_spill] sm:$0xff] %v5795_v6  ;;  %v633_v30 = vsel %vm204_vm1, %v5751_v17, 0.0  ;;  %v363_v35 = vsel %vm204_vm1, %v5307_v37, 0.0  ;;  %v5813_v36 = vmul.f32 %v5768_v29, %v5768_v29  ;;  %v635_v21 = vsel %vm202_vm0, %v5773_v46, 0.0 }
  0x42   :  { %v632_v12 = vadd.f32 %v631_v18, %v630_v58  ;;  %v5822_v60 = vld [vmem:[%s11157_s1 + $0x118] sm:$0x3]  ;;  %v5827_v18 = vld [vmem:[%s11158_s2 + $0x30] sm:$0xff]  ;;  %v365_v37 = vsel %vm202_vm0, %v5317_v41, 0.0  ;;  %11461 = vst [vmem:[#allocation56_spill] sm:$0xff] %v5833_v39  ;;  %11462 = vst [vmem:[#allocation57_spill] sm:$0xff] %v5837_v32  ;;  %v262_v41 = vadd.f32 %v5447_v54, %v260_v24  ;;  %v432_v58 = vadd.f32 %v431_v20, %v430_v8 }
  0x43   :  { %11460 = vst [vmem:[#allocation55_spill] sm:$0xff] %v5813_v36  ;;  %v367_v59 = vsel %vm204_vm1, %v5319_v42, 0.0  ;;  %v637_v32 = vsel %vm204_vm1, %v5805_v15, 0.0  ;;  %v433_v39 = vsel %vm204_vm1, %v5490_v52, 0.0  ;;  %v552_v36 = vadd.f32 %v551_v27, %v550_v5  ;;  %v5876_v52 = vld [vmem:[%s11157_s1 + $0x130] sm:$0xff] }
  0x44   :  { %v634_v22 = vadd.f32 %v633_v30, %v632_v12  ;;  %v5857_v12 = vld [vmem:[%s11158_s2 + $0x38] sm:$0x3]  ;;  %v362_v30 = vadd.f32 %v361_v10, %v360_v0  ;;  %v5863_v54 = vsel %vm202_vm0, %v5321_v43, 0.0  ;;  %v5867_v42 = vmul.f32 %v5822_v60, %v5822_v60  ;;  %v130_v0 = vld [vmem:[%s11158_s2 + $0x40] sm:$0xff] }
  0x45   :  { %v553_v8 = vsel %vm202_vm0, %v5502_v28, 0.0  ;;  %v639_v20 = vsel %vm202_vm0, %v5827_v18, 0.0  ;;  %v5880_v5 = vsel %vm204_vm1, %v5333_v48, 0.0  ;;  %v5884_v43 = vmul.f32 %v5842_v19, %v5842_v19  ;;  %v5893_v10 = vld [vmem:[%s11157_s1 + $0x138] sm:$0x3] }
  0x46   :  { %v636_v6 = vadd.f32 %v635_v21, %v634_v22  ;;  %11463 = vst [vmem:[#allocation58_spill] sm:$0xff] %v5867_v42  ;;  %v5888_v24 = vmul.f32 %v5847_v14, %v5847_v14  ;;  %v264_v48 = vadd.f32 %v5455_v62, %v262_v41  ;;  %v5901_v27 = vsel %vm202_vm0, %v5335_v49, 0.0 }
  0x47   :  { %11464 = vst [vmem:[#allocation59_spill] sm:$0xff] %v5884_v43  ;;  %v434_v21 = vadd.f32 %v433_v39, %v432_v58  ;;  %v641_v22 = vsel %vm204_vm1, %v5857_v12, 0.0  ;;  %v5909_v42 = vsel %vm204_vm1, %v5337_v50, 0.0  ;;  %v5913_v62 = vsel %vm202_vm0, %v5339_v51, 0.0  ;;  %v131_v51 = vld [vmem:[%s11158_s2 + $0x48] sm:$0x3] }
  0x48   :  { %11465 = vst [vmem:[#allocation60_spill] sm:$0xff] %v5888_v24  ;;  %v638_v28 = vadd.f32 %v637_v32, %v636_v6  ;;  %v364_v6 = vadd.f32 %v363_v35, %v362_v30  ;;  %v435_v32 = vsel %vm202_vm0, %v5495_v16, 0.0  ;;  %v554_v24 = vadd.f32 %v553_v8, %v552_v36 }
  0x49   :  { %v5917_v49 = vmul.f32 %v5876_v52, %v5876_v52  ;;  %v555_v35 = vsel %vm204_vm1, %v5517_v63, 0.0  ;;  %v5923_v16 = vmul.f32 %v5893_v10, %v5893_v10  ;;  %v643_v39 = vsel %vm202_vm0, %v130_v0, 0.0 }
  0x4a   :  { %v640_v43 = vadd.f32 %v639_v20, %v638_v28  ;;  %v5928_v50 = vmul.f32 %v5696_v61, %v5696_v61  ;;  %v266_v41 = vadd.f32 %v5471_v7, %v264_v48  ;;  %v5936_v63 = vsel %vm204_vm1, %v5347_v55, 0.0 }
  0x4b   :  { %11466 = vst [vmem:[#allocation61_spill] sm:$0xff] %v5923_v16  ;;  %v5940_v58 = vsel %vm202_vm0, %v5349_v56, 0.0  ;;  %v436_v30 = vadd.f32 %v435_v32, %v434_v21  ;;  %v366_v8 = vadd.f32 %v365_v37, %v364_v6  ;;  %v437_v61 = vsel %vm204_vm1, %v5507_v38, 0.0  ;;  %v11468_v32 = vld [vmem:[#allocation6_spill] sm:$0xff] }
  0x4c   :  { %v642_v36 = vadd.f32 %v641_v22, %v640_v43  ;;  %v556_v20 = vadd.f32 %v555_v35, %v554_v24  ;;  %v5946_v43 = vmul.f32 %v5701_v25, %v5701_v25  ;;  %v5950_v7 = vsel %vm204_vm1, %v5351_v57, 0.0 }
  0x4d   :  { %v557_v55 = vsel %vm202_vm0, %v5521_v33, 0.0  ;;  %v5956_v56 = vmul.f32 %v5706_v1, %v5706_v1  ;;  %v5960_v38 = vsel %vm202_vm0, %v5371_v2, 0.0  ;;  %v5964_v25 = vsel %vm204_vm1, %v5373_v3, 0.0  ;;  %v132_v33 = vld [vmem:[%s11158_s2 + $0x50] sm:$0xff] }
  0x4e   :  { %v644_v28 = vadd.f32 %v643_v39, %v642_v36  ;;  %v645_v37 = vsel %vm204_vm1, %v131_v51, 0.0  ;;  %v5969_v57 = vmul.f32 %v5751_v17, %v5751_v17  ;;  %v268_v1 = vadd.f32 %v5478_v40, %v266_v41  ;;  %v11470_v36 = vld [vmem:[#allocation13_spill] sm:$0xff] }
  0x4f   :  { %v5977_v2 = vsel %vm202_vm0, %v5375_v4, 0.0  ;;  %v438_v24 = vadd.f32 %v437_v61, %v436_v30  ;;  %v5981_v3 = vmul.f32 %v5773_v46, %v5773_v46  ;;  %v368_v48 = vadd.f32 %v367_v59, %v366_v8  ;;  %v11467_v59 = vld [vmem:[#allocation5_spill] sm:$0xff] }
  0x50   :  { %v439_v17 = vsel %vm202_vm0, %v5512_v31, 0.0  ;;  %v558_v21 = vadd.f32 %v557_v55, %v556_v20  ;;  %v5987_v22 = vmul.f32 %v5805_v15, %v5805_v15  ;;  %v5991_v40 = vsel %vm204_vm1, %v5385_v9, 0.0  ;;  %v11471_v20 = vld [vmem:[#allocation7_spill] sm:$0xff] }
  0x51   :  { %v559_v4 = vsel %vm204_vm1, %v5550_v44, 0.0  ;;  %v646_v6 = vadd.f32 %v645_v37, %v644_v28  ;;  %v5997_v46 = vmul.f32 %v5827_v18, %v5827_v18  ;;  %v6001_v31 = vsel %vm202_vm0, %v11467_v59, 0.0  ;;  %v133_v44 = vld [vmem:[%s11158_s2 + $0x58] sm:$0x3]  ;;  %v134_v18 = vld [vmem:[%s11158_s2 + $0x60] sm:$0xff] }
  0x52   :  { %v6005_v15 = vsel %vm204_vm1, %v11468_v32, 0.0  ;;  %v647_v35 = vsel %vm202_vm0, %v132_v33, 0.0  ;;  %v6010_v9 = vmul.f32 %v5857_v12, %v5857_v12  ;;  %v270_v39 = vadd.f32 %v11470_v36, %v268_v1  ;;  %v11473_v37 = vld [vmem:[#allocation8_spill] sm:$0xff]  ;;  %v11475_v1 = vld [vmem:[#allocation18_spill] sm:$0xff] }
  0x53   :  { %11469 = vst [vmem:[#allocation5_spill] sm:$0xff] %v6005_v15  ;;  %v440_v41 = vadd.f32 %v439_v17, %v438_v24  ;;  %v6019_v30 = vmul.f32 %v130_v0, %v130_v0  ;;  %v6021_v8 = vmul.f32 %v131_v51, %v131_v51  ;;  %v370_v61 = vadd.f32 %v5863_v54, %v368_v48  ;;  %v11476_v17 = vld [vmem:[#allocation9_spill] sm:$0xff]  ;;  %v11479_v36 = vld [vmem:[#allocation10_spill] sm:$0xff] }
  0x54   :  { %v6026_v12 = vsel %vm202_vm0, %v11471_v20, 0.0  ;;  %v441_v55 = vsel %vm204_vm1, %v5534_v34, 0.0  ;;  %v560_v28 = vadd.f32 %v559_v4, %v558_v21  ;;  %v6032_v59 = vsel %vm204_vm1, %v11473_v37, 0.0  ;;  %v11478_v21 = vld [vmem:[#allocation14_spill] sm:$0xff]  ;;  %v11481_v37 = vld [vmem:[#allocation11_spill] sm:$0xff] }
  0x55   :  { %11472 = vst [vmem:[#allocation6_spill] sm:$0xff] %v6026_v12  ;;  %11474 = vst [vmem:[#allocation13_spill] sm:$0xff] %v6032_v59  ;;  %v561_v0 = vsel %vm202_vm0, %v11475_v1, 0.0  ;;  %v648_v24 = vadd.f32 %v647_v35, %v646_v6  ;;  %v6036_v51 = vmul.f32 %v132_v33, %v132_v33  ;;  %v6040_v54 = vsel %vm202_vm0, %v11476_v17, 0.0  ;;  %v11483_v1 = vld [vmem:[#allocation12_spill] sm:$0xff]  ;;  %v11497_v12 = vld [vmem:[#allocation38_spill] sm:$0xff] }
  0x56   :  { %11477 = vst [vmem:[#allocation7_spill] sm:$0xff] %v6040_v54  ;;  %v649_v48 = vsel %vm204_vm1, %v133_v44, 0.0  ;;  %v6043_v32 = vmul.f32 %v133_v44, %v133_v44  ;;  %v6045_v34 = vmul.f32 %v134_v18, %v134_v18  ;;  %v272_v4 = vadd.f32 %v11478_v21, %v270_v39  ;;  %v11485_v21 = vld [vmem:[#allocation19_spill] sm:$0xff] }
  0x57   :  { %v6050_v20 = vsel %vm204_vm1, %v11479_v36, 0.0  ;;  %v6054_v33 = vsel %vm202_vm0, %v11481_v37, 0.0  ;;  %v442_v6 = vadd.f32 %v441_v55, %v440_v41  ;;  %v372_v35 = vadd.f32 %v5880_v5, %v370_v61  ;;  %v11487_v55 = vld [vmem:[#allocation20_spill] sm:$0xff] }
  0x58   :  { %11480 = vst [vmem:[#allocation8_spill] sm:$0xff] %v6050_v20  ;;  %11482 = vst [vmem:[#allocation18_spill] sm:$0xff] %v6054_v33  ;;  %v6059_v17 = vsel %vm204_vm1, %v11483_v1, 0.0  ;;  %v443_v44 = vsel %vm202_vm0, %v5539_v47, 0.0  ;;  %v562_v16 = vadd.f32 %v561_v0, %v560_v28  ;;  %v445_v39 = vsel %vm204_vm1, %v5559_v45, 0.0  ;;  %v11486_v20 = vld [vmem:[#allocation21_spill] sm:$0xff] }
  0x59   :  { %11484 = vst [vmem:[#allocation9_spill] sm:$0xff] %v6059_v17  ;;  %v447_v36 = vsel %vm202_vm0, %v11485_v21, 0.0  ;;  %v563_v37 = vsel %vm204_vm1, %v11486_v20, 0.0  ;;  %v650_v41 = vadd.f32 %v649_v48, %v648_v24  ;;  %v449_v5 = vsel %vm204_vm1, %v11487_v55, 0.0  ;;  %v11488_v1 = vld [vmem:[#allocation23_spill] sm:$0xff]  ;;  %v11494_v17 = vld [vmem:[#allocation34_spill] sm:$0xff] }
  0x5a   :  { %v6073_v61 = vsel %vm202_vm0, %v5582_v23, 0.0  ;;  %v6077_v47 = vsel %vm204_vm1, %v11488_v1, 0.0  ;;  %v651_v45 = vsel %vm202_vm0, %v134_v18, 0.0  ;;  %v6083_v28 = vld [vmem:[%s11158_s2 + $0x68] sm:$0x3]  ;;  %v11489_v0 = vld [vmem:[#allocation15_spill] sm:$0xff]  ;;  %v444_v48 = vadd.f32 %v443_v44, %v442_v6 }
  0x5b   :  { %v274_v24 = vadd.f32 %v11489_v0, %v272_v4  ;;  %v6088_v20 = vsel %vm202_vm0, %v5597_v13, 0.0  ;;  %v6092_v23 = vsel %vm204_vm1, %v5613_v26, 0.0  ;;  %v374_v21 = vadd.f32 %v5901_v27, %v372_v35  ;;  %v11490_v55 = vld [vmem:[#allocation27_spill] sm:$0xff]  ;;  %v11491_v6 = vld [vmem:[#allocation32_spill] sm:$0xff]  ;;  %v11492_v13 = vld [vmem:[#allocation22_spill] sm:$0xff] }
  0x5c   :  { %v6097_v18 = vsel %vm202_vm0, %v5618_v53, 0.0  ;;  %v6101_v1 = vsel %vm204_vm1, %v11490_v55, 0.0  ;;  %v564_v4 = vadd.f32 %v563_v37, %v562_v16  ;;  %v6105_v44 = vsel %vm202_vm0, %v11491_v6, 0.0  ;;  %v11493_v35 = vld [vmem:[#allocation33_spill] sm:$0xff] }
  0x5d   :  { %v565_v0 = vsel %vm202_vm0, %v11492_v13, 0.0  ;;  %v652_v26 = vadd.f32 %v651_v45, %v650_v41  ;;  %v754_v27 = vsel %vm202_vm0, %v5928_v50, 0.0  ;;  %v6113_v53 = vsel %vm204_vm1, %v11493_v35, 0.0  ;;  %v6126_v41 = vld [vmem:[%s11158_s2 + $0x70] sm:$0xff]  ;;  %v11495_v50 = vld [vmem:[#allocation16_spill] sm:$0xff]  ;;  %v11496_v33 = vld [vmem:[#allocation37_spill] sm:$0xff] }
  0x5e   :  { %v6117_v55 = vsel %vm202_vm0, %v11494_v17, 0.0  ;;  %v653_v16 = vsel %vm204_vm1, %v6083_v28, 0.0  ;;  %v755_v37 = vsel %vm204_vm1, %v5946_v43, 0.0  ;;  %v276_v45 = vadd.f32 %v11495_v50, %v274_v24  ;;  %v11498_v24 = vld [vmem:[#allocation26_spill] sm:$0xff] }
  0x5f   :  { %v446_v6 = vadd.f32 %v445_v39, %v444_v48  ;;  %v756_v13 = vadd.f32 %v755_v37, %v754_v27  ;;  %v757_v35 = vsel %vm202_vm0, %v5956_v56, 0.0  ;;  %v376_v17 = vadd.f32 %v5909_v42, %v374_v21  ;;  %v11499_v56 = vld [vmem:[#allocation46_spill] sm:$0xff]  ;;  %v11500_v21 = vld [vmem:[#allocation47_spill] sm:$0xff]  ;;  %v11502_v37 = vld [vmem:[#allocation48_spill] sm:$0xff] }
  0x60   :  { %v6134_v54 = vsel %vm204_vm1, %v11496_v33, 0.0  ;;  %v566_v59 = vadd.f32 %v565_v0, %v564_v4  ;;  %v759_v43 = vsel %vm204_vm1, %v5969_v57, 0.0  ;;  %v6140_v15 = vsel %vm202_vm0, %v11497_v12, 0.0  ;;  %v6159_v4 = vld [vmem:[%s11158_s2 + $0x78] sm:$0x3]  ;;  %v11501_v0 = vld [vmem:[#allocation17_spill] sm:$0xff] }
  0x61   :  { %v567_v39 = vsel %vm204_vm1, %v11498_v24, 0.0  ;;  %v654_v48 = vadd.f32 %v653_v16, %v652_v26  ;;  %v758_v27 = vadd.f32 %v757_v35, %v756_v13  ;;  %v6146_v42 = vsel %vm204_vm1, %v11499_v56, 0.0 }
  0x62   :  { %v6150_v33 = vsel %vm202_vm0, %v11500_v21, 0.0  ;;  %v655_v57 = vsel %vm202_vm0, %v6126_v41, 0.0  ;;  %v761_v12 = vsel %vm202_vm0, %v5981_v3, 0.0  ;;  %v278_v26 = vadd.f32 %v11501_v0, %v276_v45 }
  0x63   :  { %v448_v16 = vadd.f32 %v447_v36, %v446_v6  ;;  %v6164_v50 = vsel %vm204_vm1, %v11502_v37, 0.0  ;;  %v760_v13 = vadd.f32 %v759_v43, %v758_v27  ;;  %v378_v35 = vadd.f32 %v5913_v62, %v376_v17  ;;  %v11503_v36 = vld [vmem:[#allocation28_spill] sm:$0xff]  ;;  %v11504_v43 = vld [vmem:[#allocation54_spill] sm:$0xff] }
  0x64   :  { %v6169_v24 = vsel %vm202_vm0, %v5768_v29, 0.0  ;;  %v568_v3 = vadd.f32 %v567_v39, %v566_v59  ;;  %v763_v56 = vsel %vm204_vm1, %v5987_v22, 0.0  ;;  %v6175_v21 = vsel %vm204_vm1, %v5790_v11, 0.0  ;;  %v6194_v59 = vld [vmem:[%s11158_s2 + $0x80] sm:$0xff]  ;;  %v11507_v17 = vld [vmem:[#allocation24_spill] sm:$0xff] }
  0x65   :  { %v569_v45 = vsel %vm202_vm0, %v11503_v36, 0.0  ;;  %v656_v6 = vadd.f32 %v655_v57, %v654_v48  ;;  %v762_v0 = vadd.f32 %v761_v12, %v760_v13  ;;  %v6181_v62 = vsel %vm202_vm0, %v11504_v43, 0.0 }
  0x66   :  { %11505 = vst [vmem:[#allocation14_spill] sm:$0xff] %v6181_v62  ;;  %v6185_v29 = vsel %vm204_vm1, %v5822_v60, 0.0  ;;  %v657_v22 = vsel %vm204_vm1, %v6159_v4, 0.0  ;;  %v765_v11 = vsel %vm202_vm0, %v5997_v46, 0.0  ;;  %v280_v39 = vadd.f32 %v11507_v17, %v278_v26 }
  0x67   :  { %11506 = vst [vmem:[#allocation10_spill] sm:$0xff] %v6185_v29  ;;  %v450_v48 = vadd.f32 %v449_v5, %v448_v16  ;;  %v6199_v27 = vsel %vm202_vm0, %v5842_v19, 0.0  ;;  %v764_v60 = vadd.f32 %v763_v56, %v762_v0  ;;  %v380_v57 = vadd.f32 %v5936_v63, %v378_v35  ;;  %v11511_v5 = vld [vmem:[#allocation29_spill] sm:$0xff]  ;;  %v11513_v35 = vld [vmem:[#allocation30_spill] sm:$0xff] }
  0x68   :  { %11508 = vst [vmem:[#allocation11_spill] sm:$0xff] %v6199_v27  ;;  %v6204_v12 = vsel %vm204_vm1, %v5847_v14, 0.0  ;;  %v570_v46 = vadd.f32 %v569_v45, %v568_v3  ;;  %v767_v37 = vsel %vm204_vm1, %v6010_v9, 0.0  ;;  %v6210_v13 = vsel %vm202_vm0, %v5876_v52, 0.0  ;;  %v6227_v52 = vld [vmem:[%s11158_s2 + $0x88] sm:$0x3] }
  0x69   :  { %11509 = vst [vmem:[#allocation12_spill] sm:$0xff] %v6204_v12  ;;  %11510 = vst [vmem:[#allocation19_spill] sm:$0xff] %v6210_v13  ;;  %v571_v26 = vsel %vm204_vm1, %v11511_v5, 0.0  ;;  %v658_v19 = vadd.f32 %v657_v22, %v656_v6  ;;  %v766_v16 = vadd.f32 %v765_v11, %v764_v60  ;;  %v6216_v63 = vsel %vm204_vm1, %v5893_v10, 0.0  ;;  %v11514_v56 = vld [vmem:[#allocation25_spill] sm:$0xff]  ;;  %v11516_v45 = vld [vmem:[#allocation31_spill] sm:$0xff] }
  0x6a   :  { %11512 = vst [vmem:[#allocation21_spill] sm:$0xff] %v6216_v63  ;;  %v573_v14 = vsel %vm202_vm0, %v11513_v35, 0.0  ;;  %v659_v3 = vsel %vm202_vm0, %v6194_v59, 0.0  ;;  %v769_v9 = vsel %vm202_vm0, %v6019_v30, 0.0  ;;  %v6230_v36 = vadd.f32 %v11514_v56, %v280_v39  ;;  %v11517_v11 = vld [vmem:[#allocation35_spill] sm:$0xff]  ;;  %v11518_v60 = vld [vmem:[#allocation36_spill] sm:$0xff] }
  0x6b   :  { %v452_v10 = vadd.f32 %v6073_v61, %v450_v48  ;;  %v575_v6 = vsel %vm204_vm1, %v11516_v45, 0.0  ;;  %v768_v0 = vadd.f32 %v767_v37, %v766_v16  ;;  %v382_v43 = vadd.f32 %v5940_v58, %v380_v57  ;;  %v11519_v39 = vld [vmem:[#allocation39_spill] sm:$0xff]  ;;  %v6251_v58 = vld [vmem:[%s11159_s3] sm:$0xff]  ;;  %v11520_v57 = vld [vmem:[#allocation40_spill] sm:$0xff] }
  0x6c   :  { %11515 = vst [vmem:[#allocation20_spill] sm:$0xff] %v6230_v36  ;;  %v572_v22 = vadd.f32 %v571_v26, %v570_v46  ;;  %v577_v30 = vsel %vm202_vm0, %v11517_v11, 0.0  ;;  %v771_v17 = vsel %vm204_vm1, %v6021_v8, 0.0  ;;  %v6242_v5 = vsel %vm204_vm1, %v11518_v60, 0.0  ;;  %v11521_v8 = vld [vmem:[#allocation41_spill] sm:$0xff]  ;;  %v140_v16 = vld [vmem:[%s11158_s2 + $0x90] sm:$0xff] }
  0x6d   :  { %v6246_v61 = vsel %vm202_vm0, %v11519_v39, 0.0  ;;  %v660_v48 = vadd.f32 %v659_v3, %v658_v19  ;;  %v770_v35 = vadd.f32 %v769_v9, %v768_v0  ;;  %v6255_v46 = vsel %vm204_vm1, %v11520_v57, 0.0  ;;  %v6271_v3 = vld [vmem:[%s11159_s3 + $0x8] sm:$0x3]  ;;  %v6359_v12 = vld [vmem:[%s11159_s3 + $0x38] sm:$0x3] }
  0x6e   :  { %v6259_v37 = vsel %vm202_vm0, %v11521_v8, 0.0  ;;  %v661_v26 = vsel %vm204_vm1, %v6227_v52, 0.0  ;;  %v773_v19 = vsel %vm202_vm0, %v6036_v51, 0.0  ;;  %v454_v56 = vadd.f32 %v6077_v47, %v452_v10  ;;  %v11522_v45 = vld [vmem:[#allocation42_spill] sm:$0xff]  ;;  %v6282_v51 = vld [vmem:[%s11159_s3 + $0x10] sm:$0xff] }
  0x6f   :  { %v6277_v0 = vsel %vm204_vm1, %v11522_v45, 0.0  ;;  %v772_v11 = vadd.f32 %v771_v17, %v770_v35  ;;  %v384_v60 = vadd.f32 %v5950_v7, %v382_v43  ;;  %v574_v39 = vadd.f32 %v573_v14, %v572_v22  ;;  %v6292_v47 = vld [vmem:[%s11159_s3 + $0x18] sm:$0x3]  ;;  %v11523_v10 = vld [vmem:[#allocation43_spill] sm:$0xff]  ;;  %v6326_v63 = vld [vmem:[%s11159_s3 + $0x28] sm:$0x3] }
  0x70   :  { %v727_v57 = vmul.f32 %v6083_v28, %v6083_v28  ;;  %v775_v8 = vsel %vm204_vm1, %v6043_v32, 0.0  ;;  %v6296_v17 = vsel %vm202_vm0, %v11523_v10, 0.0  ;;  %v662_v35 = vadd.f32 %v661_v26, %v660_v48  ;;  %v141_v22 = vld [vmem:[%s11158_s2 + $0x98] sm:$0x3]  ;;  %v6313_v48 = vld [vmem:[%s11159_s3 + $0x20] sm:$0xff]  ;;  %v11527_v27 = vld [vmem:[#allocation50_spill] sm:$0xff] }
  0x71   :  { %v774_v45 = vadd.f32 %v773_v19, %v772_v11  ;;  %v840_v7 = vsel %vm202_vm0, %v6251_v58, 0.0  ;;  %v663_v14 = vsel %vm202_vm0, %v140_v16, 0.0  ;;  %v728_v28 = vmul.f32 %v6126_v41, %v6126_v41 }
  0x72   :  { %v777_v32 = vsel %vm202_vm0, %v6045_v34, 0.0  ;;  %v841_v43 = vsel %vm204_vm1, %v6271_v3, 0.0  ;;  %v456_v26 = vadd.f32 %v6088_v20, %v454_v56  ;;  %v843_v41 = vsel %vm202_vm0, %v6282_v51, 0.0  ;;  %v11524_v20 = vld [vmem:[#allocation44_spill] sm:$0xff] }
  0x73   :  { %v776_v19 = vadd.f32 %v775_v8, %v774_v45  ;;  %v842_v11 = vadd.f32 %v841_v43, %v840_v7  ;;  %v576_v34 = vadd.f32 %v575_v6, %v574_v39  ;;  %v729_v10 = vmul.f32 %v6159_v4, %v6159_v4  ;;  %v142_v43 = vld [vmem:[%s11158_s2 + $0xa0] sm:$0xff] }
  0x74   :  { %v779_v9 = vsel %vm204_vm1, %v727_v57, 0.0  ;;  %v845_v36 = vsel %vm204_vm1, %v6292_v47, 0.0  ;;  %v6330_v56 = vsel %vm204_vm1, %v11524_v20, 0.0  ;;  %v664_v8 = vadd.f32 %v663_v14, %v662_v35  ;;  %v6344_v35 = vld [vmem:[%s11159_s3 + $0x30] sm:$0xff] }
  0x75   :  { %v778_v45 = vadd.f32 %v777_v32, %v776_v19  ;;  %v844_v6 = vadd.f32 %v843_v41, %v842_v11  ;;  %v665_v39 = vsel %vm204_vm1, %v141_v22, 0.0  ;;  %v730_v4 = vmul.f32 %v6194_v59, %v6194_v59  ;;  %v11525_v32 = vld [vmem:[#allocation45_spill] sm:$0xff] }
  0x76   :  { %v781_v57 = vsel %vm202_vm0, %v728_v28, 0.0  ;;  %v847_v7 = vsel %vm202_vm0, %v6313_v48, 0.0  ;;  %v458_v14 = vadd.f32 %v6092_v23, %v456_v26  ;;  %v6349_v19 = vsel %vm202_vm0, %v11525_v32, 0.0  ;;  %v11526_v23 = vld [vmem:[#allocation49_spill] sm:$0xff] }
  0x77   :  { %v780_v59 = vadd.f32 %v779_v9, %v778_v45  ;;  %v846_v28 = vadd.f32 %v845_v36, %v844_v6  ;;  %v578_v11 = vadd.f32 %v577_v30, %v576_v34  ;;  %v731_v41 = vmul.f32 %v6227_v52, %v6227_v52  ;;  %v143_v6 = vld [vmem:[%s11158_s2 + $0xa8] sm:$0x3]  ;;  %v6375_v32 = vld [vmem:[%s11159_s3 + $0x40] sm:$0xff] }
  0x78   :  { %v783_v20 = vsel %vm204_vm1, %v729_v10, 0.0  ;;  %v849_v13 = vsel %vm204_vm1, %v6326_v63, 0.0  ;;  %v6363_v26 = vsel %vm204_vm1, %v11526_v23, 0.0  ;;  %v666_v9 = vadd.f32 %v665_v39, %v664_v8  ;;  %v6386_v23 = vld [vmem:[%s11159_s3 + $0x48] sm:$0x3] }
  0x79   :  { %v782_v36 = vadd.f32 %v781_v57, %v780_v59  ;;  %v848_v30 = vadd.f32 %v847_v7, %v846_v28  ;;  %v667_v34 = vsel %vm202_vm0, %v142_v43, 0.0  ;;  %v732_v52 = vmul.f32 %v140_v16, %v140_v16 }
  0x7a   :  { %v785_v10 = vsel %vm202_vm0, %v730_v4, 0.0  ;;  %v851_v45 = vsel %vm202_vm0, %v6344_v35, 0.0  ;;  %v386_v8 = vadd.f32 %v5960_v38, %v384_v60  ;;  %v460_v39 = vadd.f32 %v6097_v18, %v458_v14 }
  0x7b   :  { %v784_v57 = vadd.f32 %v783_v20, %v782_v36  ;;  %v850_v16 = vadd.f32 %v849_v13, %v848_v30  ;;  %v580_v4 = vadd.f32 %v6242_v5, %v578_v11  ;;  %v733_v7 = vmul.f32 %v141_v22, %v141_v22 }
  0x7c   :  { %v787_v59 = vsel %vm204_vm1, %v731_v41, 0.0  ;;  %v853_v28 = vsel %vm204_vm1, %v6359_v12, 0.0  ;;  %v6390_v38 = vsel %vm202_vm0, %v11527_v27, 0.0  ;;  %v668_v18 = vadd.f32 %v667_v34, %v666_v9  ;;  %v144_v41 = vld [vmem:[%s11158_s2 + $0xb0] sm:$0xff] }
  0x7d   :  { %v786_v60 = vadd.f32 %v785_v10, %v784_v57  ;;  %v852_v13 = vadd.f32 %v851_v45, %v850_v16  ;;  %v669_v5 = vsel %vm204_vm1, %v143_v6, 0.0  ;;  %v734_v22 = vmul.f32 %v142_v43, %v142_v43  ;;  %v6402_v27 = vld [vmem:[%s11159_s3 + $0x50] sm:$0xff]  ;;  %v6417_v57 = vld [vmem:[%s11159_s3 + $0x58] sm:$0x3] }
  0x7e   :  { %v789_v14 = vsel %vm202_vm0, %v732_v52, 0.0  ;;  %v855_v11 = vsel %vm202_vm0, %v6375_v32, 0.0  ;;  %v388_v20 = vadd.f32 %v5964_v25, %v386_v8  ;;  %v462_v9 = vadd.f32 %v6101_v1, %v460_v39  ;;  %v11528_v34 = vld [vmem:[#allocation51_spill] sm:$0xff]  ;;  %v11529_v25 = vld [vmem:[#allocation52_spill] sm:$0xff] }
  0x7f   :  { %v788_v36 = vadd.f32 %v787_v59, %v786_v60  ;;  %v854_v43 = vadd.f32 %v853_v28, %v852_v13  ;;  %v582_v30 = vadd.f32 %v6246_v61, %v580_v4  ;;  %v6409_v52 = vsel %vm204_vm1, %v11528_v34, 0.0  ;;  %v145_v28 = vld [vmem:[%s11158_s2 + $0xb8] sm:$0x3]  ;;  %v6433_v60 = vld [vmem:[%s11159_s3 + $0x60] sm:$0xff] }
  0x80   :  { %v791_v10 = vsel %vm204_vm1, %v733_v7, 0.0  ;;  %v857_v45 = vsel %vm204_vm1, %v6386_v23, 0.0  ;;  %v6421_v1 = vsel %vm202_vm0, %v11529_v25, 0.0  ;;  %v670_v8 = vadd.f32 %v669_v5, %v668_v18 }
  0x81   :  { %v790_v61 = vadd.f32 %v789_v14, %v788_v36  ;;  %v856_v39 = vadd.f32 %v855_v11, %v854_v43  ;;  %v671_v16 = vsel %vm202_vm0, %v144_v41, 0.0  ;;  %v735_v4 = vmul.f32 %v143_v6, %v143_v6  ;;  %v11530_v14 = vld [vmem:[#allocation53_spill] sm:$0xff]  ;;  %v11531_v36 = vld [vmem:[#allocation55_spill] sm:$0xff] }
  0x82   :  { %v793_v7 = vsel %vm202_vm0, %v734_v22, 0.0  ;;  %v859_v59 = vsel %vm202_vm0, %v6402_v27, 0.0  ;;  %v390_v18 = vadd.f32 %v5977_v2, %v388_v20  ;;  %v464_v13 = vadd.f32 %v6105_v44, %v462_v9  ;;  %v6451_v2 = vld [vmem:[%s11159_s3 + $0x68] sm:$0x3]  ;;  %v11533_v44 = vld [vmem:[#allocation56_spill] sm:$0xff] }
  0x83   :  { %v792_v5 = vadd.f32 %v791_v10, %v790_v61  ;;  %v858_v6 = vadd.f32 %v857_v45, %v856_v39  ;;  %v584_v22 = vadd.f32 %v6255_v46, %v582_v30  ;;  %v6440_v11 = vsel %vm204_vm1, %v11530_v14, 0.0  ;;  %v146_v39 = vld [vmem:[%s11158_s2 + $0xc0] sm:$0xff]  ;;  %v6467_v14 = vld [vmem:[%s11159_s3 + $0x70] sm:$0xff] }
  0x84   :  { %v6444_v43 = vsel %vm202_vm0, %v11531_v36, 0.0  ;;  %v861_v34 = vsel %vm204_vm1, %v6417_v57, 0.0  ;;  %v6455_v20 = vsel %vm204_vm1, %v11533_v44, 0.0  ;;  %v672_v46 = vadd.f32 %v671_v16, %v670_v8  ;;  %v11539_v36 = vld [vmem:[#allocation59_spill] sm:$0xff] }
  0x85   :  { %11532 = vst [vmem:[#allocation23_spill] sm:$0xff] %v6444_v43  ;;  %11534 = vst [vmem:[#allocation15_spill] sm:$0xff] %v6455_v20  ;;  %v794_v9 = vadd.f32 %v793_v7, %v792_v5  ;;  %v860_v30 = vadd.f32 %v859_v59, %v858_v6  ;;  %v673_v10 = vsel %vm204_vm1, %v145_v28, 0.0  ;;  %v736_v45 = vmul.f32 %v144_v41, %v144_v41  ;;  %v11535_v7 = vld [vmem:[#allocation57_spill] sm:$0xff]  ;;  %v11537_v5 = vld [vmem:[#allocation58_spill] sm:$0xff] }
  0x86   :  { %v795_v25 = vsel %vm204_vm1, %v735_v4, 0.0  ;;  %v863_v61 = vsel %vm202_vm0, %v6433_v60, 0.0  ;;  %v392_v8 = vadd.f32 %v5991_v40, %v390_v18  ;;  %v466_v16 = vadd.f32 %v6113_v53, %v464_v13  ;;  %v147_v53 = vld [vmem:[%s11158_s2 + $0xc8] sm:$0x3]  ;;  %v148_v18 = vld [vmem:[%s11158_s2 + $0xd0] sm:$0xff]  ;;  %v11542_v13 = vld [vmem:[#allocation60_spill] sm:$0xff] }
  0x87   :  { %v6473_v41 = vsel %vm202_vm0, %v11535_v7, 0.0  ;;  %v862_v4 = vadd.f32 %v861_v34, %v860_v30  ;;  %v586_v59 = vadd.f32 %v6259_v37, %v584_v22  ;;  %v6478_v6 = vsel %vm204_vm1, %v11537_v5, 0.0  ;;  %v6495_v37 = vld [vmem:[%s11159_s3 + $0x78] sm:$0x3]  ;;  %v6570_v43 = vld [vmem:[%s11159_s3 + $0x90] sm:$0xff] }
  0x88   :  { %11536 = vst [vmem:[#allocation27_spill] sm:$0xff] %v6473_v41  ;;  %11538 = vst [vmem:[#allocation32_spill] sm:$0xff] %v6478_v6  ;;  %v6482_v44 = vsel %vm202_vm0, %v11539_v36, 0.0  ;;  %v865_v40 = vsel %vm204_vm1, %v6451_v2, 0.0  ;;  %v6499_v22 = vsel %vm204_vm1, %v11542_v13, 0.0  ;;  %v674_v34 = vadd.f32 %v673_v10, %v672_v46  ;;  %v6513_v13 = vld [vmem:[%s11158_s2 + $0xe0] sm:$0xff] }
  0x89   :  { %11540 = vst [vmem:[#allocation22_spill] sm:$0xff] %v6482_v44  ;;  %11541 = vst [vmem:[#allocation33_spill] sm:$0xff] %v6495_v37  ;;  %v796_v30 = vadd.f32 %v795_v25, %v794_v9  ;;  %v864_v7 = vadd.f32 %v863_v61, %v862_v4  ;;  %v6504_v5 = vld [vmem:[%s11158_s2 + $0xd8] sm:$0x3]  ;;  %v675_v36 = vsel %vm202_vm0, %v146_v39, 0.0  ;;  %v737_v44 = vmul.f32 %v145_v28, %v145_v28  ;;  %v6518_v46 = vld [vmem:[%s11159_s3 + $0x80] sm:$0xff] }
  0x8a   :  { %11543 = vst [vmem:[#allocation34_spill] sm:$0xff] %v6499_v22  ;;  %v797_v6 = vsel %vm202_vm0, %v736_v45, 0.0  ;;  %v867_v41 = vsel %vm202_vm0, %v6467_v14, 0.0  ;;  %11544 = vst [vmem:[#allocation16_spill] sm:$0xff] %v6518_v46  ;;  %v6521_v9 = vadd.f32 %v6001_v31, %v392_v8  ;;  %v468_v28 = vadd.f32 %v6117_v55, %v466_v16  ;;  %v6531_v25 = vld [vmem:[%s11158_s2 + $0xe8] sm:$0x3] }
  0x8b   :  { %v6526_v10 = vsel %vm202_vm0, %v5917_v49, 0.0  ;;  %v866_v45 = vadd.f32 %v865_v40, %v864_v7  ;;  %v6536_v61 = vld [vmem:[%s11158_s2 + $0xf0] sm:$0xff]  ;;  %v588_v31 = vadd.f32 %v6277_v0, %v586_v59  ;;  %v677_v8 = vsel %vm204_vm1, %v147_v53, 0.0  ;;  %v6546_v16 = vld [vmem:[%s11158_s2 + $0xf8] sm:$0x3]  ;;  %v6551_v4 = vld [vmem:[%s11158_s2 + $0x100] sm:$0xff] }
  0x8c   :  { %11545 = vst [vmem:[#allocation37_spill] sm:$0xff] %v6521_v9  ;;  %11546 = vst [vmem:[#allocation38_spill] sm:$0xff] %v6526_v10  ;;  %v679_v55 = vsel %vm202_vm0, %v148_v18, 0.0  ;;  %v869_v49 = vsel %vm204_vm1, %v6495_v37, 0.0  ;;  %v6556_v0 = vld [vmem:[%s11159_s3 + $0x88] sm:$0x3]  ;;  %v676_v59 = vadd.f32 %v675_v36, %v674_v34  ;;  %v798_v7 = vadd.f32 %v797_v6, %v796_v30 }
  0x8d   :  { %11547 = vst [vmem:[#allocation26_spill] sm:$0xff] %v6556_v0  ;;  %v681_v40 = vsel %vm204_vm1, %v6504_v5, 0.0  ;;  %v868_v10 = vadd.f32 %v867_v41, %v866_v45  ;;  %v6562_v22 = vsel %vm202_vm0, %v6513_v13, 0.0  ;;  %v738_v20 = vmul.f32 %v146_v39, %v146_v39  ;;  %v6612_v37 = vld [vmem:[%s11159_s3 + $0xa0] sm:$0xff] }
  0x8e   :  { %v799_v29 = vsel %vm204_vm1, %v737_v44, 0.0  ;;  %v871_v9 = vsel %vm202_vm0, %v6518_v46, 0.0  ;;  %v470_v34 = vadd.f32 %v6134_v54, %v468_v28  ;;  %v6575_v41 = vsel %vm204_vm1, %v6531_v25, 0.0  ;;  %v6584_v44 = vld [vmem:[%s11158_s2 + $0x108] sm:$0x3] }
  0x8f   :  { %v6579_v6 = vsel %vm202_vm0, %v6536_v61, 0.0  ;;  %v870_v39 = vadd.f32 %v869_v49, %v868_v10  ;;  %v590_v30 = vadd.f32 %v6296_v17, %v588_v31  ;;  %v6589_v36 = vsel %vm204_vm1, %v6546_v16, 0.0  ;;  %v6600_v10 = vld [vmem:[%s11159_s3 + $0x98] sm:$0x3] }
  0x90   :  { %v6593_v54 = vsel %vm202_vm0, %v6551_v4, 0.0  ;;  %v873_v28 = vsel %vm204_vm1, %v6556_v0, 0.0  ;;  %v678_v45 = vadd.f32 %v677_v8, %v676_v59  ;;  %v739_v49 = vmul.f32 %v147_v53, %v147_v53 }
  0x91   :  { %11548 = vst [vmem:[#allocation46_spill] sm:$0xff] %v6593_v54  ;;  %v800_v62 = vadd.f32 %v799_v29, %v798_v7  ;;  %v872_v17 = vadd.f32 %v871_v9, %v870_v39  ;;  %v801_v31 = vsel %vm202_vm0, %v738_v20, 0.0  ;;  %v875_v46 = vsel %vm202_vm0, %v6570_v43, 0.0 }
  0x92   :  { %v926_v54 = vmul.f32 %v6251_v58, %v6251_v58  ;;  %v927_v0 = vmul.f32 %v6271_v3, %v6271_v3  ;;  %v472_v53 = vadd.f32 %v6140_v15, %v470_v34  ;;  %v6617_v29 = vsel %vm204_vm1, %v6584_v44, 0.0  ;;  %v6629_v15 = vld [vmem:[%s11159_s3 + $0xa8] sm:$0x3] }
  0x93   :  { %v874_v20 = vadd.f32 %v873_v28, %v872_v17  ;;  %v928_v9 = vmul.f32 %v6282_v51, %v6282_v51  ;;  %v592_v58 = vadd.f32 %v6330_v56, %v590_v30  ;;  %v740_v8 = vmul.f32 %v148_v18, %v148_v18  ;;  %v6641_v30 = vld [vmem:[%s11159_s3 + $0xb0] sm:$0xff]  ;;  %v6655_v17 = vld [vmem:[%s11159_s3 + $0xb8] sm:$0x3] }
  0x94   :  { %v877_v3 = vsel %vm204_vm1, %v6600_v10, 0.0  ;;  %v929_v59 = vmul.f32 %v6292_v47, %v6292_v47  ;;  %v680_v7 = vadd.f32 %v679_v55, %v678_v45  ;;  %v802_v34 = vadd.f32 %v801_v31, %v800_v62 }
  0x95   :  { %v803_v39 = vsel %vm204_vm1, %v739_v49, 0.0  ;;  %v876_v28 = vadd.f32 %v875_v46, %v874_v20  ;;  %v879_v51 = vsel %vm202_vm0, %v6612_v37, 0.0  ;;  %v930_v56 = vmul.f32 %v6313_v48, %v6313_v48 }
  0x96   :  { %v966_v18 = vsel %vm202_vm0, %v926_v54, 0.0  ;;  %v967_v47 = vsel %vm204_vm1, %v927_v0, 0.0  ;;  %v741_v62 = vmul.f32 %v6504_v5, %v6504_v5  ;;  %v969_v45 = vsel %vm202_vm0, %v928_v9, 0.0 }
  0x97   :  { %v878_v55 = vadd.f32 %v877_v3, %v876_v28  ;;  %v968_v46 = vadd.f32 %v967_v47, %v966_v18  ;;  %v594_v49 = vadd.f32 %v6349_v19, %v592_v58  ;;  %v881_v48 = vsel %vm204_vm1, %v6629_v15, 0.0 }
  0x98   :  { %v931_v0 = vmul.f32 %v6326_v63, %v6326_v63  ;;  %v971_v54 = vsel %vm204_vm1, %v929_v59, 0.0  ;;  %v682_v5 = vadd.f32 %v681_v40, %v680_v7  ;;  %v804_v31 = vadd.f32 %v803_v39, %v802_v34  ;;  %v6666_v59 = vld [vmem:[%s11159_s3 + $0xc0] sm:$0xff] }
  0x99   :  { %v880_v20 = vadd.f32 %v879_v51, %v878_v55  ;;  %v970_v3 = vadd.f32 %v969_v45, %v968_v46  ;;  %v805_v9 = vsel %vm202_vm0, %v740_v8, 0.0  ;;  %v883_v19 = vsel %vm202_vm0, %v6641_v30, 0.0  ;;  %v6692_v46 = vld [vmem:[%s11159_s3 + $0xd0] sm:$0xff] }
  0x9a   :  { %v932_v58 = vmul.f32 %v6344_v35, %v6344_v35  ;;  %v973_v63 = vsel %vm202_vm0, %v930_v56, 0.0  ;;  %v474_v40 = vadd.f32 %v6146_v42, %v472_v53  ;;  %v742_v7 = vmul.f32 %v6513_v13, %v6513_v13  ;;  %v6680_v56 = vld [vmem:[%s11159_s3 + $0xc8] sm:$0x3] }
  0x9b   :  { %v882_v34 = vadd.f32 %v881_v48, %v880_v20  ;;  %v972_v8 = vadd.f32 %v971_v54, %v970_v3  ;;  %v596_v39 = vadd.f32 %v6363_v26, %v594_v49  ;;  %v885_v28 = vsel %vm204_vm1, %v6655_v17, 0.0 }
  0x9c   :  { %v933_v35 = vmul.f32 %v6359_v12, %v6359_v12  ;;  %v975_v51 = vsel %vm204_vm1, %v931_v0, 0.0  ;;  %v684_v42 = vadd.f32 %v6562_v22, %v682_v5  ;;  %v806_v13 = vadd.f32 %v805_v9, %v804_v31  ;;  %v6706_v5 = vld [vmem:[%s11159_s3 + $0xd8] sm:$0x3] }
  0x9d   :  { %v884_v53 = vadd.f32 %v883_v19, %v882_v34  ;;  %v974_v18 = vadd.f32 %v973_v63, %v972_v8  ;;  %v807_v26 = vsel %vm204_vm1, %v741_v62, 0.0  ;;  %v887_v47 = vsel %vm202_vm0, %v6666_v59, 0.0  ;;  %v6718_v19 = vld [vmem:[%s11159_s3 + $0xe0] sm:$0xff] }
  0x9e   :  { %v934_v12 = vmul.f32 %v6375_v32, %v6375_v32  ;;  %v977_v55 = vsel %vm202_vm0, %v932_v58, 0.0  ;;  %v476_v22 = vadd.f32 %v6150_v33, %v474_v40  ;;  %v743_v45 = vmul.f32 %v6531_v25, %v6531_v25 }
  0x9f   :  { %v886_v49 = vadd.f32 %v885_v28, %v884_v53  ;;  %v976_v62 = vadd.f32 %v975_v51, %v974_v18  ;;  %v598_v48 = vadd.f32 %v6390_v38, %v596_v39  ;;  %v889_v0 = vsel %vm204_vm1, %v6680_v56, 0.0  ;;  %v6732_v39 = vld [vmem:[%s11159_s3 + $0xe8] sm:$0x3] }
  0xa0   :  { %v935_v32 = vmul.f32 %v6386_v23, %v6386_v23  ;;  %v979_v54 = vsel %vm204_vm1, %v933_v35, 0.0  ;;  %v686_v33 = vadd.f32 %v6575_v41, %v684_v42  ;;  %v808_v25 = vadd.f32 %v807_v26, %v806_v13  ;;  %v6744_v13 = vld [vmem:[%s11159_s3 + $0xf0] sm:$0xff] }
  0xa1   :  { %v888_v31 = vadd.f32 %v887_v47, %v886_v49  ;;  %v978_v20 = vadd.f32 %v977_v55, %v976_v62  ;;  %v809_v38 = vsel %vm202_vm0, %v742_v7, 0.0  ;;  %v891_v3 = vsel %vm202_vm0, %v6692_v46, 0.0 }
  0xa2   :  { %v936_v23 = vmul.f32 %v6402_v27, %v6402_v27  ;;  %v981_v9 = vsel %vm202_vm0, %v934_v12, 0.0  ;;  %v478_v41 = vadd.f32 %v6164_v50, %v476_v22  ;;  %v744_v58 = vmul.f32 %v6536_v61, %v6536_v61  ;;  %v6758_v22 = vld [vmem:[%s11159_s3 + $0xf8] sm:$0x3] }
  0xa3   :  { %v890_v63 = vadd.f32 %v889_v0, %v888_v31  ;;  %v980_v40 = vadd.f32 %v979_v54, %v978_v20  ;;  %v600_v7 = vadd.f32 %v6409_v52, %v598_v48  ;;  %v893_v34 = vsel %vm204_vm1, %v6706_v5, 0.0  ;;  %v6770_v0 = vld [vmem:[%s11159_s3 + $0x100] sm:$0xff] }
  0xa4   :  { %v937_v27 = vmul.f32 %v6417_v57, %v6417_v57  ;;  %v983_v8 = vsel %vm204_vm1, %v935_v32, 0.0  ;;  %v688_v50 = vadd.f32 %v6579_v6, %v686_v33  ;;  %v810_v61 = vadd.f32 %v809_v38, %v808_v25  ;;  %v156_v25 = vld [vmem:[%s11158_s2 + $0x110] sm:$0xff]  ;;  %v11549_v20 = vld [vmem:[#allocation33_spill] sm:$0xff] }
  0xa5   :  { %v892_v28 = vadd.f32 %v891_v3, %v890_v63  ;;  %v982_v35 = vadd.f32 %v981_v9, %v980_v40  ;;  %v811_v52 = vsel %vm204_vm1, %v743_v45, 0.0  ;;  %v895_v51 = vsel %vm202_vm0, %v6718_v19, 0.0  ;;  %v11551_v40 = vld [vmem:[#allocation16_spill] sm:$0xff] }
  0xa6   :  { %v938_v57 = vmul.f32 %v6433_v60, %v6433_v60  ;;  %v985_v42 = vsel %vm202_vm0, %v936_v23, 0.0  ;;  %v480_v6 = vadd.f32 %v6169_v24, %v478_v41  ;;  %v745_v53 = vmul.f32 %v6546_v16, %v6546_v16 }
  0xa7   :  { %v894_v18 = vadd.f32 %v893_v34, %v892_v28  ;;  %v984_v26 = vadd.f32 %v983_v8, %v982_v35  ;;  %v602_v47 = vadd.f32 %v6421_v1, %v600_v7  ;;  %v897_v12 = vsel %vm204_vm1, %v6732_v39, 0.0  ;;  %v6794_v34 = vld [vmem:[%s11159_s3 + $0x108] sm:$0x3]  ;;  %v157_v28 = vld [vmem:[%s11158_s2 + $0x118] sm:$0x3] }
  0xa8   :  { %v939_v60 = vmul.f32 %v6451_v2, %v6451_v2  ;;  %v987_v55 = vsel %vm204_vm1, %v937_v27, 0.0  ;;  %v690_v24 = vadd.f32 %v6589_v36, %v688_v50  ;;  %v812_v16 = vadd.f32 %v811_v52, %v810_v61  ;;  %v11552_v35 = vld [vmem:[#allocation14_spill] sm:$0xff] }
  0xa9   :  { %v896_v45 = vadd.f32 %v895_v51, %v894_v18  ;;  %v986_v49 = vadd.f32 %v985_v42, %v984_v26  ;;  %v813_v1 = vsel %vm202_vm0, %v744_v58, 0.0  ;;  %v899_v62 = vsel %vm202_vm0, %v6744_v13, 0.0  ;;  %v11553_v51 = vld [vmem:[#allocation23_spill] sm:$0xff]  ;;  %v11554_v42 = vld [vmem:[#allocation26_spill] sm:$0xff] }
  0xaa   :  { %v940_v2 = vmul.f32 %v6467_v14, %v6467_v14  ;;  %v989_v48 = vsel %vm202_vm0, %v938_v57, 0.0  ;;  %v482_v36 = vadd.f32 %v6175_v21, %v480_v6  ;;  %v746_v32 = vmul.f32 %v6551_v4, %v6551_v4  ;;  %v11550_v21 = vld [vmem:[#allocation46_spill] sm:$0xff] }
  0xab   :  { %v898_v54 = vadd.f32 %v897_v12, %v896_v45  ;;  %v988_v33 = vadd.f32 %v987_v55, %v986_v49  ;;  %v604_v14 = vadd.f32 %v6440_v11, %v602_v47  ;;  %v901_v31 = vsel %vm204_vm1, %v6758_v22, 0.0  ;;  %v11555_v45 = vld [vmem:[#allocation37_spill] sm:$0xff] }
  0xac   :  { %v941_v38 = vmul.f32 %v11549_v20, %v11549_v20  ;;  %v991_v3 = vsel %vm204_vm1, %v939_v60, 0.0  ;;  %v692_v23 = vadd.f32 %v11550_v21, %v690_v24  ;;  %v814_v9 = vadd.f32 %v813_v1, %v812_v16  ;;  %v6817_v16 = vld [vmem:[%s11159_s3 + $0x110] sm:$0xff] }
  0xad   :  { %v900_v4 = vadd.f32 %v899_v62, %v898_v54  ;;  %v990_v41 = vadd.f32 %v989_v48, %v988_v33  ;;  %v815_v58 = vsel %vm204_vm1, %v745_v53, 0.0  ;;  %v903_v63 = vsel %vm202_vm0, %v6770_v0, 0.0  ;;  %v6825_v48 = vld [vmem:[%s11158_s2 + $0x120] sm:$0xff] }
  0xae   :  { %v942_v11 = vmul.f32 %v11551_v40, %v11551_v40  ;;  %v993_v7 = vsel %vm202_vm0, %v940_v2, 0.0  ;;  %v695_v27 = vsel %vm202_vm0, %v156_v25, 0.0  ;;  %v747_v8 = vmul.f32 %v6584_v44, %v6584_v44 }
  0xaf   :  { %v902_v50 = vadd.f32 %v901_v31, %v900_v4  ;;  %v992_v61 = vadd.f32 %v991_v3, %v990_v41  ;;  %v484_v52 = vadd.f32 %v11552_v35, %v482_v36  ;;  %v606_v57 = vadd.f32 %v11553_v51, %v604_v14  ;;  %v11559_v4 = vld [vmem:[#allocation6_spill] sm:$0xff] }
  0xb0   :  { %v943_v6 = vmul.f32 %v11554_v42, %v11554_v42  ;;  %v995_v53 = vsel %vm204_vm1, %v941_v38, 0.0  ;;  %v694_v18 = vadd.f32 %v6617_v29, %v692_v23  ;;  %v816_v26 = vadd.f32 %v815_v58, %v814_v9  ;;  %v11556_v29 = vld [vmem:[#allocation5_spill] sm:$0xff] }
  0xb1   :  { %v904_v47 = vadd.f32 %v903_v63, %v902_v50  ;;  %v994_v44 = vadd.f32 %v993_v7, %v992_v61  ;;  %v817_v12 = vsel %vm202_vm0, %v746_v32, 0.0  ;;  %v905_v60 = vsel %vm204_vm1, %v6794_v34, 0.0  ;;  %v11558_v32 = vld [vmem:[#allocation15_spill] sm:$0xff] }
  0xb2   :  { %v944_v55 = vmul.f32 %v6570_v43, %v6570_v43  ;;  %v997_v24 = vsel %vm202_vm0, %v942_v11, 0.0  ;;  %v396_v49 = vadd.f32 %v11556_v29, %v11555_v45  ;;  %v697_v1 = vsel %vm204_vm1, %v157_v28, 0.0  ;;  %v11557_v43 = vld [vmem:[#allocation10_spill] sm:$0xff] }
  0xb3   :  { %v748_v62 = vmul.f32 %v156_v25, %v156_v25  ;;  %v996_v2 = vadd.f32 %v995_v53, %v994_v44  ;;  %v486_v36 = vadd.f32 %v11557_v43, %v484_v52  ;;  %v608_v54 = vadd.f32 %v11558_v32, %v606_v57  ;;  %v6849_v11 = vld [vmem:[%s11158_s2 + $0x128] sm:$0x3] }
  0xb4   :  { %v945_v33 = vmul.f32 %v6600_v10, %v6600_v10  ;;  %v999_v14 = vsel %vm204_vm1, %v943_v6, 0.0  ;;  %v696_v31 = vadd.f32 %v695_v27, %v694_v18  ;;  %v818_v20 = vadd.f32 %v817_v12, %v816_v26  ;;  %v6841_v10 = vld [vmem:[%s11159_s3 + $0x118] sm:$0x3]  ;;  %v11561_v27 = vld [vmem:[#allocation27_spill] sm:$0xff]  ;;  %v11562_v18 = vld [vmem:[#allocation13_spill] sm:$0xff] }
  0xb5   :  { %v906_v38 = vadd.f32 %v905_v60, %v904_v47  ;;  %v998_v3 = vadd.f32 %v997_v24, %v996_v2  ;;  %v819_v25 = vsel %vm204_vm1, %v747_v8, 0.0  ;;  %v907_v21 = vsel %vm202_vm0, %v6817_v16, 0.0  ;;  %v11563_v60 = vld [vmem:[#allocation12_spill] sm:$0xff] }
  0xb6   :  { %v946_v23 = vmul.f32 %v6612_v37, %v6612_v37  ;;  %v1001_v9 = vsel %vm202_vm0, %v944_v55, 0.0  ;;  %v398_v41 = vadd.f32 %v11559_v4, %v396_v49  ;;  %v699_v58 = vsel %vm202_vm0, %v6825_v48, 0.0  ;;  %v11560_v37 = vld [vmem:[#allocation11_spill] sm:$0xff]  ;;  %v11564_v24 = vld [vmem:[#allocation32_spill] sm:$0xff] }
  0xb7   :  { %v749_v63 = vmul.f32 %v157_v28, %v157_v28  ;;  %v1000_v40 = vadd.f32 %v999_v14, %v998_v3  ;;  %v488_v7 = vadd.f32 %v11560_v37, %v486_v36  ;;  %v610_v8 = vadd.f32 %v11561_v27, %v608_v54  ;;  %v11565_v14 = vld [vmem:[#allocation7_spill] sm:$0xff] }
  0xb8   :  { %v947_v50 = vmul.f32 %v6629_v15, %v6629_v15  ;;  %v1003_v61 = vsel %vm204_vm1, %v945_v33, 0.0  ;;  %v698_v35 = vadd.f32 %v697_v1, %v696_v31  ;;  %v820_v52 = vadd.f32 %v819_v25, %v818_v20  ;;  %v6865_v15 = vld [vmem:[%s11159_s3 + $0x120] sm:$0xff]  ;;  %v161_v25 = vld [vmem:[%s11158_s2 + $0x138] sm:$0x3] }
  0xb9   :  { %v908_v51 = vadd.f32 %v907_v21, %v906_v38  ;;  %v1002_v57 = vadd.f32 %v1001_v9, %v1000_v40  ;;  %v821_v28 = vsel %vm202_vm0, %v748_v62, 0.0  ;;  %v909_v42 = vsel %vm204_vm1, %v6841_v10, 0.0 }
  0xba   :  { %v948_v6 = vmul.f32 %v6641_v30, %v6641_v30  ;;  %v1005_v53 = vsel %vm202_vm0, %v946_v23, 0.0  ;;  %v400_v26 = vadd.f32 %v11562_v18, %v398_v41  ;;  %v701_v47 = vsel %vm204_vm1, %v6849_v11, 0.0  ;;  %v160_v30 = vld [vmem:[%s11158_s2 + $0x130] sm:$0xff]  ;;  %v11567_v23 = vld [vmem:[#allocation22_spill] sm:$0xff] }
  0xbb   :  { %v750_v44 = vmul.f32 %v6825_v48, %v6825_v48  ;;  %v1004_v12 = vadd.f32 %v1003_v61, %v1002_v57  ;;  %v490_v55 = vadd.f32 %v11563_v60, %v488_v7  ;;  %v612_v45 = vadd.f32 %v11564_v24, %v610_v8  ;;  %v11568_v61 = vld [vmem:[#allocation8_spill] sm:$0xff] }
  0xbc   :  { %v949_v29 = vmul.f32 %v6655_v17, %v6655_v17  ;;  %v1007_v49 = vsel %vm204_vm1, %v947_v50, 0.0  ;;  %v700_v1 = vadd.f32 %v699_v58, %v698_v35  ;;  %v822_v62 = vadd.f32 %v821_v28, %v820_v52  ;;  %v6889_v17 = vld [vmem:[%s11159_s3 + $0x128] sm:$0x3]  ;;  %v11569_v28 = vld [vmem:[#allocation21_spill] sm:$0xff] }
  0xbd   :  { %v910_v2 = vadd.f32 %v909_v42, %v908_v51  ;;  %v1006_v43 = vadd.f32 %v1005_v53, %v1004_v12  ;;  %v823_v36 = vsel %vm204_vm1, %v749_v63, 0.0  ;;  %v911_v32 = vsel %vm202_vm0, %v6865_v15, 0.0 }
  0xbe   :  { %v950_v54 = vmul.f32 %v6666_v59, %v6666_v59  ;;  %v1009_v33 = vsel %vm202_vm0, %v948_v6, 0.0  ;;  %v402_v31 = vadd.f32 %v11565_v14, %v400_v26  ;;  %v703_v20 = vsel %vm202_vm0, %v160_v30, 0.0  ;;  %v11566_v59 = vld [vmem:[#allocation19_spill] sm:$0xff]  ;;  %v11570_v6 = vld [vmem:[#allocation34_spill] sm:$0xff] }
  0xbf   :  { %v751_v38 = vmul.f32 %v6849_v11, %v6849_v11  ;;  %v1008_v3 = vadd.f32 %v1007_v49, %v1006_v43  ;;  %v492_v21 = vadd.f32 %v11566_v59, %v490_v55  ;;  %v614_v9 = vadd.f32 %v11567_v23, %v612_v45  ;;  %v11571_v45 = vld [vmem:[#allocation18_spill] sm:$0xff]  ;;  %v11572_v49 = vld [vmem:[#allocation61_spill] sm:$0xff] }
  0xc0   :  { %v951_v4 = vmul.f32 %v6680_v56, %v6680_v56  ;;  %v1011_v41 = vsel %vm204_vm1, %v949_v29, 0.0  ;;  %v702_v58 = vadd.f32 %v701_v47, %v700_v1  ;;  %v824_v63 = vadd.f32 %v823_v36, %v822_v62  ;;  %v6912_v56 = vld [vmem:[%s11159_s3 + $0x130] sm:$0xff]  ;;  %v11573_v36 = vld [vmem:[#allocation38_spill] sm:$0xff] }
  0xc1   :  { %v912_v40 = vadd.f32 %v911_v32, %v910_v2  ;;  %v1010_v37 = vadd.f32 %v1009_v33, %v1008_v3  ;;  %v825_v7 = vsel %vm202_vm0, %v750_v44, 0.0  ;;  %v913_v27 = vsel %vm204_vm1, %v6889_v17, 0.0 }
  0xc2   :  { %v952_v8 = vmul.f32 %v6692_v46, %v6692_v46  ;;  %v1013_v50 = vsel %vm202_vm0, %v950_v54, 0.0  ;;  %v404_v35 = vadd.f32 %v11568_v61, %v402_v31  ;;  %v705_v52 = vsel %vm204_vm1, %v161_v25, 0.0 }
  0xc3   :  { %v752_v51 = vmul.f32 %v160_v30, %v160_v30  ;;  %v1012_v57 = vadd.f32 %v1011_v41, %v1010_v37  ;;  %v494_v42 = vadd.f32 %v11569_v28, %v492_v21  ;;  %v616_v53 = vadd.f32 %v11570_v6, %v614_v9  ;;  %v11574_v21 = vld [vmem:[#allocation20_spill] sm:$0xff]  ;;  %v11576_v9 = vld [vmem:[#allocation9_spill] sm:$0xff] }
  0xc4   :  { %v953_v46 = vmul.f32 %v6706_v5, %v6706_v5  ;;  %v1015_v18 = vsel %vm204_vm1, %v951_v4, 0.0  ;;  %v704_v26 = vadd.f32 %v703_v20, %v702_v58  ;;  %v826_v47 = vadd.f32 %v825_v7, %v824_v63  ;;  %v6930_v5 = vld [vmem:[%s11159_s3 + $0x138] sm:$0x3] }
  0xc5   :  { %v914_v44 = vadd.f32 %v913_v27, %v912_v40  ;;  %v1014_v12 = vadd.f32 %v1013_v50, %v1012_v57  ;;  %v827_v60 = vsel %vm204_vm1, %v751_v38, 0.0  ;;  %v915_v55 = vsel %vm202_vm0, %v6912_v56, 0.0 }
  0xc6   :  { %v954_v30 = vmul.f32 %v6718_v19, %v6718_v19  ;;  %v1017_v24 = vsel %vm202_vm0, %v952_v8, 0.0  ;;  %v406_v29 = vadd.f32 %v11571_v45, %v404_v35  ;;  %v619_v1 = vsel %vm204_vm1, %v11572_v49, 0.0 }
  0xc7   :  { %v753_v62 = vmul.f32 %v161_v25, %v161_v25  ;;  %v1016_v2 = vadd.f32 %v1015_v18, %v1014_v12  ;;  %v495_v43 = vrot.slane %v494_v42, 4  ;;  %v618_v32 = vadd.f32 %v11573_v36, %v616_v53 }
  0xc8   :  { %v955_v19 = vmul.f32 %v6732_v39, %v6732_v39  ;;  %v1019_v54 = vsel %vm204_vm1, %v953_v46, 0.0  ;;  %v706_v33 = vadd.f32 %v705_v52, %v704_v26  ;;  %v828_v14 = vadd.f32 %v827_v60, %v826_v47 }
  0xc9   :  { %v916_v31 = vadd.f32 %v915_v55, %v914_v44  ;;  %v1018_v20 = vadd.f32 %v1017_v24, %v1016_v2  ;;  %v829_v38 = vsel %vm202_vm0, %v752_v51, 0.0  ;;  %v917_v3 = vsel %vm204_vm1, %v6930_v5, 0.0 }
  0xca   :  { %v956_v25 = vmul.f32 %v6744_v13, %v6744_v13  ;;  %v1021_v59 = vsel %vm202_vm0, %v954_v30, 0.0  ;;  %v11575_v23 = vrot.slane %v11574_v21, 4  ;;  %v408_v4 = vadd.f32 %v11576_v9, %v406_v29 }
  0xcb   :  { %v1020_v41 = vadd.f32 %v1019_v54, %v1018_v20  ;;  %v496_v58 = vadd.f32 %v495_v43, %v494_v42  ;;  %v620_v63 = vadd.f32 %v619_v1, %v618_v32  ;;  %v957_v40 = vmul.f32 %v6758_v22, %v6758_v22 }
  0xcc   :  { %v284_v39 = vadd.f32 %v11575_v23, %v11574_v21  ;;  %v1023_v37 = vsel %vm204_vm1, %v955_v19, 0.0  ;;  %v707_v7 = vrot.slane %v706_v33, 4  ;;  %v830_v27 = vadd.f32 %v829_v38, %v828_v14 }
  0xcd   :  { %v918_v8 = vadd.f32 %v917_v3, %v916_v31  ;;  %v1022_v13 = vadd.f32 %v1021_v59, %v1020_v41  ;;  %v831_v50 = vsel %vm204_vm1, %v753_v62, 0.0  ;;  %v958_v61 = vmul.f32 %v6770_v0, %v6770_v0 }
  0xce   :  { %v1025_v35 = vsel %vm202_vm0, %v956_v25, 0.0  ;;  %v285_v52 = vrot.slane %v284_v39, 2  ;;  %v409_v51 = vrot.slane %v408_v4, 4  ;;  %v497_v28 = vrot.slane %v496_v58, 2 }
  0xcf   :  { %v1024_v57 = vadd.f32 %v1023_v37, %v1022_v13  ;;  %v621_v42 = vrot.slane %v620_v63, 4  ;;  %v959_v22 = vmul.f32 %v6794_v34, %v6794_v34  ;;  %v1027_v6 = vsel %vm204_vm1, %v957_v40, 0.0 }
  0xd0   :  { %v708_v53 = vadd.f32 %v707_v7, %v706_v33  ;;  %v832_v46 = vadd.f32 %v831_v50, %v830_v27  ;;  %v919_v18 = vrot.slane %v918_v8, 4  ;;  %v960_v47 = vmul.f32 %v6817_v16, %v6817_v16 }
  0xd1   :  { %v1026_v26 = vadd.f32 %v1025_v35, %v1024_v57  ;;  %v1029_v0 = vsel %vm202_vm0, %v958_v61, 0.0  ;;  %v286_v44 = vadd.f32 %v285_v52, %v284_v39  ;;  %v410_v12 = vadd.f32 %v409_v51, %v408_v4 }
  0xd2   :  { %v498_v55 = vadd.f32 %v497_v28, %v496_v58  ;;  %v622_v30 = vadd.f32 %v621_v42, %v620_v63  ;;  %v961_v24 = vmul.f32 %v6841_v10, %v6841_v10  ;;  %v1031_v34 = vsel %vm204_vm1, %v959_v22, 0.0 }
  0xd3   :  { %v1028_v60 = vadd.f32 %v1027_v6, %v1026_v26  ;;  %v709_v45 = vrot.slane %v708_v53, 2  ;;  %v833_v29 = vrot.slane %v832_v46, 4  ;;  %v920_v49 = vadd.f32 %v919_v18, %v918_v8 }
  0xd4   :  { %v962_v62 = vmul.f32 %v6865_v15, %v6865_v15  ;;  %v1033_v16 = vsel %vm202_vm0, %v960_v47, 0.0  ;;  %v287_v2 = vrot.slane %v286_v44, 1  ;;  %v411_v43 = vrot.slane %v410_v12, 2 }
  0xd5   :  { %v1030_v1 = vadd.f32 %v1029_v0, %v1028_v60  ;;  %v499_v32 = vrot.slane %v498_v55, 1  ;;  %v623_v19 = vrot.slane %v622_v30, 2  ;;  %v963_v54 = vmul.f32 %v6889_v17, %v6889_v17 }
  0xd6   :  { %v1035_v10 = vsel %vm204_vm1, %v961_v24, 0.0  ;;  %v710_v33 = vadd.f32 %v709_v45, %v708_v53  ;;  %v834_v14 = vadd.f32 %v833_v29, %v832_v46  ;;  %v921_v31 = vrot.slane %v920_v49, 2 }
  0xd7   :  { %v1032_v36 = vadd.f32 %v1031_v34, %v1030_v1  ;;  %v964_v38 = vmul.f32 %v6912_v56, %v6912_v56  ;;  %v1037_v15 = vsel %vm202_vm0, %v962_v62, 0.0  ;;  %v288_v3 = vadd.f32 %v287_v2, %v286_v44  ;;  %v1056_v1 = vld [vmem:[%s11162_s6] sm:$0x1] }
  0xd8   :  { %v412_v25 = vadd.f32 %v411_v43, %v410_v12  ;;  %v500_v21 = vadd.f32 %v499_v32, %v498_v55  ;;  %v624_v23 = vadd.f32 %v623_v19, %v622_v30  ;;  %v965_v39 = vmul.f32 %v6930_v5, %v6930_v5  ;;  %v1698_v2 = vld [vmem:[%s11160_s4] sm:$0xff] }
  0xd9   :  { %v1034_v20 = vadd.f32 %v1033_v16, %v1032_v36  ;;  %v1039_v17 = vsel %vm204_vm1, %v963_v54, 0.0  ;;  %v711_v9 = vrot.slane %v710_v33, 1  ;;  %v835_v4 = vrot.slane %v834_v14, 2  ;;  %v1060_v54 = vld [vmem:[%s11163_s7] sm:$0x1] }
  0xda   :  { %v922_v41 = vadd.f32 %v921_v31, %v920_v49  ;;  %v1041_v63 = vsel %vm202_vm0, %v964_v38, 0.0  ;;  %v413_v56 = vrot.slane %v412_v25, 1  ;;  %v501_v37 = vadd.f32 %v500_v21, %v288_v3 }
  0xdb   :  { %v1036_v59 = vadd.f32 %v1035_v10, %v1034_v20  ;;  %v625_v7 = vrot.slane %v624_v23, 1  ;;  %v1043_v27 = vsel %vm204_vm1, %v965_v39, 0.0  ;;  %v712_v8 = vadd.f32 %v711_v9, %v710_v33  ;;  %v1699_v10 = vld [vmem:[%s11160_s4 + $0x8] sm:$0xff]  ;;  %v4944_v20 = vld [vmem:[%s11156_s0 + $0x10] sm:$0xff] }
  0xdc   :  { %v836_v13 = vadd.f32 %v835_v4, %v834_v14  ;;  %v923_v50 = vrot.slane %v922_v41, 1  ;;  %v414_v5 = vadd.f32 %v413_v56, %v412_v25  ;;  %v1063_v45 = vlaneseq  ;;  %v4949_v4 = vld [vmem:[%s11156_s0 + $0x38] sm:$0x3] }
  0xdd   :  { %v1038_v58 = vadd.f32 %v1037_v15, %v1036_v59  ;;  %v626_v52 = vadd.f32 %v625_v7, %v624_v23  ;;  %v713_v51 = vadd.f32 %v712_v8, %v501_v37  ;;  %v4945_v15 = vld [vmem:[%s11156_s0 + $0x18] sm:$0x3]  ;;  %v4946_v59 = vld [vmem:[%s11156_s0 + $0x20] sm:$0xff]  ;;  %v4947_v23 = vld [vmem:[%s11156_s0 + $0x28] sm:$0x3] }
  0xde   :  { %v837_v57 = vrot.slane %v836_v13, 1  ;;  %v924_v28 = vadd.f32 %v923_v50, %v922_v41  ;;  %v6979_v29 = vshrl.u32 %v1063_v45, 7  ;;  %v4952_v37 = vld [vmem:[%s11156_s0 + $0x50] sm:$0xff] }
  0xdf   :  { %v1040_v40 = vadd.f32 %v1039_v17, %v1038_v58  ;;  %v627_v6 = vadd.f32 %v626_v52, %v414_v5  ;;  %v4948_v17 = vld [vmem:[%s11156_s0 + $0x30] sm:$0xff]  ;;  %v4950_v58 = vld [vmem:[%s11156_s0 + $0x40] sm:$0xff] }
  0xe0   :  { %v838_v53 = vadd.f32 %v837_v57, %v836_v13  ;;  %v925_v46 = vadd.f32 %v924_v28, %v713_v51  ;;  %v6985_v16 = vsub.s32 0, %v6979_v29  ;;  %v6997_v19 = vsub.s32 2, %v6979_v29  ;;  %v4954_v13 = vld [vmem:[%s11156_s0 + $0x60] sm:$0xff]  ;;  %v4956_v5 = vld [vmem:[%s11156_s0 + $0x70] sm:$0xff]  ;;  %v4957_v51 = vld [vmem:[%s11156_s0 + $0x78] sm:$0x3] }
  0xe1   :  { %v1042_v61 = vadd.f32 %v1041_v63, %v1040_v40  ;;  %v7006_v33 = vadd.s32 8, %v6979_v29  ;;  %v4951_v40 = vld [vmem:[%s11156_s0 + $0x48] sm:$0x3]  ;;  %v4958_v28 = vld [vmem:[%s11156_s0 + $0x80] sm:$0xff]  ;;  %vm1066_vm2 = vcmp.gt.s32.totalorder %v6979_v29, 0 }
  0xe2   :  { %v839_v47 = vadd.f32 %v838_v53, %v627_v6  ;;  %v1052_v44 = vmul.f32 0.001953125, %v925_v46  ;;  %11577 = vst [vmem:[#allocation47_spill] sm:$0xff] %v6985_v16  ;;  %v6991_v43 = vrot.slane %v1698_v2, %v6985_v16  ;;  %11578 = vst [vmem:[#allocation17_spill] sm:$0xff] %v6997_v19  ;;  %v7024_v25 = vrot.slane %v1699_v10, %v6997_v19  ;;  %v4960_v53 = vld [vmem:[%s11156_s0 + $0xb0] sm:$0xff] }
  0xe3   :  { %v1044_v35 = vadd.f32 %v1043_v27, %v1042_v61  ;;  %v4953_v27 = vld [vmem:[%s11156_s0 + $0x58] sm:$0x3]  ;;  %v4955_v61 = vld [vmem:[%s11156_s0 + $0x68] sm:$0x3]  ;;  %vm1073_vm3 = vcmp.lt.s32.totalorder %v7006_v33, 9 }
  0xe4   :  { %v1054_v55 = vmul.f32 %v1052_v44, %v1052_v44  ;;  %v7009_v14 = vmul.f32 0.0, %v6991_v43 }
  0xe5   :  { %v1045_v42 = vrot.slane %v1044_v35, 4 }
  0xe6   :  { %11579 = vst [vmem:[#allocation48_spill] sm:$0xff] %v7009_v14 }
  0xe7   :  { %v1046_v22 = vadd.f32 %v1045_v42, %v1044_v35 }
  0xe9   :  { %v1047_v18 = vrot.slane %v1046_v22, 2 }
  0xeb   :  { %v1048_v26 = vadd.f32 %v1047_v18, %v1046_v22  ;;  %v4959_v22 = vld [vmem:[%s11156_s0 + $0x88] sm:$0x3]  ;;  %v4961_v18 = vld [vmem:[%s11156_s0 + $0xb8] sm:$0x3] }
  0xed   :  { %v1049_v0 = vrot.slane %v1048_v26, 1 }
  0xef   :  { %v1050_v12 = vadd.f32 %v1049_v0, %v1048_v26 }
  0xf1   :  { %v1051_v60 = vadd.f32 %v1050_v12, %v839_v47  ;;  %v4962_v47 = vld [vmem:[%s11156_s0 + $0xc0] sm:$0xff] }
  0xf3   :  { %v1053_v30 = vmul.f32 0.001953125, %v1051_v60  ;;  %v4964_v60 = vld [vmem:[%s11156_s0 + $0xd0] sm:$0xff] }
  0xf5   :  { %v1055_v24 = vsub.f32 %v1053_v30, %v1054_v55  ;;  %v4965_v30 = vld [vmem:[%s11156_s0 + $0xd8] sm:$0x3] }
  0xf7   :  { %v1057_v34 = vadd.f32 1e-05, %v1055_v24 }
  0xf9   :  { %4938 = vrsqrt.f32 %v1057_v34  ;;  %v4966_v34 = vld [vmem:[%s11156_s0 + $0xe0] sm:$0xff] }
 0x103   :  { %v4939_v49 = vpop.eup %4938 }
 0x104   :  { %v1059_v62 = vmul.f32 %v4939_v49, %v1056_v1  ;;  %v4967_v49 = vld [vmem:[%s11156_s0 + $0xe8] sm:$0x3] }
 0x106   :  { %v1061_v36 = vmul.f32 %v1059_v62, %v1052_v44  ;;  %v6994_v32 = vrot.slane %v1059_v62, %v6985_v16  ;;  %v4963_v44 = vld [vmem:[%s11156_s0 + $0xc8] sm:$0x3]  ;;  %v4968_v62 = vld [vmem:[%s11156_s0 + $0xf0] sm:$0xff] }
 0x108   :  { %v1062_v31 = vsub.f32 %v1060_v54, %v1061_v36  ;;  %v7015_v38 = vmul.f32 %v4944_v20, %v6994_v32  ;;  %v7021_v3 = vmul.f32 %v4945_v15, %v6994_v32  ;;  %v7030_v21 = vmul.f32 %v4946_v59, %v6994_v32  ;;  %v4969_v54 = vld [vmem:[%s11156_s0 + $0xf8] sm:$0x3]  ;;  %v4970_v20 = vld [vmem:[%s11156_s0 + $0x100] sm:$0xff]  ;;  %v4971_v59 = vld [vmem:[%s11156_s0 + $0x108] sm:$0x3] }
 0x109   :  { %v7036_v39 = vmul.f32 %v4947_v23, %v6994_v32  ;;  %v7042_v9 = vmul.f32 %v4948_v17, %v6994_v32  ;;  %v7048_v41 = vmul.f32 %v4949_v4, %v6994_v32  ;;  %v7054_v63 = vmul.f32 %v4950_v58, %v6994_v32  ;;  %v4973_v4 = vld [vmem:[%s11156_s0 + $0x118] sm:$0x3] }
 0x10a   :  { %v7060_v56 = vmul.f32 %v4951_v40, %v6994_v32  ;;  %v7066_v7 = vmul.f32 %v4952_v37, %v6994_v32  ;;  %v7072_v8 = vmul.f32 %v4953_v27, %v6994_v32  ;;  %v7078_v50 = vmul.f32 %v4954_v13, %v6994_v32  ;;  %v4974_v40 = vld [vmem:[%s11156_s0 + $0x120] sm:$0xff]  ;;  %v4975_v27 = vld [vmem:[%s11156_s0 + $0x128] sm:$0x3] }
 0x10b   :  { %v7084_v35 = vmul.f32 %v4955_v61, %v6994_v32  ;;  %v7090_v52 = vmul.f32 %v4956_v5, %v6994_v32  ;;  %v7096_v57 = vmul.f32 %v4957_v51, %v6994_v32  ;;  %v1100_v42 = vmul.f32 %v4958_v28, %v6994_v32  ;;  %v4976_v61 = vld [vmem:[%s11157_s1 + $0x10] sm:$0xff]  ;;  %v4977_v51 = vld [vmem:[%s11157_s1 + $0x18] sm:$0x3] }
 0x10c   :  { %v1101_v6 = vmul.f32 %v4959_v22, %v6994_v32  ;;  %v1106_v46 = vmul.f32 %v4960_v53, %v6994_v32  ;;  %v1107_v26 = vmul.f32 %v4961_v18, %v6994_v32  ;;  %v1108_v0 = vmul.f32 %v4962_v47, %v6994_v32  ;;  %v4978_v22 = vld [vmem:[%s11157_s1 + $0x20] sm:$0xff]  ;;  %v4979_v18 = vld [vmem:[%s11157_s1 + $0x28] sm:$0x3] }
 0x10d   :  { %v1109_v12 = vmul.f32 %v4963_v44, %v6994_v32  ;;  %v1110_v55 = vmul.f32 %v4964_v60, %v6994_v32  ;;  %v1111_v24 = vmul.f32 %v4965_v30, %v6994_v32  ;;  %v1112_v45 = vmul.f32 %v4966_v34, %v6994_v32  ;;  %v4980_v44 = vld [vmem:[%s11157_s1 + $0x30] sm:$0xff] }
 0x10e   :  { %v1113_v1 = vmul.f32 %v4967_v49, %v6994_v32  ;;  %v1114_v2 = vmul.f32 %v4968_v62, %v6994_v32  ;;  %v7143_v36 = vrot.slane %v1062_v31, %v6985_v16  ;;  %v1115_v10 = vmul.f32 %v4969_v54, %v6994_v32  ;;  %v4972_v31 = vld [vmem:[%s11156_s0 + $0x110] sm:$0xff]  ;;  %v4981_v62 = vld [vmem:[%s11157_s1 + $0x38] sm:$0x3] }
 0x10f   :  { %v1116_v15 = vmul.f32 %v4970_v20, %v6994_v32  ;;  %v1117_v23 = vmul.f32 %v4971_v59, %v6994_v32  ;;  %v1118_v17 = vmul.f32 %v4972_v31, %v6994_v32  ;;  %v1119_v58 = vmul.f32 %v4973_v4, %v6994_v32 }
 0x110   :  { %v1120_v37 = vmul.f32 %v4974_v40, %v6994_v32  ;;  %v1121_v13 = vmul.f32 %v4975_v27, %v6994_v32  ;;  %v7177_v5 = vmul.f32 %v4976_v61, %v6994_v32  ;;  %v7183_v28 = vmul.f32 %v4977_v51, %v6994_v32 }
 0x111   :  { %v7189_v53 = vmul.f32 %v4978_v22, %v6994_v32  ;;  %v7195_v47 = vmul.f32 %v4979_v18, %v6994_v32  ;;  %v7201_v60 = vmul.f32 %v4980_v44, %v6994_v32  ;;  %v7205_v30 = vadd.f32 %v7143_v36, %v7015_v38 }
 0x112   :  { %v7209_v34 = vadd.f32 %v7143_v36, %v7021_v3  ;;  %v7213_v49 = vadd.f32 %v7143_v36, %v7030_v21  ;;  %v7219_v54 = vmul.f32 %v4981_v62, %v6994_v32  ;;  %v7223_v20 = vadd.f32 %v7143_v36, %v7036_v39 }
 0x113   :  { %v7227_v38 = vadd.f32 %v7143_v36, %v7042_v9  ;;  %v7231_v3 = vadd.f32 %v7143_v36, %v7048_v41  ;;  %v7235_v21 = vadd.f32 %v7143_v36, %v7054_v63  ;;  %v7239_v59 = vadd.f32 %v7143_v36, %v7060_v56 }
 0x114   :  { %v7243_v39 = vadd.f32 %v7143_v36, %v7066_v7  ;;  %v7247_v9 = vadd.f32 %v7143_v36, %v7072_v8  ;;  %v7251_v41 = vadd.f32 %v7143_v36, %v7078_v50  ;;  %v7255_v63 = vadd.f32 %v7143_v36, %v7084_v35 }
 0x115   :  { %v7259_v56 = vadd.f32 %v7143_v36, %v7090_v52  ;;  %v7263_v7 = vadd.f32 %v7143_v36, %v7096_v57  ;;  %v7266_v31 = vadd.f32 %v7143_v36, %v1100_v42  ;;  %v7269_v8 = vadd.f32 %v7143_v36, %v1101_v6 }
 0x116   :  { %v7272_v50 = vadd.f32 %v7143_v36, %v1106_v46  ;;  %v7275_v35 = vadd.f32 %v7143_v36, %v1107_v26  ;;  %v7278_v4 = vadd.f32 %v7143_v36, %v1108_v0  ;;  %v7283_v52 = vadd.f32 %v7143_v36, %v1109_v12 }
 0x117   :  { %v7286_v57 = vadd.f32 %v7143_v36, %v1110_v55  ;;  %v7289_v42 = vadd.f32 %v7143_v36, %v1111_v24  ;;  %v7292_v6 = vadd.f32 %v7143_v36, %v1112_v45  ;;  %v7295_v46 = vadd.f32 %v7143_v36, %v1113_v1 }
 0x118   :  { %v7298_v26 = vadd.f32 %v7143_v36, %v1114_v2  ;;  %v7301_v0 = vadd.f32 %v7143_v36, %v1115_v10  ;;  %v7304_v12 = vadd.f32 %v7143_v36, %v1116_v15  ;;  %v7307_v55 = vadd.f32 %v7143_v36, %v1117_v23 }
 0x119   :  { %v7310_v24 = vadd.f32 %v7143_v36, %v1118_v17  ;;  %v7313_v45 = vadd.f32 %v7143_v36, %v1119_v58  ;;  %v7316_v1 = vadd.f32 %v7143_v36, %v1120_v37  ;;  %v7319_v2 = vadd.f32 %v7143_v36, %v1121_v13 }
 0x11a   :  { %v1172_v10 = vmax.f32 %v7205_v30, 0.0  ;;  %v1173_v15 = vmax.f32 %v7209_v34, 0.0  ;;  %v1174_v40 = vmax.f32 %v7213_v49, 0.0  ;;  %v1175_v23 = vmax.f32 %v7223_v20, 0.0 }
 0x11b   :  { %v1176_v17 = vmax.f32 %v7227_v38, 0.0  ;;  %v1177_v27 = vmax.f32 %v7231_v3, 0.0  ;;  %v1178_v58 = vmax.f32 %v7235_v21, 0.0  ;;  %v1179_v37 = vmax.f32 %v7239_v59, 0.0 }
 0x11c   :  { %v1180_v61 = vmax.f32 %v7243_v39, 0.0  ;;  %v1181_v13 = vmax.f32 %v7247_v9, 0.0  ;;  %v1182_v51 = vmax.f32 %v7251_v41, 0.0  ;;  %v1183_v22 = vmax.f32 %v7255_v63, 0.0 }
 0x11d   :  { %v1184_v18 = vmax.f32 %v7259_v56, 0.0  ;;  %v1185_v44 = vmax.f32 %v7263_v7, 0.0  ;;  %v1186_v30 = vmax.f32 %v7266_v31, 0.0  ;;  %v1187_v34 = vmax.f32 %v7269_v8, 0.0 }
 0x11e   :  { %v1192_v49 = vmax.f32 %v7272_v50, 0.0  ;;  %v1193_v62 = vmax.f32 %v7275_v35, 0.0  ;;  %v1194_v20 = vmax.f32 %v7278_v4, 0.0  ;;  %v1195_v38 = vmax.f32 %v7283_v52, 0.0 }
 0x11f   :  { %v1196_v3 = vmax.f32 %v7286_v57, 0.0  ;;  %v1197_v21 = vmax.f32 %v7289_v42, 0.0  ;;  %v1198_v59 = vmax.f32 %v7292_v6, 0.0  ;;  %v1199_v39 = vmax.f32 %v7295_v46, 0.0 }
 0x120   :  { %v1200_v9 = vmax.f32 %v7298_v26, 0.0  ;;  %v1201_v41 = vmax.f32 %v7301_v0, 0.0  ;;  %v1202_v63 = vmax.f32 %v7304_v12, 0.0  ;;  %v1203_v56 = vmax.f32 %v7307_v55, 0.0 }
 0x121   :  { %v1204_v7 = vmax.f32 %v7310_v24, 0.0  ;;  %v1205_v31 = vmax.f32 %v7313_v45, 0.0  ;;  %v1206_v8 = vmax.f32 %v7316_v1, 0.0  ;;  %v1207_v50 = vmax.f32 %v7319_v2, 0.0 }
 0x122   :  { %v7355_v35 = vsel %vm1066_vm2, %v1172_v10, 0.0  ;;  %v7359_v4 = vsel %vm1073_vm3, %v1173_v15, 0.0  ;;  %v7363_v52 = vsel %vm1066_vm2, %v1174_v40, 0.0  ;;  %v7367_v57 = vsel %vm1073_vm3, %v1175_v23, 0.0 }
 0x123   :  { %11580 = vst [vmem:[#allocation28_spill] sm:$0xff] %v7355_v35  ;;  %11581 = vst [vmem:[#allocation54_spill] sm:$0xff] %v7359_v4  ;;  %v7371_v42 = vsel %vm1066_vm2, %v1176_v17, 0.0  ;;  %v7375_v6 = vsel %vm1073_vm3, %v1177_v27, 0.0  ;;  %v7379_v46 = vsel %vm1066_vm2, %v1178_v58, 0.0  ;;  %v7383_v26 = vsel %vm1073_vm3, %v1179_v37, 0.0 }
 0x124   :  { %11582 = vst [vmem:[#allocation24_spill] sm:$0xff] %v7363_v52  ;;  %11583 = vst [vmem:[#allocation29_spill] sm:$0xff] %v7367_v57  ;;  %v7387_v0 = vsel %vm1066_vm2, %v1180_v61, 0.0  ;;  %v7391_v12 = vsel %vm1073_vm3, %v1181_v13, 0.0  ;;  %v7395_v55 = vsel %vm1066_vm2, %v1182_v51, 0.0  ;;  %v7399_v24 = vsel %vm1073_vm3, %v1183_v22, 0.0 }
 0x125   :  { %11584 = vst [vmem:[#allocation30_spill] sm:$0xff] %v7371_v42  ;;  %11585 = vst [vmem:[#allocation25_spill] sm:$0xff] %v7375_v6  ;;  %v7403_v45 = vsel %vm1066_vm2, %v1184_v18, 0.0  ;;  %v7407_v1 = vsel %vm1073_vm3, %v1185_v44, 0.0  ;;  %v7411_v2 = vsel %vm1066_vm2, %v1186_v30, 0.0  ;;  %v7415_v10 = vsel %vm1073_vm3, %v1187_v34, 0.0 }
 0x126   :  { %11586 = vst [vmem:[#allocation31_spill] sm:$0xff] %v7379_v46  ;;  %11587 = vst [vmem:[#allocation35_spill] sm:$0xff] %v7383_v26  ;;  %v7419_v15 = vsel %vm1066_vm2, %v1192_v49, 0.0  ;;  %v7423_v40 = vsel %vm1073_vm3, %v1193_v62, 0.0  ;;  %v7427_v23 = vsel %vm1066_vm2, %v1194_v20, 0.0  ;;  %v7431_v17 = vsel %vm1073_vm3, %v1195_v38, 0.0 }
 0x127   :  { %11588 = vst [vmem:[#allocation36_spill] sm:$0xff] %v7387_v0  ;;  %11589 = vst [vmem:[#allocation39_spill] sm:$0xff] %v7391_v12  ;;  %v7435_v27 = vsel %vm1066_vm2, %v1196_v3, 0.0  ;;  %v7439_v58 = vsel %vm1073_vm3, %v1197_v21, 0.0  ;;  %v7443_v37 = vsel %vm1066_vm2, %v1198_v59, 0.0  ;;  %v7447_v61 = vsel %vm1073_vm3, %v1199_v39, 0.0 }
 0x128   :  { %11590 = vst [vmem:[#allocation40_spill] sm:$0xff] %v7395_v55  ;;  %11591 = vst [vmem:[#allocation41_spill] sm:$0xff] %v7399_v24  ;;  %v7451_v13 = vsel %vm1066_vm2, %v1200_v9, 0.0  ;;  %v7455_v51 = vsel %vm1073_vm3, %v1201_v41, 0.0  ;;  %v7459_v22 = vsel %vm1066_vm2, %v1202_v63, 0.0  ;;  %v7463_v18 = vsel %vm1073_vm3, %v1203_v56, 0.0 }
 0x129   :  { %11592 = vst [vmem:[#allocation42_spill] sm:$0xff] %v7403_v45  ;;  %11593 = vst [vmem:[#allocation43_spill] sm:$0xff] %v7407_v1  ;;  %v7467_v44 = vsel %vm1066_vm2, %v1204_v7, 0.0  ;;  %v7471_v30 = vsel %vm1073_vm3, %v1205_v31, 0.0  ;;  %v7475_v34 = vsel %vm1066_vm2, %v1206_v8, 0.0  ;;  %v7479_v49 = vsel %vm1073_vm3, %v1207_v50, 0.0 }
 0x12a   :  { %11594 = vst [vmem:[#allocation44_spill] sm:$0xff] %v7411_v2  ;;  %11595 = vst [vmem:[#allocation45_spill] sm:$0xff] %v7415_v10  ;;  %v4982_v62 = vld [vmem:[%s11157_s1 + $0x40] sm:$0xff]  ;;  %v4983_v38 = vld [vmem:[%s11157_s1 + $0x48] sm:$0x3]  ;;  %v7591_v4 = vadd.f32 %v7183_v28, %v7143_v36  ;;  %v7603_v19 = vadd.f32 %v7201_v60, %v7143_v36  ;;  %v1712_v33 = vmul.f32 %v6991_v43, %v7395_v55 }
 0x12b   :  { %11596 = vst [vmem:[#allocation49_spill] sm:$0xff] %v7419_v15  ;;  %11597 = vst [vmem:[#allocation50_spill] sm:$0xff] %v7423_v40  ;;  %v1258_v20 = vmul.f32 %v4982_v62, %v6994_v32  ;;  %v1259_v3 = vmul.f32 %v4983_v38, %v6994_v32  ;;  %v4984_v21 = vld [vmem:[%s11157_s1 + $0x50] sm:$0xff]  ;;  %v4985_v39 = vld [vmem:[%s11157_s1 + $0x58] sm:$0x3] }
 0x12c   :  { %11598 = vst [vmem:[#allocation51_spill] sm:$0xff] %v7427_v23  ;;  %11599 = vst [vmem:[#allocation52_spill] sm:$0xff] %v7431_v17  ;;  %v1260_v59 = vmul.f32 %v4984_v21, %v6994_v32  ;;  %v1261_v9 = vmul.f32 %v4985_v39, %v6994_v32  ;;  %v4986_v41 = vld [vmem:[%s11157_s1 + $0x60] sm:$0xff]  ;;  %v4987_v56 = vld [vmem:[%s11157_s1 + $0x68] sm:$0x3] }
 0x12d   :  { %11600 = vst [vmem:[#allocation53_spill] sm:$0xff] %v7435_v27  ;;  %11601 = vst [vmem:[#allocation55_spill] sm:$0xff] %v7439_v58  ;;  %v1262_v63 = vmul.f32 %v4986_v41, %v6994_v32  ;;  %v1263_v7 = vmul.f32 %v4987_v56, %v6994_v32  ;;  %v4988_v31 = vld [vmem:[%s11157_s1 + $0x70] sm:$0xff]  ;;  %v4989_v50 = vld [vmem:[%s11157_s1 + $0x78] sm:$0x3]  ;;  %v7613_v28 = vadd.f32 %v1259_v3, %v7143_v36 }
 0x12e   :  { %11602 = vst [vmem:[#allocation56_spill] sm:$0xff] %v7443_v37  ;;  %11603 = vst [vmem:[#allocation57_spill] sm:$0xff] %v7447_v61  ;;  %v1264_v8 = vmul.f32 %v4988_v31, %v6994_v32  ;;  %v1265_v62 = vmul.f32 %v4989_v50, %v6994_v32  ;;  %v4990_v38 = vld [vmem:[%s11157_s1 + $0x80] sm:$0xff]  ;;  %v4991_v39 = vld [vmem:[%s11157_s1 + $0x88] sm:$0x3] }
 0x12f   :  { %11604 = vst [vmem:[#allocation58_spill] sm:$0xff] %v7451_v13  ;;  %11605 = vst [vmem:[#allocation59_spill] sm:$0xff] %v7455_v51  ;;  %v1266_v21 = vmul.f32 %v4990_v38, %v6994_v32  ;;  %v1267_v41 = vmul.f32 %v4991_v39, %v6994_v32  ;;  %v4992_v56 = vld [vmem:[%s11157_s1 + $0xb0] sm:$0xff]  ;;  %v4993_v50 = vld [vmem:[%s11157_s1 + $0xb8] sm:$0x3]  ;;  %v7622_v16 = vadd.f32 %v1262_v63, %v7143_v36 }
 0x130   :  { %11606 = vst [vmem:[#allocation60_spill] sm:$0xff] %v7459_v22  ;;  %11607 = vst [vmem:[#allocation33_spill] sm:$0xff] %v7463_v18  ;;  %v1272_v31 = vmul.f32 %v4992_v56, %v6994_v32  ;;  %v4994_v38 = vld [vmem:[%s11157_s1 + $0xc0] sm:$0xff]  ;;  %v4995_v39 = vld [vmem:[%s11157_s1 + $0xc8] sm:$0x3]  ;;  %v7625_v60 = vadd.f32 %v1263_v7, %v7143_v36 }
 0x131   :  { %11608 = vst [vmem:[#allocation46_spill] sm:$0xff] %v7467_v44  ;;  %11609 = vst [vmem:[#allocation16_spill] sm:$0xff] %v7471_v30  ;;  %v1274_v10 = vmul.f32 %v4994_v38, %v6994_v32  ;;  %v1275_v30 = vmul.f32 %v4995_v39, %v6994_v32  ;;  %v4996_v56 = vld [vmem:[%s11157_s1 + $0xd0] sm:$0xff]  ;;  %v4998_v38 = vld [vmem:[%s11157_s1 + $0xe0] sm:$0xff]  ;;  %v7634_v3 = vadd.f32 %v1266_v21, %v7143_v36 }
 0x132   :  { %11610 = vst [vmem:[#allocation14_spill] sm:$0xff] %v7475_v34  ;;  %11611 = vst [vmem:[#allocation23_spill] sm:$0xff] %v7479_v49  ;;  %v1273_v49 = vmul.f32 %v4993_v50, %v6994_v32  ;;  %v1276_v18 = vmul.f32 %v4996_v56, %v6994_v32  ;;  %v4997_v50 = vld [vmem:[%s11157_s1 + $0xd8] sm:$0x3]  ;;  %v1278_v61 = vmul.f32 %v4998_v38, %v6994_v32  ;;  %v4999_v39 = vld [vmem:[%s11157_s1 + $0xe8] sm:$0x3] }
 0x133   :  { %v1277_v51 = vmul.f32 %v4997_v50, %v6994_v32  ;;  %v1279_v58 = vmul.f32 %v4999_v39, %v6994_v32  ;;  %v5000_v56 = vld [vmem:[%s11157_s1 + $0xf0] sm:$0xff]  ;;  %v5001_v50 = vld [vmem:[%s11157_s1 + $0xf8] sm:$0x3]  ;;  %v5002_v38 = vld [vmem:[%s11157_s1 + $0x100] sm:$0xff]  ;;  %v7646_v7 = vadd.f32 %v1274_v10, %v7143_v36 }
 0x134   :  { %v1280_v17 = vmul.f32 %v5000_v56, %v6994_v32  ;;  %v1281_v40 = vmul.f32 %v5001_v50, %v6994_v32  ;;  %v1282_v1 = vmul.f32 %v5002_v38, %v6994_v32  ;;  %v5003_v39 = vld [vmem:[%s11157_s1 + $0x108] sm:$0x3]  ;;  %v5004_v56 = vld [vmem:[%s11157_s1 + $0x110] sm:$0xff]  ;;  %v5005_v50 = vld [vmem:[%s11157_s1 + $0x118] sm:$0x3]  ;;  %v7643_v63 = vadd.f32 %v1273_v49, %v7143_v36 }
 0x135   :  { %v1283_v24 = vmul.f32 %v5003_v39, %v6994_v32  ;;  %v1284_v12 = vmul.f32 %v5004_v56, %v6994_v32  ;;  %v1285_v26 = vmul.f32 %v5005_v50, %v6994_v32  ;;  %v5006_v38 = vld [vmem:[%s11157_s1 + $0x120] sm:$0xff]  ;;  %v5007_v39 = vld [vmem:[%s11157_s1 + $0x128] sm:$0x3]  ;;  %v7587_v56 = vadd.f32 %v7177_v5, %v7143_v36 }
 0x136   :  { %v1286_v6 = vmul.f32 %v5006_v38, %v6994_v32  ;;  %v1287_v57 = vmul.f32 %v5007_v39, %v6994_v32  ;;  %v7595_v50 = vadd.f32 %v7189_v53, %v7143_v36  ;;  %v7599_v38 = vadd.f32 %v7195_v47, %v7143_v36 }
 0x137   :  { %v7607_v5 = vadd.f32 %v7219_v54, %v7143_v36  ;;  %v7610_v39 = vadd.f32 %v1258_v20, %v7143_v36  ;;  %v7616_v53 = vadd.f32 %v1260_v59, %v7143_v36  ;;  %v7619_v47 = vadd.f32 %v1261_v9, %v7143_v36 }
 0x138   :  { %v7628_v54 = vadd.f32 %v1264_v8, %v7143_v36  ;;  %v7631_v20 = vadd.f32 %v1265_v62, %v7143_v36  ;;  %v7637_v59 = vadd.f32 %v1267_v41, %v7143_v36  ;;  %v7640_v9 = vadd.f32 %v1272_v31, %v7143_v36 }
 0x139   :  { %v7649_v8 = vadd.f32 %v1275_v30, %v7143_v36  ;;  %v7652_v62 = vadd.f32 %v1276_v18, %v7143_v36  ;;  %v7655_v21 = vadd.f32 %v1277_v51, %v7143_v36  ;;  %v7658_v41 = vadd.f32 %v1278_v61, %v7143_v36 }
 0x13a   :  { %v7661_v31 = vadd.f32 %v1279_v58, %v7143_v36  ;;  %v7664_v49 = vadd.f32 %v1280_v17, %v7143_v36  ;;  %v7667_v10 = vadd.f32 %v1281_v40, %v7143_v36  ;;  %v7670_v30 = vadd.f32 %v1282_v1, %v7143_v36 }
 0x13b   :  { %v7673_v18 = vadd.f32 %v1283_v24, %v7143_v36  ;;  %v7676_v51 = vadd.f32 %v1284_v12, %v7143_v36  ;;  %v7679_v61 = vadd.f32 %v1285_v26, %v7143_v36  ;;  %v7682_v58 = vadd.f32 %v1286_v6, %v7143_v36 }
 0x13c   :  { %v7685_v17 = vadd.f32 %v1287_v57, %v7143_v36  ;;  %v1332_v40 = vmax.f32 %v7587_v56, 0.0  ;;  %v1333_v1 = vmax.f32 %v7591_v4, 0.0  ;;  %v1334_v14 = vmax.f32 %v7595_v50, 0.0 }
 0x13d   :  { %v1335_v24 = vmax.f32 %v7599_v38, 0.0  ;;  %v1336_v12 = vmax.f32 %v7603_v19, 0.0  ;;  %v1337_v34 = vmax.f32 %v7607_v5, 0.0  ;;  %v1338_v26 = vmax.f32 %v7610_v39, 0.0 }
 0x13e   :  { %v1339_v6 = vmax.f32 %v7613_v28, 0.0  ;;  %v1340_v2 = vmax.f32 %v7616_v53, 0.0  ;;  %v1341_v57 = vmax.f32 %v7619_v47, 0.0  ;;  %v1342_v56 = vmax.f32 %v7622_v16, 0.0 }
 0x13f   :  { %v1343_v4 = vmax.f32 %v7625_v60, 0.0  ;;  %v1344_v50 = vmax.f32 %v7628_v54, 0.0  ;;  %v1345_v38 = vmax.f32 %v7631_v20, 0.0  ;;  %v1346_v19 = vmax.f32 %v7634_v3, 0.0 }
 0x140   :  { %v1347_v5 = vmax.f32 %v7637_v59, 0.0  ;;  %v1352_v39 = vmax.f32 %v7640_v9, 0.0  ;;  %v1353_v28 = vmax.f32 %v7643_v63, 0.0  ;;  %v1354_v53 = vmax.f32 %v7646_v7, 0.0 }
 0x141   :  { %v1355_v47 = vmax.f32 %v7649_v8, 0.0  ;;  %v1356_v16 = vmax.f32 %v7652_v62, 0.0  ;;  %v1357_v60 = vmax.f32 %v7655_v21, 0.0  ;;  %v1358_v54 = vmax.f32 %v7658_v41, 0.0 }
 0x142   :  { %v1359_v20 = vmax.f32 %v7661_v31, 0.0  ;;  %v1360_v3 = vmax.f32 %v7664_v49, 0.0  ;;  %v1361_v59 = vmax.f32 %v7667_v10, 0.0  ;;  %v1362_v9 = vmax.f32 %v7670_v30, 0.0 }
 0x143   :  { %v1363_v63 = vmax.f32 %v7673_v18, 0.0  ;;  %v1364_v7 = vmax.f32 %v7676_v51, 0.0  ;;  %v1365_v8 = vmax.f32 %v7679_v61, 0.0  ;;  %v1366_v62 = vmax.f32 %v7682_v58, 0.0 }
 0x144   :  { %v1367_v21 = vmax.f32 %v7685_v17, 0.0  ;;  %v7721_v41 = vsel %vm1066_vm2, %v1332_v40, 0.0  ;;  %v7725_v31 = vsel %vm1073_vm3, %v1333_v1, 0.0  ;;  %v7729_v49 = vsel %vm1066_vm2, %v1334_v14, 0.0 }
 0x145   :  { %11612 = vst [vmem:[#allocation26_spill] sm:$0xff] %v7721_v41  ;;  %11613 = vst [vmem:[#allocation37_spill] sm:$0xff] %v7725_v31  ;;  %v7733_v10 = vsel %vm1073_vm3, %v1335_v24, 0.0  ;;  %v7737_v30 = vsel %vm1066_vm2, %v1336_v12, 0.0  ;;  %v7741_v18 = vsel %vm1073_vm3, %v1337_v34, 0.0  ;;  %v7745_v51 = vsel %vm1066_vm2, %v1338_v26, 0.0 }
 0x146   :  { %11614 = vst [vmem:[#allocation5_spill] sm:$0xff] %v7729_v49  ;;  %11615 = vst [vmem:[#allocation10_spill] sm:$0xff] %v7733_v10  ;;  %v7749_v14 = vsel %vm1073_vm3, %v1339_v6, 0.0  ;;  %v7753_v61 = vsel %vm1066_vm2, %v1340_v2, 0.0  ;;  %v7757_v58 = vsel %vm1073_vm3, %v1341_v57, 0.0  ;;  %v7761_v34 = vsel %vm1066_vm2, %v1342_v56, 0.0 }
 0x147   :  { %11616 = vst [vmem:[#allocation15_spill] sm:$0xff] %v7737_v30  ;;  %11617 = vst [vmem:[#allocation6_spill] sm:$0xff] %v7741_v18  ;;  %v7765_v17 = vsel %vm1073_vm3, %v1343_v4, 0.0  ;;  %v7769_v40 = vsel %vm1066_vm2, %v1344_v50, 0.0  ;;  %v7773_v2 = vsel %vm1073_vm3, %v1345_v38, 0.0  ;;  %v7777_v1 = vsel %vm1066_vm2, %v1346_v19, 0.0 }
 0x148   :  { %11618 = vst [vmem:[#allocation11_spill] sm:$0xff] %v7745_v51  ;;  %11619 = vst [vmem:[#allocation27_spill] sm:$0xff] %v7749_v14  ;;  %v7781_v24 = vsel %vm1073_vm3, %v1347_v5, 0.0  ;;  %v7785_v12 = vsel %vm1066_vm2, %v1352_v39, 0.0  ;;  %v7789_v26 = vsel %vm1073_vm3, %v1353_v28, 0.0  ;;  %v7793_v6 = vsel %vm1066_vm2, %v1354_v53, 0.0 }
 0x149   :  { %11620 = vst [vmem:[#allocation13_spill] sm:$0xff] %v7753_v61  ;;  %11621 = vst [vmem:[#allocation12_spill] sm:$0xff] %v7757_v58  ;;  %v7797_v57 = vsel %vm1073_vm3, %v1355_v47, 0.0  ;;  %v7801_v56 = vsel %vm1066_vm2, %v1356_v16, 0.0  ;;  %v7805_v4 = vsel %vm1073_vm3, %v1357_v60, 0.0  ;;  %v7809_v50 = vsel %vm1066_vm2, %v1358_v54, 0.0 }
 0x14a   :  { %11622 = vst [vmem:[#allocation32_spill] sm:$0xff] %v7761_v34  ;;  %11623 = vst [vmem:[#allocation7_spill] sm:$0xff] %v7765_v17  ;;  %v7813_v38 = vsel %vm1073_vm3, %v1359_v20, 0.0  ;;  %v7817_v19 = vsel %vm1066_vm2, %v1360_v3, 0.0  ;;  %v7821_v5 = vsel %vm1073_vm3, %v1361_v59, 0.0  ;;  %v7825_v39 = vsel %vm1066_vm2, %v1362_v9, 0.0 }
 0x14b   :  { %11624 = vst [vmem:[#allocation19_spill] sm:$0xff] %v7769_v40  ;;  %11625 = vst [vmem:[#allocation22_spill] sm:$0xff] %v7773_v2  ;;  %v7829_v28 = vsel %vm1073_vm3, %v1363_v63, 0.0  ;;  %v7833_v53 = vsel %vm1066_vm2, %v1364_v7, 0.0  ;;  %v7837_v47 = vsel %vm1073_vm3, %v1365_v8, 0.0  ;;  %v7841_v16 = vsel %vm1066_vm2, %v1366_v62, 0.0 }
 0x14c   :  { %11626 = vst [vmem:[#allocation8_spill] sm:$0xff] %v7777_v1  ;;  %11627 = vst [vmem:[#allocation21_spill] sm:$0xff] %v7781_v24  ;;  %v7845_v60 = vsel %vm1073_vm3, %v1367_v21, 0.0  ;;  %v5008_v54 = vld [vmem:[%s11158_s2 + $0x10] sm:$0xff]  ;;  %v5009_v3 = vld [vmem:[%s11158_s2 + $0x18] sm:$0x3] }
 0x14d   :  { %11628 = vst [vmem:[#allocation34_spill] sm:$0xff] %v7785_v12  ;;  %11629 = vst [vmem:[#allocation18_spill] sm:$0xff] %v7789_v26  ;;  %v1412_v20 = vmul.f32 %v5008_v54, %v6994_v32  ;;  %v1413_v59 = vmul.f32 %v5009_v3, %v6994_v32  ;;  %v5010_v9 = vld [vmem:[%s11158_s2 + $0x20] sm:$0xff]  ;;  %v5011_v7 = vld [vmem:[%s11158_s2 + $0x28] sm:$0x3]  ;;  %v1445_v12 = vmul.f32 %v6994_v32, %v6849_v11 }
 0x14e   :  { %11630 = vst [vmem:[#allocation61_spill] sm:$0xff] %v7793_v6  ;;  %11631 = vst [vmem:[#allocation38_spill] sm:$0xff] %v7797_v57  ;;  %v1414_v63 = vmul.f32 %v5010_v9, %v6994_v32  ;;  %v1415_v8 = vmul.f32 %v5011_v7, %v6994_v32  ;;  %v5012_v62 = vld [vmem:[%s11158_s2 + $0x30] sm:$0xff]  ;;  %v5013_v54 = vld [vmem:[%s11158_s2 + $0x38] sm:$0x3] }
 0x14f   :  { %11632 = vst [vmem:[#allocation20_spill] sm:$0xff] %v7801_v56  ;;  %11633 = vst [vmem:[#allocation9_spill] sm:$0xff] %v7805_v4  ;;  %v1416_v21 = vmul.f32 %v5012_v62, %v6994_v32  ;;  %v1417_v3 = vmul.f32 %v5013_v54, %v6994_v32  ;;  %v5014_v9 = vld [vmem:[%s11158_s2 + $0x40] sm:$0xff]  ;;  %v5015_v7 = vld [vmem:[%s11158_s2 + $0x48] sm:$0x3]  ;;  %v7975_v40 = vadd.f32 %v1413_v59, %v7143_v36 }
 0x150   :  { %11634 = vst [vmem:[#allocation62_spill] sm:$0xff] %v7809_v50  ;;  %11635 = vst [vmem:[#allocation63_spill] sm:$0xff] %v7813_v38  ;;  %v1419_v24 = vmul.f32 %v5015_v7, %v6994_v32  ;;  %v5016_v62 = vld [vmem:[%s11158_s2 + $0x50] sm:$0xff]  ;;  %v5017_v54 = vld [vmem:[%s11158_s2 + $0x58] sm:$0x3]  ;;  %v7981_v34 = vadd.f32 %v1415_v8, %v7143_v36 }
 0x151   :  { %11636 = vst [vmem:[#allocation64_spill] sm:$0xff] %v7817_v19  ;;  %11637 = vst [vmem:[#allocation65_spill] sm:$0xff] %v7821_v5  ;;  %v5019_v7 = vld [vmem:[%s11158_s2 + $0x68] sm:$0x3] }
 0x152   :  { %11638 = vst [vmem:[#allocation66_spill] sm:$0xff] %v7825_v39  ;;  %11639 = vst [vmem:[#allocation67_spill] sm:$0xff] %v7829_v28  ;;  %v1421_v28 = vmul.f32 %v5017_v54, %v6994_v32  ;;  %v1423_v38 = vmul.f32 %v5019_v7, %v6994_v32  ;;  %v5021_v54 = vld [vmem:[%s11158_s2 + $0x78] sm:$0x3]  ;;  %v5023_v7 = vld [vmem:[%s11158_s2 + $0x88] sm:$0x3] }
 0x153   :  { %11640 = vst [vmem:[#allocation68_spill] sm:$0xff] %v7833_v53  ;;  %11641 = vst [vmem:[#allocation69_spill] sm:$0xff] %v7837_v47  ;;  %v1420_v47 = vmul.f32 %v5016_v62, %v6994_v32  ;;  %v5020_v62 = vld [vmem:[%s11158_s2 + $0x70] sm:$0xff]  ;;  %v1425_v57 = vmul.f32 %v5021_v54, %v6994_v32  ;;  %v1427_v2 = vmul.f32 %v5023_v7, %v6994_v32  ;;  %v5025_v54 = vld [vmem:[%s11158_s2 + $0xb8] sm:$0x3] }
 0x154   :  { %11642 = vst [vmem:[#allocation70_spill] sm:$0xff] %v7841_v16  ;;  %11643 = vst [vmem:[#allocation71_spill] sm:$0xff] %v7845_v60  ;;  %v1418_v60 = vmul.f32 %v5014_v9, %v6994_v32  ;;  %v5018_v9 = vld [vmem:[%s11158_s2 + $0x60] sm:$0xff]  ;;  %v1424_v4 = vmul.f32 %v5020_v62, %v6994_v32  ;;  %v5024_v62 = vld [vmem:[%s11158_s2 + $0xb0] sm:$0xff]  ;;  %v1431_v58 = vmul.f32 %v5025_v54, %v6994_v32 }
 0x155   :  { %v1422_v5 = vmul.f32 %v5018_v9, %v6994_v32  ;;  %v5022_v9 = vld [vmem:[%s11158_s2 + $0x80] sm:$0xff]  ;;  %v1430_v17 = vmul.f32 %v5024_v62, %v6994_v32  ;;  %v5027_v7 = vld [vmem:[%s11158_s2 + $0xc8] sm:$0x3]  ;;  %v5028_v62 = vld [vmem:[%s11158_s2 + $0xd0] sm:$0xff]  ;;  %v7996_v59 = vadd.f32 %v1420_v47, %v7143_v36  ;;  %v8017_v47 = vadd.f32 %v1427_v2, %v7143_v36 }
 0x156   :  { %v1426_v26 = vmul.f32 %v5022_v9, %v6994_v32  ;;  %v5026_v9 = vld [vmem:[%s11158_s2 + $0xc0] sm:$0xff]  ;;  %v1433_v18 = vmul.f32 %v5027_v7, %v6994_v32  ;;  %v1434_v10 = vmul.f32 %v5028_v62, %v6994_v32  ;;  %v5029_v54 = vld [vmem:[%s11158_s2 + $0xd8] sm:$0x3]  ;;  %v5031_v7 = vld [vmem:[%s11158_s2 + $0xe8] sm:$0x3]  ;;  %v7990_v11 = vadd.f32 %v1418_v60, %v7143_v36 }
 0x157   :  { %v1432_v14 = vmul.f32 %v5026_v9, %v6994_v32  ;;  %v1435_v31 = vmul.f32 %v5029_v54, %v6994_v32  ;;  %v5030_v9 = vld [vmem:[%s11158_s2 + $0xe0] sm:$0xff]  ;;  %v1437_v1 = vmul.f32 %v5031_v7, %v6994_v32  ;;  %v5032_v62 = vld [vmem:[%s11158_s2 + $0xf0] sm:$0xff]  ;;  %v5033_v54 = vld [vmem:[%s11158_s2 + $0xf8] sm:$0x3]  ;;  %v8002_v8 = vadd.f32 %v1422_v5, %v7143_v36 }
 0x158   :  { %v1436_v16 = vmul.f32 %v5030_v9, %v6994_v32  ;;  %v1438_v53 = vmul.f32 %v5032_v62, %v6994_v32  ;;  %v1439_v39 = vmul.f32 %v5033_v54, %v6994_v32  ;;  %v5034_v9 = vld [vmem:[%s11158_s2 + $0x100] sm:$0xff]  ;;  %v5035_v7 = vld [vmem:[%s11158_s2 + $0x108] sm:$0x3]  ;;  %v5036_v62 = vld [vmem:[%s11158_s2 + $0x110] sm:$0xff]  ;;  %v8011_v60 = vadd.f32 %v1425_v57, %v7143_v36 }
 0x159   :  { %v1440_v19 = vmul.f32 %v5034_v9, %v6994_v32  ;;  %v1441_v50 = vmul.f32 %v5035_v7, %v6994_v32  ;;  %v1442_v56 = vmul.f32 %v5036_v62, %v6994_v32  ;;  %v5037_v54 = vld [vmem:[%s11158_s2 + $0x118] sm:$0x3]  ;;  %v1444_v9 = vmul.f32 %v6994_v32, %v6825_v48 }
 0x15a   :  { %v1443_v6 = vmul.f32 %v5037_v54, %v6994_v32  ;;  %v7972_v7 = vadd.f32 %v1412_v20, %v7143_v36  ;;  %v7978_v62 = vadd.f32 %v1414_v63, %v7143_v36  ;;  %v7984_v54 = vadd.f32 %v1416_v21, %v7143_v36 }
 0x15b   :  { %v7987_v48 = vadd.f32 %v1417_v3, %v7143_v36  ;;  %v7993_v20 = vadd.f32 %v1419_v24, %v7143_v36  ;;  %v7999_v63 = vadd.f32 %v1421_v28, %v7143_v36  ;;  %v8005_v21 = vadd.f32 %v1423_v38, %v7143_v36 }
 0x15c   :  { %v8008_v3 = vadd.f32 %v1424_v4, %v7143_v36  ;;  %v8014_v24 = vadd.f32 %v1426_v26, %v7143_v36  ;;  %v8020_v28 = vadd.f32 %v1430_v17, %v7143_v36  ;;  %v8023_v5 = vadd.f32 %v1431_v58, %v7143_v36 }
 0x15d   :  { %v8026_v38 = vadd.f32 %v1432_v14, %v7143_v36  ;;  %v8029_v4 = vadd.f32 %v1433_v18, %v7143_v36  ;;  %v8032_v57 = vadd.f32 %v1434_v10, %v7143_v36  ;;  %v8035_v26 = vadd.f32 %v1435_v31, %v7143_v36 }
 0x15e   :  { %v8038_v2 = vadd.f32 %v1436_v16, %v7143_v36  ;;  %v8041_v17 = vadd.f32 %v1437_v1, %v7143_v36  ;;  %v8044_v58 = vadd.f32 %v1438_v53, %v7143_v36  ;;  %v8047_v14 = vadd.f32 %v1439_v39, %v7143_v36 }
 0x15f   :  { %v8050_v18 = vadd.f32 %v1440_v19, %v7143_v36  ;;  %v8053_v10 = vadd.f32 %v1441_v50, %v7143_v36  ;;  %v8056_v31 = vadd.f32 %v1442_v56, %v7143_v36  ;;  %v8059_v16 = vadd.f32 %v1443_v6, %v7143_v36 }
 0x160   :  { %v8062_v1 = vadd.f32 %v1444_v9, %v7143_v36  ;;  %v8065_v53 = vadd.f32 %v1445_v12, %v7143_v36  ;;  %v1484_v39 = vmax.f32 %v7972_v7, 0.0  ;;  %v1485_v19 = vmax.f32 %v7975_v40, 0.0 }
 0x161   :  { %v1486_v61 = vmax.f32 %v7978_v62, 0.0  ;;  %v1487_v50 = vmax.f32 %v7981_v34, 0.0  ;;  %v1488_v56 = vmax.f32 %v7984_v54, 0.0  ;;  %v1489_v51 = vmax.f32 %v7987_v48, 0.0 }
 0x162   :  { %v1490_v6 = vmax.f32 %v7990_v11, 0.0  ;;  %v1491_v9 = vmax.f32 %v7993_v20, 0.0  ;;  %v1492_v30 = vmax.f32 %v7996_v59, 0.0  ;;  %v1493_v12 = vmax.f32 %v7999_v63, 0.0 }
 0x163   :  { %v1494_v7 = vmax.f32 %v8002_v8, 0.0  ;;  %v1495_v40 = vmax.f32 %v8005_v21, 0.0  ;;  %v1496_v62 = vmax.f32 %v8008_v3, 0.0  ;;  %v1497_v34 = vmax.f32 %v8011_v60, 0.0 }
 0x164   :  { %v1498_v54 = vmax.f32 %v8014_v24, 0.0  ;;  %v1499_v48 = vmax.f32 %v8017_v47, 0.0  ;;  %v1502_v11 = vmax.f32 %v8020_v28, 0.0  ;;  %v1503_v20 = vmax.f32 %v8023_v5, 0.0 }
 0x165   :  { %v1504_v59 = vmax.f32 %v8026_v38, 0.0  ;;  %v1505_v63 = vmax.f32 %v8029_v4, 0.0  ;;  %v1506_v8 = vmax.f32 %v8032_v57, 0.0  ;;  %v1507_v21 = vmax.f32 %v8035_v26, 0.0 }
 0x166   :  { %v1508_v3 = vmax.f32 %v8038_v2, 0.0  ;;  %v1509_v60 = vmax.f32 %v8041_v17, 0.0  ;;  %v1510_v24 = vmax.f32 %v8044_v58, 0.0  ;;  %v1511_v47 = vmax.f32 %v8047_v14, 0.0 }
 0x167   :  { %v1512_v28 = vmax.f32 %v8050_v18, 0.0  ;;  %v1513_v5 = vmax.f32 %v8053_v10, 0.0  ;;  %v1514_v38 = vmax.f32 %v8056_v31, 0.0  ;;  %v1515_v4 = vmax.f32 %v8059_v16, 0.0 }
 0x168   :  { %v1516_v57 = vmax.f32 %v8062_v1, 0.0  ;;  %v1517_v26 = vmax.f32 %v8065_v53, 0.0  ;;  %v8101_v2 = vsel %vm1066_vm2, %v1484_v39, 0.0  ;;  %v8105_v17 = vsel %vm1073_vm3, %v1485_v19, 0.0 }
 0x169   :  { %11644 = vst [vmem:[#allocation72_spill] sm:$0xff] %v8101_v2  ;;  %11645 = vst [vmem:[#allocation73_spill] sm:$0xff] %v8105_v17  ;;  %v8109_v58 = vsel %vm1066_vm2, %v1486_v61, 0.0  ;;  %v8113_v14 = vsel %vm1073_vm3, %v1487_v50, 0.0  ;;  %v8117_v18 = vsel %vm1066_vm2, %v1488_v56, 0.0  ;;  %v8121_v10 = vsel %vm1073_vm3, %v1489_v51, 0.0 }
 0x16a   :  { %11646 = vst [vmem:[#allocation74_spill] sm:$0xff] %v8109_v58  ;;  %11647 = vst [vmem:[#allocation75_spill] sm:$0xff] %v8113_v14  ;;  %v8125_v31 = vsel %vm1066_vm2, %v1490_v6, 0.0  ;;  %v8129_v61 = vsel %vm1073_vm3, %v1491_v9, 0.0  ;;  %v8133_v16 = vsel %vm1066_vm2, %v1492_v30, 0.0  ;;  %v8137_v1 = vsel %vm1073_vm3, %v1493_v12, 0.0 }
 0x16b   :  { %11648 = vst [vmem:[#allocation76_spill] sm:$0xff] %v8117_v18  ;;  %11649 = vst [vmem:[#allocation77_spill] sm:$0xff] %v8121_v10  ;;  %v8141_v51 = vsel %vm1066_vm2, %v1494_v7, 0.0  ;;  %v8145_v53 = vsel %vm1073_vm3, %v1495_v40, 0.0  ;;  %v8149_v39 = vsel %vm1066_vm2, %v1496_v62, 0.0  ;;  %v8153_v30 = vsel %vm1073_vm3, %v1497_v34, 0.0 }
 0x16c   :  { %11650 = vst [vmem:[#allocation78_spill] sm:$0xff] %v8125_v31  ;;  %11651 = vst [vmem:[#allocation79_spill] sm:$0xff] %v8129_v61  ;;  %v8157_v19 = vsel %vm1066_vm2, %v1498_v54, 0.0  ;;  %v8161_v50 = vsel %vm1073_vm3, %v1499_v48, 0.0  ;;  %v8165_v56 = vsel %vm1066_vm2, %v1502_v11, 0.0  ;;  %v8169_v6 = vsel %vm1073_vm3, %v1503_v20, 0.0 }
 0x16d   :  { %11652 = vst [vmem:[#allocation80_spill] sm:$0xff] %v8133_v16  ;;  %11653 = vst [vmem:[#allocation81_spill] sm:$0xff] %v8137_v1  ;;  %v8173_v9 = vsel %vm1066_vm2, %v1504_v59, 0.0  ;;  %v8177_v12 = vsel %vm1073_vm3, %v1505_v63, 0.0  ;;  %v8181_v7 = vsel %vm1066_vm2, %v1506_v8, 0.0  ;;  %v8185_v40 = vsel %vm1073_vm3, %v1507_v21, 0.0 }
 0x16e   :  { %11654 = vst [vmem:[#allocation82_spill] sm:$0xff] %v8141_v51  ;;  %11655 = vst [vmem:[#allocation83_spill] sm:$0xff] %v8145_v53  ;;  %v8189_v62 = vsel %vm1066_vm2, %v1508_v3, 0.0  ;;  %v8193_v34 = vsel %vm1073_vm3, %v1509_v60, 0.0  ;;  %v8197_v54 = vsel %vm1066_vm2, %v1510_v24, 0.0  ;;  %v8201_v48 = vsel %vm1073_vm3, %v1511_v47, 0.0 }
 0x16f   :  { %11656 = vst [vmem:[#allocation84_spill] sm:$0xff] %v8149_v39  ;;  %11657 = vst [vmem:[#allocation85_spill] sm:$0xff] %v8153_v30  ;;  %v8205_v11 = vsel %vm1066_vm2, %v1512_v28, 0.0  ;;  %v8209_v20 = vsel %vm1073_vm3, %v1513_v5, 0.0  ;;  %v8213_v59 = vsel %vm1066_vm2, %v1514_v38, 0.0  ;;  %v8217_v63 = vsel %vm1073_vm3, %v1515_v4, 0.0 }
 0x170   :  { %11658 = vst [vmem:[#allocation86_spill] sm:$0xff] %v8157_v19  ;;  %11659 = vst [vmem:[#allocation87_spill] sm:$0xff] %v8161_v50  ;;  %v8221_v8 = vsel %vm1066_vm2, %v1516_v57, 0.0  ;;  %v8225_v21 = vsel %vm1073_vm3, %v1517_v26, 0.0  ;;  %v5038_v3 = vld [vmem:[%s11159_s3 + $0x10] sm:$0xff]  ;;  %v5040_v28 = vld [vmem:[%s11159_s3 + $0x20] sm:$0xff] }
 0x171   :  { %11660 = vst [vmem:[#allocation88_spill] sm:$0xff] %v8165_v56  ;;  %11661 = vst [vmem:[#allocation89_spill] sm:$0xff] %v8169_v6  ;;  %v8231_v60 = vmul.f32 %v5038_v3, %v6994_v32  ;;  %v5039_v24 = vld [vmem:[%s11159_s3 + $0x18] sm:$0x3]  ;;  %v1558_v5 = vmul.f32 %v5040_v28, %v6994_v32  ;;  %v5041_v38 = vld [vmem:[%s11159_s3 + $0x28] sm:$0x3] }
 0x172   :  { %11662 = vst [vmem:[#allocation90_spill] sm:$0xff] %v8173_v9  ;;  %11663 = vst [vmem:[#allocation91_spill] sm:$0xff] %v8177_v12  ;;  %v1557_v47 = vmul.f32 %v5039_v24, %v6994_v32  ;;  %v1559_v4 = vmul.f32 %v5041_v38, %v6994_v32  ;;  %v5042_v57 = vld [vmem:[%s11159_s3 + $0x30] sm:$0xff]  ;;  %v5043_v3 = vld [vmem:[%s11159_s3 + $0x38] sm:$0x3] }
 0x173   :  { %11664 = vst [vmem:[#allocation92_spill] sm:$0xff] %v8181_v7  ;;  %11665 = vst [vmem:[#allocation93_spill] sm:$0xff] %v8185_v40  ;;  %v1560_v26 = vmul.f32 %v5042_v57, %v6994_v32  ;;  %v1561_v24 = vmul.f32 %v5043_v3, %v6994_v32  ;;  %v5044_v28 = vld [vmem:[%s11159_s3 + $0x40] sm:$0xff]  ;;  %v5045_v38 = vld [vmem:[%s11159_s3 + $0x48] sm:$0x3] }
 0x174   :  { %11666 = vst [vmem:[#allocation94_spill] sm:$0xff] %v8189_v62  ;;  %11667 = vst [vmem:[#allocation95_spill] sm:$0xff] %v8193_v34  ;;  %v1563_v50 = vmul.f32 %v5045_v38, %v6994_v32  ;;  %v5046_v57 = vld [vmem:[%s11159_s3 + $0x50] sm:$0xff]  ;;  %v5047_v3 = vld [vmem:[%s11159_s3 + $0x58] sm:$0x3]  ;;  %v8362_v56 = vadd.f32 %v1557_v47, %v7143_v36  ;;  %v8368_v39 = vadd.f32 %v1559_v4, %v7143_v36 }
 0x175   :  { %11668 = vst [vmem:[#allocation96_spill] sm:$0xff] %v8197_v54  ;;  %11669 = vst [vmem:[#allocation97_spill] sm:$0xff] %v8201_v48  ;;  %v5049_v38 = vld [vmem:[%s11159_s3 + $0x68] sm:$0x3]  ;;  %v8374_v51 = vadd.f32 %v1561_v24, %v7143_v36 }
 0x176   :  { %11670 = vst [vmem:[#allocation98_spill] sm:$0xff] %v8205_v11  ;;  %11671 = vst [vmem:[#allocation99_spill] sm:$0xff] %v8209_v20  ;;  %v1565_v20 = vmul.f32 %v5047_v3, %v6994_v32  ;;  %v1567_v34 = vmul.f32 %v5049_v38, %v6994_v32  ;;  %v5051_v3 = vld [vmem:[%s11159_s3 + $0x78] sm:$0x3]  ;;  %v5053_v38 = vld [vmem:[%s11159_s3 + $0x88] sm:$0x3] }
 0x177   :  { %11672 = vst [vmem:[#allocation100_spill] sm:$0xff] %v8213_v59  ;;  %11673 = vst [vmem:[#allocation101_spill] sm:$0xff] %v8217_v63  ;;  %v1564_v63 = vmul.f32 %v5046_v57, %v6994_v32  ;;  %v5050_v57 = vld [vmem:[%s11159_s3 + $0x70] sm:$0xff]  ;;  %v1569_v12 = vmul.f32 %v5051_v3, %v6994_v32  ;;  %v1571_v30 = vmul.f32 %v5053_v38, %v6994_v32  ;;  %v5055_v3 = vld [vmem:[%s11159_s3 + $0xb8] sm:$0x3]  ;;  %v1633_v16 = vmax.f32 %v8374_v51, 0.0 }
 0x178   :  { %11674 = vst [vmem:[#allocation102_spill] sm:$0xff] %v8221_v8  ;;  %11675 = vst [vmem:[#allocation103_spill] sm:$0xff] %v8225_v21  ;;  %v1562_v21 = vmul.f32 %v5044_v28, %v6994_v32  ;;  %v5048_v28 = vld [vmem:[%s11159_s3 + $0x60] sm:$0xff]  ;;  %v1568_v40 = vmul.f32 %v5050_v57, %v6994_v32  ;;  %v5054_v57 = vld [vmem:[%s11159_s3 + $0xb0] sm:$0xff]  ;;  %v1575_v1 = vmul.f32 %v5055_v3, %v6994_v32 }
 0x179   :  { %v1566_v48 = vmul.f32 %v5048_v28, %v6994_v32  ;;  %v5052_v28 = vld [vmem:[%s11159_s3 + $0x80] sm:$0xff]  ;;  %v1574_v53 = vmul.f32 %v5054_v57, %v6994_v32  ;;  %v5057_v38 = vld [vmem:[%s11159_s3 + $0xc8] sm:$0x3]  ;;  %v5058_v57 = vld [vmem:[%s11159_s3 + $0xd0] sm:$0xff]  ;;  %v8383_v47 = vadd.f32 %v1564_v63, %v7143_v36  ;;  %v8404_v63 = vadd.f32 %v1571_v30, %v7143_v36 }
 0x17a   :  { %v1570_v6 = vmul.f32 %v5052_v28, %v6994_v32  ;;  %v5056_v28 = vld [vmem:[%s11159_s3 + $0xc0] sm:$0xff]  ;;  %v1577_v10 = vmul.f32 %v5057_v38, %v6994_v32  ;;  %v1578_v14 = vmul.f32 %v5058_v57, %v6994_v32  ;;  %v5059_v3 = vld [vmem:[%s11159_s3 + $0xd8] sm:$0x3]  ;;  %v5061_v38 = vld [vmem:[%s11159_s3 + $0xe8] sm:$0x3]  ;;  %v8395_v24 = vadd.f32 %v1568_v40, %v7143_v36 }
 0x17b   :  { %v1576_v61 = vmul.f32 %v5056_v28, %v6994_v32  ;;  %v1579_v17 = vmul.f32 %v5059_v3, %v6994_v32  ;;  %v5060_v28 = vld [vmem:[%s11159_s3 + $0xe0] sm:$0xff]  ;;  %v1581_v41 = vmul.f32 %v5061_v38, %v6994_v32  ;;  %v5062_v57 = vld [vmem:[%s11159_s3 + $0xf0] sm:$0xff]  ;;  %v5063_v3 = vld [vmem:[%s11159_s3 + $0xf8] sm:$0x3]  ;;  %v8389_v4 = vadd.f32 %v1566_v48, %v7143_v36 }
 0x17c   :  { %v1580_v49 = vmul.f32 %v5060_v28, %v6994_v32  ;;  %v1582_v8 = vmul.f32 %v5062_v57, %v6994_v32  ;;  %v1583_v19 = vmul.f32 %v5063_v3, %v6994_v32  ;;  %v5064_v28 = vld [vmem:[%s11159_s3 + $0x100] sm:$0xff]  ;;  %v5065_v38 = vld [vmem:[%s11159_s3 + $0x108] sm:$0x3]  ;;  %v5066_v57 = vld [vmem:[%s11159_s3 + $0x110] sm:$0xff]  ;;  %v8410_v48 = vadd.f32 %v1575_v1, %v7143_v36 }
 0x17d   :  { %v1584_v59 = vmul.f32 %v5064_v28, %v6994_v32  ;;  %v1585_v11 = vmul.f32 %v5065_v38, %v6994_v32  ;;  %v1586_v54 = vmul.f32 %v5066_v57, %v6994_v32  ;;  %v5067_v3 = vld [vmem:[%s11159_s3 + $0x118] sm:$0x3]  ;;  %v5068_v28 = vld [vmem:[%s11159_s3 + $0x120] sm:$0xff]  ;;  %v5069_v38 = vld [vmem:[%s11159_s3 + $0x128] sm:$0x3]  ;;  %v8359_v57 = vadd.f32 %v8231_v60, %v7143_v36 }
 0x17e   :  { %v1587_v62 = vmul.f32 %v5067_v3, %v6994_v32  ;;  %v1588_v7 = vmul.f32 %v5068_v28, %v6994_v32  ;;  %v1589_v9 = vmul.f32 %v5069_v38, %v6994_v32  ;;  %v8365_v3 = vadd.f32 %v1558_v5, %v7143_v36 }
 0x17f   :  { %v8371_v28 = vadd.f32 %v1560_v26, %v7143_v36  ;;  %v8377_v32 = vadd.f32 %v1562_v21, %v7143_v36  ;;  %v8380_v60 = vadd.f32 %v1563_v50, %v7143_v36  ;;  %v8386_v5 = vadd.f32 %v1565_v20, %v7143_v36 }
 0x180   :  { %v8392_v26 = vadd.f32 %v1567_v34, %v7143_v36  ;;  %v8398_v21 = vadd.f32 %v1569_v12, %v7143_v36  ;;  %v8401_v50 = vadd.f32 %v1570_v6, %v7143_v36  ;;  %v8407_v20 = vadd.f32 %v1574_v53, %v7143_v36 }
 0x181   :  { %v8413_v34 = vadd.f32 %v1576_v61, %v7143_v36  ;;  %v8416_v40 = vadd.f32 %v1577_v10, %v7143_v36  ;;  %v8419_v12 = vadd.f32 %v1578_v14, %v7143_v36  ;;  %v8422_v6 = vadd.f32 %v1579_v17, %v7143_v36 }
 0x182   :  { %v8425_v30 = vadd.f32 %v1580_v49, %v7143_v36  ;;  %v8428_v53 = vadd.f32 %v1581_v41, %v7143_v36  ;;  %v8431_v1 = vadd.f32 %v1582_v8, %v7143_v36  ;;  %v8434_v61 = vadd.f32 %v1583_v19, %v7143_v36 }
 0x183   :  { %v8437_v10 = vadd.f32 %v1584_v59, %v7143_v36  ;;  %v8440_v14 = vadd.f32 %v1585_v11, %v7143_v36  ;;  %v8443_v17 = vadd.f32 %v1586_v54, %v7143_v36  ;;  %v8446_v49 = vadd.f32 %v1587_v62, %v7143_v36 }
 0x184   :  { %v8449_v41 = vadd.f32 %v1588_v7, %v7143_v36  ;;  %v8452_v8 = vadd.f32 %v1589_v9, %v7143_v36  ;;  %v1628_v19 = vmax.f32 %v8359_v57, 0.0  ;;  %v1629_v59 = vmax.f32 %v8362_v56, 0.0 }
 0x185   :  { %v1630_v38 = vmax.f32 %v8365_v3, 0.0  ;;  %v1631_v11 = vmax.f32 %v8368_v39, 0.0  ;;  %v1632_v54 = vmax.f32 %v8371_v28, 0.0  ;;  %v1634_v62 = vmax.f32 %v8377_v32, 0.0 }
 0x186   :  { %v1635_v7 = vmax.f32 %v8380_v60, 0.0  ;;  %v1636_v31 = vmax.f32 %v8383_v47, 0.0  ;;  %v1637_v36 = vmax.f32 %v8386_v5, 0.0  ;;  %v1638_v9 = vmax.f32 %v8389_v4, 0.0 }
 0x187   :  { %v1639_v56 = vmax.f32 %v8392_v26, 0.0  ;;  %v1640_v57 = vmax.f32 %v8395_v24, 0.0  ;;  %v1641_v39 = vmax.f32 %v8398_v21, 0.0  ;;  %v1642_v3 = vmax.f32 %v8401_v50, 0.0 }
 0x188   :  { %v1643_v51 = vmax.f32 %v8404_v63, 0.0  ;;  %v1646_v28 = vmax.f32 %v8407_v20, 0.0  ;;  %v1647_v32 = vmax.f32 %v8410_v48, 0.0  ;;  %v1648_v60 = vmax.f32 %v8413_v34, 0.0 }
 0x189   :  { %v1649_v47 = vmax.f32 %v8416_v40, 0.0  ;;  %v1650_v5 = vmax.f32 %v8419_v12, 0.0  ;;  %v1651_v4 = vmax.f32 %v8422_v6, 0.0  ;;  %v1652_v26 = vmax.f32 %v8425_v30, 0.0 }
 0x18a   :  { %v1653_v24 = vmax.f32 %v8428_v53, 0.0  ;;  %v1654_v21 = vmax.f32 %v8431_v1, 0.0  ;;  %v1655_v50 = vmax.f32 %v8434_v61, 0.0  ;;  %v1656_v63 = vmax.f32 %v8437_v10, 0.0 }
 0x18b   :  { %v1657_v20 = vmax.f32 %v8440_v14, 0.0  ;;  %v1658_v48 = vmax.f32 %v8443_v17, 0.0  ;;  %v1659_v34 = vmax.f32 %v8446_v49, 0.0  ;;  %v1660_v40 = vmax.f32 %v8449_v41, 0.0 }
 0x18c   :  { %v1661_v12 = vmax.f32 %v8452_v8, 0.0  ;;  %v8488_v6 = vsel %vm1066_vm2, %v1628_v19, 0.0  ;;  %v8492_v30 = vsel %vm1073_vm3, %v1629_v59, 0.0  ;;  %v8496_v53 = vsel %vm1066_vm2, %v1630_v38, 0.0 }
 0x18d   :  { %11676 = vst [vmem:[#allocation104_spill] sm:$0xff] %v8488_v6  ;;  %11677 = vst [vmem:[#allocation105_spill] sm:$0xff] %v8492_v30  ;;  %v8500_v1 = vsel %vm1073_vm3, %v1631_v11, 0.0  ;;  %v8504_v61 = vsel %vm1066_vm2, %v1632_v54, 0.0  ;;  %v8508_v10 = vsel %vm1073_vm3, %v1633_v16, 0.0  ;;  %v8512_v14 = vsel %vm1066_vm2, %v1634_v62, 0.0 }
 0x18e   :  { %11678 = vst [vmem:[#allocation106_spill] sm:$0xff] %v8496_v53  ;;  %11679 = vst [vmem:[#allocation107_spill] sm:$0xff] %v8500_v1  ;;  %v8516_v17 = vsel %vm1073_vm3, %v1635_v7, 0.0  ;;  %v8520_v49 = vsel %vm1066_vm2, %v1636_v31, 0.0  ;;  %v8524_v41 = vsel %vm1073_vm3, %v1637_v36, 0.0  ;;  %v8528_v16 = vsel %vm1066_vm2, %v1638_v9, 0.0 }
 0x18f   :  { %11680 = vst [vmem:[#allocation108_spill] sm:$0xff] %v8504_v61  ;;  %11681 = vst [vmem:[#allocation109_spill] sm:$0xff] %v8508_v10  ;;  %v8532_v8 = vsel %vm1073_vm3, %v1639_v56, 0.0  ;;  %v8536_v19 = vsel %vm1066_vm2, %v1640_v57, 0.0  ;;  %v8540_v31 = vsel %vm1073_vm3, %v1641_v39, 0.0  ;;  %v8544_v59 = vsel %vm1066_vm2, %v1642_v3, 0.0 }
 0x190   :  { %11682 = vst [vmem:[#allocation110_spill] sm:$0xff] %v8512_v14  ;;  %11683 = vst [vmem:[#allocation111_spill] sm:$0xff] %v8516_v17  ;;  %v8548_v38 = vsel %vm1073_vm3, %v1643_v51, 0.0  ;;  %v8552_v11 = vsel %vm1066_vm2, %v1646_v28, 0.0  ;;  %v8556_v54 = vsel %vm1073_vm3, %v1647_v32, 0.0  ;;  %v8560_v62 = vsel %vm1066_vm2, %v1648_v60, 0.0 }
 0x191   :  { %11684 = vst [vmem:[#allocation112_spill] sm:$0xff] %v8520_v49  ;;  %11685 = vst [vmem:[#allocation113_spill] sm:$0xff] %v8524_v41  ;;  %v8564_v7 = vsel %vm1073_vm3, %v1649_v47, 0.0  ;;  %v8568_v36 = vsel %vm1066_vm2, %v1650_v5, 0.0  ;;  %v8572_v9 = vsel %vm1073_vm3, %v1651_v4, 0.0  ;;  %v8576_v56 = vsel %vm1066_vm2, %v1652_v26, 0.0 }
 0x192   :  { %11686 = vst [vmem:[#allocation114_spill] sm:$0xff] %v8528_v16  ;;  %11687 = vst [vmem:[#allocation115_spill] sm:$0xff] %v8532_v8  ;;  %v8580_v57 = vsel %vm1073_vm3, %v1653_v24, 0.0  ;;  %v8584_v39 = vsel %vm1066_vm2, %v1654_v21, 0.0  ;;  %v8588_v3 = vsel %vm1073_vm3, %v1655_v50, 0.0  ;;  %v8592_v51 = vsel %vm1066_vm2, %v1656_v63, 0.0 }
 0x193   :  { %11688 = vst [vmem:[#allocation116_spill] sm:$0xff] %v8536_v19  ;;  %11689 = vst [vmem:[#allocation117_spill] sm:$0xff] %v8540_v31  ;;  %v8596_v28 = vsel %vm1073_vm3, %v1657_v20, 0.0  ;;  %v8600_v32 = vsel %vm1066_vm2, %v1658_v48, 0.0  ;;  %v8604_v60 = vsel %vm1073_vm3, %v1659_v34, 0.0  ;;  %v8608_v47 = vsel %vm1066_vm2, %v1660_v40, 0.0 }
 0x194   :  { %11690 = vst [vmem:[#allocation118_spill] sm:$0xff] %v8544_v59  ;;  %11691 = vst [vmem:[#allocation119_spill] sm:$0xff] %v8548_v38  ;;  %v8612_v5 = vsel %vm1073_vm3, %v1661_v12, 0.0  ;;  %v1707_v4 = vmul.f32 %v6991_v43, %v7355_v35  ;;  %v1708_v26 = vmul.f32 %v6991_v43, %v7363_v52  ;;  %v1709_v24 = vmul.f32 %v6991_v43, %v7371_v42  ;;  %v11710_v59 = vld [vmem:[#allocation48_spill] sm:$0xff] }
 0x195   :  { %11692 = vst [vmem:[#allocation120_spill] sm:$0xff] %v8552_v11  ;;  %11693 = vst [vmem:[#allocation121_spill] sm:$0xff] %v8556_v54  ;;  %v1710_v21 = vmul.f32 %v6991_v43, %v7379_v46  ;;  %v1711_v50 = vmul.f32 %v6991_v43, %v7387_v0  ;;  %v1713_v63 = vmul.f32 %v6991_v43, %v7403_v45  ;;  %v11708_v54 = vld [vmem:[#allocation44_spill] sm:$0xff]  ;;  %v8684_v14 = vsub.s32 5, %v6979_v29 }
 0x196   :  { %11694 = vst [vmem:[#allocation122_spill] sm:$0xff] %v8560_v62  ;;  %11695 = vst [vmem:[#allocation123_spill] sm:$0xff] %v8564_v7  ;;  %v1715_v20 = vmul.f32 %v6991_v43, %v7419_v15  ;;  %v1716_v48 = vmul.f32 %v6991_v43, %v7427_v23  ;;  %v1717_v34 = vmul.f32 %v6991_v43, %v7435_v27 }
 0x197   :  { %11696 = vst [vmem:[#allocation124_spill] sm:$0xff] %v8568_v36  ;;  %11697 = vst [vmem:[#allocation125_spill] sm:$0xff] %v8572_v9  ;;  %v1718_v40 = vmul.f32 %v6991_v43, %v7443_v37  ;;  %v1719_v12 = vmul.f32 %v6991_v43, %v7451_v13  ;;  %v1721_v38 = vmul.f32 %v6991_v43, %v7467_v44 }
 0x198   :  { %11698 = vst [vmem:[#allocation126_spill] sm:$0xff] %v8576_v56  ;;  %11699 = vst [vmem:[#allocation127_spill] sm:$0xff] %v8580_v57  ;;  %v1745_v57 = vmul.f32 %v7024_v25, %v7379_v46  ;;  %v1746_v9 = vmul.f32 %v7024_v25, %v7387_v0  ;;  %v1747_v7 = vmul.f32 %v7024_v25, %v7395_v55  ;;  %v8681_v56 = vld [vmem:[%s11160_s4 + $0x10] sm:$0xff] }
 0x199   :  { %11700 = vst [vmem:[#allocation128_spill] sm:$0xff] %v8584_v39  ;;  %11701 = vst [vmem:[#allocation129_spill] sm:$0xff] %v8588_v3  ;;  %v1744_v3 = vmul.f32 %v7024_v25, %v7371_v42  ;;  %v1749_v31 = vmul.f32 %v7024_v25, %v11708_v54  ;;  %v1750_v8 = vmul.f32 %v7024_v25, %v7419_v15  ;;  %v8676_v39 = vsub.s32 4, %v6979_v29 }
 0x19a   :  { %11702 = vst [vmem:[#allocation130_spill] sm:$0xff] %v8592_v51  ;;  %11703 = vst [vmem:[#allocation131_spill] sm:$0xff] %v8596_v28  ;;  %v1743_v28 = vmul.f32 %v7024_v25, %v7363_v52  ;;  %v1751_v41 = vmul.f32 %v7024_v25, %v7427_v23  ;;  %v1752_v17 = vmul.f32 %v7024_v25, %v7435_v27 }
 0x19b   :  { %11704 = vst [vmem:[#allocation132_spill] sm:$0xff] %v8600_v32  ;;  %11705 = vst [vmem:[#allocation133_spill] sm:$0xff] %v8604_v60  ;;  %v1742_v60 = vmul.f32 %v7024_v25, %v7355_v35  ;;  %v1753_v10 = vmul.f32 %v7024_v25, %v7443_v37  ;;  %v1754_v1 = vmul.f32 %v7024_v25, %v7451_v13 }
 0x19c   :  { %11706 = vst [vmem:[#allocation134_spill] sm:$0xff] %v8608_v47  ;;  %11707 = vst [vmem:[#allocation135_spill] sm:$0xff] %v8612_v5  ;;  %v1720_v5 = vmul.f32 %v6991_v43, %v7459_v22  ;;  %v1748_v43 = vmul.f32 %v7024_v25, %v7403_v45  ;;  %v1755_v30 = vmul.f32 %v7024_v25, %v7459_v22  ;;  %v11709_v47 = vld [vmem:[#allocation14_spill] sm:$0xff] }
 0x19d   :  { %v1756_v35 = vmul.f32 %v7024_v25, %v7467_v44  ;;  %v1757_v15 = vmul.f32 %v7024_v25, %v11709_v47  ;;  %v1758_v32 = vadd.f32 %v1742_v60, %v11710_v59  ;;  %v1759_v51 = vadd.f32 %v1743_v28, %v1707_v4  ;;  %11711 = vst [vmem:[#allocation48_spill] sm:$0xff] %v8676_v39 }
 0x19e   :  { %11712 = vst [vmem:[#allocation136_spill] sm:$0xff] %v8681_v56  ;;  %v1760_v36 = vadd.f32 %v1744_v3, %v1708_v26  ;;  %v1761_v62 = vadd.f32 %v1745_v57, %v1709_v24  ;;  %v1762_v11 = vadd.f32 %v1746_v9, %v1710_v21  ;;  %v1763_v19 = vadd.f32 %v1747_v7, %v1711_v50 }
 0x19f   :  { %v1764_v16 = vadd.f32 %v1748_v43, %v1712_v33  ;;  %v1765_v49 = vadd.f32 %v1749_v31, %v1713_v63  ;;  %11713 = vst [vmem:[#allocation137_spill] sm:$0xff] %v8684_v14  ;;  %v8687_v25 = vsub.s32 7, %v6979_v29  ;;  %v1766_v28 = vadd.f32 %v1750_v8, %v11710_v59  ;;  %v8704_v8 = vld [vmem:[%s11160_s4] sm:$0xff] }
 0x1a0   :  { %v8691_v60 = vsub.s32 1, %v6979_v29  ;;  %v8694_v4 = vsub.s32 3, %v6979_v29  ;;  %v8697_v57 = vsub.s32 6, %v6979_v29  ;;  %v1767_v7 = vadd.f32 %v1751_v41, %v1715_v20  ;;  %11718 = vst [vmem:[#allocation142_spill] sm:$0xff] %v8704_v8  ;;  %v8711_v29 = vld [vmem:[%s11160_s4 + $0x8] sm:$0xff] }
 0x1a1   :  { %11714 = vst [vmem:[#allocation138_spill] sm:$0xff] %v8687_v25  ;;  %v1768_v9 = vadd.f32 %v1752_v17, %v1716_v48  ;;  %v1769_v31 = vadd.f32 %v1753_v10, %v1717_v34  ;;  %v1777_v3 = vrot.slane %v8681_v56, %v8676_v39  ;;  %v1770_v26 = vadd.f32 %v1754_v1, %v1718_v40 }
 0x1a2   :  { %11715 = vst [vmem:[#allocation139_spill] sm:$0xff] %v8691_v60  ;;  %11716 = vst [vmem:[#allocation140_spill] sm:$0xff] %v8694_v4  ;;  %v1771_v24 = vadd.f32 %v1755_v30, %v1719_v12  ;;  %v1772_v21 = vadd.f32 %v1756_v35, %v1720_v5  ;;  %v1773_v50 = vadd.f32 %v1757_v15, %v1721_v38  ;;  %v11720_v30 = vld [vmem:[#allocation47_spill] sm:$0xff]  ;;  %v11722_v15 = vld [vmem:[#allocation17_spill] sm:$0xff] }
 0x1a3   :  { %11717 = vst [vmem:[#allocation141_spill] sm:$0xff] %v8697_v57  ;;  %v1813_v59 = vrot.slane %v8704_v8, %v8684_v14  ;;  %11719 = vst [vmem:[#allocation143_spill] sm:$0xff] %v8711_v29  ;;  %v8715_v10 = vrot.slane %v8711_v29, %v8687_v25  ;;  %v8719_v35 = vrot.slane %v8681_v56, %v11720_v30  ;;  %v1785_v43 = vmul.f32 0.0, %v1777_v3 }
 0x1a4   :  { %v8723_v1 = vrot.slane %v8704_v8, %v11722_v15  ;;  %v8727_v17 = vrot.slane %v8704_v8, %v8691_v60  ;;  %v8731_v41 = vrot.slane %v8711_v29, %v8694_v4  ;;  %v8735_v38 = vrot.slane %v8681_v56, %v8684_v14 }
 0x1a5   :  { %11721 = vst [vmem:[#allocation144_spill] sm:$0xff] %v8719_v35  ;;  %v8739_v5 = vrot.slane %v8704_v8, %v8697_v57  ;;  %v1778_v33 = vmul.f32 %v1777_v3, %v7363_v52  ;;  %v1779_v63 = vmul.f32 %v1777_v3, %v7371_v42  ;;  %v1780_v20 = vmul.f32 %v1777_v3, %v7379_v46 }
 0x1a6   :  { %11723 = vst [vmem:[#allocation145_spill] sm:$0xff] %v8723_v1  ;;  %11724 = vst [vmem:[#allocation146_spill] sm:$0xff] %v8727_v17  ;;  %v1781_v48 = vmul.f32 %v1777_v3, %v7387_v0  ;;  %v1782_v34 = vmul.f32 %v1777_v3, %v7395_v55  ;;  %v1783_v40 = vmul.f32 %v1777_v3, %v7403_v45 }
 0x1a7   :  { %11725 = vst [vmem:[#allocation147_spill] sm:$0xff] %v8731_v41  ;;  %11726 = vst [vmem:[#allocation148_spill] sm:$0xff] %v8735_v38  ;;  %v1784_v12 = vmul.f32 %v1777_v3, %v11708_v54  ;;  %v1786_v15 = vmul.f32 %v1777_v3, %v7427_v23  ;;  %v1787_v30 = vmul.f32 %v1777_v3, %v7435_v27 }
 0x1a8   :  { %11727 = vst [vmem:[#allocation149_spill] sm:$0xff] %v8739_v5  ;;  %v1788_v14 = vmul.f32 %v1777_v3, %v7443_v37  ;;  %v1789_v4 = vmul.f32 %v1777_v3, %v7451_v13  ;;  %v1790_v60 = vmul.f32 %v1777_v3, %v7459_v22  ;;  %v1791_v8 = vmul.f32 %v1777_v3, %v7467_v44 }
 0x1a9   :  { %v1792_v25 = vmul.f32 %v1777_v3, %v11709_v47  ;;  %v8757_v56 = vmul.f32 %v8719_v35, %v8488_v6  ;;  %v1794_v54 = vadd.f32 %v1778_v33, %v1758_v32  ;;  %v1795_v57 = vadd.f32 %v1779_v63, %v1759_v51  ;;  %v11739_v33 = vld [vmem:[#allocation100_spill] sm:$0xff] }
 0x1aa   :  { %v1796_v29 = vadd.f32 %v1780_v20, %v1760_v36  ;;  %v1797_v39 = vadd.f32 %v1781_v48, %v1761_v62  ;;  %v1798_v23 = vadd.f32 %v1782_v34, %v1762_v11  ;;  %v1799_v27 = vadd.f32 %v1783_v40, %v1763_v19  ;;  %v11729_v36 = vld [vmem:[#allocation78_spill] sm:$0xff]  ;;  %v11730_v19 = vld [vmem:[#allocation80_spill] sm:$0xff] }
 0x1ab   :  { %11728 = vst [vmem:[#allocation150_spill] sm:$0xff] %v8757_v56  ;;  %v1800_v45 = vadd.f32 %v1784_v12, %v1764_v16  ;;  %v1801_v37 = vadd.f32 %v1785_v43, %v1765_v49  ;;  %v1802_v55 = vadd.f32 %v1786_v15, %v1766_v28  ;;  %v1803_v13 = vadd.f32 %v1787_v30, %v1767_v7  ;;  %v11731_v49 = vld [vmem:[#allocation82_spill] sm:$0xff]  ;;  %v11732_v28 = vld [vmem:[#allocation84_spill] sm:$0xff] }
 0x1ac   :  { %v1804_v0 = vadd.f32 %v1788_v14, %v1768_v9  ;;  %v1805_v22 = vadd.f32 %v1789_v4, %v1769_v31  ;;  %v1806_v46 = vadd.f32 %v1790_v60, %v1770_v26  ;;  %v1807_v44 = vadd.f32 %v1791_v8, %v1771_v24  ;;  %v11733_v4 = vld [vmem:[#allocation88_spill] sm:$0xff]  ;;  %v11734_v7 = vld [vmem:[#allocation90_spill] sm:$0xff] }
 0x1ad   :  { %v1808_v42 = vadd.f32 %v1792_v25, %v1772_v21  ;;  %v1814_v3 = vmul.f32 0.0, %v1813_v59  ;;  %v1815_v47 = vmul.f32 %v1813_v59, %v8101_v2  ;;  %v1816_v52 = vmul.f32 %v1813_v59, %v8109_v58  ;;  %v11735_v9 = vld [vmem:[#allocation92_spill] sm:$0xff]  ;;  %v11736_v26 = vld [vmem:[#allocation94_spill] sm:$0xff] }
 0x1ae   :  { %v1817_v51 = vmul.f32 %v1813_v59, %v8117_v18  ;;  %v1818_v62 = vmul.f32 %v1813_v59, %v11729_v36  ;;  %v1809_v11 = vadd.f32 %v1785_v43, %v1773_v50  ;;  %v1819_v16 = vmul.f32 %v1813_v59, %v11730_v19  ;;  %v11737_v21 = vld [vmem:[#allocation96_spill] sm:$0xff]  ;;  %v11738_v30 = vld [vmem:[#allocation98_spill] sm:$0xff] }
 0x1af   :  { %v1820_v32 = vmul.f32 %v1813_v59, %v11731_v49  ;;  %v1821_v14 = vmul.f32 %v1813_v59, %v11732_v28  ;;  %v1823_v60 = vmul.f32 %v1813_v59, %v11733_v4  ;;  %v1824_v25 = vmul.f32 %v1813_v59, %v11734_v7 }
 0x1b0   :  { %v1825_v31 = vmul.f32 %v1813_v59, %v11735_v9  ;;  %v1826_v24 = vmul.f32 %v1813_v59, %v11736_v26  ;;  %v1827_v8 = vmul.f32 %v1813_v59, %v11737_v21  ;;  %v1828_v15 = vmul.f32 %v1813_v59, %v11738_v30 }
 0x1b1   :  { %v1829_v50 = vmul.f32 %v1813_v59, %v11739_v33  ;;  %v1830_v63 = vadd.f32 %v1814_v3, %v1794_v54  ;;  %v1831_v20 = vadd.f32 %v1815_v47, %v1795_v57  ;;  %v1832_v48 = vadd.f32 %v1816_v52, %v1796_v29  ;;  %v11741_v57 = vld [vmem:[#allocation102_spill] sm:$0xff] }
 0x1b2   :  { %v1833_v34 = vadd.f32 %v1817_v51, %v1797_v39  ;;  %v1834_v40 = vadd.f32 %v1818_v62, %v1798_v23  ;;  %v1835_v12 = vadd.f32 %v1819_v16, %v1799_v27  ;;  %v1836_v43 = vadd.f32 %v1820_v32, %v1800_v45 }
 0x1b3   :  { %v1837_v1 = vadd.f32 %v1821_v14, %v1801_v37  ;;  %v1838_v56 = vadd.f32 %v1814_v3, %v1802_v55  ;;  %v1839_v35 = vadd.f32 %v1823_v60, %v1803_v13  ;;  %v1840_v61 = vadd.f32 %v1824_v25, %v1804_v0  ;;  %v11740_v55 = vld [vmem:[#allocation86_spill] sm:$0xff] }
 0x1b4   :  { %v1841_v53 = vadd.f32 %v1825_v31, %v1805_v22  ;;  %v1842_v6 = vadd.f32 %v1826_v24, %v1806_v46  ;;  %v1843_v5 = vadd.f32 %v1827_v8, %v1807_v44  ;;  %v1844_v38 = vadd.f32 %v1828_v15, %v1808_v42 }
 0x1b5   :  { %v1845_v41 = vadd.f32 %v1829_v50, %v1809_v11  ;;  %v1850_v17 = vmul.f32 %v8715_v10, %v8101_v2  ;;  %v1851_v54 = vmul.f32 %v8715_v10, %v8109_v58  ;;  %v1852_v52 = vmul.f32 %v8715_v10, %v8117_v18  ;;  %v11757_v58 = vld [vmem:[#allocation147_spill] sm:$0xff] }
 0x1b6   :  { %v1853_v45 = vmul.f32 %v8715_v10, %v11729_v36  ;;  %v1854_v0 = vmul.f32 %v8715_v10, %v11730_v19  ;;  %v1855_v46 = vmul.f32 %v8715_v10, %v11731_v49  ;;  %v1856_v42 = vmul.f32 %v8715_v10, %v11732_v28 }
 0x1b7   :  { %v1857_v23 = vmul.f32 %v8715_v10, %v11740_v55  ;;  %v1858_v27 = vmul.f32 %v8715_v10, %v11733_v4  ;;  %v1859_v37 = vmul.f32 %v8715_v10, %v11734_v7  ;;  %v1860_v13 = vmul.f32 %v8715_v10, %v11735_v9  ;;  %v11742_v55 = vld [vmem:[#allocation146_spill] sm:$0xff] }
 0x1b8   :  { %v1861_v22 = vmul.f32 %v8715_v10, %v11736_v26  ;;  %v1862_v44 = vmul.f32 %v8715_v10, %v11737_v21  ;;  %v1863_v39 = vmul.f32 %v8715_v10, %v11738_v30  ;;  %v1864_v47 = vmul.f32 %v8715_v10, %v11739_v33  ;;  %v11743_v30 = vld [vmem:[#allocation26_spill] sm:$0xff] }
 0x1b9   :  { %v1865_v59 = vmul.f32 %v8715_v10, %v11741_v57  ;;  %v1866_v29 = vadd.f32 %v1850_v17, %v1830_v63  ;;  %v1867_v3 = vadd.f32 %v1851_v54, %v1831_v20  ;;  %v1868_v51 = vadd.f32 %v1852_v52, %v1832_v48  ;;  %v11744_v17 = vld [vmem:[#allocation5_spill] sm:$0xff]  ;;  %v11745_v20 = vld [vmem:[#allocation15_spill] sm:$0xff]  ;;  %v11752_v52 = vld [vmem:[#allocation20_spill] sm:$0xff] }
 0x1ba   :  { %v1869_v62 = vadd.f32 %v1853_v45, %v1833_v34  ;;  %v1870_v11 = vadd.f32 %v1854_v0, %v1834_v40  ;;  %v1871_v16 = vadd.f32 %v1855_v46, %v1835_v12  ;;  %v1872_v32 = vadd.f32 %v1856_v42, %v1836_v43  ;;  %v11746_v34 = vld [vmem:[#allocation11_spill] sm:$0xff]  ;;  %v11750_v40 = vld [vmem:[#allocation34_spill] sm:$0xff]  ;;  %v11751_v43 = vld [vmem:[#allocation61_spill] sm:$0xff] }
 0x1bb   :  { %v1873_v14 = vadd.f32 %v1857_v23, %v1837_v1  ;;  %v1874_v60 = vadd.f32 %v1858_v27, %v1838_v56  ;;  %v1875_v25 = vadd.f32 %v1859_v37, %v1839_v35  ;;  %v1876_v31 = vadd.f32 %v1860_v13, %v1840_v61  ;;  %v11747_v35 = vld [vmem:[#allocation13_spill] sm:$0xff]  ;;  %v11748_v61 = vld [vmem:[#allocation32_spill] sm:$0xff]  ;;  %v11753_v0 = vld [vmem:[#allocation62_spill] sm:$0xff] }
 0x1bc   :  { %v1877_v24 = vadd.f32 %v1861_v22, %v1841_v53  ;;  %v1878_v8 = vadd.f32 %v1862_v44, %v1842_v6  ;;  %v1879_v15 = vadd.f32 %v1863_v39, %v1843_v5  ;;  %v1880_v50 = vadd.f32 %v1864_v47, %v1844_v38  ;;  %v11749_v38 = vld [vmem:[#allocation19_spill] sm:$0xff]  ;;  %v11754_v42 = vld [vmem:[#allocation64_spill] sm:$0xff]  ;;  %v11755_v23 = vld [vmem:[#allocation66_spill] sm:$0xff] }
 0x1bd   :  { %v1886_v33 = vmul.f32 0.0, %v11742_v55  ;;  %v1887_v10 = vmul.f32 %v11742_v55, %v11743_v30  ;;  %v1888_v63 = vmul.f32 %v11742_v55, %v11744_v17  ;;  %v1889_v48 = vmul.f32 %v11742_v55, %v11745_v20  ;;  %v11756_v37 = vld [vmem:[#allocation68_spill] sm:$0xff] }
 0x1be   :  { %v1890_v56 = vmul.f32 %v11742_v55, %v11746_v34  ;;  %v1891_v53 = vmul.f32 %v11742_v55, %v11747_v35  ;;  %v1881_v6 = vadd.f32 %v1865_v59, %v1845_v41  ;;  %v1892_v1 = vmul.f32 %v11742_v55, %v11748_v61 }
 0x1bf   :  { %v1893_v5 = vmul.f32 %v11742_v55, %v11749_v38  ;;  %v1895_v12 = vmul.f32 %v11742_v55, %v11750_v40  ;;  %v1896_v54 = vmul.f32 %v11742_v55, %v11751_v43  ;;  %v1897_v45 = vmul.f32 %v11742_v55, %v11752_v52 }
 0x1c0   :  { %v1898_v46 = vmul.f32 %v11742_v55, %v11753_v0  ;;  %v1899_v41 = vmul.f32 %v11742_v55, %v11754_v42  ;;  %v1900_v27 = vmul.f32 %v11742_v55, %v11755_v23  ;;  %v1901_v13 = vmul.f32 %v11742_v55, %v11756_v37 }
 0x1c1   :  { %v1902_v22 = vadd.f32 %v1886_v33, %v1866_v29  ;;  %v1903_v44 = vadd.f32 %v1887_v10, %v1867_v3  ;;  %v1904_v39 = vadd.f32 %v1888_v63, %v1868_v51  ;;  %v1905_v47 = vadd.f32 %v1889_v48, %v1869_v62 }
 0x1c2   :  { %v1906_v59 = vadd.f32 %v1890_v56, %v1870_v11  ;;  %v1907_v57 = vadd.f32 %v1891_v53, %v1871_v16  ;;  %v1908_v21 = vadd.f32 %v1892_v1, %v1872_v32  ;;  %v1909_v26 = vadd.f32 %v1893_v5, %v1873_v14  ;;  %v11758_v11 = vld [vmem:[#allocation8_spill] sm:$0xff] }
 0x1c3   :  { %v1910_v9 = vadd.f32 %v1886_v33, %v1874_v60  ;;  %v1911_v7 = vadd.f32 %v1895_v12, %v1875_v25  ;;  %v1912_v4 = vadd.f32 %v1896_v54, %v1876_v31  ;;  %v1913_v28 = vadd.f32 %v1897_v45, %v1877_v24 }
 0x1c4   :  { %v1914_v49 = vadd.f32 %v1898_v46, %v1878_v8  ;;  %v1915_v19 = vadd.f32 %v1899_v41, %v1879_v15  ;;  %v1916_v36 = vadd.f32 %v1900_v27, %v1880_v50  ;;  %v1917_v18 = vadd.f32 %v1901_v13, %v1881_v6  ;;  %v11759_v15 = vld [vmem:[#allocation70_spill] sm:$0xff] }
 0x1c5   :  { %v1922_v2 = vmul.f32 %v11757_v58, %v11743_v30  ;;  %v1923_v55 = vmul.f32 %v11757_v58, %v11744_v17  ;;  %v1924_v29 = vmul.f32 %v11757_v58, %v11745_v20  ;;  %v1925_v3 = vmul.f32 %v11757_v58, %v11746_v34 }
 0x1c6   :  { %v1926_v33 = vmul.f32 %v11757_v58, %v11747_v35  ;;  %v1927_v51 = vmul.f32 %v11757_v58, %v11748_v61  ;;  %v1928_v62 = vmul.f32 %v11757_v58, %v11749_v38  ;;  %v1929_v16 = vmul.f32 %v11757_v58, %v11758_v11 }
 0x1c7   :  { %v1930_v32 = vmul.f32 %v11757_v58, %v11750_v40  ;;  %v1931_v14 = vmul.f32 %v11757_v58, %v11751_v43  ;;  %v1932_v60 = vmul.f32 %v11757_v58, %v11752_v52  ;;  %v1933_v25 = vmul.f32 %v11757_v58, %v11753_v0  ;;  %v11760_v40 = vld [vmem:[#allocation148_spill] sm:$0xff] }
 0x1c8   :  { %v1934_v31 = vmul.f32 %v11757_v58, %v11754_v42  ;;  %v1935_v24 = vmul.f32 %v11757_v58, %v11755_v23  ;;  %v1936_v8 = vmul.f32 %v11757_v58, %v11756_v37  ;;  %v1937_v50 = vmul.f32 %v11757_v58, %v11759_v15 }
 0x1c9   :  { %v1938_v10 = vadd.f32 %v1922_v2, %v1902_v22  ;;  %v1939_v63 = vadd.f32 %v1923_v55, %v1903_v44  ;;  %v1940_v48 = vadd.f32 %v1924_v29, %v1904_v39  ;;  %v1941_v56 = vadd.f32 %v1925_v3, %v1905_v47 }
 0x1ca   :  { %v1942_v53 = vadd.f32 %v1926_v33, %v1906_v59  ;;  %v1943_v6 = vadd.f32 %v1927_v51, %v1907_v57  ;;  %v1944_v1 = vadd.f32 %v1928_v62, %v1908_v21  ;;  %v1945_v5 = vadd.f32 %v1929_v16, %v1909_v26 }
 0x1cb   :  { %v1946_v12 = vadd.f32 %v1930_v32, %v1910_v9  ;;  %v1947_v54 = vadd.f32 %v1931_v14, %v1911_v7  ;;  %v1948_v45 = vadd.f32 %v1932_v60, %v1912_v4  ;;  %v1949_v46 = vadd.f32 %v1933_v25, %v1913_v28 }
 0x1cc   :  { %v1950_v41 = vadd.f32 %v1934_v31, %v1914_v49  ;;  %v1951_v27 = vadd.f32 %v1935_v24, %v1915_v19  ;;  %v1952_v13 = vadd.f32 %v1936_v8, %v1916_v36  ;;  %v1958_v30 = vmul.f32 %v11760_v40, %v11744_v17  ;;  %v11761_v8 = vld [vmem:[#allocation149_spill] sm:$0xff] }
 0x1cd   :  { %v1959_v2 = vmul.f32 %v11760_v40, %v11745_v20  ;;  %v1960_v58 = vmul.f32 %v11760_v40, %v11746_v34  ;;  %v1961_v21 = vmul.f32 %v11760_v40, %v11747_v35  ;;  %v1962_v7 = vmul.f32 %v11760_v40, %v11748_v61  ;;  %v11776_v34 = vld [vmem:[#allocation144_spill] sm:$0xff] }
 0x1ce   :  { %v1963_v49 = vmul.f32 %v11760_v40, %v11749_v38  ;;  %v1964_v36 = vmul.f32 %v11760_v40, %v11758_v11  ;;  %v1965_v19 = vmul.f32 0.0, %v11760_v40  ;;  %v1966_v28 = vmul.f32 %v11760_v40, %v11751_v43 }
 0x1cf   :  { %v1967_v4 = vmul.f32 %v11760_v40, %v11752_v52  ;;  %v1968_v9 = vmul.f32 %v11760_v40, %v11753_v0  ;;  %v1969_v26 = vmul.f32 %v11760_v40, %v11754_v42  ;;  %v1970_v57 = vmul.f32 %v11760_v40, %v11755_v23 }
 0x1d0   :  { %v1971_v22 = vmul.f32 %v11760_v40, %v11756_v37  ;;  %v1972_v44 = vmul.f32 %v11760_v40, %v11759_v15  ;;  %v1953_v39 = vadd.f32 %v1937_v50, %v1917_v18  ;;  %v1974_v47 = vadd.f32 %v1958_v30, %v1938_v10  ;;  %v11762_v37 = vld [vmem:[#allocation104_spill] sm:$0xff]  ;;  %v11763_v30 = vld [vmem:[#allocation106_spill] sm:$0xff] }
 0x1d1   :  { %v1975_v59 = vadd.f32 %v1959_v2, %v1939_v63  ;;  %v1976_v55 = vadd.f32 %v1960_v58, %v1940_v48  ;;  %v1977_v29 = vadd.f32 %v1961_v21, %v1941_v56  ;;  %v1978_v3 = vadd.f32 %v1962_v7, %v1942_v53  ;;  %v11764_v50 = vld [vmem:[#allocation108_spill] sm:$0xff]  ;;  %v11765_v63 = vld [vmem:[#allocation110_spill] sm:$0xff] }
 0x1d2   :  { %v1979_v33 = vadd.f32 %v1963_v49, %v1943_v6  ;;  %v1980_v51 = vadd.f32 %v1964_v36, %v1944_v1  ;;  %v1981_v62 = vadd.f32 %v1965_v19, %v1945_v5  ;;  %v1982_v16 = vadd.f32 %v1966_v28, %v1946_v12  ;;  %v11766_v56 = vld [vmem:[#allocation112_spill] sm:$0xff]  ;;  %v11767_v6 = vld [vmem:[#allocation114_spill] sm:$0xff] }
 0x1d3   :  { %v1983_v32 = vadd.f32 %v1967_v4, %v1947_v54  ;;  %v1984_v14 = vadd.f32 %v1968_v9, %v1948_v45  ;;  %v1985_v60 = vadd.f32 %v1969_v26, %v1949_v46  ;;  %v1986_v25 = vadd.f32 %v1970_v57, %v1950_v41  ;;  %v11768_v5 = vld [vmem:[#allocation116_spill] sm:$0xff]  ;;  %v11770_v41 = vld [vmem:[#allocation122_spill] sm:$0xff] }
 0x1d4   :  { %v1987_v31 = vadd.f32 %v1971_v22, %v1951_v27  ;;  %v1988_v24 = vadd.f32 %v1972_v44, %v1952_v13  ;;  %v1994_v11 = vmul.f32 0.0, %v11761_v8  ;;  %v1995_v18 = vmul.f32 %v11761_v8, %v11762_v37  ;;  %v11769_v45 = vld [vmem:[#allocation120_spill] sm:$0xff]  ;;  %v11772_v58 = vld [vmem:[#allocation126_spill] sm:$0xff] }
 0x1d5   :  { %v1996_v40 = vmul.f32 %v11761_v8, %v11763_v30  ;;  %v1997_v10 = vmul.f32 %v11761_v8, %v11764_v50  ;;  %v1998_v48 = vmul.f32 %v11761_v8, %v11765_v63  ;;  %v1999_v53 = vmul.f32 %v11761_v8, %v11766_v56  ;;  %v11771_v13 = vld [vmem:[#allocation124_spill] sm:$0xff]  ;;  %v11774_v36 = vld [vmem:[#allocation130_spill] sm:$0xff] }
 0x1d6   :  { %v2000_v1 = vmul.f32 %v11761_v8, %v11767_v6  ;;  %v2001_v12 = vmul.f32 %v11761_v8, %v11768_v5  ;;  %v1989_v54 = vadd.f32 %v1965_v19, %v1953_v39  ;;  %v2003_v46 = vmul.f32 %v11761_v8, %v11769_v45  ;;  %v11773_v7 = vld [vmem:[#allocation128_spill] sm:$0xff] }
 0x1d7   :  { %v2004_v27 = vmul.f32 %v11761_v8, %v11770_v41  ;;  %v2005_v2 = vmul.f32 %v11761_v8, %v11771_v13  ;;  %v2006_v21 = vmul.f32 %v11761_v8, %v11772_v58  ;;  %v2007_v49 = vmul.f32 %v11761_v8, %v11773_v7  ;;  %v11775_v4 = vld [vmem:[#allocation132_spill] sm:$0xff] }
 0x1d8   :  { %v2008_v28 = vmul.f32 %v11761_v8, %v11774_v36  ;;  %v2009_v19 = vmul.f32 %v11761_v8, %v11775_v4  ;;  %v2010_v9 = vadd.f32 %v1994_v11, %v1974_v47  ;;  %v2011_v26 = vadd.f32 %v1995_v18, %v1975_v59  ;;  %v11779_v8 = vld [vmem:[#allocation150_spill] sm:$0xff] }
 0x1d9   :  { %v2012_v57 = vadd.f32 %v1996_v40, %v1976_v55  ;;  %v2013_v22 = vadd.f32 %v1997_v10, %v1977_v29  ;;  %v2014_v44 = vadd.f32 %v1998_v48, %v1978_v3  ;;  %v2015_v39 = vadd.f32 %v1999_v53, %v1979_v33  ;;  %v11777_v3 = vld [vmem:[#allocation118_spill] sm:$0xff] }
 0x1da   :  { %v2016_v37 = vadd.f32 %v2000_v1, %v1980_v51  ;;  %v2017_v15 = vadd.f32 %v2001_v12, %v1981_v62  ;;  %v2018_v23 = vadd.f32 %v1994_v11, %v1982_v16  ;;  %v2019_v42 = vadd.f32 %v2003_v46, %v1983_v32 }
 0x1db   :  { %v2020_v0 = vadd.f32 %v2004_v27, %v1984_v14  ;;  %v2021_v52 = vadd.f32 %v2005_v2, %v1985_v60  ;;  %v2022_v43 = vadd.f32 %v2006_v21, %v1986_v25  ;;  %v2023_v38 = vadd.f32 %v2007_v49, %v1987_v31  ;;  %v11778_v31 = vld [vmem:[#allocation134_spill] sm:$0xff] }
 0x1dc   :  { %v2024_v61 = vadd.f32 %v2008_v28, %v1988_v24  ;;  %v2025_v35 = vadd.f32 %v2009_v19, %v1989_v54  ;;  %v2031_v20 = vmul.f32 %v11776_v34, %v11763_v30  ;;  %v2032_v47 = vmul.f32 %v11776_v34, %v11764_v50 }
 0x1dd   :  { %v2033_v59 = vmul.f32 %v11776_v34, %v11765_v63  ;;  %v2034_v55 = vmul.f32 %v11776_v34, %v11766_v56  ;;  %v2035_v11 = vmul.f32 %v11776_v34, %v11767_v6  ;;  %v2036_v29 = vmul.f32 %v11776_v34, %v11768_v5  ;;  %v11801_v6 = vld [vmem:[#allocation56_spill] sm:$0xff]  ;;  %v11802_v63 = vld [vmem:[#allocation57_spill] sm:$0xff] }
 0x1de   :  { %v2037_v33 = vmul.f32 %v11776_v34, %v11777_v3  ;;  %v2038_v51 = vmul.f32 %v11776_v34, %v11769_v45  ;;  %v2039_v62 = vmul.f32 %v11776_v34, %v11770_v41  ;;  %v2040_v16 = vmul.f32 %v11776_v34, %v11771_v13  ;;  %v11799_v13 = vld [vmem:[#allocation53_spill] sm:$0xff]  ;;  %v11800_v45 = vld [vmem:[#allocation55_spill] sm:$0xff] }
 0x1df   :  { %v2041_v32 = vmul.f32 %v11776_v34, %v11772_v58  ;;  %v2042_v14 = vmul.f32 %v11776_v34, %v11773_v7  ;;  %v2043_v60 = vmul.f32 %v11776_v34, %v11774_v36  ;;  %v2044_v25 = vmul.f32 %v11776_v34, %v11775_v4  ;;  %v11797_v4 = vld [vmem:[#allocation51_spill] sm:$0xff]  ;;  %v11798_v7 = vld [vmem:[#allocation52_spill] sm:$0xff] }
 0x1e0   :  { %v2045_v24 = vmul.f32 %v11776_v34, %v11778_v31  ;;  %v8955_v18 = vadd.f32 %v11779_v8, %v2010_v9  ;;  %v8957_v40 = vadd.f32 %v2031_v20, %v2011_v26  ;;  %v8959_v10 = vadd.f32 %v2032_v47, %v2012_v57  ;;  %v11783_v9 = vld [vmem:[#allocation24_spill] sm:$0xff]  ;;  %v11785_v26 = vld [vmem:[#allocation30_spill] sm:$0xff] }
 0x1e1   :  { %v8961_v48 = vadd.f32 %v2033_v59, %v2013_v22  ;;  %v8963_v53 = vadd.f32 %v2034_v55, %v2014_v44  ;;  %v8965_v1 = vadd.f32 %v2035_v11, %v2015_v39  ;;  %v8967_v12 = vadd.f32 %v2036_v29, %v2016_v37  ;;  %v11780_v37 = vld [vmem:[#allocation145_spill] sm:$0xff]  ;;  %v11787_v22 = vld [vmem:[#allocation31_spill] sm:$0xff]  ;;  %v11789_v59 = vld [vmem:[#allocation36_spill] sm:$0xff] }
 0x1e2   :  { %v8969_v54 = vadd.f32 %v2037_v33, %v2017_v15  ;;  %v8971_v46 = vadd.f32 %v2038_v51, %v2018_v23  ;;  %v8973_v34 = vadd.f32 %v2039_v62, %v2019_v42  ;;  %v8975_v27 = vadd.f32 %v2040_v16, %v2020_v0  ;;  %v11781_v15 = vld [vmem:[#allocation28_spill] sm:$0xff]  ;;  %v11782_v42 = vld [vmem:[#allocation54_spill] sm:$0xff]  ;;  %v11788_v39 = vld [vmem:[#allocation35_spill] sm:$0xff] }
 0x1e3   :  { %v8977_v20 = vadd.f32 %v2041_v32, %v2021_v52  ;;  %v8979_v2 = vadd.f32 %v2042_v14, %v2022_v43  ;;  %v8981_v21 = vadd.f32 %v2043_v60, %v2023_v38  ;;  %v8983_v49 = vadd.f32 %v2044_v25, %v2024_v61  ;;  %v11784_v43 = vld [vmem:[#allocation29_spill] sm:$0xff]  ;;  %v11790_v11 = vld [vmem:[#allocation39_spill] sm:$0xff]  ;;  %v11791_v33 = vld [vmem:[#allocation40_spill] sm:$0xff] }
 0x1e4   :  { %v8985_v28 = vadd.f32 %v2045_v24, %v2025_v35  ;;  %v8988_v19 = vmul.f32 0.0, %v11780_v37  ;;  %v2068_v23 = vmul.f32 %v11780_v37, %v11781_v15  ;;  %v2069_v0 = vmul.f32 %v11780_v37, %v11782_v42  ;;  %v11786_v35 = vld [vmem:[#allocation25_spill] sm:$0xff]  ;;  %v11793_v32 = vld [vmem:[#allocation42_spill] sm:$0xff]  ;;  %v11794_v60 = vld [vmem:[#allocation43_spill] sm:$0xff] }
 0x1e5   :  { %v2070_v52 = vmul.f32 %v11780_v37, %v11783_v9  ;;  %v2071_v38 = vmul.f32 %v11780_v37, %v11784_v43  ;;  %v2072_v61 = vmul.f32 %v11780_v37, %v11785_v26  ;;  %v2073_v57 = vmul.f32 %v11780_v37, %v11786_v35  ;;  %v11792_v62 = vld [vmem:[#allocation41_spill] sm:$0xff]  ;;  %v11796_v31 = vld [vmem:[#allocation50_spill] sm:$0xff] }
 0x1e6   :  { %v2074_v44 = vmul.f32 %v11780_v37, %v11787_v22  ;;  %v2075_v47 = vmul.f32 %v11780_v37, %v11788_v39  ;;  %v2076_v55 = vmul.f32 %v11780_v37, %v11789_v59  ;;  %v2077_v29 = vmul.f32 %v11780_v37, %v11790_v11  ;;  %v11795_v24 = vld [vmem:[#allocation49_spill] sm:$0xff] }
 0x1e7   :  { %v2078_v51 = vmul.f32 %v11780_v37, %v11791_v33  ;;  %v2079_v16 = vmul.f32 %v11780_v37, %v11792_v62  ;;  %v2080_v14 = vmul.f32 %v11780_v37, %v11793_v32  ;;  %v2081_v25 = vmul.f32 %v11780_v37, %v11794_v60  ;;  %v11804_v60 = vld [vmem:[#allocation59_spill] sm:$0xff]  ;;  %v11805_v32 = vld [vmem:[#allocation60_spill] sm:$0xff]  ;;  %v11806_v62 = vld [vmem:[#allocation33_spill] sm:$0xff] }
 0x1e8   :  { %v2084_v8 = vmul.f32 %v11780_v37, %v11795_v24  ;;  %v2085_v3 = vmul.f32 %v11780_v37, %v11796_v31  ;;  %v2086_v36 = vmul.f32 %v11780_v37, %v11797_v4  ;;  %v2087_v58 = vmul.f32 %v11780_v37, %v11798_v7  ;;  %v11803_v31 = vld [vmem:[#allocation58_spill] sm:$0xff] }
 0x1e9   :  { %v2088_v41 = vmul.f32 %v11780_v37, %v11799_v13  ;;  %v2089_v5 = vmul.f32 %v11780_v37, %v11800_v45  ;;  %v2090_v56 = vmul.f32 %v11780_v37, %v11801_v6  ;;  %v2091_v50 = vmul.f32 %v11780_v37, %v11802_v63  ;;  %v11807_v33 = vld [vmem:[#allocation46_spill] sm:$0xff] }
 0x1ea   :  { %v2134_v30 = vrot.slane %v2068_v23, 1  ;;  %v2135_v17 = vrot.slane %v2069_v0, 1  ;;  %v2092_v4 = vmul.f32 %v11780_v37, %v11803_v31  ;;  %v2137_v24 = vrot.slane %v2070_v52, 1  ;;  %v11808_v23 = vld [vmem:[#allocation16_spill] sm:$0xff] }
 0x1eb   :  { %v2138_v7 = vrot.slane %v2071_v38, 1  ;;  %v2093_v13 = vmul.f32 %v11780_v37, %v11804_v60  ;;  %v2094_v45 = vmul.f32 %v11780_v37, %v11805_v32  ;;  %v2095_v6 = vmul.f32 %v11780_v37, %v11806_v62 }
 0x1ec   :  { %v2096_v63 = vmul.f32 %v11780_v37, %v11807_v33  ;;  %v2097_v0 = vmul.f32 %v11780_v37, %v11808_v23  ;;  %v2131_v31 = vrot.slane %v8988_v19, 1  ;;  %v2140_v11 = vrot.slane %v2072_v61, 1 }
 0x1ed   :  { %v2141_v52 = vrot.slane %v2073_v57, 1  ;;  %v2136_v38 = vsel %vm2130_vm4, %v2134_v30, %v2135_v17  ;;  %v2143_v59 = vrot.slane %v2074_v44, 1  ;;  %v2144_v60 = vrot.slane %v2075_v47, 1 }
 0x1ee   :  { %v2146_v39 = vrot.slane %v2076_v55, 1  ;;  %v2139_v32 = vsel %vm2130_vm4, %v2137_v24, %v2138_v7  ;;  %v2147_v22 = vrot.slane %v2077_v29, 1  ;;  %v2149_v35 = vrot.slane %v2078_v51, 1  ;;  %v11827_v24 = vld [vmem:[#allocation30_spill] sm:$0xff] }
 0x1ef   :  { %v2150_v62 = vrot.slane %v2079_v16, 1  ;;  %v2152_v26 = vrot.slane %v2080_v14, 1  ;;  %v2153_v43 = vrot.slane %v2081_v25, 1  ;;  %v2158_v33 = vrot.slane %v2084_v8, 1  ;;  %v11823_v16 = vld [vmem:[#allocation24_spill] sm:$0xff] }
 0x1f0   :  { %v2159_v9 = vrot.slane %v2085_v3, 1  ;;  %v2161_v42 = vrot.slane %v2086_v36, 1  ;;  %v2162_v37 = vrot.slane %v2087_v58, 1  ;;  %v2164_v23 = vrot.slane %v2088_v41, 1 }
 0x1f1   :  { %v2165_v19 = vrot.slane %v2089_v5, 1  ;;  %v2167_v61 = vrot.slane %v2090_v56, 1  ;;  %v2168_v57 = vrot.slane %v2091_v50, 1  ;;  %v2170_v15 = vrot.slane %v2092_v4, 1 }
 0x1f2   :  { %v2171_v17 = vrot.slane %v2093_v13, 1  ;;  %v2173_v30 = vrot.slane %v2094_v45, 1  ;;  %v2174_v44 = vrot.slane %v2095_v6, 1  ;;  %v2176_v47 = vrot.slane %v2096_v63, 1 }
 0x1f3   :  { %v2177_v55 = vrot.slane %v2097_v0, 1  ;;  %v2142_v7 = vsel %vm2130_vm4, %v2140_v11, %v2141_v52  ;;  %v2145_v29 = vsel %vm2130_vm4, %v2143_v59, %v2144_v60  ;;  %v2148_v51 = vsel %vm2130_vm4, %v2146_v39, %v2147_v22  ;;  %v11817_v59 = vld [vmem:[#allocation142_spill] sm:$0xff]  ;;  %v11819_v11 = vld [vmem:[#allocation139_spill] sm:$0xff]  ;;  %v11826_v60 = vld [vmem:[#allocation29_spill] sm:$0xff] }
 0x1f4   :  { %v2151_v3 = vsel %vm2130_vm4, %v2149_v35, %v2150_v62  ;;  %v2154_v58 = vsel %vm2130_vm4, %v2152_v26, %v2153_v43  ;;  %v2160_v5 = vsel %vm2130_vm4, %v2158_v33, %v2159_v9  ;;  %v2163_v50 = vsel %vm2130_vm4, %v2161_v42, %v2162_v37  ;;  %v11810_v43 = vld [vmem:[#allocation143_spill] sm:$0xff]  ;;  %v11822_v62 = vld [vmem:[#allocation54_spill] sm:$0xff] }
 0x1f5   :  { %v2166_v56 = vsel %vm2130_vm4, %v2164_v23, %v2165_v19  ;;  %v2169_v6 = vsel %vm2130_vm4, %v2167_v61, %v2168_v57  ;;  %v2172_v63 = vsel %vm2130_vm4, %v2170_v15, %v2171_v17  ;;  %v9060_v45 = vadd.f32 %v2131_v31, %v8955_v18  ;;  %v11828_v23 = vld [vmem:[#allocation25_spill] sm:$0xff]  ;;  %v11829_v52 = vld [vmem:[#allocation31_spill] sm:$0xff]  ;;  %v11831_v61 = vld [vmem:[#allocation36_spill] sm:$0xff] }
 0x1f6   :  { %v9063_v41 = vadd.f32 %v2136_v38, %v8957_v40  ;;  %v2175_v13 = vsel %vm2130_vm4, %v2173_v30, %v2174_v44  ;;  %v2178_v36 = vsel %vm2130_vm4, %v2176_v47, %v2177_v55  ;;  %v9068_v4 = vadd.f32 %v2139_v32, %v8959_v10  ;;  %v11809_v40 = vld [vmem:[#allocation48_spill] sm:$0xff]  ;;  %v11830_v37 = vld [vmem:[#allocation35_spill] sm:$0xff]  ;;  %v11834_v55 = vld [vmem:[#allocation41_spill] sm:$0xff] }
 0x1f7   :  { %v9071_v42 = vadd.f32 %v2142_v7, %v8961_v48  ;;  %v9074_v9 = vadd.f32 %v2145_v29, %v8963_v53  ;;  %v9077_v15 = vadd.f32 %v2148_v51, %v8965_v1  ;;  %v9080_v18 = vadd.f32 %v2151_v3, %v8967_v12  ;;  %v11832_v17 = vld [vmem:[#allocation39_spill] sm:$0xff]  ;;  %v11833_v44 = vld [vmem:[#allocation40_spill] sm:$0xff]  ;;  %v11835_v29 = vld [vmem:[#allocation42_spill] sm:$0xff] }
 0x1f8   :  { %v2214_v26 = vrot.slane %v11810_v43, %v11809_v40  ;;  %v9085_v35 = vadd.f32 %v2154_v58, %v8969_v54  ;;  %v9088_v10 = vadd.f32 %v2131_v31, %v8971_v46  ;;  %v9091_v48 = vadd.f32 %v2160_v5, %v8973_v34  ;;  %v11813_v46 = vld [vmem:[#allocation141_spill] sm:$0xff]  ;;  %v11814_v34 = vld [vmem:[#allocation136_spill] sm:$0xff]  ;;  %v11836_v3 = vld [vmem:[#allocation43_spill] sm:$0xff] }
 0x1f9   :  { %v9094_v53 = vadd.f32 %v2163_v50, %v8975_v27  ;;  %v9097_v1 = vadd.f32 %v2166_v56, %v8977_v20  ;;  %v9100_v12 = vadd.f32 %v2169_v6, %v8979_v2  ;;  %v9103_v22 = vadd.f32 %v2172_v63, %v8981_v21  ;;  %v11816_v27 = vld [vmem:[#allocation138_spill] sm:$0xff]  ;;  %v11821_v21 = vld [vmem:[#allocation28_spill] sm:$0xff]  ;;  %v11838_v56 = vld [vmem:[#allocation45_spill] sm:$0xff] }
 0x1fa   :  { %v9106_v54 = vadd.f32 %v2175_v13, %v8983_v49  ;;  %v9109_v31 = vadd.f32 %v2178_v36, %v8985_v28  ;;  %v9113_v39 = vrot.slane %v11814_v34, %v11813_v46  ;;  %v9117_v20 = vrot.slane %v11817_v59, %v11816_v27  ;;  %v11824_v28 = vld [vmem:[#allocation140_spill] sm:$0xff]  ;;  %v11839_v63 = vld [vmem:[#allocation49_spill] sm:$0xff]  ;;  %v11840_v36 = vld [vmem:[#allocation50_spill] sm:$0xff] }
 0x1fb   :  { %v9121_v2 = vrot.slane %v11814_v34, %v11819_v11  ;;  %v2215_v33 = vmul.f32 %v2214_v26, %v11821_v21  ;;  %v2216_v49 = vmul.f32 %v2214_v26, %v11822_v62  ;;  %v2217_v32 = vmul.f32 %v2214_v26, %v11823_v16  ;;  %v11837_v5 = vld [vmem:[#allocation44_spill] sm:$0xff]  ;;  %v11841_v34 = vld [vmem:[#allocation51_spill] sm:$0xff]  ;;  %v11843_v62 = vld [vmem:[#allocation53_spill] sm:$0xff] }
 0x1fc   :  { %11811 = vst [vmem:[#allocation146_spill] sm:$0xff] %v9106_v54  ;;  %11812 = vst [vmem:[#allocation147_spill] sm:$0xff] %v9109_v31  ;;  %v9128_v14 = vrot.slane %v11817_v59, %v11824_v28  ;;  %v2218_v25 = vmul.f32 %v2214_v26, %v11826_v60  ;;  %v2219_v8 = vmul.f32 %v2214_v26, %v11827_v24  ;;  %v11842_v28 = vld [vmem:[#allocation52_spill] sm:$0xff]  ;;  %v11844_v46 = vld [vmem:[#allocation55_spill] sm:$0xff] }
 0x1fd   :  { %11815 = vst [vmem:[#allocation148_spill] sm:$0xff] %v9113_v39  ;;  %11818 = vst [vmem:[#allocation149_spill] sm:$0xff] %v9117_v20  ;;  %v2220_v0 = vmul.f32 %v2214_v26, %v11828_v23  ;;  %v2221_v38 = vmul.f32 %v2214_v26, %v11829_v52  ;;  %v2222_v19 = vmul.f32 %v2214_v26, %v11830_v37  ;;  %v11845_v27 = vld [vmem:[#allocation56_spill] sm:$0xff]  ;;  %v2280_v20 = vrot.slane %v2216_v49, 1  ;;  %v11850_v37 = vld [vmem:[#allocation33_spill] sm:$0xff] }
 0x1fe   :  { %11820 = vst [vmem:[#allocation144_spill] sm:$0xff] %v9121_v2  ;;  %11825 = vst [vmem:[#allocation150_spill] sm:$0xff] %v9128_v14  ;;  %v2223_v57 = vmul.f32 %v2214_v26, %v11831_v61  ;;  %v2224_v30 = vmul.f32 %v2214_v26, %v11832_v17  ;;  %v2225_v47 = vmul.f32 %v2214_v26, %v11833_v44  ;;  %v2279_v2 = vrot.slane %v2215_v33, 1  ;;  %v11848_v17 = vld [vmem:[#allocation59_spill] sm:$0xff]  ;;  %v11849_v61 = vld [vmem:[#allocation60_spill] sm:$0xff] }
 0x1ff   :  { %v2226_v7 = vmul.f32 %v2214_v26, %v11834_v55  ;;  %v2227_v51 = vmul.f32 %v2214_v26, %v11835_v29  ;;  %v2228_v58 = vmul.f32 %v2214_v26, %v11836_v3  ;;  %v2229_v50 = vmul.f32 %v2214_v26, %v11837_v5  ;;  %v11846_v29 = vld [vmem:[#allocation57_spill] sm:$0xff]  ;;  %v11847_v55 = vld [vmem:[#allocation58_spill] sm:$0xff]  ;;  %v11852_v23 = vld [vmem:[#allocation16_spill] sm:$0xff] }
 0x200   :  { %v2230_v6 = vmul.f32 %v2214_v26, %v11838_v56  ;;  %v2231_v13 = vmul.f32 %v2214_v26, %v11839_v63  ;;  %v2232_v43 = vmul.f32 %v2214_v26, %v11840_v36  ;;  %v2233_v59 = vmul.f32 %v2214_v26, %v11841_v34  ;;  %v11851_v52 = vld [vmem:[#allocation46_spill] sm:$0xff] }
 0x201   :  { %v2234_v11 = vmul.f32 %v2214_v26, %v11842_v28  ;;  %v2235_v21 = vmul.f32 %v2214_v26, %v11843_v62  ;;  %v2236_v40 = vmul.f32 %v2214_v26, %v11844_v46  ;;  %v2237_v14 = vmul.f32 %v2214_v26, %v11845_v27  ;;  %v11853_v33 = vld [vmem:[#allocation14_spill] sm:$0xff] }
 0x202   :  { %v2282_v3 = vrot.slane %v2217_v32, 1  ;;  %v2283_v5 = vrot.slane %v2218_v25, 1  ;;  %v2238_v56 = vmul.f32 %v2214_v26, %v11846_v29  ;;  %v2239_v63 = vmul.f32 %v2214_v26, %v11847_v55  ;;  %v11854_v32 = vld [vmem:[#allocation23_spill] sm:$0xff] }
 0x203   :  { %v2285_v44 = vrot.slane %v2219_v8, 1  ;;  %v2286_v36 = vrot.slane %v2220_v0, 1  ;;  %v2240_v34 = vmul.f32 %v2214_v26, %v11848_v17  ;;  %v2241_v28 = vmul.f32 %v2214_v26, %v11849_v61 }
 0x204   :  { %v2242_v62 = vmul.f32 %v2214_v26, %v11850_v37  ;;  %v2243_v46 = vmul.f32 %v2214_v26, %v11851_v52  ;;  %v2244_v27 = vmul.f32 %v2214_v26, %v11852_v23  ;;  %v2245_v49 = vmul.f32 %v2214_v26, %v11853_v33 }
 0x205   :  { %v2246_v25 = vmul.f32 %v2214_v26, %v11854_v32  ;;  %v2288_v24 = vrot.slane %v2221_v38, 1  ;;  %v2281_v29 = vsel %vm2130_vm4, %v2279_v2, %v2280_v20  ;;  %v2284_v8 = vsel %vm2130_vm4, %v2282_v3, %v2283_v5 }
 0x206   :  { %v2289_v0 = vrot.slane %v2222_v19, 1  ;;  %v2291_v55 = vrot.slane %v2223_v57, 1  ;;  %v2287_v17 = vsel %vm2130_vm4, %v2285_v44, %v2286_v36  ;;  %v2292_v61 = vrot.slane %v2224_v30, 1  ;;  %v11863_v36 = vld [vmem:[#allocation35_spill] sm:$0xff] }
 0x207   :  { %v2294_v60 = vrot.slane %v2225_v47, 1  ;;  %v2295_v37 = vrot.slane %v2226_v7, 1  ;;  %v2297_v39 = vrot.slane %v2227_v51, 1  ;;  %v2298_v52 = vrot.slane %v2228_v58, 1 }
 0x208   :  { %v2300_v16 = vrot.slane %v2229_v50, 1  ;;  %v2301_v23 = vrot.slane %v2230_v6, 1  ;;  %v2303_v31 = vrot.slane %v2231_v13, 1  ;;  %v2304_v33 = vrot.slane %v2232_v43, 1 }
 0x209   :  { %v2306_v54 = vrot.slane %v2233_v59, 1  ;;  %v2307_v26 = vrot.slane %v2234_v11, 1  ;;  %v2309_v38 = vrot.slane %v2235_v21, 1  ;;  %v2310_v32 = vrot.slane %v2236_v40, 1 }
 0x20a   :  { %v2312_v20 = vrot.slane %v2237_v14, 1  ;;  %v2313_v2 = vrot.slane %v2238_v56, 1  ;;  %v2315_v3 = vrot.slane %v2239_v63, 1  ;;  %v2316_v19 = vrot.slane %v2240_v34, 1  ;;  %v11864_v34 = vld [vmem:[#allocation36_spill] sm:$0xff] }
 0x20b   :  { %v2318_v57 = vrot.slane %v2241_v28, 1  ;;  %v2319_v5 = vrot.slane %v2242_v62, 1  ;;  %v2290_v30 = vsel %vm2130_vm4, %v2288_v24, %v2289_v0  ;;  %v2293_v44 = vsel %vm2130_vm4, %v2291_v55, %v2292_v61  ;;  %v11858_v55 = vld [vmem:[#allocation148_spill] sm:$0xff] }
 0x20c   :  { %v2321_v47 = vrot.slane %v2243_v46, 1  ;;  %v2322_v7 = vrot.slane %v2244_v27, 1  ;;  %v2296_v51 = vsel %vm2130_vm4, %v2294_v60, %v2295_v37  ;;  %v2299_v58 = vsel %vm2130_vm4, %v2297_v39, %v2298_v52 }
 0x20d   :  { %v2324_v50 = vrot.slane %v2245_v49, 1  ;;  %v2325_v11 = vrot.slane %v2246_v25, 1  ;;  %v2302_v40 = vsel %vm2130_vm4, %v2300_v16, %v2301_v23  ;;  %v2305_v21 = vsel %vm2130_vm4, %v2303_v31, %v2304_v33  ;;  %v11865_v33 = vld [vmem:[#allocation39_spill] sm:$0xff] }
 0x20e   :  { %v2308_v14 = vsel %vm2130_vm4, %v2306_v54, %v2307_v26  ;;  %v2311_v62 = vsel %vm2130_vm4, %v2309_v38, %v2310_v32  ;;  %v2314_v28 = vsel %vm2130_vm4, %v2312_v20, %v2313_v2  ;;  %v2317_v24 = vsel %vm2130_vm4, %v2315_v3, %v2316_v19  ;;  %v11866_v32 = vld [vmem:[#allocation40_spill] sm:$0xff]  ;;  %v11868_v26 = vld [vmem:[#allocation42_spill] sm:$0xff]  ;;  %v11869_v20 = vld [vmem:[#allocation43_spill] sm:$0xff] }
 0x20f   :  { %v2320_v46 = vsel %vm2130_vm4, %v2318_v57, %v2319_v5  ;;  %v9174_v27 = vadd.f32 %v2281_v29, %v9060_v45  ;;  %v2323_v39 = vsel %vm2130_vm4, %v2321_v47, %v2322_v7  ;;  %v9178_v60 = vadd.f32 %v2284_v8, %v9063_v41  ;;  %v11867_v8 = vld [vmem:[#allocation41_spill] sm:$0xff]  ;;  %v11870_v3 = vld [vmem:[#allocation44_spill] sm:$0xff] }
 0x210   :  { %v9181_v31 = vadd.f32 %v2287_v17, %v9068_v4  ;;  %v9184_v54 = vadd.f32 %v2290_v30, %v9071_v42  ;;  %v2326_v16 = vsel %vm2130_vm4, %v2324_v50, %v2325_v11  ;;  %v9188_v23 = vadd.f32 %v2293_v44, %v9074_v9  ;;  %v11871_v57 = vld [vmem:[#allocation45_spill] sm:$0xff]  ;;  %v11872_v44 = vld [vmem:[#allocation51_spill] sm:$0xff]  ;;  %v11873_v7 = vld [vmem:[#allocation52_spill] sm:$0xff] }
 0x211   :  { %v9191_v52 = vadd.f32 %v2296_v51, %v9077_v15  ;;  %v9194_v45 = vadd.f32 %v2299_v58, %v9080_v18  ;;  %v9197_v41 = vadd.f32 %v2302_v40, %v9085_v35  ;;  %v9200_v4 = vadd.f32 %v2305_v21, %v9088_v10  ;;  %v11855_v35 = vld [vmem:[#allocation146_spill] sm:$0xff]  ;;  %v11856_v10 = vld [vmem:[#allocation147_spill] sm:$0xff]  ;;  %v11874_v58 = vld [vmem:[#allocation53_spill] sm:$0xff] }
 0x212   :  { %v9203_v42 = vadd.f32 %v2308_v14, %v9091_v48  ;;  %v9206_v37 = vadd.f32 %v2311_v62, %v9094_v53  ;;  %v9209_v9 = vadd.f32 %v2314_v28, %v9097_v1  ;;  %v9212_v15 = vadd.f32 %v2317_v24, %v9100_v12  ;;  %v11857_v48 = vld [vmem:[#allocation24_spill] sm:$0xff]  ;;  %v11859_v53 = vld [vmem:[#allocation29_spill] sm:$0xff]  ;;  %v11860_v1 = vld [vmem:[#allocation30_spill] sm:$0xff] }
 0x213   :  { %v9215_v18 = vadd.f32 %v2320_v46, %v9103_v22  ;;  %v9218_v61 = vadd.f32 %v2323_v39, %v11855_v35  ;;  %v9221_v17 = vadd.f32 %v2326_v16, %v11856_v10  ;;  %v2363_v29 = vmul.f32 %v11858_v55, %v11857_v48  ;;  %v11861_v12 = vld [vmem:[#allocation25_spill] sm:$0xff]  ;;  %v11862_v22 = vld [vmem:[#allocation31_spill] sm:$0xff]  ;;  %v11876_v21 = vld [vmem:[#allocation56_spill] sm:$0xff] }
 0x214   :  { %v2364_v56 = vmul.f32 %v11858_v55, %v11859_v53  ;;  %v2365_v6 = vmul.f32 %v11858_v55, %v11860_v1  ;;  %v2366_v63 = vmul.f32 %v11858_v55, %v11861_v12  ;;  %v2367_v13 = vmul.f32 %v11858_v55, %v11862_v22  ;;  %v11875_v11 = vld [vmem:[#allocation55_spill] sm:$0xff]  ;;  %v11877_v62 = vld [vmem:[#allocation57_spill] sm:$0xff]  ;;  %v11878_v39 = vld [vmem:[#allocation58_spill] sm:$0xff] }
 0x215   :  { %v2368_v43 = vmul.f32 %v11858_v55, %v11863_v36  ;;  %v2369_v59 = vmul.f32 %v11858_v55, %v11864_v34  ;;  %v2370_v49 = vmul.f32 %v11858_v55, %v11865_v33  ;;  %v2371_v25 = vmul.f32 %v11858_v55, %v11866_v32  ;;  %v11879_v35 = vld [vmem:[#allocation59_spill] sm:$0xff] }
 0x216   :  { %v2372_v0 = vmul.f32 %v11858_v55, %v11867_v8  ;;  %v2373_v38 = vmul.f32 %v11858_v55, %v11868_v26  ;;  %v2374_v2 = vmul.f32 %v11858_v55, %v11869_v20  ;;  %v2375_v19 = vmul.f32 %v11858_v55, %v11870_v3  ;;  %v11885_v26 = vld [vmem:[#allocation23_spill] sm:$0xff] }
 0x217   :  { %v2376_v5 = vmul.f32 %v11858_v55, %v11871_v57  ;;  %v9252_v30 = vmul.f32 0.0, %v11858_v55  ;;  %v2379_v47 = vmul.f32 %v11858_v55, %v11872_v44  ;;  %v2380_v51 = vmul.f32 %v11858_v55, %v11873_v7 }
 0x218   :  { %v2381_v50 = vmul.f32 %v11858_v55, %v11874_v58  ;;  %v2382_v40 = vmul.f32 %v11858_v55, %v11875_v11  ;;  %v2383_v14 = vmul.f32 %v11858_v55, %v11876_v21  ;;  %v2384_v28 = vmul.f32 %v11858_v55, %v11877_v62  ;;  %v11880_v58 = vld [vmem:[#allocation60_spill] sm:$0xff]  ;;  %v11881_v11 = vld [vmem:[#allocation33_spill] sm:$0xff]  ;;  %v11882_v21 = vld [vmem:[#allocation46_spill] sm:$0xff] }
 0x219   :  { %v2427_v24 = vrot.slane %v2363_v29, 1  ;;  %v2428_v46 = vrot.slane %v2364_v56, 1  ;;  %v2385_v16 = vmul.f32 %v11858_v55, %v11878_v39  ;;  %v2386_v10 = vmul.f32 %v11858_v55, %v11879_v35  ;;  %v11883_v62 = vld [vmem:[#allocation16_spill] sm:$0xff]  ;;  %v11884_v56 = vld [vmem:[#allocation14_spill] sm:$0xff] }
 0x21a   :  { %v2430_v57 = vrot.slane %v2365_v6, 1  ;;  %v2431_v3 = vrot.slane %v2366_v63, 1  ;;  %v2387_v7 = vmul.f32 %v11858_v55, %v11880_v58  ;;  %v2388_v44 = vmul.f32 %v11858_v55, %v11881_v11 }
 0x21b   :  { %v2389_v20 = vmul.f32 %v11858_v55, %v11882_v21  ;;  %v2390_v29 = vmul.f32 %v11858_v55, %v11883_v62  ;;  %v2391_v39 = vmul.f32 %v11858_v55, %v11884_v56  ;;  %v2392_v35 = vmul.f32 %v11858_v55, %v11885_v26 }
 0x21c   :  { %v2433_v6 = vrot.slane %v2367_v13, 1  ;;  %v2434_v63 = vrot.slane %v2368_v43, 1  ;;  %v2429_v8 = vsel %vm2130_vm4, %v2427_v24, %v2428_v46  ;;  %v2436_v58 = vrot.slane %v2369_v59, 1 }
 0x21d   :  { %v2437_v32 = vrot.slane %v2370_v49, 1  ;;  %v2439_v33 = vrot.slane %v2371_v25, 1  ;;  %v2432_v11 = vsel %vm2130_vm4, %v2430_v57, %v2431_v3  ;;  %v2440_v34 = vrot.slane %v2372_v0, 1 }
 0x21e   :  { %v2442_v21 = vrot.slane %v2373_v38, 1  ;;  %v2443_v36 = vrot.slane %v2374_v2, 1  ;;  %v2445_v22 = vrot.slane %v2375_v19, 1  ;;  %v2446_v62 = vrot.slane %v2376_v5, 1 }
 0x21f   :  { %v2451_v12 = vrot.slane %v2379_v47, 1  ;;  %v2452_v1 = vrot.slane %v2380_v51, 1  ;;  %v2454_v56 = vrot.slane %v2381_v50, 1  ;;  %v2455_v53 = vrot.slane %v2382_v40, 1  ;;  %v11894_v40 = vld [vmem:[#allocation78_spill] sm:$0xff] }
 0x220   :  { %v2457_v48 = vrot.slane %v2383_v14, 1  ;;  %v2458_v55 = vrot.slane %v2384_v28, 1  ;;  %v2460_v13 = vrot.slane %v2385_v16, 1  ;;  %v2461_v43 = vrot.slane %v2386_v10, 1  ;;  %v11895_v14 = vld [vmem:[#allocation79_spill] sm:$0xff]  ;;  %v11896_v28 = vld [vmem:[#allocation80_spill] sm:$0xff] }
 0x221   :  { %v2463_v26 = vrot.slane %v2387_v7, 1  ;;  %v2464_v24 = vrot.slane %v2388_v44, 1  ;;  %v2466_v59 = vrot.slane %v2389_v20, 1  ;;  %v2467_v49 = vrot.slane %v2390_v29, 1  ;;  %v11897_v16 = vld [vmem:[#allocation81_spill] sm:$0xff]  ;;  %v11898_v10 = vld [vmem:[#allocation82_spill] sm:$0xff] }
 0x222   :  { %v2469_v25 = vrot.slane %v2391_v39, 1  ;;  %v2470_v46 = vrot.slane %v2392_v35, 1  ;;  %v2435_v0 = vsel %vm2130_vm4, %v2433_v6, %v2434_v63  ;;  %v2438_v38 = vsel %vm2130_vm4, %v2436_v58, %v2437_v32  ;;  %v11900_v63 = vld [vmem:[#allocation84_spill] sm:$0xff] }
 0x223   :  { %v2441_v2 = vsel %vm2130_vm4, %v2439_v33, %v2440_v34  ;;  %v2444_v3 = vsel %vm2130_vm4, %v2442_v21, %v2443_v36  ;;  %v2447_v19 = vsel %vm2130_vm4, %v2445_v22, %v2446_v62  ;;  %v2448_v57 = vrot.slane %v9252_v30, 1 }
 0x224   :  { %v2453_v5 = vsel %vm2130_vm4, %v2451_v12, %v2452_v1  ;;  %v2456_v44 = vsel %vm2130_vm4, %v2454_v56, %v2455_v53  ;;  %v2459_v20 = vsel %vm2130_vm4, %v2457_v48, %v2458_v55  ;;  %v2462_v47 = vsel %vm2130_vm4, %v2460_v13, %v2461_v43  ;;  %v11899_v56 = vld [vmem:[#allocation83_spill] sm:$0xff]  ;;  %v11901_v13 = vld [vmem:[#allocation85_spill] sm:$0xff] }
 0x225   :  { %v2465_v7 = vsel %vm2130_vm4, %v2463_v26, %v2464_v24  ;;  %v9296_v32 = vadd.f32 %v2429_v8, %v9174_v27  ;;  %v2468_v34 = vsel %vm2130_vm4, %v2466_v59, %v2467_v49  ;;  %v2471_v36 = vsel %vm2130_vm4, %v2469_v25, %v2470_v46  ;;  %v11902_v24 = vld [vmem:[#allocation88_spill] sm:$0xff]  ;;  %v11903_v49 = vld [vmem:[#allocation89_spill] sm:$0xff]  ;;  %v11904_v46 = vld [vmem:[#allocation90_spill] sm:$0xff] }
 0x226   :  { %v9301_v22 = vadd.f32 %v2432_v11, %v9178_v60  ;;  %v9304_v1 = vadd.f32 %v2435_v0, %v9181_v31  ;;  %v9307_v53 = vadd.f32 %v2438_v38, %v9184_v54  ;;  %v9310_v48 = vadd.f32 %v2441_v2, %v9188_v23  ;;  %v11905_v38 = vld [vmem:[#allocation91_spill] sm:$0xff] }
 0x227   :  { %v9313_v12 = vadd.f32 %v2444_v3, %v9191_v52  ;;  %v9316_v27 = vadd.f32 %v2447_v19, %v9194_v45  ;;  %v9319_v33 = vadd.f32 %v2448_v57, %v9197_v41  ;;  %v9322_v60 = vadd.f32 %v2453_v5, %v9200_v4  ;;  %v11906_v3 = vld [vmem:[#allocation92_spill] sm:$0xff] }
 0x228   :  { %v9325_v31 = vadd.f32 %v2456_v44, %v9203_v42  ;;  %v9328_v54 = vadd.f32 %v2459_v20, %v9206_v37  ;;  %v9331_v23 = vadd.f32 %v2462_v47, %v9209_v9  ;;  %v9334_v52 = vadd.f32 %v2465_v7, %v9212_v15  ;;  %v11887_v42 = vld [vmem:[#allocation149_spill] sm:$0xff]  ;;  %v11888_v37 = vld [vmem:[#allocation72_spill] sm:$0xff]  ;;  %v11890_v15 = vld [vmem:[#allocation74_spill] sm:$0xff] }
 0x229   :  { %v9337_v45 = vadd.f32 %v2468_v34, %v9215_v18  ;;  %v9340_v41 = vadd.f32 %v2471_v36, %v9218_v61  ;;  %v9343_v4 = vadd.f32 %v2448_v57, %v9221_v17  ;;  %v9346_v8 = vmul.f32 0.0, %v11887_v42  ;;  %v11889_v9 = vld [vmem:[#allocation73_spill] sm:$0xff]  ;;  %v11891_v18 = vld [vmem:[#allocation75_spill] sm:$0xff]  ;;  %v11892_v61 = vld [vmem:[#allocation76_spill] sm:$0xff] }
 0x22a   :  { %v2513_v26 = vmul.f32 %v11887_v42, %v11888_v37  ;;  %v2514_v30 = vmul.f32 %v11887_v42, %v11889_v9  ;;  %v2515_v51 = vmul.f32 %v11887_v42, %v11890_v15  ;;  %v2516_v58 = vmul.f32 %v11887_v42, %v11891_v18  ;;  %v11893_v17 = vld [vmem:[#allocation77_spill] sm:$0xff]  ;;  %v11908_v47 = vld [vmem:[#allocation94_spill] sm:$0xff]  ;;  %v11909_v34 = vld [vmem:[#allocation95_spill] sm:$0xff] }
 0x22b   :  { %11886 = vst [vmem:[#allocation145_spill] sm:$0xff] %v9343_v4  ;;  %v2517_v50 = vmul.f32 %v11887_v42, %v11892_v61  ;;  %v2518_v11 = vmul.f32 %v11887_v42, %v11893_v17  ;;  %v2519_v21 = vmul.f32 %v11887_v42, %v11894_v40  ;;  %v2520_v62 = vmul.f32 %v11887_v42, %v11895_v14  ;;  %v11907_v57 = vld [vmem:[#allocation93_spill] sm:$0xff] }
 0x22c   :  { %v2521_v39 = vmul.f32 %v11887_v42, %v11896_v28  ;;  %v2522_v35 = vmul.f32 %v11887_v42, %v11897_v16  ;;  %v2523_v29 = vmul.f32 %v11887_v42, %v11898_v10  ;;  %v2524_v6 = vmul.f32 %v11887_v42, %v11899_v56  ;;  %v11915_v56 = vld [vmem:[#allocation101_spill] sm:$0xff] }
 0x22d   :  { %v2525_v55 = vmul.f32 %v11887_v42, %v11900_v63  ;;  %v2526_v43 = vmul.f32 %v11887_v42, %v11901_v13  ;;  %v2529_v59 = vmul.f32 %v11887_v42, %v11902_v24  ;;  %v2530_v25 = vmul.f32 %v11887_v42, %v11903_v49  ;;  %v11910_v49 = vld [vmem:[#allocation96_spill] sm:$0xff]  ;;  %v11911_v24 = vld [vmem:[#allocation97_spill] sm:$0xff]  ;;  %v11912_v13 = vld [vmem:[#allocation98_spill] sm:$0xff] }
 0x22e   :  { %v2531_v0 = vmul.f32 %v11887_v42, %v11904_v46  ;;  %v2532_v2 = vmul.f32 %v11887_v42, %v11905_v38  ;;  %v2533_v19 = vmul.f32 %v11887_v42, %v11906_v3  ;;  %v2534_v5 = vmul.f32 %v11887_v42, %v11907_v57  ;;  %v11913_v63 = vld [vmem:[#allocation99_spill] sm:$0xff] }
 0x22f   :  { %v2578_v44 = vrot.slane %v2513_v26, 1  ;;  %v2579_v20 = vrot.slane %v2514_v30, 1  ;;  %v2535_v7 = vmul.f32 %v11887_v42, %v11908_v47  ;;  %v2536_v36 = vmul.f32 %v11887_v42, %v11909_v34  ;;  %v11914_v26 = vld [vmem:[#allocation100_spill] sm:$0xff] }
 0x230   :  { %v2537_v46 = vmul.f32 %v11887_v42, %v11910_v49  ;;  %v2538_v38 = vmul.f32 %v11887_v42, %v11911_v24  ;;  %v2539_v3 = vmul.f32 %v11887_v42, %v11912_v13  ;;  %v2540_v57 = vmul.f32 %v11887_v42, %v11913_v63 }
 0x231   :  { %v2541_v30 = vmul.f32 %v11887_v42, %v11914_v26  ;;  %v2542_v47 = vmul.f32 %v11887_v42, %v11915_v56  ;;  %v2575_v34 = vrot.slane %v9346_v8, 1  ;;  %v2581_v10 = vrot.slane %v2515_v51, 1 }
 0x232   :  { %v2582_v16 = vrot.slane %v2516_v58, 1  ;;  %v2584_v49 = vrot.slane %v2517_v50, 1  ;;  %v2580_v28 = vsel %vm2130_vm4, %v2578_v44, %v2579_v20  ;;  %v2585_v24 = vrot.slane %v2518_v11, 1  ;;  %v11928_v44 = vld [vmem:[#allocation80_spill] sm:$0xff] }
 0x233   :  { %v2587_v14 = vrot.slane %v2519_v21, 1  ;;  %v2588_v40 = vrot.slane %v2520_v62, 1  ;;  %v2590_v13 = vrot.slane %v2521_v39, 1  ;;  %v2591_v17 = vrot.slane %v2522_v35, 1 }
 0x234   :  { %v2593_v61 = vrot.slane %v2523_v29, 1  ;;  %v2594_v63 = vrot.slane %v2524_v6, 1  ;;  %v2596_v18 = vrot.slane %v2525_v55, 1  ;;  %v2597_v15 = vrot.slane %v2526_v43, 1 }
 0x235   :  { %v2602_v26 = vrot.slane %v2529_v59, 1  ;;  %v2603_v9 = vrot.slane %v2530_v25, 1  ;;  %v2605_v37 = vrot.slane %v2531_v0, 1  ;;  %v2606_v42 = vrot.slane %v2532_v2, 1 }
 0x236   :  { %v2608_v56 = vrot.slane %v2533_v19, 1  ;;  %v2609_v8 = vrot.slane %v2534_v5, 1  ;;  %v2611_v51 = vrot.slane %v2535_v7, 1  ;;  %v2612_v58 = vrot.slane %v2536_v36, 1 }
 0x237   :  { %v2614_v50 = vrot.slane %v2537_v46, 1  ;;  %v2615_v4 = vrot.slane %v2538_v38, 1  ;;  %v2583_v11 = vsel %vm2130_vm4, %v2581_v10, %v2582_v16  ;;  %v2586_v21 = vsel %vm2130_vm4, %v2584_v49, %v2585_v24 }
 0x238   :  { %v2617_v62 = vrot.slane %v2539_v3, 1  ;;  %v2618_v39 = vrot.slane %v2540_v57, 1  ;;  %v2589_v35 = vsel %vm2130_vm4, %v2587_v14, %v2588_v40  ;;  %v2592_v29 = vsel %vm2130_vm4, %v2590_v13, %v2591_v17  ;;  %v11926_v3 = vld [vmem:[#allocation78_spill] sm:$0xff]  ;;  %v11927_v57 = vld [vmem:[#allocation79_spill] sm:$0xff] }
 0x239   :  { %v2620_v6 = vrot.slane %v2541_v30, 1  ;;  %v2621_v55 = vrot.slane %v2542_v47, 1  ;;  %v2595_v43 = vsel %vm2130_vm4, %v2593_v61, %v2594_v63  ;;  %v2598_v59 = vsel %vm2130_vm4, %v2596_v18, %v2597_v15  ;;  %v11929_v47 = vld [vmem:[#allocation81_spill] sm:$0xff] }
 0x23a   :  { %v2604_v25 = vsel %vm2130_vm4, %v2602_v26, %v2603_v9  ;;  %v2607_v46 = vsel %vm2130_vm4, %v2605_v37, %v2606_v42  ;;  %v2610_v16 = vsel %vm2130_vm4, %v2608_v56, %v2609_v8  ;;  %v2613_v10 = vsel %vm2130_vm4, %v2611_v51, %v2612_v58  ;;  %v11920_v56 = vld [vmem:[#allocation144_spill] sm:$0xff]  ;;  %v11931_v26 = vld [vmem:[#allocation83_spill] sm:$0xff]  ;;  %v11933_v51 = vld [vmem:[#allocation85_spill] sm:$0xff] }
 0x23b   :  { %v2616_v24 = vsel %vm2130_vm4, %v2614_v50, %v2615_v4  ;;  %v9418_v40 = vadd.f32 %v2575_v34, %v9296_v32  ;;  %v2619_v17 = vsel %vm2130_vm4, %v2617_v62, %v2618_v39  ;;  %v9422_v14 = vadd.f32 %v2580_v28, %v9301_v22  ;;  %v11932_v42 = vld [vmem:[#allocation84_spill] sm:$0xff]  ;;  %v11934_v50 = vld [vmem:[#allocation86_spill] sm:$0xff] }
 0x23c   :  { %v9425_v15 = vadd.f32 %v2583_v11, %v9304_v1  ;;  %v9428_v9 = vadd.f32 %v2586_v21, %v9307_v53  ;;  %v2622_v37 = vsel %vm2130_vm4, %v2620_v6, %v2621_v55  ;;  %v9432_v18 = vadd.f32 %v2589_v35, %v9310_v48  ;;  %v11935_v21 = vld [vmem:[#allocation87_spill] sm:$0xff]  ;;  %v11936_v39 = vld [vmem:[#allocation88_spill] sm:$0xff]  ;;  %v11938_v55 = vld [vmem:[#allocation90_spill] sm:$0xff] }
 0x23d   :  { %v9435_v4 = vadd.f32 %v2592_v29, %v9313_v12  ;;  %v9438_v32 = vadd.f32 %v2595_v43, %v9316_v27  ;;  %v9441_v22 = vadd.f32 %v2598_v59, %v9319_v33  ;;  %v9444_v1 = vadd.f32 %v2575_v34, %v9322_v60  ;;  %v11917_v60 = vld [vmem:[#allocation145_spill] sm:$0xff]  ;;  %v11930_v34 = vld [vmem:[#allocation82_spill] sm:$0xff]  ;;  %v11939_v59 = vld [vmem:[#allocation91_spill] sm:$0xff] }
 0x23e   :  { %v9447_v53 = vadd.f32 %v2604_v25, %v9325_v31  ;;  %v9450_v61 = vadd.f32 %v2607_v46, %v9328_v54  ;;  %v9453_v48 = vadd.f32 %v2610_v16, %v9331_v23  ;;  %v9456_v12 = vadd.f32 %v2613_v10, %v9334_v52  ;;  %v11919_v31 = vld [vmem:[#allocation72_spill] sm:$0xff]  ;;  %v11921_v54 = vld [vmem:[#allocation73_spill] sm:$0xff]  ;;  %v11922_v23 = vld [vmem:[#allocation74_spill] sm:$0xff] }
 0x23f   :  { %v9459_v27 = vadd.f32 %v2616_v24, %v9337_v45  ;;  %v9462_v33 = vadd.f32 %v2619_v17, %v9340_v41  ;;  %v9465_v28 = vadd.f32 %v2622_v37, %v11917_v60  ;;  %v2659_v63 = vmul.f32 %v11920_v56, %v11919_v31  ;;  %v11923_v52 = vld [vmem:[#allocation75_spill] sm:$0xff]  ;;  %v11924_v45 = vld [vmem:[#allocation76_spill] sm:$0xff]  ;;  %v11925_v41 = vld [vmem:[#allocation77_spill] sm:$0xff] }
 0x240   :  { %v2660_v13 = vmul.f32 %v11920_v56, %v11921_v54  ;;  %v2661_v49 = vmul.f32 %v11920_v56, %v11922_v23  ;;  %v2662_v0 = vmul.f32 %v11920_v56, %v11923_v52  ;;  %v2663_v38 = vmul.f32 %v11920_v56, %v11924_v45  ;;  %v11937_v29 = vld [vmem:[#allocation89_spill] sm:$0xff]  ;;  %v11940_v46 = vld [vmem:[#allocation92_spill] sm:$0xff]  ;;  %v11942_v17 = vld [vmem:[#allocation94_spill] sm:$0xff] }
 0x241   :  { %11916 = vst [vmem:[#allocation143_spill] sm:$0xff] %v9462_v33  ;;  %11918 = vst [vmem:[#allocation136_spill] sm:$0xff] %v9465_v28  ;;  %v2664_v2 = vmul.f32 %v11920_v56, %v11925_v41  ;;  %v2665_v19 = vmul.f32 %v11920_v56, %v11926_v3  ;;  %v2666_v5 = vmul.f32 %v11920_v56, %v11927_v57  ;;  %v11941_v10 = vld [vmem:[#allocation93_spill] sm:$0xff]  ;;  %v2723_v60 = vrot.slane %v2659_v63, 1 }
 0x242   :  { %v2667_v20 = vmul.f32 %v11920_v56, %v11928_v44  ;;  %v2668_v7 = vmul.f32 %v11920_v56, %v11929_v47  ;;  %v2669_v36 = vmul.f32 %v11920_v56, %v11930_v34  ;;  %v2670_v30 = vmul.f32 %v11920_v56, %v11931_v26  ;;  %v11945_v34 = vld [vmem:[#allocation97_spill] sm:$0xff]  ;;  %v11946_v47 = vld [vmem:[#allocation98_spill] sm:$0xff]  ;;  %v11947_v44 = vld [vmem:[#allocation99_spill] sm:$0xff] }
 0x243   :  { %v2671_v8 = vmul.f32 %v11920_v56, %v11932_v42  ;;  %v2672_v58 = vmul.f32 %v11920_v56, %v11933_v51  ;;  %v2673_v11 = vmul.f32 %v11920_v56, %v11934_v50  ;;  %v2674_v62 = vmul.f32 %v11920_v56, %v11935_v21 }
 0x244   :  { %v2675_v35 = vmul.f32 %v11920_v56, %v11936_v39  ;;  %v2676_v6 = vmul.f32 %v11920_v56, %v11937_v29  ;;  %v2677_v43 = vmul.f32 %v11920_v56, %v11938_v55  ;;  %v2678_v25 = vmul.f32 %v11920_v56, %v11939_v59  ;;  %v11943_v29 = vld [vmem:[#allocation95_spill] sm:$0xff]  ;;  %v11944_v55 = vld [vmem:[#allocation96_spill] sm:$0xff] }
 0x245   :  { %v2679_v16 = vmul.f32 %v11920_v56, %v11940_v46  ;;  %v2680_v24 = vmul.f32 %v11920_v56, %v11941_v10  ;;  %v2681_v37 = vmul.f32 %v11920_v56, %v11942_v17  ;;  %v2724_v21 = vrot.slane %v2660_v13, 1  ;;  %v11948_v13 = vld [vmem:[#allocation100_spill] sm:$0xff]  ;;  %v11950_v17 = vld [vmem:[#allocation102_spill] sm:$0xff] }
 0x246   :  { %v2726_v50 = vrot.slane %v2661_v49, 1  ;;  %v2727_v39 = vrot.slane %v2662_v0, 1  ;;  %v2682_v51 = vmul.f32 %v11920_v56, %v11943_v29  ;;  %v2683_v42 = vmul.f32 %v11920_v56, %v11944_v55  ;;  %v11949_v0 = vld [vmem:[#allocation101_spill] sm:$0xff] }
 0x247   :  { %v2729_v59 = vrot.slane %v2663_v38, 1  ;;  %v2730_v26 = vrot.slane %v2664_v2, 1  ;;  %v2684_v46 = vmul.f32 %v11920_v56, %v11945_v34  ;;  %v2685_v10 = vmul.f32 %v11920_v56, %v11946_v47  ;;  %v11951_v38 = vld [vmem:[#allocation103_spill] sm:$0xff] }
 0x248   :  { %v2686_v63 = vmul.f32 %v11920_v56, %v11947_v44  ;;  %v2687_v49 = vmul.f32 %v11920_v56, %v11948_v13  ;;  %v2688_v29 = vmul.f32 %v11920_v56, %v11949_v0  ;;  %v2689_v55 = vmul.f32 %v11920_v56, %v11950_v17 }
 0x249   :  { %v2690_v2 = vmul.f32 %v11920_v56, %v11951_v38  ;;  %v2732_v57 = vrot.slane %v2665_v19, 1  ;;  %v2725_v34 = vsel %vm2130_vm4, %v2723_v60, %v2724_v21  ;;  %v2728_v47 = vsel %vm2130_vm4, %v2726_v50, %v2727_v39 }
 0x24a   :  { %v2733_v3 = vrot.slane %v2666_v5, 1  ;;  %v2735_v41 = vrot.slane %v2667_v20, 1  ;;  %v2731_v44 = vsel %vm2130_vm4, %v2729_v59, %v2730_v26  ;;  %v2736_v45 = vrot.slane %v2668_v7, 1 }
 0x24b   :  { %v2738_v13 = vrot.slane %v2669_v36, 1  ;;  %v2739_v52 = vrot.slane %v2670_v30, 1  ;;  %v2741_v23 = vrot.slane %v2671_v8, 1  ;;  %v2742_v0 = vrot.slane %v2672_v58, 1 }
 0x24c   :  { %v2744_v54 = vrot.slane %v2673_v11, 1  ;;  %v2745_v31 = vrot.slane %v2674_v62, 1  ;;  %v2747_v17 = vrot.slane %v2675_v35, 1  ;;  %v2748_v28 = vrot.slane %v2676_v6, 1 }
 0x24d   :  { %v2750_v33 = vrot.slane %v2677_v43, 1  ;;  %v2751_v56 = vrot.slane %v2678_v25, 1  ;;  %v2753_v19 = vrot.slane %v2679_v16, 1  ;;  %v2754_v38 = vrot.slane %v2680_v24, 1  ;;  %v11960_v16 = vld [vmem:[#allocation15_spill] sm:$0xff]  ;;  %v11961_v24 = vld [vmem:[#allocation6_spill] sm:$0xff] }
 0x24e   :  { %v2756_v21 = vrot.slane %v2681_v37, 1  ;;  %v2757_v60 = vrot.slane %v2682_v51, 1  ;;  %v2759_v50 = vrot.slane %v2683_v42, 1  ;;  %v2760_v5 = vrot.slane %v2684_v46, 1  ;;  %v11962_v37 = vld [vmem:[#allocation11_spill] sm:$0xff] }
 0x24f   :  { %v2762_v20 = vrot.slane %v2685_v10, 1  ;;  %v2763_v39 = vrot.slane %v2686_v63, 1  ;;  %v2734_v7 = vsel %vm2130_vm4, %v2732_v57, %v2733_v3  ;;  %v2737_v36 = vsel %vm2130_vm4, %v2735_v41, %v2736_v45 }
 0x250   :  { %v2765_v26 = vrot.slane %v2687_v49, 1  ;;  %v2766_v30 = vrot.slane %v2688_v29, 1  ;;  %v2740_v8 = vsel %vm2130_vm4, %v2738_v13, %v2739_v52  ;;  %v2743_v58 = vsel %vm2130_vm4, %v2741_v23, %v2742_v0  ;;  %v11963_v13 = vld [vmem:[#allocation27_spill] sm:$0xff]  ;;  %v11964_v0 = vld [vmem:[#allocation13_spill] sm:$0xff] }
 0x251   :  { %v2768_v11 = vrot.slane %v2689_v55, 1  ;;  %v2769_v62 = vrot.slane %v2690_v2, 1  ;;  %v2746_v35 = vsel %vm2130_vm4, %v2744_v54, %v2745_v31  ;;  %v2749_v51 = vsel %vm2130_vm4, %v2747_v17, %v2748_v28  ;;  %v11965_v2 = vld [vmem:[#allocation12_spill] sm:$0xff] }
 0x252   :  { %v2752_v42 = vsel %vm2130_vm4, %v2750_v33, %v2751_v56  ;;  %v2755_v6 = vsel %vm2130_vm4, %v2753_v19, %v2754_v38  ;;  %v2758_v3 = vsel %vm2130_vm4, %v2756_v21, %v2757_v60  ;;  %v2761_v45 = vsel %vm2130_vm4, %v2759_v50, %v2760_v5  ;;  %v11966_v19 = vld [vmem:[#allocation32_spill] sm:$0xff]  ;;  %v11967_v60 = vld [vmem:[#allocation7_spill] sm:$0xff] }
 0x253   :  { %v2764_v41 = vsel %vm2130_vm4, %v2762_v20, %v2763_v39  ;;  %v9546_v52 = vadd.f32 %v2725_v34, %v9418_v40  ;;  %v2767_v23 = vsel %vm2130_vm4, %v2765_v26, %v2766_v30  ;;  %v9550_v57 = vadd.f32 %v2728_v47, %v9422_v14  ;;  %v11968_v5 = vld [vmem:[#allocation19_spill] sm:$0xff]  ;;  %v11969_v39 = vld [vmem:[#allocation22_spill] sm:$0xff] }
 0x254   :  { %v9553_v28 = vadd.f32 %v2731_v44, %v9425_v15  ;;  %v9556_v33 = vadd.f32 %v2734_v7, %v9428_v9  ;;  %v2770_v31 = vsel %vm2130_vm4, %v2768_v11, %v2769_v62  ;;  %v9560_v54 = vadd.f32 %v2737_v36, %v9432_v18  ;;  %v11970_v36 = vld [vmem:[#allocation34_spill] sm:$0xff] }
 0x255   :  { %v9563_v29 = vadd.f32 %v2740_v8, %v9435_v4  ;;  %v9566_v40 = vadd.f32 %v2743_v58, %v9438_v32  ;;  %v9569_v14 = vadd.f32 %v2746_v35, %v9441_v22  ;;  %v9572_v15 = vadd.f32 %v2749_v51, %v9444_v1  ;;  %v11952_v22 = vld [vmem:[#allocation143_spill] sm:$0xff]  ;;  %v11953_v1 = vld [vmem:[#allocation136_spill] sm:$0xff]  ;;  %v11971_v30 = vld [vmem:[#allocation18_spill] sm:$0xff] }
 0x256   :  { %v9575_v9 = vadd.f32 %v2752_v42, %v9447_v53  ;;  %v9578_v44 = vadd.f32 %v2755_v6, %v9450_v61  ;;  %v9581_v18 = vadd.f32 %v2758_v3, %v9453_v48  ;;  %v9584_v4 = vadd.f32 %v2761_v45, %v9456_v12  ;;  %v11955_v53 = vld [vmem:[#allocation150_spill] sm:$0xff]  ;;  %v11957_v48 = vld [vmem:[#allocation37_spill] sm:$0xff]  ;;  %v11974_v51 = vld [vmem:[#allocation20_spill] sm:$0xff] }
 0x257   :  { %v9587_v32 = vadd.f32 %v2764_v41, %v9459_v27  ;;  %v9590_v47 = vadd.f32 %v2767_v23, %v11952_v22  ;;  %v9593_v34 = vadd.f32 %v2770_v31, %v11953_v1  ;;  %v9596_v55 = vmul.f32 0.0, %v11955_v53  ;;  %v11956_v61 = vld [vmem:[#allocation26_spill] sm:$0xff]  ;;  %v11958_v12 = vld [vmem:[#allocation5_spill] sm:$0xff]  ;;  %v11977_v22 = vld [vmem:[#allocation63_spill] sm:$0xff] }
 0x258   :  { %v2809_v43 = vmul.f32 %v11955_v53, %v11956_v61  ;;  %v2810_v59 = vmul.f32 %v11955_v53, %v11957_v48  ;;  %v2811_v25 = vmul.f32 %v11955_v53, %v11958_v12  ;;  %v11959_v27 = vld [vmem:[#allocation10_spill] sm:$0xff]  ;;  %v2813_v10 = vmul.f32 %v11955_v53, %v11960_v16  ;;  %v11972_v58 = vld [vmem:[#allocation61_spill] sm:$0xff] }
 0x259   :  { %11954 = vst [vmem:[#allocation142_spill] sm:$0xff] %v9593_v34  ;;  %v2812_v46 = vmul.f32 %v11955_v53, %v11959_v27  ;;  %v2814_v17 = vmul.f32 %v11955_v53, %v11961_v24  ;;  %v2815_v63 = vmul.f32 %v11955_v53, %v11962_v37  ;;  %v2816_v49 = vmul.f32 %v11955_v53, %v11963_v13  ;;  %v11973_v62 = vld [vmem:[#allocation38_spill] sm:$0xff]  ;;  %v11975_v6 = vld [vmem:[#allocation9_spill] sm:$0xff] }
 0x25a   :  { %v2817_v38 = vmul.f32 %v11955_v53, %v11964_v0  ;;  %v2818_v56 = vmul.f32 %v11955_v53, %v11965_v2  ;;  %v2819_v21 = vmul.f32 %v11955_v53, %v11966_v19  ;;  %v2820_v50 = vmul.f32 %v11955_v53, %v11967_v60  ;;  %v11976_v23 = vld [vmem:[#allocation62_spill] sm:$0xff]  ;;  %v11983_v60 = vld [vmem:[#allocation69_spill] sm:$0xff] }
 0x25b   :  { %v2821_v20 = vmul.f32 %v11955_v53, %v11968_v5  ;;  %v2822_v7 = vmul.f32 %v11955_v53, %v11969_v39  ;;  %v2825_v26 = vmul.f32 %v11955_v53, %v11970_v36  ;;  %v2826_v8 = vmul.f32 %v11955_v53, %v11971_v30  ;;  %v11978_v30 = vld [vmem:[#allocation64_spill] sm:$0xff]  ;;  %v11979_v36 = vld [vmem:[#allocation65_spill] sm:$0xff]  ;;  %v11980_v39 = vld [vmem:[#allocation66_spill] sm:$0xff] }
 0x25c   :  { %v2827_v11 = vmul.f32 %v11955_v53, %v11972_v58  ;;  %v2828_v35 = vmul.f32 %v11955_v53, %v11973_v62  ;;  %v2829_v42 = vmul.f32 %v11955_v53, %v11974_v51  ;;  %v2830_v3 = vmul.f32 %v11955_v53, %v11975_v6  ;;  %v11981_v5 = vld [vmem:[#allocation67_spill] sm:$0xff] }
 0x25d   :  { %v2874_v45 = vrot.slane %v2809_v43, 1  ;;  %v2875_v41 = vrot.slane %v2810_v59, 1  ;;  %v2831_v31 = vmul.f32 %v11955_v53, %v11976_v23  ;;  %v2832_v1 = vmul.f32 %v11955_v53, %v11977_v22  ;;  %v11982_v43 = vld [vmem:[#allocation68_spill] sm:$0xff] }
 0x25e   :  { %v2833_v58 = vmul.f32 %v11955_v53, %v11978_v30  ;;  %v2834_v62 = vmul.f32 %v11955_v53, %v11979_v36  ;;  %v2835_v51 = vmul.f32 %v11955_v53, %v11980_v39  ;;  %v2836_v6 = vmul.f32 %v11955_v53, %v11981_v5 }
 0x25f   :  { %v2837_v59 = vmul.f32 %v11955_v53, %v11982_v43  ;;  %v2838_v23 = vmul.f32 %v11955_v53, %v11983_v60  ;;  %v2871_v22 = vrot.slane %v9596_v55, 1  ;;  %v2877_v19 = vrot.slane %v2811_v25, 1 }
 0x260   :  { %v2878_v2 = vrot.slane %v2812_v46, 1  ;;  %v2880_v30 = vrot.slane %v2813_v10, 1  ;;  %v2876_v0 = vsel %vm2130_vm4, %v2874_v45, %v2875_v41  ;;  %v2881_v36 = vrot.slane %v2814_v17, 1  ;;  %v11999_v45 = vld [vmem:[#allocation37_spill] sm:$0xff] }
 0x261   :  { %v2883_v13 = vrot.slane %v2815_v63, 1  ;;  %v2884_v37 = vrot.slane %v2816_v49, 1  ;;  %v2886_v39 = vrot.slane %v2817_v38, 1  ;;  %v2887_v24 = vrot.slane %v2818_v56, 1 }
 0x262   :  { %v2889_v16 = vrot.slane %v2819_v21, 1  ;;  %v2890_v5 = vrot.slane %v2820_v50, 1  ;;  %v2892_v27 = vrot.slane %v2821_v20, 1  ;;  %v2893_v12 = vrot.slane %v2822_v7, 1 }
 0x263   :  { %v2898_v43 = vrot.slane %v2825_v26, 1  ;;  %v2899_v48 = vrot.slane %v2826_v8, 1  ;;  %v2901_v61 = vrot.slane %v2827_v11, 1  ;;  %v2902_v53 = vrot.slane %v2828_v35, 1 }
 0x264   :  { %v2904_v60 = vrot.slane %v2829_v42, 1  ;;  %v2905_v55 = vrot.slane %v2830_v3, 1  ;;  %v2907_v25 = vrot.slane %v2831_v31, 1  ;;  %v2908_v46 = vrot.slane %v2832_v1, 1 }
 0x265   :  { %v2910_v10 = vrot.slane %v2833_v58, 1  ;;  %v2911_v34 = vrot.slane %v2834_v62, 1  ;;  %v2879_v17 = vsel %vm2130_vm4, %v2877_v19, %v2878_v2  ;;  %v2882_v63 = vsel %vm2130_vm4, %v2880_v30, %v2881_v36 }
 0x266   :  { %v2913_v49 = vrot.slane %v2835_v51, 1  ;;  %v2914_v38 = vrot.slane %v2836_v6, 1  ;;  %v2885_v56 = vsel %vm2130_vm4, %v2883_v13, %v2884_v37  ;;  %v2888_v21 = vsel %vm2130_vm4, %v2886_v39, %v2887_v24  ;;  %v11995_v51 = vld [vmem:[#allocation48_spill] sm:$0xff]  ;;  %v11997_v6 = vld [vmem:[#allocation141_spill] sm:$0xff] }
 0x267   :  { %v2916_v50 = vrot.slane %v2837_v59, 1  ;;  %v2917_v20 = vrot.slane %v2838_v23, 1  ;;  %v2891_v7 = vsel %vm2130_vm4, %v2889_v16, %v2890_v5  ;;  %v2894_v26 = vsel %vm2130_vm4, %v2892_v27, %v2893_v12  ;;  %v12000_v23 = vld [vmem:[#allocation5_spill] sm:$0xff] }
 0x268   :  { %v2900_v8 = vsel %vm2130_vm4, %v2898_v43, %v2899_v48  ;;  %v2903_v58 = vsel %vm2130_vm4, %v2901_v61, %v2902_v53  ;;  %v2906_v2 = vsel %vm2130_vm4, %v2904_v60, %v2905_v55  ;;  %v2909_v19 = vsel %vm2130_vm4, %v2907_v25, %v2908_v46  ;;  %v12002_v43 = vld [vmem:[#allocation15_spill] sm:$0xff]  ;;  %v12003_v53 = vld [vmem:[#allocation6_spill] sm:$0xff] }
 0x269   :  { %v2912_v36 = vsel %vm2130_vm4, %v2910_v10, %v2911_v34  ;;  %v9668_v37 = vadd.f32 %v2871_v22, %v9546_v52  ;;  %v2915_v24 = vsel %vm2130_vm4, %v2913_v49, %v2914_v38  ;;  %v9672_v13 = vadd.f32 %v2876_v0, %v9550_v57  ;;  %v5072_v52 = vld [vmem:[%s11160_s4 + $0x8] sm:$0xff]  ;;  %v11984_v57 = vld [vmem:[#allocation137_spill] sm:$0xff]  ;;  %v12004_v25 = vld [vmem:[#allocation11_spill] sm:$0xff] }
 0x26a   :  { %v9675_v12 = vadd.f32 %v2879_v17, %v9553_v28  ;;  %v9678_v48 = vadd.f32 %v2882_v63, %v9556_v33  ;;  %v2918_v61 = vsel %vm2130_vm4, %v2916_v50, %v2917_v20  ;;  %v9682_v27 = vadd.f32 %v2885_v56, %v9560_v54  ;;  %v12005_v10 = vld [vmem:[#allocation27_spill] sm:$0xff]  ;;  %v12006_v63 = vld [vmem:[#allocation13_spill] sm:$0xff]  ;;  %v12007_v38 = vld [vmem:[#allocation12_spill] sm:$0xff] }
 0x26b   :  { %v9685_v34 = vadd.f32 %v2888_v21, %v9563_v29  ;;  %v2954_v16 = vrot.slane %v5072_v52, %v11984_v57  ;;  %v9692_v28 = vadd.f32 %v2891_v7, %v9566_v40  ;;  %v9695_v33 = vadd.f32 %v2894_v26, %v9569_v14  ;;  %v12008_v21 = vld [vmem:[#allocation32_spill] sm:$0xff]  ;;  %v12009_v20 = vld [vmem:[#allocation7_spill] sm:$0xff] }
 0x26c   :  { %v9698_v0 = vadd.f32 %v2871_v22, %v9572_v15  ;;  %v9701_v54 = vadd.f32 %v2900_v8, %v9575_v9  ;;  %v9704_v29 = vadd.f32 %v2903_v58, %v9578_v44  ;;  %v9707_v60 = vadd.f32 %v2906_v2, %v9581_v18  ;;  %v11986_v15 = vld [vmem:[#allocation142_spill] sm:$0xff]  ;;  %v5073_v9 = vld [vmem:[%s11160_s4 + $0x10] sm:$0xff] }
 0x26d   :  { %v9710_v5 = vadd.f32 %v2909_v19, %v9584_v4  ;;  %v9713_v40 = vadd.f32 %v2912_v36, %v9587_v32  ;;  %v9716_v14 = vadd.f32 %v2915_v24, %v9590_v47  ;;  %v9719_v39 = vadd.f32 %v2918_v61, %v11986_v15  ;;  %v11988_v44 = vld [vmem:[#allocation138_spill] sm:$0xff]  ;;  %v11990_v18 = vld [vmem:[#allocation47_spill] sm:$0xff]  ;;  %v11993_v32 = vld [vmem:[#allocation17_spill] sm:$0xff] }
 0x26e   :  { %v9725_v30 = vrot.slane %v5073_v9, %v11988_v44  ;;  %v9728_v11 = vrot.slane %v5072_v52, %v11990_v18  ;;  %v11992_v4 = vld [vmem:[#allocation26_spill] sm:$0xff]  ;;  %v9732_v35 = vrot.slane %v5073_v9, %v11993_v32  ;;  %v5074_v47 = vld [vmem:[%s11160_s4] sm:$0xff]  ;;  %v9741_v3 = vrot.slane %v5072_v52, %v11997_v6  ;;  %v12010_v26 = vld [vmem:[#allocation19_spill] sm:$0xff] }
 0x26f   :  { %11985 = vst [vmem:[#allocation146_spill] sm:$0xff] %v9716_v14  ;;  %11987 = vst [vmem:[#allocation147_spill] sm:$0xff] %v9719_v39  ;;  %v2955_v62 = vmul.f32 %v2954_v16, %v11992_v4  ;;  %v9738_v42 = vrot.slane %v5074_v47, %v11995_v51  ;;  %v2956_v41 = vmul.f32 %v2954_v16, %v11999_v45  ;;  %v12001_v22 = vld [vmem:[#allocation10_spill] sm:$0xff]  ;;  %v12012_v19 = vld [vmem:[#allocation8_spill] sm:$0xff] }
 0x270   :  { %11989 = vst [vmem:[#allocation148_spill] sm:$0xff] %v9725_v30  ;;  %11991 = vst [vmem:[#allocation149_spill] sm:$0xff] %v9728_v11  ;;  %v2957_v31 = vmul.f32 %v2954_v16, %v12000_v23  ;;  %v2958_v1 = vmul.f32 %v2954_v16, %v12001_v22  ;;  %v2959_v59 = vmul.f32 %v2954_v16, %v12002_v43  ;;  %v12011_v58 = vld [vmem:[#allocation22_spill] sm:$0xff]  ;;  %v12013_v24 = vld [vmem:[#allocation21_spill] sm:$0xff] }
 0x271   :  { %11994 = vst [vmem:[#allocation145_spill] sm:$0xff] %v9732_v35  ;;  %11996 = vst [vmem:[#allocation144_spill] sm:$0xff] %v9738_v42  ;;  %v2960_v55 = vmul.f32 %v2954_v16, %v12003_v53  ;;  %v2961_v46 = vmul.f32 %v2954_v16, %v12004_v25  ;;  %v2962_v17 = vmul.f32 %v2954_v16, %v12005_v10  ;;  %v12014_v52 = vld [vmem:[#allocation34_spill] sm:$0xff]  ;;  %v12016_v44 = vld [vmem:[#allocation61_spill] sm:$0xff]  ;;  %v3019_v35 = vrot.slane %v2955_v62, 1 }
 0x272   :  { %11998 = vst [vmem:[#allocation143_spill] sm:$0xff] %v9741_v3  ;;  %v2963_v49 = vmul.f32 %v2954_v16, %v12006_v63  ;;  %v2964_v56 = vmul.f32 %v2954_v16, %v12007_v38  ;;  %v2965_v50 = vmul.f32 %v2954_v16, %v12008_v21  ;;  %v2966_v7 = vmul.f32 %v2954_v16, %v12009_v20  ;;  %v12015_v15 = vld [vmem:[#allocation18_spill] sm:$0xff]  ;;  %v12018_v51 = vld [vmem:[#allocation20_spill] sm:$0xff]  ;;  %v12019_v45 = vld [vmem:[#allocation9_spill] sm:$0xff] }
 0x273   :  { %v2967_v8 = vmul.f32 %v2954_v16, %v12010_v26  ;;  %v2968_v2 = vmul.f32 %v2954_v16, %v12011_v58  ;;  %v2969_v36 = vmul.f32 %v2954_v16, %v12012_v19  ;;  %v2970_v61 = vmul.f32 %v2954_v16, %v12013_v24  ;;  %v12017_v32 = vld [vmem:[#allocation38_spill] sm:$0xff]  ;;  %v12021_v20 = vld [vmem:[#allocation63_spill] sm:$0xff]  ;;  %v12022_v21 = vld [vmem:[#allocation64_spill] sm:$0xff] }
 0x274   :  { %v2971_v57 = vmul.f32 %v2954_v16, %v12014_v52  ;;  %v2972_v9 = vmul.f32 %v2954_v16, %v12015_v15  ;;  %v2973_v4 = vmul.f32 %v2954_v16, %v12016_v44  ;;  %v2974_v47 = vmul.f32 %v2954_v16, %v12017_v32  ;;  %v12020_v3 = vld [vmem:[#allocation62_spill] sm:$0xff]  ;;  %v12023_v38 = vld [vmem:[#allocation65_spill] sm:$0xff]  ;;  %v12025_v10 = vld [vmem:[#allocation67_spill] sm:$0xff] }
 0x275   :  { %v2975_v6 = vmul.f32 %v2954_v16, %v12018_v51  ;;  %v2976_v18 = vmul.f32 %v2954_v16, %v12019_v45  ;;  %v2977_v42 = vmul.f32 %v2954_v16, %v12020_v3  ;;  %v3020_v11 = vrot.slane %v2956_v41, 1  ;;  %v12024_v63 = vld [vmem:[#allocation66_spill] sm:$0xff]  ;;  %v12026_v25 = vld [vmem:[#allocation68_spill] sm:$0xff]  ;;  %v12027_v53 = vld [vmem:[#allocation69_spill] sm:$0xff] }
 0x276   :  { %v3022_v58 = vrot.slane %v2957_v31, 1  ;;  %v3023_v19 = vrot.slane %v2958_v1, 1  ;;  %v3025_v26 = vrot.slane %v2959_v59, 1  ;;  %v3026_v24 = vrot.slane %v2960_v55, 1  ;;  %v12028_v62 = vld [vmem:[#allocation70_spill] sm:$0xff]  ;;  %v12029_v31 = vld [vmem:[#allocation71_spill] sm:$0xff] }
 0x277   :  { %v2978_v52 = vmul.f32 %v2954_v16, %v12021_v20  ;;  %v2979_v15 = vmul.f32 %v2954_v16, %v12022_v21  ;;  %v2980_v44 = vmul.f32 %v2954_v16, %v12023_v38  ;;  %v2981_v32 = vmul.f32 %v2954_v16, %v12024_v63 }
 0x278   :  { %v2982_v51 = vmul.f32 %v2954_v16, %v12025_v10  ;;  %v2983_v45 = vmul.f32 %v2954_v16, %v12026_v25  ;;  %v2984_v3 = vmul.f32 %v2954_v16, %v12027_v53  ;;  %v2985_v41 = vmul.f32 %v2954_v16, %v12028_v62 }
 0x279   :  { %v2986_v1 = vmul.f32 %v2954_v16, %v12029_v31  ;;  %v3021_v59 = vsel %vm2130_vm4, %v3019_v35, %v3020_v11  ;;  %v3028_v55 = vrot.slane %v2961_v46, 1  ;;  %v3029_v20 = vrot.slane %v2962_v17, 1 }
 0x27a   :  { %v3024_v21 = vsel %vm2130_vm4, %v3022_v58, %v3023_v19  ;;  %v3027_v38 = vsel %vm2130_vm4, %v3025_v26, %v3026_v24  ;;  %v3031_v43 = vrot.slane %v2963_v49, 1  ;;  %v3032_v63 = vrot.slane %v2964_v56, 1 }
 0x27b   :  { %v3034_v22 = vrot.slane %v2965_v50, 1  ;;  %v3035_v10 = vrot.slane %v2966_v7, 1  ;;  %v3037_v30 = vrot.slane %v2967_v8, 1  ;;  %v3038_v25 = vrot.slane %v2968_v2, 1 }
 0x27c   :  { %v3040_v23 = vrot.slane %v2969_v36, 1  ;;  %v3041_v53 = vrot.slane %v2970_v61, 1  ;;  %v3043_v39 = vrot.slane %v2971_v57, 1  ;;  %v3044_v62 = vrot.slane %v2972_v9, 1  ;;  %v12033_v9 = vld [vmem:[#allocation148_spill] sm:$0xff] }
 0x27d   :  { %v3046_v14 = vrot.slane %v2973_v4, 1  ;;  %v3047_v16 = vrot.slane %v2974_v47, 1  ;;  %v3049_v31 = vrot.slane %v2975_v6, 1  ;;  %v3050_v11 = vrot.slane %v2976_v18, 1  ;;  %v12038_v6 = vld [vmem:[#allocation27_spill] sm:$0xff] }
 0x27e   :  { %v3052_v35 = vrot.slane %v2977_v42, 1  ;;  %v3053_v46 = vrot.slane %v2978_v52, 1  ;;  %v3055_v17 = vrot.slane %v2979_v15, 1  ;;  %v3056_v58 = vrot.slane %v2980_v44, 1  ;;  %v12039_v52 = vld [vmem:[#allocation13_spill] sm:$0xff] }
 0x27f   :  { %v3058_v19 = vrot.slane %v2981_v32, 1  ;;  %v3059_v26 = vrot.slane %v2982_v51, 1  ;;  %v3061_v49 = vrot.slane %v2983_v45, 1  ;;  %v3062_v56 = vrot.slane %v2984_v3, 1 }
 0x280   :  { %v3030_v50 = vsel %vm2130_vm4, %v3028_v55, %v3029_v20  ;;  %v3033_v7 = vsel %vm2130_vm4, %v3031_v43, %v3032_v63  ;;  %v3064_v8 = vrot.slane %v2985_v41, 1  ;;  %v3065_v2 = vrot.slane %v2986_v1, 1 }
 0x281   :  { %v3036_v36 = vsel %vm2130_vm4, %v3034_v22, %v3035_v10  ;;  %v3039_v24 = vsel %vm2130_vm4, %v3037_v30, %v3038_v25  ;;  %v3042_v18 = vsel %vm2130_vm4, %v3040_v23, %v3041_v53  ;;  %v3045_v42 = vsel %vm2130_vm4, %v3043_v39, %v3044_v62  ;;  %v12040_v62 = vld [vmem:[#allocation12_spill] sm:$0xff] }
 0x282   :  { %v3048_v61 = vsel %vm2130_vm4, %v3046_v14, %v3047_v16  ;;  %v3051_v57 = vsel %vm2130_vm4, %v3049_v31, %v3050_v11  ;;  %v3054_v3 = vsel %vm2130_vm4, %v3052_v35, %v3053_v46  ;;  %v3057_v20 = vsel %vm2130_vm4, %v3055_v17, %v3056_v58  ;;  %v12041_v31 = vld [vmem:[#allocation32_spill] sm:$0xff]  ;;  %v12043_v16 = vld [vmem:[#allocation19_spill] sm:$0xff]  ;;  %v12044_v35 = vld [vmem:[#allocation22_spill] sm:$0xff] }
 0x283   :  { %v3060_v43 = vsel %vm2130_vm4, %v3058_v19, %v3059_v26  ;;  %v3063_v63 = vsel %vm2130_vm4, %v3061_v49, %v3062_v56  ;;  %v9790_v22 = vadd.f32 %v3021_v59, %v9668_v37  ;;  %v9793_v30 = vadd.f32 %v3024_v21, %v9672_v13  ;;  %v12042_v59 = vld [vmem:[#allocation7_spill] sm:$0xff]  ;;  %v12045_v17 = vld [vmem:[#allocation8_spill] sm:$0xff]  ;;  %v12046_v19 = vld [vmem:[#allocation21_spill] sm:$0xff] }
 0x284   :  { %v3066_v39 = vsel %vm2130_vm4, %v3064_v8, %v3065_v2  ;;  %v9797_v14 = vadd.f32 %v3027_v38, %v9675_v12  ;;  %v9800_v23 = vadd.f32 %v3030_v50, %v9678_v48  ;;  %v9803_v53 = vadd.f32 %v3033_v7, %v9682_v27  ;;  %v12047_v56 = vld [vmem:[#allocation61_spill] sm:$0xff]  ;;  %v12048_v7 = vld [vmem:[#allocation38_spill] sm:$0xff]  ;;  %v12049_v2 = vld [vmem:[#allocation20_spill] sm:$0xff] }
 0x285   :  { %v9806_v25 = vadd.f32 %v3036_v36, %v9685_v34  ;;  %v9809_v37 = vadd.f32 %v3039_v24, %v9692_v28  ;;  %v9812_v13 = vadd.f32 %v3042_v18, %v9695_v33  ;;  %v9815_v10 = vadd.f32 %v3045_v42, %v9698_v0  ;;  %v12030_v33 = vld [vmem:[#allocation146_spill] sm:$0xff]  ;;  %v12031_v0 = vld [vmem:[#allocation147_spill] sm:$0xff]  ;;  %v12050_v24 = vld [vmem:[#allocation9_spill] sm:$0xff] }
 0x286   :  { %v9818_v12 = vadd.f32 %v3048_v61, %v9701_v54  ;;  %v9821_v48 = vadd.f32 %v3051_v57, %v9704_v29  ;;  %v9824_v27 = vadd.f32 %v3054_v3, %v9707_v60  ;;  %v9827_v34 = vadd.f32 %v3057_v20, %v9710_v5  ;;  %v12032_v54 = vld [vmem:[#allocation5_spill] sm:$0xff]  ;;  %v12034_v29 = vld [vmem:[#allocation10_spill] sm:$0xff]  ;;  %v12035_v60 = vld [vmem:[#allocation15_spill] sm:$0xff] }
 0x287   :  { %v9830_v28 = vadd.f32 %v3060_v43, %v9713_v40  ;;  %v9833_v38 = vadd.f32 %v3063_v63, %v12030_v33  ;;  %v9836_v21 = vadd.f32 %v3066_v39, %v12031_v0  ;;  %v3103_v44 = vmul.f32 %v12033_v9, %v12032_v54  ;;  %v12036_v5 = vld [vmem:[#allocation6_spill] sm:$0xff]  ;;  %v12037_v40 = vld [vmem:[#allocation11_spill] sm:$0xff]  ;;  %v12053_v33 = vld [vmem:[#allocation64_spill] sm:$0xff] }
 0x288   :  { %v3104_v4 = vmul.f32 %v12033_v9, %v12034_v29  ;;  %v3105_v32 = vmul.f32 %v12033_v9, %v12035_v60  ;;  %v3106_v47 = vmul.f32 %v12033_v9, %v12036_v5  ;;  %v3107_v51 = vmul.f32 %v12033_v9, %v12037_v40  ;;  %v12051_v57 = vld [vmem:[#allocation62_spill] sm:$0xff]  ;;  %v12052_v20 = vld [vmem:[#allocation63_spill] sm:$0xff]  ;;  %v12054_v54 = vld [vmem:[#allocation65_spill] sm:$0xff] }
 0x289   :  { %v3108_v45 = vmul.f32 %v12033_v9, %v12038_v6  ;;  %v3109_v15 = vmul.f32 %v12033_v9, %v12039_v52  ;;  %v3110_v41 = vmul.f32 %v12033_v9, %v12040_v62  ;;  %v3111_v1 = vmul.f32 %v12033_v9, %v12041_v31  ;;  %v12055_v60 = vld [vmem:[#allocation66_spill] sm:$0xff]  ;;  %v12056_v40 = vld [vmem:[#allocation67_spill] sm:$0xff]  ;;  %v12058_v52 = vld [vmem:[#allocation69_spill] sm:$0xff] }
 0x28a   :  { %v3112_v55 = vmul.f32 %v12033_v9, %v12042_v59  ;;  %v3113_v11 = vmul.f32 %v12033_v9, %v12043_v16  ;;  %v3114_v46 = vmul.f32 %v12033_v9, %v12044_v35  ;;  %v3115_v58 = vmul.f32 %v12033_v9, %v12045_v17  ;;  %v12060_v31 = vld [vmem:[#allocation71_spill] sm:$0xff] }
 0x28b   :  { %v3116_v26 = vmul.f32 %v12033_v9, %v12046_v19  ;;  %v9867_v49 = vmul.f32 0.0, %v12033_v9  ;;  %v3119_v50 = vmul.f32 %v12033_v9, %v12047_v56  ;;  %v3120_v8 = vmul.f32 %v12033_v9, %v12048_v7 }
 0x28c   :  { %v3121_v36 = vmul.f32 %v12033_v9, %v12049_v2  ;;  %v3122_v18 = vmul.f32 %v12033_v9, %v12050_v24  ;;  %v3167_v42 = vrot.slane %v3103_v44, 1  ;;  %v3168_v61 = vrot.slane %v3104_v4, 1  ;;  %v12057_v4 = vld [vmem:[#allocation68_spill] sm:$0xff] }
 0x28d   :  { %v3123_v3 = vmul.f32 %v12033_v9, %v12051_v57  ;;  %v3124_v43 = vmul.f32 %v12033_v9, %v12052_v20  ;;  %v3170_v63 = vrot.slane %v3105_v32, 1  ;;  %v3171_v39 = vrot.slane %v3106_v47, 1  ;;  %v12059_v32 = vld [vmem:[#allocation70_spill] sm:$0xff] }
 0x28e   :  { %v3125_v0 = vmul.f32 %v12033_v9, %v12053_v33  ;;  %v3126_v29 = vmul.f32 %v12033_v9, %v12054_v54  ;;  %v3127_v5 = vmul.f32 %v12033_v9, %v12055_v60  ;;  %v3128_v44 = vmul.f32 %v12033_v9, %v12056_v40 }
 0x28f   :  { %v3129_v6 = vmul.f32 %v12033_v9, %v12057_v4  ;;  %v3130_v62 = vmul.f32 %v12033_v9, %v12058_v52  ;;  %v3131_v47 = vmul.f32 %v12033_v9, %v12059_v32  ;;  %v3132_v59 = vmul.f32 %v12033_v9, %v12060_v31 }
 0x290   :  { %v3169_v16 = vsel %vm2130_vm4, %v3167_v42, %v3168_v61  ;;  %v3173_v35 = vrot.slane %v3107_v51, 1  ;;  %v3174_v17 = vrot.slane %v3108_v45, 1  ;;  %v3176_v19 = vrot.slane %v3109_v15, 1 }
 0x291   :  { %v3172_v56 = vsel %vm2130_vm4, %v3170_v63, %v3171_v39  ;;  %v3177_v7 = vrot.slane %v3110_v41, 1  ;;  %v3179_v2 = vrot.slane %v3111_v1, 1  ;;  %v3180_v24 = vrot.slane %v3112_v55, 1 }
 0x292   :  { %v3182_v57 = vrot.slane %v3113_v11, 1  ;;  %v3183_v20 = vrot.slane %v3114_v46, 1  ;;  %v3185_v33 = vrot.slane %v3115_v58, 1  ;;  %v3186_v54 = vrot.slane %v3116_v26, 1 }
 0x293   :  { %v3191_v60 = vrot.slane %v3119_v50, 1  ;;  %v3192_v40 = vrot.slane %v3120_v8, 1  ;;  %v3194_v4 = vrot.slane %v3121_v36, 1  ;;  %v3195_v52 = vrot.slane %v3122_v18, 1 }
 0x294   :  { %v3197_v32 = vrot.slane %v3123_v3, 1  ;;  %v3198_v9 = vrot.slane %v3124_v43, 1  ;;  %v3200_v31 = vrot.slane %v3125_v0, 1  ;;  %v3201_v42 = vrot.slane %v3126_v29, 1 }
 0x295   :  { %v3203_v51 = vrot.slane %v3127_v5, 1  ;;  %v3204_v45 = vrot.slane %v3128_v44, 1  ;;  %v3206_v15 = vrot.slane %v3129_v6, 1  ;;  %v3207_v61 = vrot.slane %v3130_v62, 1 }
 0x296   :  { %v3175_v41 = vsel %vm2130_vm4, %v3173_v35, %v3174_v17  ;;  %v3178_v1 = vsel %vm2130_vm4, %v3176_v19, %v3177_v7  ;;  %v3209_v55 = vrot.slane %v3131_v47, 1  ;;  %v3210_v11 = vrot.slane %v3132_v59, 1  ;;  %v12069_v7 = vld [vmem:[#allocation110_spill] sm:$0xff] }
 0x297   :  { %v3181_v46 = vsel %vm2130_vm4, %v3179_v2, %v3180_v24  ;;  %v3184_v58 = vsel %vm2130_vm4, %v3182_v57, %v3183_v20  ;;  %v3187_v26 = vsel %vm2130_vm4, %v3185_v33, %v3186_v54  ;;  %v3188_v50 = vrot.slane %v9867_v49, 1  ;;  %v12070_v24 = vld [vmem:[#allocation111_spill] sm:$0xff]  ;;  %v12071_v20 = vld [vmem:[#allocation112_spill] sm:$0xff]  ;;  %v12072_v54 = vld [vmem:[#allocation113_spill] sm:$0xff] }
 0x298   :  { %v3193_v8 = vsel %vm2130_vm4, %v3191_v60, %v3192_v40  ;;  %v3196_v36 = vsel %vm2130_vm4, %v3194_v4, %v3195_v52  ;;  %v3199_v18 = vsel %vm2130_vm4, %v3197_v32, %v3198_v9  ;;  %v3202_v3 = vsel %vm2130_vm4, %v3200_v31, %v3201_v42  ;;  %v12073_v40 = vld [vmem:[#allocation114_spill] sm:$0xff]  ;;  %v12074_v52 = vld [vmem:[#allocation115_spill] sm:$0xff]  ;;  %v12075_v9 = vld [vmem:[#allocation116_spill] sm:$0xff] }
 0x299   :  { %v3205_v43 = vsel %vm2130_vm4, %v3203_v51, %v3204_v45  ;;  %v3208_v63 = vsel %vm2130_vm4, %v3206_v15, %v3207_v61  ;;  %v9912_v39 = vadd.f32 %v3169_v16, %v9790_v22  ;;  %v9915_v0 = vadd.f32 %v3172_v56, %v9793_v30  ;;  %v12076_v42 = vld [vmem:[#allocation117_spill] sm:$0xff]  ;;  %v12077_v45 = vld [vmem:[#allocation120_spill] sm:$0xff] }
 0x29a   :  { %v3211_v49 = vsel %vm2130_vm4, %v3209_v55, %v3210_v11  ;;  %v9919_v29 = vadd.f32 %v3175_v41, %v9797_v14  ;;  %v9922_v5 = vadd.f32 %v3178_v1, %v9800_v23  ;;  %v9925_v44 = vadd.f32 %v3181_v46, %v9803_v53  ;;  %v12078_v61 = vld [vmem:[#allocation121_spill] sm:$0xff]  ;;  %v12079_v1 = vld [vmem:[#allocation122_spill] sm:$0xff]  ;;  %v12080_v11 = vld [vmem:[#allocation123_spill] sm:$0xff] }
 0x29b   :  { %v9928_v6 = vadd.f32 %v3184_v58, %v9806_v25  ;;  %v9931_v22 = vadd.f32 %v3187_v26, %v9809_v37  ;;  %v9934_v30 = vadd.f32 %v3188_v50, %v9812_v13  ;;  %v9937_v62 = vadd.f32 %v3193_v8, %v9815_v10 }
 0x29c   :  { %v9940_v14 = vadd.f32 %v3196_v36, %v9818_v12  ;;  %v9943_v23 = vadd.f32 %v3199_v18, %v9821_v48  ;;  %v9946_v53 = vadd.f32 %v3202_v3, %v9824_v27  ;;  %v9949_v25 = vadd.f32 %v3205_v43, %v9827_v34  ;;  %v12062_v12 = vld [vmem:[#allocation149_spill] sm:$0xff]  ;;  %v12063_v48 = vld [vmem:[#allocation104_spill] sm:$0xff]  ;;  %v12065_v34 = vld [vmem:[#allocation106_spill] sm:$0xff] }
 0x29d   :  { %v9952_v37 = vadd.f32 %v3208_v63, %v9830_v28  ;;  %v9955_v13 = vadd.f32 %v3211_v49, %v9833_v38  ;;  %v9958_v10 = vadd.f32 %v3188_v50, %v9836_v21  ;;  %v9961_v47 = vmul.f32 0.0, %v12062_v12  ;;  %v12064_v27 = vld [vmem:[#allocation105_spill] sm:$0xff]  ;;  %v12066_v28 = vld [vmem:[#allocation107_spill] sm:$0xff]  ;;  %v12067_v38 = vld [vmem:[#allocation108_spill] sm:$0xff] }
 0x29e   :  { %v3253_v59 = vmul.f32 %v12062_v12, %v12063_v48  ;;  %v3254_v16 = vmul.f32 %v12062_v12, %v12064_v27  ;;  %v3255_v35 = vmul.f32 %v12062_v12, %v12065_v34  ;;  %v3256_v17 = vmul.f32 %v12062_v12, %v12066_v28  ;;  %v12068_v21 = vld [vmem:[#allocation109_spill] sm:$0xff]  ;;  %v12081_v50 = vld [vmem:[#allocation124_spill] sm:$0xff]  ;;  %v12083_v3 = vld [vmem:[#allocation126_spill] sm:$0xff] }
 0x29f   :  { %12061 = vst [vmem:[#allocation136_spill] sm:$0xff] %v9958_v10  ;;  %v3257_v19 = vmul.f32 %v12062_v12, %v12067_v38  ;;  %v3258_v56 = vmul.f32 %v12062_v12, %v12068_v21  ;;  %v3259_v2 = vmul.f32 %v12062_v12, %v12069_v7  ;;  %v3260_v57 = vmul.f32 %v12062_v12, %v12070_v24  ;;  %v12082_v36 = vld [vmem:[#allocation125_spill] sm:$0xff]  ;;  %v12084_v63 = vld [vmem:[#allocation127_spill] sm:$0xff] }
 0x2a0   :  { %v3261_v33 = vmul.f32 %v12062_v12, %v12071_v20  ;;  %v3262_v60 = vmul.f32 %v12062_v12, %v12072_v54  ;;  %v3263_v4 = vmul.f32 %v12062_v12, %v12073_v40  ;;  %v3264_v32 = vmul.f32 %v12062_v12, %v12074_v52  ;;  %v12090_v52 = vld [vmem:[#allocation133_spill] sm:$0xff] }
 0x2a1   :  { %v3265_v31 = vmul.f32 %v12062_v12, %v12075_v9  ;;  %v3266_v51 = vmul.f32 %v12062_v12, %v12076_v42  ;;  %v3269_v15 = vmul.f32 %v12062_v12, %v12077_v45  ;;  %v3270_v41 = vmul.f32 %v12062_v12, %v12078_v61  ;;  %v12085_v61 = vld [vmem:[#allocation128_spill] sm:$0xff]  ;;  %v12086_v45 = vld [vmem:[#allocation129_spill] sm:$0xff]  ;;  %v12088_v42 = vld [vmem:[#allocation131_spill] sm:$0xff] }
 0x2a2   :  { %v3271_v55 = vmul.f32 %v12062_v12, %v12079_v1  ;;  %v3272_v46 = vmul.f32 %v12062_v12, %v12080_v11  ;;  %v3318_v58 = vrot.slane %v3253_v59, 1  ;;  %v3319_v26 = vrot.slane %v3254_v16, 1  ;;  %v12087_v59 = vld [vmem:[#allocation130_spill] sm:$0xff]  ;;  %v12089_v9 = vld [vmem:[#allocation132_spill] sm:$0xff] }
 0x2a3   :  { %v3273_v8 = vmul.f32 %v12062_v12, %v12081_v50  ;;  %v3274_v18 = vmul.f32 %v12062_v12, %v12082_v36  ;;  %v3275_v43 = vmul.f32 %v12062_v12, %v12083_v3  ;;  %v3276_v49 = vmul.f32 %v12062_v12, %v12084_v63 }
 0x2a4   :  { %v3277_v1 = vmul.f32 %v12062_v12, %v12085_v61  ;;  %v3278_v11 = vmul.f32 %v12062_v12, %v12086_v45  ;;  %v3279_v16 = vmul.f32 %v12062_v12, %v12087_v59  ;;  %v3280_v50 = vmul.f32 %v12062_v12, %v12088_v42 }
 0x2a5   :  { %v3281_v36 = vmul.f32 %v12062_v12, %v12089_v9  ;;  %v3282_v3 = vmul.f32 %v12062_v12, %v12090_v52  ;;  %v3315_v63 = vrot.slane %v9961_v47, 1  ;;  %v3321_v40 = vrot.slane %v3255_v35, 1 }
 0x2a6   :  { %v3320_v61 = vsel %vm2130_vm4, %v3318_v58, %v3319_v26  ;;  %v3322_v54 = vrot.slane %v3256_v17, 1  ;;  %v3324_v20 = vrot.slane %v3257_v19, 1  ;;  %v3325_v45 = vrot.slane %v3258_v56, 1 }
 0x2a7   :  { %v3327_v24 = vrot.slane %v3259_v2, 1  ;;  %v3328_v7 = vrot.slane %v3260_v57, 1  ;;  %v3330_v59 = vrot.slane %v3261_v33, 1  ;;  %v3331_v21 = vrot.slane %v3262_v60, 1 }
 0x2a8   :  { %v3333_v38 = vrot.slane %v3263_v4, 1  ;;  %v3334_v42 = vrot.slane %v3264_v32, 1  ;;  %v3336_v28 = vrot.slane %v3265_v31, 1  ;;  %v3337_v34 = vrot.slane %v3266_v51, 1 }
 0x2a9   :  { %v3342_v9 = vrot.slane %v3269_v15, 1  ;;  %v3343_v27 = vrot.slane %v3270_v41, 1  ;;  %v3345_v48 = vrot.slane %v3271_v55, 1  ;;  %v3346_v12 = vrot.slane %v3272_v46, 1  ;;  %v12101_v46 = vld [vmem:[#allocation110_spill] sm:$0xff] }
 0x2aa   :  { %v3348_v52 = vrot.slane %v3273_v8, 1  ;;  %v3349_v47 = vrot.slane %v3274_v18, 1  ;;  %v3351_v35 = vrot.slane %v3275_v43, 1  ;;  %v3352_v10 = vrot.slane %v3276_v49, 1 }
 0x2ab   :  { %v3354_v58 = vrot.slane %v3277_v1, 1  ;;  %v3355_v17 = vrot.slane %v3278_v11, 1  ;;  %v3357_v19 = vrot.slane %v3279_v16, 1  ;;  %v3358_v56 = vrot.slane %v3280_v50, 1  ;;  %v12102_v50 = vld [vmem:[#allocation111_spill] sm:$0xff] }
 0x2ac   :  { %v3323_v2 = vsel %vm2130_vm4, %v3321_v40, %v3322_v54  ;;  %v3326_v57 = vsel %vm2130_vm4, %v3324_v20, %v3325_v45  ;;  %v3360_v33 = vrot.slane %v3281_v36, 1  ;;  %v3361_v60 = vrot.slane %v3282_v3, 1  ;;  %v12103_v36 = vld [vmem:[#allocation112_spill] sm:$0xff]  ;;  %v12104_v3 = vld [vmem:[#allocation113_spill] sm:$0xff] }
 0x2ad   :  { %v3329_v4 = vsel %vm2130_vm4, %v3327_v24, %v3328_v7  ;;  %v3332_v32 = vsel %vm2130_vm4, %v3330_v59, %v3331_v21  ;;  %v3335_v31 = vsel %vm2130_vm4, %v3333_v38, %v3334_v42  ;;  %v3338_v51 = vsel %vm2130_vm4, %v3336_v28, %v3337_v34  ;;  %v12106_v59 = vld [vmem:[#allocation115_spill] sm:$0xff] }
 0x2ae   :  { %v3344_v15 = vsel %vm2130_vm4, %v3342_v9, %v3343_v27  ;;  %v3347_v41 = vsel %vm2130_vm4, %v3345_v48, %v3346_v12  ;;  %v3350_v1 = vsel %vm2130_vm4, %v3348_v52, %v3349_v47  ;;  %v3353_v54 = vsel %vm2130_vm4, %v3351_v35, %v3352_v10  ;;  %v12095_v52 = vld [vmem:[#allocation145_spill] sm:$0xff]  ;;  %v12107_v12 = vld [vmem:[#allocation116_spill] sm:$0xff] }
 0x2af   :  { %v3356_v20 = vsel %vm2130_vm4, %v3354_v58, %v3355_v17  ;;  %v3359_v40 = vsel %vm2130_vm4, %v3357_v19, %v3358_v56  ;;  %v10034_v7 = vadd.f32 %v3315_v63, %v9912_v39  ;;  %v10037_v21 = vadd.f32 %v3320_v61, %v9915_v0  ;;  %v12108_v35 = vld [vmem:[#allocation117_spill] sm:$0xff]  ;;  %v12109_v17 = vld [vmem:[#allocation118_spill] sm:$0xff]  ;;  %v12110_v56 = vld [vmem:[#allocation119_spill] sm:$0xff] }
 0x2b0   :  { %v3362_v34 = vsel %vm2130_vm4, %v3360_v33, %v3361_v60  ;;  %v10041_v27 = vadd.f32 %v3323_v2, %v9919_v29  ;;  %v10044_v48 = vadd.f32 %v3326_v57, %v9922_v5  ;;  %v10047_v10 = vadd.f32 %v3329_v4, %v9925_v44  ;;  %v12111_v57 = vld [vmem:[#allocation120_spill] sm:$0xff]  ;;  %v12112_v60 = vld [vmem:[#allocation121_spill] sm:$0xff] }
 0x2b1   :  { %v10050_v28 = vadd.f32 %v3332_v32, %v9928_v6  ;;  %v10053_v39 = vadd.f32 %v3335_v31, %v9931_v22  ;;  %v10056_v0 = vadd.f32 %v3338_v51, %v9934_v30  ;;  %v10059_v38 = vadd.f32 %v3315_v63, %v9937_v62  ;;  %v12092_v62 = vld [vmem:[#allocation136_spill] sm:$0xff]  ;;  %v12105_v63 = vld [vmem:[#allocation114_spill] sm:$0xff]  ;;  %v12114_v51 = vld [vmem:[#allocation123_spill] sm:$0xff] }
 0x2b2   :  { %v10062_v29 = vadd.f32 %v3344_v15, %v9940_v14  ;;  %v10065_v5 = vadd.f32 %v3347_v41, %v9943_v23  ;;  %v10068_v44 = vadd.f32 %v3350_v1, %v9946_v53  ;;  %v10071_v6 = vadd.f32 %v3353_v54, %v9949_v25  ;;  %v12094_v14 = vld [vmem:[#allocation104_spill] sm:$0xff]  ;;  %v12096_v23 = vld [vmem:[#allocation105_spill] sm:$0xff]  ;;  %v12097_v53 = vld [vmem:[#allocation106_spill] sm:$0xff] }
 0x2b3   :  { %v10074_v22 = vadd.f32 %v3356_v20, %v9952_v37  ;;  %v10077_v30 = vadd.f32 %v3359_v40, %v9955_v13  ;;  %v10080_v24 = vadd.f32 %v3362_v34, %v12092_v62  ;;  %v3399_v9 = vmul.f32 %v12095_v52, %v12094_v14  ;;  %v12098_v25 = vld [vmem:[#allocation107_spill] sm:$0xff]  ;;  %v12099_v37 = vld [vmem:[#allocation108_spill] sm:$0xff]  ;;  %v12100_v13 = vld [vmem:[#allocation109_spill] sm:$0xff] }
 0x2b4   :  { %v3400_v42 = vmul.f32 %v12095_v52, %v12096_v23  ;;  %v3401_v45 = vmul.f32 %v12095_v52, %v12097_v53  ;;  %v3402_v61 = vmul.f32 %v12095_v52, %v12098_v25  ;;  %v3403_v55 = vmul.f32 %v12095_v52, %v12099_v37  ;;  %v12113_v32 = vld [vmem:[#allocation122_spill] sm:$0xff]  ;;  %v12115_v41 = vld [vmem:[#allocation124_spill] sm:$0xff]  ;;  %v12116_v54 = vld [vmem:[#allocation125_spill] sm:$0xff] }
 0x2b5   :  { %12091 = vst [vmem:[#allocation150_spill] sm:$0xff] %v10077_v30  ;;  %12093 = vst [vmem:[#allocation137_spill] sm:$0xff] %v10080_v24  ;;  %v3404_v11 = vmul.f32 %v12095_v52, %v12100_v13  ;;  %v3405_v26 = vmul.f32 %v12095_v52, %v12101_v46  ;;  %v3406_v8 = vmul.f32 %v12095_v52, %v12102_v50  ;;  %v12117_v40 = vld [vmem:[#allocation126_spill] sm:$0xff]  ;;  %v3463_v62 = vrot.slane %v3399_v9, 1  ;;  %v12118_v13 = vld [vmem:[#allocation127_spill] sm:$0xff] }
 0x2b6   :  { %v3407_v18 = vmul.f32 %v12095_v52, %v12103_v36  ;;  %v3408_v43 = vmul.f32 %v12095_v52, %v12104_v3  ;;  %v3409_v49 = vmul.f32 %v12095_v52, %v12105_v63  ;;  %v3410_v16 = vmul.f32 %v12095_v52, %v12106_v59  ;;  %v12119_v50 = vld [vmem:[#allocation128_spill] sm:$0xff]  ;;  %v12120_v3 = vld [vmem:[#allocation129_spill] sm:$0xff]  ;;  %v12121_v59 = vld [vmem:[#allocation130_spill] sm:$0xff] }
 0x2b7   :  { %v3411_v47 = vmul.f32 %v12095_v52, %v12107_v12  ;;  %v3412_v58 = vmul.f32 %v12095_v52, %v12108_v35  ;;  %v3413_v19 = vmul.f32 %v12095_v52, %v12109_v17  ;;  %v3414_v2 = vmul.f32 %v12095_v52, %v12110_v56  ;;  %v12122_v35 = vld [vmem:[#allocation131_spill] sm:$0xff] }
 0x2b8   :  { %v3415_v33 = vmul.f32 %v12095_v52, %v12111_v57  ;;  %v3416_v4 = vmul.f32 %v12095_v52, %v12112_v60  ;;  %v3417_v31 = vmul.f32 %v12095_v52, %v12113_v32  ;;  %v3418_v15 = vmul.f32 %v12095_v52, %v12114_v51  ;;  %v12126_v56 = vld [vmem:[#allocation135_spill] sm:$0xff] }
 0x2b9   :  { %v3419_v1 = vmul.f32 %v12095_v52, %v12115_v41  ;;  %v3420_v20 = vmul.f32 %v12095_v52, %v12116_v54  ;;  %v3421_v34 = vmul.f32 %v12095_v52, %v12117_v40  ;;  %v3464_v14 = vrot.slane %v3400_v42, 1  ;;  %v12123_v42 = vld [vmem:[#allocation132_spill] sm:$0xff] }
 0x2ba   :  { %v3466_v23 = vrot.slane %v3401_v45, 1  ;;  %v3467_v53 = vrot.slane %v3402_v61, 1  ;;  %v3469_v25 = vrot.slane %v3403_v55, 1  ;;  %v3470_v37 = vrot.slane %v3404_v11, 1  ;;  %v12124_v61 = vld [vmem:[#allocation133_spill] sm:$0xff]  ;;  %v12125_v11 = vld [vmem:[#allocation134_spill] sm:$0xff] }
 0x2bb   :  { %v3422_v46 = vmul.f32 %v12095_v52, %v12118_v13  ;;  %v3423_v36 = vmul.f32 %v12095_v52, %v12119_v50  ;;  %v3424_v63 = vmul.f32 %v12095_v52, %v12120_v3  ;;  %v3425_v12 = vmul.f32 %v12095_v52, %v12121_v59 }
 0x2bc   :  { %v3426_v9 = vmul.f32 %v12095_v52, %v12122_v35  ;;  %v3427_v45 = vmul.f32 %v12095_v52, %v12123_v42  ;;  %v3428_v55 = vmul.f32 %v12095_v52, %v12124_v61  ;;  %v3429_v17 = vmul.f32 %v12095_v52, %v12125_v11 }
 0x2bd   :  { %v3430_v57 = vmul.f32 %v12095_v52, %v12126_v56  ;;  %v3465_v60 = vsel %vm2130_vm4, %v3463_v62, %v3464_v14  ;;  %v3472_v32 = vrot.slane %v3405_v26, 1  ;;  %v3473_v51 = vrot.slane %v3406_v8, 1 }
 0x2be   :  { %v3468_v41 = vsel %vm2130_vm4, %v3466_v23, %v3467_v53  ;;  %v3471_v54 = vsel %vm2130_vm4, %v3469_v25, %v3470_v37  ;;  %v3475_v40 = vrot.slane %v3407_v18, 1  ;;  %v3476_v13 = vrot.slane %v3408_v43, 1 }
 0x2bf   :  { %v3478_v50 = vrot.slane %v3409_v49, 1  ;;  %v3479_v3 = vrot.slane %v3410_v16, 1  ;;  %v3481_v59 = vrot.slane %v3411_v47, 1  ;;  %v3482_v35 = vrot.slane %v3412_v58, 1 }
 0x2c0   :  { %v3484_v42 = vrot.slane %v3413_v19, 1  ;;  %v3485_v61 = vrot.slane %v3414_v2, 1  ;;  %v3487_v11 = vrot.slane %v3415_v33, 1  ;;  %v3488_v24 = vrot.slane %v3416_v4, 1 }
 0x2c1   :  { %v3490_v30 = vrot.slane %v3417_v31, 1  ;;  %v3491_v52 = vrot.slane %v3418_v15, 1  ;;  %v3493_v56 = vrot.slane %v3419_v1, 1  ;;  %v3494_v62 = vrot.slane %v3420_v20, 1 }
 0x2c2   :  { %v3496_v26 = vrot.slane %v3421_v34, 1  ;;  %v3497_v8 = vrot.slane %v3422_v46, 1  ;;  %v3499_v14 = vrot.slane %v3423_v36, 1  ;;  %v3500_v23 = vrot.slane %v3424_v63, 1 }
 0x2c3   :  { %v3502_v53 = vrot.slane %v3425_v12, 1  ;;  %v3503_v25 = vrot.slane %v3426_v9, 1  ;;  %v3505_v18 = vrot.slane %v3427_v45, 1  ;;  %v3506_v43 = vrot.slane %v3428_v55, 1 }
 0x2c4   :  { %v3474_v49 = vsel %vm2130_vm4, %v3472_v32, %v3473_v51  ;;  %v3477_v16 = vsel %vm2130_vm4, %v3475_v40, %v3476_v13  ;;  %v3508_v47 = vrot.slane %v3429_v17, 1  ;;  %v3509_v58 = vrot.slane %v3430_v57, 1  ;;  %v12136_v13 = vld [vmem:[#allocation25_spill] sm:$0xff] }
 0x2c5   :  { %v3480_v19 = vsel %vm2130_vm4, %v3478_v50, %v3479_v3  ;;  %v3483_v2 = vsel %vm2130_vm4, %v3481_v59, %v3482_v35  ;;  %v3486_v33 = vsel %vm2130_vm4, %v3484_v42, %v3485_v61  ;;  %v3489_v4 = vsel %vm2130_vm4, %v3487_v11, %v3488_v24  ;;  %v12137_v3 = vld [vmem:[#allocation31_spill] sm:$0xff]  ;;  %v12139_v61 = vld [vmem:[#allocation36_spill] sm:$0xff] }
 0x2c6   :  { %v3492_v31 = vsel %vm2130_vm4, %v3490_v30, %v3491_v52  ;;  %v3495_v15 = vsel %vm2130_vm4, %v3493_v56, %v3494_v62  ;;  %v3498_v1 = vsel %vm2130_vm4, %v3496_v26, %v3497_v8  ;;  %v3501_v20 = vsel %vm2130_vm4, %v3499_v14, %v3500_v23  ;;  %v12138_v35 = vld [vmem:[#allocation35_spill] sm:$0xff]  ;;  %v12141_v62 = vld [vmem:[#allocation40_spill] sm:$0xff]  ;;  %v12142_v8 = vld [vmem:[#allocation41_spill] sm:$0xff] }
 0x2c7   :  { %v3504_v34 = vsel %vm2130_vm4, %v3502_v53, %v3503_v25  ;;  %v3507_v37 = vsel %vm2130_vm4, %v3505_v18, %v3506_v43  ;;  %v10162_v46 = vadd.f32 %v3465_v60, %v10034_v7  ;;  %v10165_v36 = vadd.f32 %v3468_v41, %v10037_v21  ;;  %v12140_v52 = vld [vmem:[#allocation39_spill] sm:$0xff]  ;;  %v12143_v23 = vld [vmem:[#allocation42_spill] sm:$0xff]  ;;  %v12145_v43 = vld [vmem:[#allocation49_spill] sm:$0xff] }
 0x2c8   :  { %v3510_v24 = vsel %vm2130_vm4, %v3508_v47, %v3509_v58  ;;  %v10169_v30 = vadd.f32 %v3471_v54, %v10041_v27  ;;  %v10172_v63 = vadd.f32 %v3474_v49, %v10044_v48  ;;  %v10175_v12 = vadd.f32 %v3477_v16, %v10047_v10  ;;  %v12135_v54 = vld [vmem:[#allocation30_spill] sm:$0xff]  ;;  %v12144_v25 = vld [vmem:[#allocation43_spill] sm:$0xff] }
 0x2c9   :  { %v10178_v9 = vadd.f32 %v3480_v19, %v10050_v28  ;;  %v10181_v7 = vadd.f32 %v3483_v2, %v10053_v39  ;;  %v10184_v21 = vadd.f32 %v3486_v33, %v10056_v0  ;;  %v10187_v45 = vadd.f32 %v3489_v4, %v10059_v38  ;;  %v12127_v0 = vld [vmem:[#allocation150_spill] sm:$0xff]  ;;  %v12128_v38 = vld [vmem:[#allocation137_spill] sm:$0xff]  ;;  %v12147_v58 = vld [vmem:[#allocation51_spill] sm:$0xff] }
 0x2ca   :  { %v10190_v27 = vadd.f32 %v3492_v31, %v10062_v29  ;;  %v10193_v48 = vadd.f32 %v3495_v15, %v10065_v5  ;;  %v10196_v10 = vadd.f32 %v3498_v1, %v10068_v44  ;;  %v10199_v28 = vadd.f32 %v3501_v20, %v10071_v6  ;;  %v12130_v29 = vld [vmem:[#allocation144_spill] sm:$0xff]  ;;  %v12132_v44 = vld [vmem:[#allocation54_spill] sm:$0xff]  ;;  %v12149_v15 = vld [vmem:[#allocation53_spill] sm:$0xff] }
 0x2cb   :  { %v10202_v39 = vadd.f32 %v3504_v34, %v10074_v22  ;;  %v10205_v55 = vadd.f32 %v3507_v37, %v12127_v0  ;;  %v10208_v17 = vadd.f32 %v3510_v24, %v12128_v38  ;;  %v10211_v57 = vmul.f32 0.0, %v12130_v29  ;;  %v12131_v5 = vld [vmem:[#allocation28_spill] sm:$0xff]  ;;  %v12134_v22 = vld [vmem:[#allocation29_spill] sm:$0xff]  ;;  %v12146_v16 = vld [vmem:[#allocation50_spill] sm:$0xff] }
 0x2cc   :  { %v3549_v60 = vmul.f32 %v12130_v29, %v12131_v5  ;;  %v3550_v32 = vmul.f32 %v12130_v29, %v12132_v44  ;;  %v12133_v6 = vld [vmem:[#allocation24_spill] sm:$0xff]  ;;  %v3552_v41 = vmul.f32 %v12130_v29, %v12134_v22  ;;  %v3553_v40 = vmul.f32 %v12130_v29, %v12135_v54  ;;  %v12150_v20 = vld [vmem:[#allocation55_spill] sm:$0xff]  ;;  %v12152_v0 = vld [vmem:[#allocation57_spill] sm:$0xff] }
 0x2cd   :  { %12129 = vst [vmem:[#allocation142_spill] sm:$0xff] %v10208_v17  ;;  %v3551_v51 = vmul.f32 %v12130_v29, %v12133_v6  ;;  %v3554_v50 = vmul.f32 %v12130_v29, %v12136_v13  ;;  %v3555_v59 = vmul.f32 %v12130_v29, %v12137_v3  ;;  %v3556_v42 = vmul.f32 %v12130_v29, %v12138_v35  ;;  %v12148_v2 = vld [vmem:[#allocation52_spill] sm:$0xff] }
 0x2ce   :  { %v3557_v11 = vmul.f32 %v12130_v29, %v12139_v61  ;;  %v3558_v56 = vmul.f32 %v12130_v29, %v12140_v52  ;;  %v3559_v26 = vmul.f32 %v12130_v29, %v12141_v62  ;;  %v3560_v14 = vmul.f32 %v12130_v29, %v12142_v8  ;;  %v12151_v37 = vld [vmem:[#allocation56_spill] sm:$0xff] }
 0x2cf   :  { %v3561_v53 = vmul.f32 %v12130_v29, %v12143_v23  ;;  %v3562_v18 = vmul.f32 %v12130_v29, %v12144_v25  ;;  %v3565_v49 = vmul.f32 %v12130_v29, %v12145_v43  ;;  %v3566_v47 = vmul.f32 %v12130_v29, %v12146_v16  ;;  %v12153_v16 = vld [vmem:[#allocation58_spill] sm:$0xff]  ;;  %v12154_v43 = vld [vmem:[#allocation59_spill] sm:$0xff]  ;;  %v12156_v25 = vld [vmem:[#allocation33_spill] sm:$0xff] }
 0x2d0   :  { %v3567_v19 = vmul.f32 %v12130_v29, %v12147_v58  ;;  %v3568_v33 = vmul.f32 %v12130_v29, %v12148_v2  ;;  %v3615_v4 = vrot.slane %v3549_v60, 2  ;;  %v3616_v31 = vrot.slane %v3550_v32, 2  ;;  %v12155_v60 = vld [vmem:[#allocation60_spill] sm:$0xff]  ;;  %v12157_v23 = vld [vmem:[#allocation46_spill] sm:$0xff] }
 0x2d1   :  { %v3569_v1 = vmul.f32 %v12130_v29, %v12149_v15  ;;  %v3570_v34 = vmul.f32 %v12130_v29, %v12150_v20  ;;  %v3571_v24 = vmul.f32 %v12130_v29, %v12151_v37  ;;  %v3572_v38 = vmul.f32 %v12130_v29, %v12152_v0  ;;  %v12158_v8 = vld [vmem:[#allocation16_spill] sm:$0xff] }
 0x2d2   :  { %v3573_v58 = vmul.f32 %v12130_v29, %v12153_v16  ;;  %v3574_v2 = vmul.f32 %v12130_v29, %v12154_v43  ;;  %v3575_v32 = vmul.f32 %v12130_v29, %v12155_v60  ;;  %v3576_v15 = vmul.f32 %v12130_v29, %v12156_v25 }
 0x2d3   :  { %v3577_v20 = vmul.f32 %v12130_v29, %v12157_v23  ;;  %v3578_v37 = vmul.f32 %v12130_v29, %v12158_v8  ;;  %v3612_v0 = vrot.slane %v10211_v57, 2  ;;  %v3618_v62 = vrot.slane %v3551_v51, 2 }
 0x2d4   :  { %v3617_v16 = vsel %vm3611_vm5, %v3615_v4, %v3616_v31  ;;  %v3619_v52 = vrot.slane %v3552_v41, 2  ;;  %v3621_v61 = vrot.slane %v3553_v40, 2  ;;  %v3622_v43 = vrot.slane %v3554_v50, 2 }
 0x2d5   :  { %v3624_v35 = vrot.slane %v3555_v59, 2  ;;  %v3625_v3 = vrot.slane %v3556_v42, 2  ;;  %v3627_v60 = vrot.slane %v3557_v11, 2  ;;  %v3628_v13 = vrot.slane %v3558_v56, 2 }
 0x2d6   :  { %v3630_v54 = vrot.slane %v3559_v26, 2  ;;  %v3631_v25 = vrot.slane %v3560_v14, 2  ;;  %v3633_v22 = vrot.slane %v3561_v53, 2  ;;  %v3634_v6 = vrot.slane %v3562_v18, 2 }
 0x2d7   :  { %v3639_v23 = vrot.slane %v3565_v49, 2  ;;  %v3640_v44 = vrot.slane %v3566_v47, 2  ;;  %v3642_v5 = vrot.slane %v3567_v19, 2  ;;  %v3643_v29 = vrot.slane %v3568_v33, 2  ;;  %v12169_v33 = vld [vmem:[#allocation31_spill] sm:$0xff] }
 0x2d8   :  { %v3645_v8 = vrot.slane %v3569_v1, 2  ;;  %v3646_v57 = vrot.slane %v3570_v34, 2  ;;  %v3648_v51 = vrot.slane %v3571_v24, 2  ;;  %v3649_v17 = vrot.slane %v3572_v38, 2 }
 0x2d9   :  { %v3651_v4 = vrot.slane %v3573_v58, 2  ;;  %v3652_v41 = vrot.slane %v3574_v2, 2  ;;  %v3654_v40 = vrot.slane %v3575_v32, 2  ;;  %v3655_v50 = vrot.slane %v3576_v15, 2  ;;  %v12170_v15 = vld [vmem:[#allocation35_spill] sm:$0xff] }
 0x2da   :  { %v3620_v59 = vsel %vm3611_vm5, %v3618_v62, %v3619_v52  ;;  %v3623_v42 = vsel %vm3611_vm5, %v3621_v61, %v3622_v43  ;;  %v3657_v11 = vrot.slane %v3577_v20, 2  ;;  %v3658_v56 = vrot.slane %v3578_v37, 2  ;;  %v12171_v20 = vld [vmem:[#allocation36_spill] sm:$0xff]  ;;  %v12172_v37 = vld [vmem:[#allocation39_spill] sm:$0xff] }
 0x2db   :  { %v3626_v26 = vsel %vm3611_vm5, %v3624_v35, %v3625_v3  ;;  %v3629_v14 = vsel %vm3611_vm5, %v3627_v60, %v3628_v13  ;;  %v3632_v53 = vsel %vm3611_vm5, %v3630_v54, %v3631_v25  ;;  %v3635_v18 = vsel %vm3611_vm5, %v3633_v22, %v3634_v6  ;;  %v12174_v60 = vld [vmem:[#allocation41_spill] sm:$0xff] }
 0x2dc   :  { %v3641_v49 = vsel %vm3611_vm5, %v3639_v23, %v3640_v44  ;;  %v3644_v47 = vsel %vm3611_vm5, %v3642_v5, %v3643_v29  ;;  %v3647_v58 = vsel %vm3611_vm5, %v3645_v8, %v3646_v57  ;;  %v3650_v52 = vsel %vm3611_vm5, %v3648_v51, %v3649_v17  ;;  %v12163_v8 = vld [vmem:[#allocation143_spill] sm:$0xff]  ;;  %v12175_v29 = vld [vmem:[#allocation42_spill] sm:$0xff] }
 0x2dd   :  { %v3653_v61 = vsel %vm3611_vm5, %v3651_v4, %v3652_v41  ;;  %v3656_v62 = vsel %vm3611_vm5, %v3654_v40, %v3655_v50  ;;  %v10284_v3 = vadd.f32 %v3612_v0, %v10162_v46  ;;  %v10287_v13 = vadd.f32 %v3617_v16, %v10165_v36  ;;  %v12176_v51 = vld [vmem:[#allocation43_spill] sm:$0xff]  ;;  %v12177_v41 = vld [vmem:[#allocation44_spill] sm:$0xff]  ;;  %v12178_v50 = vld [vmem:[#allocation45_spill] sm:$0xff] }
 0x2de   :  { %v3659_v6 = vsel %vm3611_vm5, %v3657_v11, %v3658_v56  ;;  %v10291_v44 = vadd.f32 %v3620_v59, %v10169_v30  ;;  %v10294_v5 = vadd.f32 %v3623_v42, %v10172_v63  ;;  %v10297_v17 = vadd.f32 %v3626_v26, %v10175_v12  ;;  %v12179_v42 = vld [vmem:[#allocation49_spill] sm:$0xff]  ;;  %v12180_v56 = vld [vmem:[#allocation50_spill] sm:$0xff] }
 0x2df   :  { %v10300_v22 = vadd.f32 %v3629_v14, %v10178_v9  ;;  %v10303_v46 = vadd.f32 %v3632_v53, %v10181_v7  ;;  %v10306_v36 = vadd.f32 %v3635_v18, %v10184_v21  ;;  %v10309_v54 = vadd.f32 %v3612_v0, %v10187_v45  ;;  %v12160_v45 = vld [vmem:[#allocation142_spill] sm:$0xff]  ;;  %v12173_v0 = vld [vmem:[#allocation40_spill] sm:$0xff]  ;;  %v12181_v14 = vld [vmem:[#allocation51_spill] sm:$0xff] }
 0x2e0   :  { %v10312_v30 = vadd.f32 %v3641_v49, %v10190_v27  ;;  %v10315_v63 = vadd.f32 %v3644_v47, %v10193_v48  ;;  %v10318_v12 = vadd.f32 %v3647_v58, %v10196_v10  ;;  %v10321_v9 = vadd.f32 %v3650_v52, %v10199_v28  ;;  %v12162_v27 = vld [vmem:[#allocation28_spill] sm:$0xff]  ;;  %v12164_v48 = vld [vmem:[#allocation54_spill] sm:$0xff]  ;;  %v12166_v28 = vld [vmem:[#allocation29_spill] sm:$0xff] }
 0x2e1   :  { %v10324_v7 = vadd.f32 %v3653_v61, %v10202_v39  ;;  %v10327_v21 = vadd.f32 %v3656_v62, %v10205_v55  ;;  %v10330_v35 = vadd.f32 %v3659_v6, %v12160_v45  ;;  %v3696_v23 = vmul.f32 %v12163_v8, %v12162_v27  ;;  %v12165_v10 = vld [vmem:[#allocation24_spill] sm:$0xff]  ;;  %v12167_v39 = vld [vmem:[#allocation30_spill] sm:$0xff]  ;;  %v12168_v55 = vld [vmem:[#allocation25_spill] sm:$0xff] }
 0x2e2   :  { %v3697_v25 = vmul.f32 %v12163_v8, %v12164_v48  ;;  %v3698_v43 = vmul.f32 %v12163_v8, %v12165_v10  ;;  %v3699_v16 = vmul.f32 %v12163_v8, %v12166_v28  ;;  %v3700_v19 = vmul.f32 %v12163_v8, %v12167_v39  ;;  %v12182_v18 = vld [vmem:[#allocation52_spill] sm:$0xff]  ;;  %v12183_v47 = vld [vmem:[#allocation53_spill] sm:$0xff]  ;;  %v12184_v52 = vld [vmem:[#allocation55_spill] sm:$0xff] }
 0x2e3   :  { %12159 = vst [vmem:[#allocation138_spill] sm:$0xff] %v10327_v21  ;;  %12161 = vst [vmem:[#allocation26_spill] sm:$0xff] %v10330_v35  ;;  %v3701_v2 = vmul.f32 %v12163_v8, %v12168_v55  ;;  %v3702_v31 = vmul.f32 %v12163_v8, %v12169_v33  ;;  %v3703_v1 = vmul.f32 %v12163_v8, %v12170_v15  ;;  %v12185_v62 = vld [vmem:[#allocation56_spill] sm:$0xff]  ;;  %v3760_v45 = vrot.slane %v3696_v23, 2 }
 0x2e4   :  { %v3704_v34 = vmul.f32 %v12163_v8, %v12171_v20  ;;  %v3705_v24 = vmul.f32 %v12163_v8, %v12172_v37  ;;  %v3706_v38 = vmul.f32 %v12163_v8, %v12173_v0  ;;  %v3707_v32 = vmul.f32 %v12163_v8, %v12174_v60  ;;  %v12189_v60 = vld [vmem:[#allocation60_spill] sm:$0xff]  ;;  %v12190_v0 = vld [vmem:[#allocation33_spill] sm:$0xff] }
 0x2e5   :  { %v3708_v57 = vmul.f32 %v12163_v8, %v12175_v29  ;;  %v3709_v4 = vmul.f32 %v12163_v8, %v12176_v51  ;;  %v3710_v40 = vmul.f32 %v12163_v8, %v12177_v41  ;;  %v3711_v59 = vmul.f32 %v12163_v8, %v12178_v50  ;;  %v12186_v41 = vld [vmem:[#allocation57_spill] sm:$0xff]  ;;  %v12187_v51 = vld [vmem:[#allocation58_spill] sm:$0xff]  ;;  %v12188_v29 = vld [vmem:[#allocation59_spill] sm:$0xff] }
 0x2e6   :  { %v3712_v11 = vmul.f32 %v12163_v8, %v12179_v42  ;;  %v3713_v26 = vmul.f32 %v12163_v8, %v12180_v56  ;;  %v3714_v53 = vmul.f32 %v12163_v8, %v12181_v14  ;;  %v3715_v49 = vmul.f32 %v12163_v8, %v12182_v18 }
 0x2e7   :  { %v3716_v58 = vmul.f32 %v12163_v8, %v12183_v47  ;;  %v3717_v61 = vmul.f32 %v12163_v8, %v12184_v52  ;;  %v3718_v6 = vmul.f32 %v12163_v8, %v12185_v62  ;;  %v3761_v27 = vrot.slane %v3697_v25, 2  ;;  %v12191_v25 = vld [vmem:[#allocation46_spill] sm:$0xff]  ;;  %v12194_v62 = vld [vmem:[#allocation23_spill] sm:$0xff] }
 0x2e8   :  { %v3763_v48 = vrot.slane %v3698_v43, 2  ;;  %v3764_v42 = vrot.slane %v3699_v16, 2  ;;  %v3766_v56 = vrot.slane %v3700_v19, 2  ;;  %v3767_v50 = vrot.slane %v3701_v2, 2  ;;  %v12192_v16 = vld [vmem:[#allocation16_spill] sm:$0xff]  ;;  %v12193_v2 = vld [vmem:[#allocation14_spill] sm:$0xff] }
 0x2e9   :  { %v3719_v14 = vmul.f32 %v12163_v8, %v12186_v41  ;;  %v3720_v18 = vmul.f32 %v12163_v8, %v12187_v51  ;;  %v3721_v47 = vmul.f32 %v12163_v8, %v12188_v29  ;;  %v3722_v52 = vmul.f32 %v12163_v8, %v12189_v60 }
 0x2ea   :  { %v3723_v23 = vmul.f32 %v12163_v8, %v12190_v0  ;;  %v3724_v43 = vmul.f32 %v12163_v8, %v12191_v25  ;;  %v3725_v19 = vmul.f32 %v12163_v8, %v12192_v16  ;;  %v3726_v41 = vmul.f32 %v12163_v8, %v12193_v2 }
 0x2eb   :  { %v3727_v51 = vmul.f32 %v12163_v8, %v12194_v62  ;;  %v3762_v29 = vsel %vm3611_vm5, %v3760_v45, %v3761_v27  ;;  %v3769_v37 = vrot.slane %v3702_v31, 2  ;;  %v3770_v20 = vrot.slane %v3703_v1, 2 }
 0x2ec   :  { %v3765_v60 = vsel %vm3611_vm5, %v3763_v48, %v3764_v42  ;;  %v3768_v0 = vsel %vm3611_vm5, %v3766_v56, %v3767_v50  ;;  %v3772_v15 = vrot.slane %v3704_v34, 2  ;;  %v3773_v33 = vrot.slane %v3705_v24, 2 }
 0x2ed   :  { %v3775_v25 = vrot.slane %v3706_v38, 2  ;;  %v3776_v55 = vrot.slane %v3707_v32, 2  ;;  %v3778_v39 = vrot.slane %v3708_v57, 2  ;;  %v3779_v16 = vrot.slane %v3709_v4, 2 }
 0x2ee   :  { %v3781_v28 = vrot.slane %v3710_v40, 2  ;;  %v3782_v10 = vrot.slane %v3711_v59, 2  ;;  %v3784_v2 = vrot.slane %v3712_v11, 2  ;;  %v3785_v35 = vrot.slane %v3713_v26, 2 }
 0x2ef   :  { %v3787_v21 = vrot.slane %v3714_v53, 2  ;;  %v3788_v8 = vrot.slane %v3715_v49, 2  ;;  %v3790_v62 = vrot.slane %v3716_v58, 2  ;;  %v3791_v45 = vrot.slane %v3717_v61, 2  ;;  %v12198_v49 = vld [vmem:[#allocation29_spill] sm:$0xff]  ;;  %v12201_v61 = vld [vmem:[#allocation31_spill] sm:$0xff] }
 0x2f0   :  { %v3793_v31 = vrot.slane %v3718_v6, 2  ;;  %v3794_v1 = vrot.slane %v3719_v14, 2  ;;  %v3796_v27 = vrot.slane %v3720_v18, 2  ;;  %v3797_v48 = vrot.slane %v3721_v47, 2  ;;  %v12199_v47 = vld [vmem:[#allocation30_spill] sm:$0xff] }
 0x2f1   :  { %v3799_v42 = vrot.slane %v3722_v52, 2  ;;  %v3800_v50 = vrot.slane %v3723_v23, 2  ;;  %v3802_v34 = vrot.slane %v3724_v43, 2  ;;  %v3803_v24 = vrot.slane %v3725_v19, 2  ;;  %v12204_v23 = vld [vmem:[#allocation39_spill] sm:$0xff]  ;;  %v12205_v43 = vld [vmem:[#allocation40_spill] sm:$0xff] }
 0x2f2   :  { %v3771_v38 = vsel %vm3611_vm5, %v3769_v37, %v3770_v20  ;;  %v3774_v32 = vsel %vm3611_vm5, %v3772_v15, %v3773_v33  ;;  %v3805_v57 = vrot.slane %v3726_v41, 2  ;;  %v3806_v4 = vrot.slane %v3727_v51, 2  ;;  %v12206_v19 = vld [vmem:[#allocation41_spill] sm:$0xff] }
 0x2f3   :  { %v3777_v40 = vsel %vm3611_vm5, %v3775_v25, %v3776_v55  ;;  %v3780_v59 = vsel %vm3611_vm5, %v3778_v39, %v3779_v16  ;;  %v3783_v11 = vsel %vm3611_vm5, %v3781_v28, %v3782_v10  ;;  %v3786_v26 = vsel %vm3611_vm5, %v3784_v2, %v3785_v35 }
 0x2f4   :  { %v3789_v14 = vsel %vm3611_vm5, %v3787_v21, %v3788_v8  ;;  %v3792_v53 = vsel %vm3611_vm5, %v3790_v62, %v3791_v45  ;;  %v3795_v18 = vsel %vm3611_vm5, %v3793_v31, %v3794_v1  ;;  %v3798_v20 = vsel %vm3611_vm5, %v3796_v27, %v3797_v48  ;;  %v4825_v21 = vld [vmem:[%s11160_s4 + $0x18] ss:$0 sm:$0xff]  ;;  %v12202_v62 = vld [vmem:[#allocation35_spill] sm:$0xff]  ;;  %v12207_v8 = vld [vmem:[#allocation42_spill] sm:$0xff] }
 0x2f5   :  { %v3801_v33 = vsel %vm3611_vm5, %v3799_v42, %v3800_v50  ;;  %v3804_v15 = vsel %vm3611_vm5, %v3802_v34, %v3803_v24  ;;  %v10412_v55 = vadd.f32 %v3762_v29, %v10284_v3  ;;  %v10415_v39 = vadd.f32 %v3765_v60, %v10287_v13  ;;  %v12208_v31 = vld [vmem:[#allocation43_spill] sm:$0xff]  ;;  %v12209_v27 = vld [vmem:[#allocation44_spill] sm:$0xff]  ;;  %v12210_v42 = vld [vmem:[#allocation45_spill] sm:$0xff] }
 0x2f6   :  { %v3807_v35 = vsel %vm3611_vm5, %v3805_v57, %v3806_v4  ;;  %v10422_v10 = vadd.f32 %v3768_v0, %v10291_v44  ;;  %v10425_v28 = vadd.f32 %v3771_v38, %v10294_v5  ;;  %v10428_v37 = vadd.f32 %v3774_v32, %v10297_v17  ;;  %v12211_v24 = vld [vmem:[#allocation51_spill] sm:$0xff]  ;;  %v12212_v32 = vld [vmem:[#allocation52_spill] sm:$0xff]  ;;  %v12213_v4 = vld [vmem:[#allocation53_spill] sm:$0xff] }
 0x2f7   :  { %v10431_v3 = vadd.f32 %v3777_v40, %v10300_v22  ;;  %v10434_v13 = vadd.f32 %v3780_v59, %v10303_v46  ;;  %v10437_v60 = vadd.f32 %v3783_v11, %v10306_v36  ;;  %v10440_v29 = vadd.f32 %v3786_v26, %v10309_v54  ;;  %v12195_v36 = vld [vmem:[#allocation138_spill] sm:$0xff]  ;;  %v12214_v59 = vld [vmem:[#allocation55_spill] sm:$0xff] }
 0x2f8   :  { %v10443_v44 = vadd.f32 %v3789_v14, %v10312_v30  ;;  %v10446_v5 = vadd.f32 %v3792_v53, %v10315_v63  ;;  %v10449_v17 = vadd.f32 %v3795_v18, %v10318_v12  ;;  %v10452_v22 = vadd.f32 %v3798_v20, %v10321_v9  ;;  %v12196_v54 = vld [vmem:[#allocation26_spill] sm:$0xff]  ;;  %v12197_v30 = vld [vmem:[#allocation24_spill] sm:$0xff]  ;;  %v12200_v12 = vld [vmem:[#allocation25_spill] sm:$0xff] }
 0x2f9   :  { %v10455_v46 = vadd.f32 %v3801_v33, %v10324_v7  ;;  %v10458_v0 = vadd.f32 %v3804_v15, %v12195_v36  ;;  %v10461_v51 = vadd.f32 %v3807_v35, %v12196_v54  ;;  %v3844_v41 = vmul.f32 %v4825_v21, %v12197_v30  ;;  %v12203_v7 = vld [vmem:[#allocation36_spill] sm:$0xff]  ;;  %v12216_v20 = vld [vmem:[#allocation57_spill] sm:$0xff]  ;;  %v12217_v36 = vld [vmem:[#allocation58_spill] sm:$0xff] }
 0x2fa   :  { %v3845_v63 = vmul.f32 %v4825_v21, %v12198_v49  ;;  %v3846_v58 = vmul.f32 %v4825_v21, %v12199_v47  ;;  %v3847_v52 = vmul.f32 %v4825_v21, %v12200_v12  ;;  %v3848_v9 = vmul.f32 %v4825_v21, %v12201_v61  ;;  %v12215_v53 = vld [vmem:[#allocation56_spill] sm:$0xff]  ;;  %v12218_v30 = vld [vmem:[#allocation59_spill] sm:$0xff]  ;;  %v12220_v61 = vld [vmem:[#allocation33_spill] sm:$0xff] }
 0x2fb   :  { %v3849_v6 = vmul.f32 %v4825_v21, %v12202_v62  ;;  %v3850_v56 = vmul.f32 %v4825_v21, %v12203_v7  ;;  %v3851_v25 = vmul.f32 %v4825_v21, %v12204_v23  ;;  %v10472_v16 = vmul.f32 %v4825_v21, %v12205_v43  ;;  %v12219_v47 = vld [vmem:[#allocation60_spill] sm:$0xff]  ;;  %v12221_v7 = vld [vmem:[#allocation46_spill] sm:$0xff] }
 0x2fc   :  { %v3853_v2 = vmul.f32 %v4825_v21, %v12206_v19  ;;  %v3854_v45 = vmul.f32 %v4825_v21, %v12207_v8  ;;  %v3855_v1 = vmul.f32 %v4825_v21, %v12208_v31  ;;  %v10478_v48 = vmul.f32 %v4825_v21, %v12209_v27  ;;  %v12222_v43 = vld [vmem:[#allocation16_spill] sm:$0xff]  ;;  %v12224_v8 = vld [vmem:[#allocation23_spill] sm:$0xff] }
 0x2fd   :  { %v10481_v50 = vmul.f32 %v4825_v21, %v12210_v42  ;;  %v10483_v34 = vmul.f32 0.0, %v4825_v21  ;;  %v10486_v38 = vmul.f32 %v4825_v21, %v12211_v24  ;;  %v3861_v57 = vmul.f32 %v4825_v21, %v12212_v32  ;;  %v4445_v24 = vld [vmem:[%s11161_s5] sm:$0xff] }
 0x2fe   :  { %v10490_v40 = vmul.f32 %v4825_v21, %v12213_v4  ;;  %v10493_v11 = vmul.f32 %v4825_v21, %v12214_v59  ;;  %v3908_v26 = vrot.slane %v3844_v41, 2  ;;  %v3909_v14 = vrot.slane %v3845_v63, 2  ;;  %v12223_v41 = vld [vmem:[#allocation14_spill] sm:$0xff] }
 0x2ff   :  { %v3864_v18 = vmul.f32 %v4825_v21, %v12215_v53  ;;  %v3865_v33 = vmul.f32 %v4825_v21, %v12216_v20  ;;  %v3911_v15 = vrot.slane %v3846_v58, 2  ;;  %v3912_v35 = vrot.slane %v3847_v52, 2  ;;  %v4446_v20 = vld [vmem:[%s11161_s5 + $0x8] sm:$0xff] }
 0x300   :  { %v3866_v54 = vmul.f32 %v4825_v21, %v12217_v36  ;;  %v3867_v49 = vmul.f32 %v4825_v21, %v12218_v30  ;;  %v3868_v12 = vmul.f32 %v4825_v21, %v12219_v47  ;;  %v3869_v62 = vmul.f32 %v4825_v21, %v12220_v61 }
 0x301   :  { %v3870_v23 = vmul.f32 %v4825_v21, %v12221_v7  ;;  %v3871_v19 = vmul.f32 %v4825_v21, %v12222_v43  ;;  %v3872_v63 = vmul.f32 %v4825_v21, %v12223_v41  ;;  %v3873_v31 = vmul.f32 %v4825_v21, %v12224_v8  ;;  %v4447_v21 = vld [vmem:[%s11161_s5 + $0x10] sm:$0xff] }
 0x302   :  { %v3910_v27 = vsel %vm3611_vm5, %v3908_v26, %v3909_v14  ;;  %v3914_v58 = vrot.slane %v3848_v9, 2  ;;  %v3915_v52 = vrot.slane %v3849_v6, 2  ;;  %v3917_v42 = vrot.slane %v3850_v56, 2  ;;  %v4448_v9 = vld [vmem:[%s11161_s5 + $0x18] sm:$0xff] }
 0x303   :  { %v3913_v32 = vsel %vm3611_vm5, %v3911_v15, %v3912_v35  ;;  %v3918_v4 = vrot.slane %v3851_v25, 2  ;;  %v3920_v59 = vrot.slane %v10472_v16, 2  ;;  %v3921_v53 = vrot.slane %v3853_v2, 2 }
 0x304   :  { %v3923_v6 = vrot.slane %v3854_v45, 2  ;;  %v3924_v56 = vrot.slane %v3855_v1, 2  ;;  %v3926_v26 = vrot.slane %v10478_v48, 2  ;;  %v3927_v25 = vrot.slane %v10481_v50, 2  ;;  %v4449_v1 = vld [vmem:[%s11161_s5 + $0x20] sm:$0xff]  ;;  %v4450_v48 = vld [vmem:[%s11161_s5 + $0x28] sm:$0xff] }
 0x305   :  { %v3932_v16 = vrot.slane %v10486_v38, 2  ;;  %v3933_v2 = vrot.slane %v3861_v57, 2  ;;  %v3935_v14 = vrot.slane %v10490_v40, 2  ;;  %v3936_v15 = vrot.slane %v10493_v11, 2 }
 0x306   :  { %v3938_v35 = vrot.slane %v3864_v18, 2  ;;  %v3939_v36 = vrot.slane %v3865_v33, 2  ;;  %v4909_v30 = vpack.c.bf16 %v4446_v20, %v4445_v24  ;;  %v4913_v47 = vpack.c.bf16 %v4448_v9, %v4447_v21 }
 0x307   :  { %v3941_v61 = vrot.slane %v3866_v54, 2  ;;  %v3942_v7 = vrot.slane %v3867_v49, 2  ;;  %v3944_v43 = vrot.slane %v3868_v12, 2  ;;  %v3945_v45 = vrot.slane %v3869_v62, 2 }
 0x308   :  { %v3916_v50 = vsel %vm3611_vm5, %v3914_v58, %v3915_v52  ;;  %v3919_v38 = vsel %vm3611_vm5, %v3917_v42, %v3918_v4  ;;  %v3947_v57 = vrot.slane %v3870_v23, 2  ;;  %v3948_v40 = vrot.slane %v3871_v19, 2  ;;  %4910 = vmatprep.subr.bf16.mxu0 %v4909_v30  ;;  %4925 = vmatprep.subr.bf16.mxu1 %v4909_v30 }
 0x309   :  { %v3922_v11 = vsel %vm3611_vm5, %v3920_v59, %v3921_v53  ;;  %v3925_v18 = vsel %vm3611_vm5, %v3923_v6, %v3924_v56  ;;  %v3950_v33 = vrot.slane %v3872_v63, 2  ;;  %v3951_v54 = vrot.slane %v3873_v31, 2  ;;  %4912 = vmatpush3.bf16.msra.mxu0 %v4909_v30  ;;  %v4451_v63 = vld [vmem:[%s11161_s5 + $0x30] sm:$0xff]  ;;  %4930 = vmatpush3.bf16.msra.mxu1 %v4909_v30  ;;  %v12236_v30 = vld [vmem:[#allocation78_spill] sm:$0xff] }
 0x30a   :  { %v3928_v49 = vsel %vm3611_vm5, %v3926_v26, %v3927_v25  ;;  %v3929_v12 = vrot.slane %v10483_v34, 2  ;;  %v3934_v62 = vsel %vm3611_vm5, %v3932_v16, %v3933_v2  ;;  %4914 = vmatprep.subr.bf16.mxu0 %v4913_v47  ;;  %v4917_v41 = vpack.c.bf16 %v4450_v48, %v4449_v1  ;;  %v4452_v34 = vld [vmem:[%s11161_s5 + $0x38] sm:$0xff]  ;;  %4926 = vmatprep.subr.bf16.mxu1 %v4913_v47  ;;  %v12239_v1 = vld [vmem:[#allocation81_spill] sm:$0xff] }
 0x30b   :  { %v3937_v23 = vsel %vm3611_vm5, %v3935_v14, %v3936_v15  ;;  %v3940_v19 = vsel %vm3611_vm5, %v3938_v35, %v3939_v36  ;;  %v3943_v8 = vsel %vm3611_vm5, %v3941_v61, %v3942_v7  ;;  %v3946_v58 = vsel %vm3611_vm5, %v3944_v43, %v3945_v45  ;;  %v12231_v25 = vld [vmem:[#allocation140_spill] sm:$0xff]  ;;  %v12235_v35 = vld [vmem:[#allocation77_spill] sm:$0xff]  ;;  %v12237_v61 = vld [vmem:[#allocation79_spill] sm:$0xff] }
 0x30c   :  { %v3949_v31 = vsel %vm3611_vm5, %v3947_v57, %v3948_v40  ;;  %v10550_v52 = vadd.f32 %v3910_v27, %v10412_v55  ;;  %v10553_v42 = vadd.f32 %v3913_v32, %v10415_v39  ;;  %v10556_v24 = vadd.f32 %v3916_v50, %v10422_v10  ;;  %v5075_v55 = vld [vmem:[%s11160_s4 + $0x8] sm:$0xff]  ;;  %v12225_v27 = vld [vmem:[#allocation139_spill] sm:$0xff]  ;;  %v12234_v14 = vld [vmem:[#allocation76_spill] sm:$0xff] }
 0x30d   :  { %v3952_v4 = vsel %vm3611_vm5, %v3950_v33, %v3951_v54  ;;  %v10560_v59 = vadd.f32 %v3919_v38, %v10425_v28  ;;  %v10563_v53 = vadd.f32 %v3922_v11, %v10428_v37  ;;  %v3991_v20 = vrot.slane %v5075_v55, %v12225_v27  ;;  %4916 = vmatpush3.bf16.msra.mxu0 %v4913_v47  ;;  %v12238_v43 = vld [vmem:[#allocation80_spill] sm:$0xff]  ;;  %v4453_v50 = vld [vmem:[%s11161_s5 + $0x40] sm:$0xff]  ;;  %v12240_v38 = vld [vmem:[#allocation82_spill] sm:$0xff] }
 0x30e   :  { %v10570_v39 = vadd.f32 %v3925_v18, %v10431_v3  ;;  %v10573_v10 = vadd.f32 %v3928_v49, %v10434_v13  ;;  %v10576_v32 = vadd.f32 %v3929_v12, %v10437_v60  ;;  %4918 = vmatprep.subr.bf16.mxu0 %v4917_v41  ;;  %v4921_v28 = vpack.c.bf16 %v4452_v34, %v4451_v63  ;;  %v12241_v40 = vld [vmem:[#allocation83_spill] sm:$0xff]  ;;  %v12242_v18 = vld [vmem:[#allocation84_spill] sm:$0xff]  ;;  %v12243_v54 = vld [vmem:[#allocation85_spill] sm:$0xff] }
 0x30f   :  { %v10579_v37 = vadd.f32 %v3934_v62, %v10440_v29  ;;  %v10582_v21 = vadd.f32 %v3937_v23, %v10443_v44  ;;  %v10585_v9 = vadd.f32 %v3940_v19, %v10446_v5  ;;  %v10588_v3 = vadd.f32 %v3943_v8, %v10449_v17  ;;  %4931 = vmatpush3.bf16.msra.mxu1 %v4913_v47  ;;  %v12229_v5 = vld [vmem:[#allocation72_spill] sm:$0xff]  ;;  %v12230_v17 = vld [vmem:[#allocation73_spill] sm:$0xff]  ;;  %v12246_v8 = vld [vmem:[#allocation90_spill] sm:$0xff] }
 0x310   :  { %v10591_v13 = vadd.f32 %v3946_v58, %v10452_v22  ;;  %v10594_v60 = vadd.f32 %v3949_v31, %v10455_v46  ;;  %v10597_v6 = vadd.f32 %v3952_v4, %v10458_v0  ;;  %v10600_v29 = vadd.f32 %v3929_v12, %v10461_v51  ;;  %4927 = vmatprep.subr.bf16.mxu1 %v4917_v41  ;;  %v5076_v22 = vld [vmem:[%s11160_s4 + $0x10] sm:$0xff]  ;;  %v12232_v0 = vld [vmem:[#allocation74_spill] sm:$0xff]  ;;  %v12244_v12 = vld [vmem:[#allocation88_spill] sm:$0xff] }
 0x311   :  { %v10602_v44 = vmul.f32 0.0, %v3991_v20  ;;  %v3994_v56 = vmul.f32 %v3991_v20, %v12229_v5  ;;  %v3995_v26 = vmul.f32 %v3991_v20, %v12230_v17  ;;  %v10610_v46 = vrot.slane %v5076_v22, %v12231_v25  ;;  %4920 = vmatpush3.bf16.msra.mxu0 %v4917_v41  ;;  %v12233_v51 = vld [vmem:[#allocation75_spill] sm:$0xff]  ;;  %v12245_v23 = vld [vmem:[#allocation89_spill] sm:$0xff]  ;;  %v12248_v31 = vld [vmem:[#allocation92_spill] sm:$0xff] }
 0x312   :  { %12226 = vst [vmem:[#allocation17_spill] sm:$0xff] %v10594_v60  ;;  %12227 = vst [vmem:[#allocation48_spill] sm:$0xff] %v10597_v6  ;;  %v10613_v16 = vmul.f32 %v3991_v20, %v12232_v0  ;;  %v10616_v2 = vmul.f32 %v3991_v20, %v12233_v51  ;;  %v10619_v15 = vmul.f32 %v3991_v20, %v12234_v14  ;;  %4922 = vmatprep.subr.bf16.mxu0 %v4921_v28  ;;  %v12247_v63 = vld [vmem:[#allocation91_spill] sm:$0xff]  ;;  %v12249_v4 = vld [vmem:[#allocation93_spill] sm:$0xff] }
 0x313   :  { %12228 = vst [vmem:[#allocation141_spill] sm:$0xff] %v10600_v29  ;;  %v3999_v36 = vmul.f32 %v3991_v20, %v12235_v35  ;;  %v10623_v47 = vmul.f32 %v3991_v20, %v12236_v30  ;;  %v4001_v7 = vmul.f32 %v3991_v20, %v12237_v61  ;;  %v4002_v45 = vmul.f32 %v3991_v20, %v12238_v43  ;;  %v12250_v25 = vld [vmem:[#allocation94_spill] sm:$0xff]  ;;  %v12251_v6 = vld [vmem:[#allocation95_spill] sm:$0xff]  ;;  %v12256_v43 = vld [vmem:[#allocation100_spill] sm:$0xff] }
 0x314   :  { %v4003_v48 = vmul.f32 %v3991_v20, %v12239_v1  ;;  %4932 = vmatpush3.bf16.msra.mxu1 %v4917_v41  ;;  %v4004_v57 = vmul.f32 %v3991_v20, %v12240_v38  ;;  %v4005_v11 = vmul.f32 %v3991_v20, %v12241_v40  ;;  %v4006_v33 = vmul.f32 %v3991_v20, %v12242_v18  ;;  %v12252_v18 = vld [vmem:[#allocation96_spill] sm:$0xff]  ;;  %v12253_v40 = vld [vmem:[#allocation97_spill] sm:$0xff] }
 0x315   :  { %v4007_v49 = vmul.f32 %v3991_v20, %v12243_v54  ;;  %4928 = vmatprep.subr.bf16.mxu1 %v4921_v28  ;;  %v4010_v62 = vmul.f32 %v3991_v20, %v12244_v12  ;;  %v4011_v19 = vmul.f32 %v3991_v20, %v12245_v23  ;;  %v4012_v58 = vmul.f32 %v3991_v20, %v12246_v8  ;;  %v12254_v8 = vld [vmem:[#allocation98_spill] sm:$0xff]  ;;  %v12257_v61 = vld [vmem:[#allocation101_spill] sm:$0xff] }
 0x316   :  { %v4013_v34 = vmul.f32 %v3991_v20, %v12247_v63  ;;  %4924 = vmatpush3.bf16.msra.mxu0 %v4921_v28  ;;  %v4014_v41 = vmul.f32 %v3991_v20, %v12248_v31  ;;  %v4015_v55 = vmul.f32 %v3991_v20, %v12249_v4  ;;  %v4059_v27 = vrot.slane %v3994_v56, 2  ;;  %v12255_v63 = vld [vmem:[#allocation99_spill] sm:$0xff] }
 0x317   :  { %v4060_v22 = vrot.slane %v3995_v26, 2  ;;  %4883 = vmatprep.subr.mxu0 %v4453_v50  ;;  %v4016_v29 = vmul.f32 %v3991_v20, %v12250_v25  ;;  %v4017_v54 = vmul.f32 %v3991_v20, %v12251_v6  ;;  %v4018_v12 = vmul.f32 %v3991_v20, %v12252_v18 }
 0x318   :  { %v4019_v23 = vmul.f32 %v3991_v20, %v12253_v40  ;;  %4933 = vmatpush3.bf16.msra.mxu1 %v4921_v28  ;;  %v4020_v38 = vmul.f32 %v3991_v20, %v12254_v8  ;;  %v4021_v1 = vmul.f32 %v3991_v20, %v12255_v63  ;;  %v4022_v31 = vmul.f32 %v3991_v20, %v12256_v43 }
 0x319   :  { %v4023_v4 = vmul.f32 %v3991_v20, %v12257_v61  ;;  %4929 = vmatprep.subr.mxu1 %v4453_v50  ;;  %v4056_v56 = vrot.slane %v10602_v44, 2  ;;  %v4062_v26 = vrot.slane %v10613_v16, 2  ;;  %v4063_v6 = vrot.slane %v10616_v2, 2 }
 0x31a   :  { %v4065_v18 = vrot.slane %v10619_v15, 2  ;;  %4884 = vmatpush3.msra.mxu0 %v4453_v50  ;;  %v4061_v28 = vsel %vm3611_vm5, %v4059_v27, %v4060_v22  ;;  %v4066_v40 = vrot.slane %v3999_v36, 2  ;;  %v4068_v8 = vrot.slane %v10623_v47, 2 }
 0x31b   :  { %v4069_v63 = vrot.slane %v4001_v7, 2  ;;  %v4071_v25 = vrot.slane %v4002_v45, 2  ;;  %v4072_v43 = vrot.slane %v4003_v48, 2  ;;  %v4074_v30 = vrot.slane %v4004_v57, 2 }
 0x31c   :  { %v4075_v20 = vrot.slane %v4005_v11, 2  ;;  %4934 = vmatpush3.msra.mxu1 %v4453_v50  ;;  %v4077_v61 = vrot.slane %v4006_v33, 2  ;;  %v4078_v44 = vrot.slane %v4007_v49, 2  ;;  %v4083_v60 = vrot.slane %v4010_v62, 2 }
 0x31d   :  { %v4084_v16 = vrot.slane %v4011_v19, 2  ;;  %v4086_v35 = vrot.slane %v4012_v58, 2  ;;  %v4087_v2 = vrot.slane %v4013_v34, 2  ;;  %v4089_v14 = vrot.slane %v4014_v41, 2  ;;  %v12263_v58 = vld [vmem:[#allocation78_spill] sm:$0xff]  ;;  %v12265_v34 = vld [vmem:[#allocation80_spill] sm:$0xff] }
 0x31e   :  { %v4090_v15 = vrot.slane %v4015_v55, 2  ;;  %v4092_v51 = vrot.slane %v4016_v29, 2  ;;  %v4093_v0 = vrot.slane %v4017_v54, 2  ;;  %v4095_v27 = vrot.slane %v4018_v12, 2  ;;  %v12266_v41 = vld [vmem:[#allocation81_spill] sm:$0xff]  ;;  %v12267_v55 = vld [vmem:[#allocation82_spill] sm:$0xff] }
 0x31f   :  { %v4096_v36 = vrot.slane %v4019_v23, 2  ;;  %v4064_v47 = vsel %vm3611_vm5, %v4062_v26, %v4063_v6  ;;  %v4067_v7 = vsel %vm3611_vm5, %v4065_v18, %v4066_v40  ;;  %v4098_v45 = vrot.slane %v4020_v38, 2  ;;  %v12269_v26 = vld [vmem:[#allocation84_spill] sm:$0xff] }
 0x320   :  { %v4099_v48 = vrot.slane %v4021_v1, 2  ;;  %v4070_v50 = vsel %vm3611_vm5, %v4068_v8, %v4069_v63  ;;  %v4073_v57 = vsel %vm3611_vm5, %v4071_v25, %v4072_v43  ;;  %v4101_v11 = vrot.slane %v4022_v31, 2  ;;  %v12264_v63 = vld [vmem:[#allocation79_spill] sm:$0xff] }
 0x321   :  { %v4102_v33 = vrot.slane %v4023_v4, 2  ;;  %v4076_v49 = vsel %vm3611_vm5, %v4074_v30, %v4075_v20  ;;  %v4079_v62 = vsel %vm3611_vm5, %v4077_v61, %v4078_v44  ;;  %v4085_v29 = vsel %vm3611_vm5, %v4083_v60, %v4084_v16  ;;  %v12268_v25 = vld [vmem:[#allocation83_spill] sm:$0xff]  ;;  %v12270_v20 = vld [vmem:[#allocation85_spill] sm:$0xff]  ;;  %v12271_v16 = vld [vmem:[#allocation86_spill] sm:$0xff] }
 0x322   :  { %v4088_v54 = vsel %vm3611_vm5, %v4086_v35, %v4087_v2  ;;  %v4091_v6 = vsel %vm3611_vm5, %v4089_v14, %v4090_v15  ;;  %v4094_v40 = vsel %vm3611_vm5, %v4092_v51, %v4093_v0  ;;  %v4097_v1 = vsel %vm3611_vm5, %v4095_v27, %v4096_v36 }
 0x323   :  { %v4120_v38 = vadd.f32 %v4056_v56, %v10550_v52  ;;  %v10668_v43 = vsel %vm3611_vm5, %v4098_v45, %v4099_v48  ;;  %v4121_v18 = vadd.f32 %v4061_v28, %v10553_v42  ;;  %v4122_v30 = vadd.f32 %v4064_v47, %v10556_v24  ;;  %v12272_v48 = vld [vmem:[#allocation87_spill] sm:$0xff] }
 0x324   :  { %v10673_v61 = vadd.f32 %v4067_v7, %v10560_v59  ;;  %v10676_v60 = vsel %vm3611_vm5, %v4101_v11, %v4102_v33  ;;  %v10679_v14 = vadd.f32 %v4070_v50, %v10563_v53  ;;  %v10682_v0 = vadd.f32 %v4073_v57, %v10570_v39  ;;  %v12273_v57 = vld [vmem:[#allocation88_spill] sm:$0xff]  ;;  %v12274_v33 = vld [vmem:[#allocation89_spill] sm:$0xff] }
 0x325   :  { %v10685_v52 = vadd.f32 %v4076_v49, %v10573_v10  ;;  %v10688_v51 = vadd.f32 %v4079_v62, %v10576_v32  ;;  %v10691_v42 = vadd.f32 %v4056_v56, %v10579_v37  ;;  %v10694_v24 = vadd.f32 %v4085_v29, %v10582_v21  ;;  %v12258_v37 = vld [vmem:[#allocation74_spill] sm:$0xff]  ;;  %v12259_v21 = vld [vmem:[#allocation75_spill] sm:$0xff] }
 0x326   :  { %v10697_v59 = vadd.f32 %v4088_v54, %v10585_v9  ;;  %v10700_v53 = vadd.f32 %v4091_v6, %v10588_v3  ;;  %v10703_v39 = vadd.f32 %v4094_v40, %v10591_v13  ;;  %v4140_v10 = vmul.f32 %v10610_v46, %v12229_v5  ;;  %v12260_v9 = vld [vmem:[#allocation76_spill] sm:$0xff]  ;;  %v12261_v3 = vld [vmem:[#allocation77_spill] sm:$0xff]  ;;  %v12275_v62 = vld [vmem:[#allocation90_spill] sm:$0xff] }
 0x327   :  { %v4141_v32 = vmul.f32 %v10610_v46, %v12230_v17  ;;  %v4142_v35 = vmul.f32 %v10610_v46, %v12258_v37  ;;  %v4143_v12 = vmul.f32 %v10610_v46, %v12259_v21  ;;  %v4144_v23 = vmul.f32 %v10610_v46, %v12260_v9  ;;  %v12262_v13 = vld [vmem:[#allocation17_spill] sm:$0xff]  ;;  %v12276_v54 = vld [vmem:[#allocation91_spill] sm:$0xff]  ;;  %v12277_v40 = vld [vmem:[#allocation92_spill] sm:$0xff] }
 0x328   :  { %v4145_v19 = vmul.f32 %v10610_v46, %v12261_v3  ;;  %v10718_v8 = vadd.f32 %v4097_v1, %v12262_v13  ;;  %v4146_v5 = vmul.f32 %v10610_v46, %v12263_v58  ;;  %v4147_v17 = vmul.f32 %v10610_v46, %v12264_v63  ;;  %v12278_v37 = vld [vmem:[#allocation93_spill] sm:$0xff]  ;;  %v12279_v21 = vld [vmem:[#allocation94_spill] sm:$0xff]  ;;  %v12280_v9 = vld [vmem:[#allocation95_spill] sm:$0xff] }
 0x329   :  { %v4148_v31 = vmul.f32 %v10610_v46, %v12265_v34  ;;  %v4149_v4 = vmul.f32 %v10610_v46, %v12266_v41  ;;  %v4150_v22 = vmul.f32 %v10610_v46, %v12267_v55  ;;  %v4151_v56 = vmul.f32 %v10610_v46, %v12268_v25  ;;  %v12281_v63 = vld [vmem:[#allocation96_spill] sm:$0xff]  ;;  %v12282_v34 = vld [vmem:[#allocation97_spill] sm:$0xff] }
 0x32a   :  { %v4152_v28 = vmul.f32 %v10610_v46, %v12269_v26  ;;  %v4153_v44 = vmul.f32 %v10610_v46, %v12270_v20  ;;  %v4154_v2 = vmul.f32 %v10610_v46, %v12271_v16  ;;  %v4204_v15 = vrot.slane %v4140_v10, 2  ;;  %v12283_v26 = vld [vmem:[#allocation98_spill] sm:$0xff]  ;;  %v12284_v16 = vld [vmem:[#allocation99_spill] sm:$0xff] }
 0x32b   :  { %v4205_v27 = vrot.slane %v4141_v32, 2  ;;  %v4207_v36 = vrot.slane %v4142_v35, 2  ;;  %v4208_v47 = vrot.slane %v4143_v12, 2  ;;  %v4210_v7 = vrot.slane %v4144_v23, 2 }
 0x32c   :  { %v4211_v45 = vrot.slane %v4145_v19, 2  ;;  %v4155_v50 = vmul.f32 %v10610_v46, %v12272_v48  ;;  %v4156_v11 = vmul.f32 %v10610_v46, %v12273_v57  ;;  %v4157_v49 = vmul.f32 %v10610_v46, %v12274_v33 }
 0x32d   :  { %v4158_v29 = vmul.f32 %v10610_v46, %v12275_v62  ;;  %v4159_v6 = vmul.f32 %v10610_v46, %v12276_v54  ;;  %v4160_v1 = vmul.f32 %v10610_v46, %v12277_v40  ;;  %v4213_v10 = vrot.slane %v4146_v5, 2 }
 0x32e   :  { %v4214_v32 = vrot.slane %v4147_v17, 2  ;;  %v4161_v35 = vmul.f32 %v10610_v46, %v12278_v37  ;;  %v10754_v12 = vmul.f32 %v10610_v46, %v12279_v21  ;;  %v10758_v23 = vmul.f32 %v10610_v46, %v12280_v9 }
 0x32f   :  { %v4206_v3 = vsel %vm3611_vm5, %v4204_v15, %v4205_v27  ;;  %v4209_v19 = vsel %vm3611_vm5, %v4207_v36, %v4208_v47  ;;  %v4212_v13 = vsel %vm3611_vm5, %v4210_v7, %v4211_v45  ;;  %v4216_v58 = vrot.slane %v4148_v31, 2  ;;  %v12285_v31 = vld [vmem:[#allocation100_spill] sm:$0xff]  ;;  %v12286_v36 = vld [vmem:[#allocation101_spill] sm:$0xff]  ;;  %v12287_v45 = vld [vmem:[#allocation102_spill] sm:$0xff] }
 0x330   :  { %v4217_v5 = vrot.slane %v4149_v4, 2  ;;  %v10765_v17 = vmul.f32 %v10610_v46, %v12281_v63  ;;  %v10769_v41 = vmul.f32 %v10610_v46, %v12282_v34  ;;  %v4219_v55 = vrot.slane %v4150_v22, 2 }
 0x331   :  { %v4220_v25 = vrot.slane %v4151_v56, 2  ;;  %v10773_v20 = vmul.f32 %v10610_v46, %v12283_v26  ;;  %v10777_v15 = vmul.f32 %v10610_v46, %v12284_v16  ;;  %v10781_v4 = vmul.f32 %v10610_v46, %v12285_v31 }
 0x332   :  { %v4215_v27 = vsel %vm3611_vm5, %v4213_v10, %v4214_v32  ;;  %v10786_v47 = vmul.f32 %v10610_v46, %v12286_v36  ;;  %v10788_v22 = vadd.f32 %v4206_v3, %v4120_v38  ;;  %v10790_v56 = vadd.f32 %v4209_v19, %v4121_v18 }
 0x333   :  { %v10792_v7 = vadd.f32 %v4212_v13, %v4122_v30  ;;  %v10796_v48 = vmul.f32 %v10610_v46, %v12287_v45  ;;  %v4218_v57 = vsel %vm3611_vm5, %v4216_v58, %v4217_v5  ;;  %v4222_v33 = vrot.slane %v4152_v28, 2 }
 0x334   :  { %v4223_v62 = vrot.slane %v4153_v44, 2  ;;  %v4221_v54 = vsel %vm3611_vm5, %v4219_v55, %v4220_v25  ;;  %v4225_v40 = vrot.slane %v4154_v2, 2  ;;  %v4226_v10 = vrot.slane %v4155_v50, 2  ;;  %v12288_v2 = vld [vmem:[#allocation103_spill] sm:$0xff] }
 0x335   :  { %v10801_v32 = vadd.f32 %v4215_v27, %v10673_v61  ;;  %v4228_v38 = vrot.slane %v4156_v11, 2  ;;  %v4229_v18 = vrot.slane %v4157_v49, 2  ;;  %v4231_v37 = vrot.slane %v4158_v29, 2 }
 0x336   :  { %v4232_v30 = vrot.slane %v4159_v6, 2  ;;  %v10804_v21 = vadd.f32 %v4218_v57, %v10679_v14  ;;  %v4284_v9 = vsel %vm202_vm0, %v10788_v22, 0.0  ;;  %v4285_v28 = vsel %vm202_vm0, %v10790_v56, 0.0 }
 0x337   :  { %v4287_v44 = vsel %vm202_vm0, %v10792_v7, 0.0  ;;  %v10814_v61 = vmul.f32 %v10610_v46, %v12288_v2  ;;  %v4224_v50 = vsel %vm3611_vm5, %v4222_v33, %v4223_v62  ;;  %v4234_v11 = vrot.slane %v4160_v1, 2 }
 0x338   :  { %v4286_v49 = vadd.f32 %v4285_v28, %v4284_v9  ;;  %v4227_v14 = vsel %vm3611_vm5, %v4225_v40, %v4226_v10  ;;  %v4235_v29 = vrot.slane %v4161_v35, 2  ;;  %v10819_v6 = vadd.f32 %v4221_v54, %v10682_v0 }
 0x339   :  { %v4289_v3 = vsel %vm202_vm0, %v10801_v32, 0.0  ;;  %v4230_v19 = vsel %vm3611_vm5, %v4228_v38, %v4229_v18  ;;  %v4233_v13 = vsel %vm3611_vm5, %v4231_v37, %v4232_v30  ;;  %v4237_v46 = vrot.slane %v10754_v12, 2 }
 0x33a   :  { %v4288_v58 = vadd.f32 %v4287_v44, %v4286_v49  ;;  %v4238_v5 = vrot.slane %v10758_v23, 2  ;;  %v4240_v1 = vrot.slane %v10765_v17, 2  ;;  %v10829_v63 = vadd.f32 %v4224_v50, %v10685_v52 }
 0x33b   :  { %v4291_v0 = vsel %vm202_vm0, %v10804_v21, 0.0  ;;  %v4321_v34 = vmul.f32 %v10788_v22, %v10788_v22  ;;  %v4322_v55 = vmul.f32 %v10790_v56, %v10790_v56  ;;  %v4323_v12 = vmul.f32 %v10792_v7, %v10792_v7 }
 0x33c   :  { %v4290_v35 = vadd.f32 %v4289_v3, %v4288_v58  ;;  %v4236_v23 = vsel %vm3611_vm5, %v4234_v11, %v4235_v29  ;;  %v4241_v17 = vrot.slane %v10769_v41, 2  ;;  %v10842_v52 = vadd.f32 %v4227_v14, %v10688_v51 }
 0x33d   :  { %v4293_v25 = vsel %vm202_vm0, %v10819_v6, 0.0  ;;  %v4243_v26 = vrot.slane %v10773_v20, 2  ;;  %v4244_v16 = vrot.slane %v10777_v15, 2  ;;  %v4324_v27 = vmul.f32 %v10801_v32, %v10801_v32 }
 0x33e   :  { %v4292_v31 = vadd.f32 %v4291_v0, %v4290_v35  ;;  %v4246_v36 = vrot.slane %v10781_v4, 2  ;;  %v10852_v45 = vadd.f32 %v4230_v19, %v10691_v42  ;;  %v4295_v51 = vsel %vm202_vm0, %v10829_v63, 0.0  ;;  %v12289_v19 = vld [vmem:[#allocation48_spill] sm:$0xff]  ;;  %v12290_v35 = vld [vmem:[#allocation141_spill] sm:$0xff] }
 0x33f   :  { %v4325_v41 = vmul.f32 %v10804_v21, %v10804_v21  ;;  %v4337_v20 = vsel %vm202_vm0, %v4321_v34, 0.0  ;;  %v4338_v15 = vsel %vm202_vm0, %v4322_v55, 0.0  ;;  %v4340_v33 = vsel %vm202_vm0, %v4323_v12, 0.0 }
 0x340   :  { %v4294_v57 = vadd.f32 %v4293_v25, %v4292_v31  ;;  %v4239_v62 = vsel %vm3611_vm5, %v4237_v46, %v4238_v5  ;;  %v10863_v4 = vadd.f32 %v4233_v13, %v10694_v24  ;;  %v4297_v42 = vsel %vm202_vm0, %v10842_v52, 0.0 }
 0x341   :  { %v4339_v54 = vadd.f32 %v4338_v15, %v4337_v20  ;;  %v4242_v40 = vsel %vm3611_vm5, %v4240_v1, %v4241_v17  ;;  %v4326_v38 = vmul.f32 %v10819_v6, %v10819_v6  ;;  %v4342_v18 = vsel %vm202_vm0, %v4324_v27, 0.0 }
 0x342   :  { %v4296_v10 = vadd.f32 %v4295_v51, %v4294_v57  ;;  %v4247_v37 = vrot.slane %v10786_v47, 2  ;;  %v10873_v30 = vadd.f32 %v4236_v23, %v10697_v59  ;;  %v4299_v24 = vsel %vm202_vm0, %v10852_v45, 0.0 }
 0x343   :  { %v4341_v9 = vadd.f32 %v4340_v33, %v4339_v54  ;;  %v4249_v28 = vrot.slane %v10796_v48, 2  ;;  %v4327_v2 = vmul.f32 %v10829_v63, %v10829_v63  ;;  %v4344_v50 = vsel %vm202_vm0, %v4325_v41, 0.0 }
 0x344   :  { %v4298_v44 = vadd.f32 %v4297_v42, %v4296_v10  ;;  %v4245_v11 = vsel %vm3611_vm5, %v4243_v26, %v4244_v16  ;;  %v10883_v49 = vadd.f32 %v4239_v62, %v10700_v53  ;;  %v4301_v59 = vsel %vm202_vm0, %v10863_v4, 0.0 }
 0x345   :  { %v4343_v47 = vadd.f32 %v4342_v18, %v4341_v9  ;;  %v4250_v14 = vrot.slane %v10814_v61, 2  ;;  %v4328_v48 = vmul.f32 %v10842_v52, %v10842_v52  ;;  %v4346_v3 = vsel %vm202_vm0, %v4326_v38, 0.0 }
 0x346   :  { %v4300_v29 = vadd.f32 %v4299_v24, %v4298_v44  ;;  %v4134_v13 = vadd.f32 %v10668_v43, %v12289_v19  ;;  %v10894_v46 = vadd.f32 %v4242_v40, %v10703_v39  ;;  %v4303_v53 = vsel %vm202_vm0, %v10873_v30, 0.0 }
 0x347   :  { %v4345_v58 = vadd.f32 %v4344_v50, %v4343_v47  ;;  %v4248_v5 = vsel %vm3611_vm5, %v4246_v36, %v4247_v37  ;;  %v4329_v61 = vmul.f32 %v10852_v45, %v10852_v45  ;;  %v4348_v0 = vsel %vm202_vm0, %v4327_v2, 0.0 }
 0x348   :  { %v4302_v1 = vadd.f32 %v4301_v59, %v4300_v29  ;;  %v4135_v34 = vadd.f32 %v10676_v60, %v12290_v35  ;;  %v10905_v43 = vadd.f32 %v4245_v11, %v10718_v8  ;;  %v4305_v39 = vsel %vm202_vm0, %v10883_v49, 0.0 }
 0x349   :  { %v4347_v55 = vadd.f32 %v4346_v3, %v4345_v58  ;;  %v4251_v12 = vsel %vm3611_vm5, %v4249_v28, %v4250_v14  ;;  %v4330_v17 = vmul.f32 %v10863_v4, %v10863_v4  ;;  %v4350_v25 = vsel %vm202_vm0, %v4328_v48, 0.0 }
 0x34a   :  { %v4304_v23 = vadd.f32 %v4303_v53, %v4302_v1  ;;  %v10913_v26 = vadd.f32 %v4248_v5, %v4134_v13  ;;  %v4307_v60 = vsel %vm202_vm0, %v10894_v46, 0.0  ;;  %v4331_v31 = vmul.f32 %v10873_v30, %v10873_v30 }
 0x34b   :  { %v4349_v16 = vadd.f32 %v4348_v0, %v4347_v55  ;;  %v4352_v27 = vsel %vm202_vm0, %v4329_v61, 0.0  ;;  %v10920_v36 = vadd.f32 %v4251_v12, %v4135_v34  ;;  %v4309_v51 = vsel %vm202_vm0, %v10905_v43, 0.0 }
 0x34c   :  { %v4306_v8 = vadd.f32 %v4305_v39, %v4304_v23  ;;  %v4332_v20 = vmul.f32 %v10883_v49, %v10883_v49  ;;  %v4354_v15 = vsel %vm202_vm0, %v4330_v17, 0.0  ;;  %v4311_v33 = vsel %vm202_vm0, %v10913_v26, 0.0 }
 0x34d   :  { %v4351_v41 = vadd.f32 %v4350_v25, %v4349_v16  ;;  %v4333_v54 = vmul.f32 %v10894_v46, %v10894_v46  ;;  %v4356_v40 = vsel %vm202_vm0, %v4331_v31, 0.0  ;;  %v4313_v10 = vsel %vm202_vm0, %v10920_v36, 0.0 }
 0x34e   :  { %v4308_v57 = vadd.f32 %v4307_v60, %v4306_v8  ;;  %v4334_v37 = vmul.f32 %v10905_v43, %v10905_v43  ;;  %v4358_v24 = vsel %vm202_vm0, %v4332_v20, 0.0  ;;  %v4335_v44 = vmul.f32 %v10913_v26, %v10913_v26  ;;  %v4378_v8 = vld [vmem:[%s11164_s8] sm:$0x1] }
 0x34f   :  { %v4353_v62 = vadd.f32 %v4352_v27, %v4351_v41  ;;  %v4360_v2 = vsel %vm202_vm0, %v4333_v54, 0.0  ;;  %v4336_v59 = vmul.f32 %v10920_v36, %v10920_v36 }
 0x350   :  { %v4310_v42 = vadd.f32 %v4309_v51, %v4308_v57  ;;  %v4362_v47 = vsel %vm202_vm0, %v4334_v37, 0.0  ;;  %v4364_v48 = vsel %vm202_vm0, %v4335_v44, 0.0  ;;  %v4382_v51 = vld [vmem:[%s11165_s9] sm:$0x1]  ;;  %v12291_v57 = vld [vmem:[#allocation47_spill] sm:$0xff] }
 0x351   :  { %v4355_v38 = vadd.f32 %v4354_v15, %v4353_v62  ;;  %v4366_v13 = vsel %vm202_vm0, %v4336_v59, 0.0 }
 0x352   :  { %v4312_v18 = vadd.f32 %v4311_v33, %v4310_v42 }
 0x353   :  { %v4357_v9 = vadd.f32 %v4356_v40, %v4355_v38 }
 0x354   :  { %v4314_v28 = vadd.f32 %v4313_v10, %v4312_v18 }
 0x355   :  { %v4359_v50 = vadd.f32 %v4358_v24, %v4357_v9 }
 0x356   :  { %v4315_v11 = vrot.slane %v4314_v28, 4 }
 0x357   :  { %v4361_v14 = vadd.f32 %v4360_v2, %v4359_v50 }
 0x358   :  { %v4316_v29 = vadd.f32 %v4315_v11, %v4314_v28 }
 0x359   :  { %v4363_v3 = vadd.f32 %v4362_v47, %v4361_v14 }
 0x35a   :  { %v4317_v19 = vrot.slane %v4316_v29, 2 }
 0x35b   :  { %v4365_v53 = vadd.f32 %v4364_v48, %v4363_v3 }
 0x35c   :  { %v4318_v58 = vadd.f32 %v4317_v19, %v4316_v29 }
 0x35d   :  { %v4367_v5 = vadd.f32 %v4366_v13, %v4365_v53 }
 0x35e   :  { %v4319_v1 = vrot.slane %v4318_v58, 1 }
 0x35f   :  { %v4368_v61 = vrot.slane %v4367_v5, 4 }
 0x360   :  { %v4320_v0 = vadd.f32 %v4319_v1, %v4318_v58 }
 0x361   :  { %v4369_v35 = vadd.f32 %v4368_v61, %v4367_v5 }
 0x362   :  { %v4374_v55 = vmul.f32 0.0078125, %v4320_v0 }
 0x363   :  { %v4370_v34 = vrot.slane %v4369_v35, 2 }
 0x364   :  { %v4376_v17 = vmul.f32 %v4374_v55, %v4374_v55 }
 0x365   :  { %v4371_v39 = vadd.f32 %v4370_v34, %v4369_v35 }
 0x367   :  { %v4372_v12 = vrot.slane %v4371_v39, 1 }
 0x369   :  { %v4373_v23 = vadd.f32 %v4372_v12, %v4371_v39 }
 0x36b   :  { %v4375_v25 = vmul.f32 0.0078125, %v4373_v23 }
 0x36d   :  { %v4377_v60 = vsub.f32 %v4375_v25, %v4376_v17 }
 0x36f   :  { %v4379_v16 = vadd.f32 1e-05, %v4377_v60 }
 0x371   :  { %4940 = vrsqrt.f32 %v4379_v16 }
 0x37b   :  { %v4941_v31 = vpop.eup %4940 }
 0x37c   :  { %v4381_v27 = vmul.f32 %v4941_v31, %v4378_v8 }
 0x37e   :  { %v4383_v41 = vmul.f32 %v4381_v27, %v4374_v55  ;;  %v4389_v20 = vrot.slane %v4381_v27, %v12291_v57 }
 0x380   :  { %v4384_v15 = vsub.f32 %v4382_v51, %v4383_v41  ;;  %v4391_v33 = vmul.f32 %v4389_v20, %v10788_v22  ;;  %v4392_v62 = vmul.f32 %v4389_v20, %v10790_v56  ;;  %v4393_v42 = vmul.f32 %v4389_v20, %v10792_v7 }
 0x381   :  { %v4399_v54 = vmul.f32 %v4389_v20, %v10852_v45  ;;  %v4400_v40 = vmul.f32 %v4389_v20, %v10863_v4  ;;  %v4401_v10 = vmul.f32 %v4389_v20, %v10873_v30  ;;  %v4394_v18 = vmul.f32 %v4389_v20, %v10801_v32 }
 0x382   :  { %v4411_v38 = vrot.slane %v4384_v15, %v12291_v57  ;;  %v4395_v37 = vmul.f32 %v4389_v20, %v10804_v21  ;;  %v4402_v22 = vmul.f32 %v4389_v20, %v10883_v49  ;;  %v4403_v56 = vmul.f32 %v4389_v20, %v10894_v46 }
 0x383   :  { %v4396_v4 = vmul.f32 %v4389_v20, %v10819_v6  ;;  %v4397_v30 = vmul.f32 %v4389_v20, %v10829_v63  ;;  %v4404_v21 = vmul.f32 %v4389_v20, %v10905_v43  ;;  %v4405_v47 = vmul.f32 %v4389_v20, %v10913_v26 }
 0x384   :  { %v4413_v24 = vadd.f32 %v4411_v38, %v4391_v33  ;;  %v4414_v9 = vadd.f32 %v4411_v38, %v4392_v62  ;;  %v4415_v28 = vadd.f32 %v4411_v38, %v4393_v42  ;;  %v4421_v7 = vadd.f32 %v4411_v38, %v4399_v54 }
 0x385   :  { %v4422_v44 = vadd.f32 %v4411_v38, %v4400_v40  ;;  %v4423_v45 = vadd.f32 %v4411_v38, %v4401_v10  ;;  %v4416_v2 = vadd.f32 %v4411_v38, %v4394_v18  ;;  %v4417_v50 = vadd.f32 %v4411_v38, %v4395_v37 }
 0x386   :  { %v4429_v11 = vmax.f32 %v4413_v24, 0.0  ;;  %v4430_v32 = vmax.f32 %v4414_v9, 0.0  ;;  %v4431_v59 = vmax.f32 %v4415_v28, 0.0  ;;  %v4424_v14 = vadd.f32 %v4411_v38, %v4402_v22 }
 0x387   :  { %v4425_v49 = vadd.f32 %v4411_v38, %v4403_v56  ;;  %v4437_v29 = vmax.f32 %v4421_v7, 0.0  ;;  %v4438_v46 = vmax.f32 %v4422_v44, 0.0  ;;  %v4439_v48 = vmax.f32 %v4423_v45, 0.0 }
 0x388   :  { %4885 = vmatprep.mubr.msk.f32.mxu0 %vm202_vm0, %v4429_v11  ;;  %v4398_v6 = vmul.f32 %v4389_v20, %v10842_v52  ;;  %v4418_v3 = vadd.f32 %v4411_v38, %v4396_v4  ;;  %v4432_v63 = vmax.f32 %v4416_v2, 0.0  ;;  %v4419_v19 = vadd.f32 %v4411_v38, %v4397_v30 }
 0x389   :  { %4886 = vmatmul.mubr.msk.f32.vlgmr.msra.gmra.mrb[0].mxu0 %vm202_vm0, %v4430_v32  ;;  %v4433_v13 = vmax.f32 %v4417_v50, 0.0  ;;  %4897 = vmatprep.mubr.msk.f32.mxu1 %vm202_vm0, %v4437_v29  ;;  %v4406_v43 = vmul.f32 %v4389_v20, %v10920_v36  ;;  %v4426_v26 = vadd.f32 %v4411_v38, %v4404_v21  ;;  %v4440_v53 = vmax.f32 %v4424_v14, 0.0 }
 0x38a   :  { %4888 = vmatprep.mubr.msk.f32.mxu0 %vm202_vm0, %v4431_v59  ;;  %4898 = vmatmul.mubr.msk.f32.vlgmr.msra.gmra.mrb[0].mxu1 %vm202_vm0, %v4438_v46  ;;  %v4427_v58 = vadd.f32 %v4411_v38, %v4405_v47  ;;  %v4441_v5 = vmax.f32 %v4425_v49, 0.0  ;;  %v4420_v52 = vadd.f32 %v4411_v38, %v4398_v6  ;;  %v4434_v1 = vmax.f32 %v4418_v3, 0.0 }
 0x38b   :  { %4900 = vmatprep.mubr.msk.f32.mxu1 %vm202_vm0, %v4439_v48  ;;  %v4435_v61 = vmax.f32 %v4419_v19, 0.0  ;;  %v4428_v0 = vadd.f32 %v4411_v38, %v4406_v43  ;;  %v4442_v35 = vmax.f32 %v4426_v26, 0.0 }
 0x38c   :  { %v4443_v36 = vmax.f32 %v4427_v58, 0.0  ;;  %v4436_v34 = vmax.f32 %v4420_v52, 0.0 }
 0x38d   :  { %4889 = vmatmul.mubr.msk.f32.gmra.mrb[2].mxu0 %vm202_vm0, %v4432_v63  ;;  %v4444_v39 = vmax.f32 %v4428_v0, 0.0 }
 0x38e   :  { %4891 = vmatprep.mubr.msk.f32.mxu0 %vm202_vm0, %v4433_v13  ;;  %4901 = vmatmul.mubr.msk.f32.gmra.mrb[2].mxu1 %vm202_vm0, %v4440_v53 }
 0x38f   :  { %4903 = vmatprep.mubr.msk.f32.mxu1 %vm202_vm0, %v4441_v5 }
 0x391   :  { %4892 = vmatmul.mubr.msk.f32.gmra.mrb[4].mxu0 %vm202_vm0, %v4434_v1 }
 0x392   :  { %4894 = vmatprep.mubr.msk.f32.mxu0 %vm202_vm0, %v4435_v61  ;;  %4904 = vmatmul.mubr.msk.f32.gmra.mrb[4].mxu1 %vm202_vm0, %v4442_v35 }
 0x393   :  { %4906 = vmatprep.mubr.msk.f32.mxu1 %vm202_vm0, %v4443_v36 }
 0x395   :  { %4895 = vmatmul.mubr.msk.f32.gmra.mrb[6].mxu0 %vm202_vm0, %v4436_v34 }
 0x396   :  { %4907 = vmatmul.mubr.msk.f32.gmra.mrb[6].mxu1 %vm202_vm0, %v4444_v39 }
 0x45c   :  { %v10985_v55 = vpop.f32.mrb[0].mxu0 }
 0x45d   :  { %v10987_v12 = vpop.f32.mrb[1].mxu0  ;;  %v4649_v23 = vsel %vm4647_vm6, %v10985_v55, 0.0  ;;  %v4686_v17 = vmul.f32 %v10985_v55, %v10985_v55  ;;  %v10993_v25 = vpop.f32.mrb[0].mxu1 }
 0x45e   :  { %v4648_v60 = vsel %vm4647_vm6, %v10987_v12, 0.0  ;;  %v4685_v16 = vmul.f32 %v10987_v12, %v10987_v12  ;;  %v10999_v8 = vpop.f32.mrb[1].mxu1  ;;  %v4694_v5 = vmul.f32 %v10993_v25, %v10993_v25  ;;  %v4665_v36 = vsel %vm4647_vm6, %v10993_v25, 0.0 }
 0x45f   :  { %v4650_v31 = vadd.f32 %v4649_v23, %v4648_v60  ;;  %v4702_v27 = vsel %vm4647_vm6, %v4686_v17, 0.0  ;;  %v4693_v47 = vmul.f32 %v10999_v8, %v10999_v8  ;;  %v4663_v43 = vsel %vm4647_vm6, %v10999_v8, 0.0 }
 0x460   :  { %v11002_v51 = vpop.f32.mrb[2].mxu0  ;;  %v4701_v41 = vsel %vm4647_vm6, %v4685_v16, 0.0  ;;  %v4718_v16 = vsel %vm4647_vm6, %v4694_v5, 0.0 }
 0x461   :  { %v11005_v20 = vpop.f32.mrb[3].mxu0  ;;  %v4703_v15 = vadd.f32 %v4702_v27, %v4701_v41  ;;  %v11007_v33 = vpop.f32.mrb[2].mxu1  ;;  %v4688_v54 = vmul.f32 %v11002_v51, %v11002_v51  ;;  %v4653_v18 = vsel %vm4647_vm6, %v11002_v51, 0.0  ;;  %v4716_v61 = vsel %vm4647_vm6, %v4693_v47, 0.0 }
 0x462   :  { %v4651_v62 = vsel %vm4647_vm6, %v11005_v20, 0.0  ;;  %v4687_v42 = vmul.f32 %v11005_v20, %v11005_v20  ;;  %v11015_v40 = vpop.f32.mrb[3].mxu1  ;;  %v4696_v17 = vmul.f32 %v11007_v33, %v11007_v33 }
 0x463   :  { %v4652_v10 = vadd.f32 %v4651_v62, %v4650_v31  ;;  %v4706_v45 = vsel %vm4647_vm6, %v4688_v54, 0.0  ;;  %v4695_v52 = vmul.f32 %v11015_v40, %v11015_v40  ;;  %v4667_v34 = vsel %vm4647_vm6, %v11015_v40, 0.0 }
 0x464   :  { %v11017_v38 = vpop.f32.mrb[4].mxu0  ;;  %v4704_v37 = vsel %vm4647_vm6, %v4687_v42, 0.0 }
 0x465   :  { %v11022_v24 = vpop.f32.mrb[5].mxu0  ;;  %v4654_v9 = vadd.f32 %v4653_v18, %v4652_v10  ;;  %v4705_v28 = vadd.f32 %v4704_v37, %v4703_v15  ;;  %v11024_v22 = vpop.f32.mrb[4].mxu1  ;;  %v4690_v44 = vmul.f32 %v11017_v38, %v11017_v38  ;;  %v4657_v11 = vsel %vm4647_vm6, %v11017_v38, 0.0 }
 0x466   :  { %v4655_v56 = vsel %vm4647_vm6, %v11022_v24, 0.0  ;;  %v4689_v7 = vmul.f32 %v11022_v24, %v11022_v24  ;;  %v11033_v4 = vpop.f32.mrb[5].mxu1  ;;  %v4720_v31 = vsel %vm4647_vm6, %v4695_v52, 0.0  ;;  %v4669_v15 = vsel %vm4647_vm6, %v11007_v33, 0.0 }
 0x467   :  { %v4656_v30 = vadd.f32 %v4655_v56, %v4654_v9  ;;  %v4707_v2 = vadd.f32 %v4706_v45, %v4705_v28  ;;  %v4710_v6 = vsel %vm4647_vm6, %v4690_v44, 0.0  ;;  %v4697_v60 = vmul.f32 %v11033_v4, %v11033_v4 }
 0x468   :  { %v11035_v50 = vpop.f32.mrb[6].mxu0  ;;  %v4708_v32 = vsel %vm4647_vm6, %v4689_v7, 0.0  ;;  %v4671_v62 = vsel %vm4647_vm6, %v11033_v4, 0.0  ;;  %v4698_v10 = vmul.f32 %v11024_v22, %v11024_v22  ;;  %v4722_v37 = vsel %vm4647_vm6, %v4696_v17, 0.0  ;;  %v4742_v17 = vld [vmem:[%s11166_s10] sm:$0x1] }
 0x469   :  { %v11040_v59 = vpop.f32.mrb[7].mxu0  ;;  %v4658_v21 = vadd.f32 %v4657_v11, %v4656_v30  ;;  %v4709_v14 = vadd.f32 %v4708_v32, %v4707_v2  ;;  %v11044_v49 = vpop.f32.mrb[6].mxu1  ;;  %v4692_v48 = vmul.f32 %v11035_v50, %v11035_v50  ;;  %v4661_v13 = vsel %vm4647_vm6, %v11035_v50, 0.0  ;;  %s5101_s10 = smov [#allocation2]  }
 0x46a   :  { %v4659_v29 = vsel %vm4647_vm6, %v11040_v59, 0.0  ;;  %v4691_v46 = vmul.f32 %v11040_v59, %v11040_v59  ;;  %v11053_v3 = vpop.f32.mrb[7].mxu1  ;;  %v4724_v9 = vsel %vm4647_vm6, %v4697_v60, 0.0  ;;  %v4673_v7 = vsel %vm4647_vm6, %v11024_v22, 0.0 }
 0x46b   :  { %v4660_v63 = vadd.f32 %v4659_v29, %v4658_v21  ;;  %v4711_v19 = vadd.f32 %v4710_v6, %v4709_v14  ;;  %v4714_v1 = vsel %vm4647_vm6, %v4692_v48, 0.0  ;;  %v4699_v18 = vmul.f32 %v11053_v3, %v11053_v3 }
 0x46c   :  { %v4712_v26 = vsel %vm4647_vm6, %v4691_v46, 0.0  ;;  %v4675_v44 = vsel %vm4647_vm6, %v11053_v3, 0.0  ;;  %v4700_v2 = vmul.f32 %v11044_v49, %v11044_v49  ;;  %v4726_v11 = vsel %vm4647_vm6, %v4698_v10, 0.0 }
 0x46d   :  { %v4662_v53 = vadd.f32 %v4661_v13, %v4660_v63  ;;  %v4713_v58 = vadd.f32 %v4712_v26, %v4711_v19  ;;  %v4728_v32 = vsel %vm4647_vm6, %v4699_v18, 0.0  ;;  %v4677_v14 = vsel %vm4647_vm6, %v11044_v49, 0.0 }
 0x46e   :  { %v4730_v48 = vsel %vm4647_vm6, %v4700_v2, 0.0 }
 0x46f   :  { %v4664_v0 = vadd.f32 %v4663_v43, %v4662_v53  ;;  %v4715_v35 = vadd.f32 %v4714_v1, %v4713_v58 }
 0x471   :  { %v4666_v39 = vadd.f32 %v4665_v36, %v4664_v0  ;;  %v4717_v23 = vadd.f32 %v4716_v61, %v4715_v35 }
 0x473   :  { %v4668_v27 = vadd.f32 %v4667_v34, %v4666_v39  ;;  %v4719_v41 = vadd.f32 %v4718_v16, %v4717_v23 }
 0x475   :  { %v4670_v42 = vadd.f32 %v4669_v15, %v4668_v27  ;;  %v4721_v54 = vadd.f32 %v4720_v31, %v4719_v41  ;;  %v4746_v31 = vld [vmem:[%s11167_s11] sm:$0x1]  ;;  %s4814_s11 = sshll.u32 %s5101_s10, 4  ;;  %s11125_s11 = int_to_ptr.vmem [resolvable:$true] %s4814_s11 }
 0x476   :  { %s5077_s30 = scalar_lea.vmem %s11125_s11, 2048  ;;  %p5082_p1 = scmp.lt.s32.totalorder %s11125_s11, %s11125_s11 }
 0x477   :  { %v4672_v28 = vadd.f32 %v4671_v62, %v4670_v42  ;;  %v4723_v56 = vadd.f32 %v4722_v37, %v4721_v54  ;;  %p5078_p0 = scmp.ne.s32.totalorder %s11125_s11, %s5077_s30  ;;  %p5083_p2 = scmp.lt.s32.totalorder %s5077_s30, %s5077_s30 }
 0x479   :  { %v4674_v45 = vadd.f32 %v4673_v7, %v4672_v28  ;;  %v4725_v30 = vadd.f32 %v4724_v9, %v4723_v56  ;;  %p5084_p3 = por %p5083_p2, %p5082_p1 }
 0x47b   :  { %v4676_v21 = vadd.f32 %v4675_v44, %v4674_v45  ;;  %v4727_v47 = vadd.f32 %v4726_v11, %v4725_v30  ;;  %p5085_p4 = pnand %p5084_p3, %p5078_p0 }
 0x47d   :  { %v4678_v29 = vadd.f32 %v4677_v14, %v4676_v21  ;;  %v4729_v46 = vadd.f32 %v4728_v32, %v4727_v47 }
 0x47f   :  { %v4679_v6 = vrot.slane %v4678_v29, 4  ;;  %v4731_v63 = vadd.f32 %v4730_v48, %v4729_v46 }
 0x481   :  { %v4680_v19 = vadd.f32 %v4679_v6, %v4678_v29  ;;  %v4732_v13 = vrot.slane %v4731_v63, 4 }
 0x483   :  { %v4681_v43 = vrot.slane %v4680_v19, 2  ;;  %v4733_v26 = vadd.f32 %v4732_v13, %v4731_v63 }
 0x485   :  { %v4682_v53 = vadd.f32 %v4681_v43, %v4680_v19  ;;  %v4734_v58 = vrot.slane %v4733_v26, 2 }
 0x487   :  { %v4683_v5 = vrot.slane %v4682_v53, 1  ;;  %v4735_v52 = vadd.f32 %v4734_v58, %v4733_v26 }
 0x489   :  { %v4684_v1 = vadd.f32 %v4683_v5, %v4682_v53  ;;  %v4736_v61 = vrot.slane %v4735_v52, 1 }
 0x48b   :  { %v4737_v0 = vadd.f32 %v4736_v61, %v4735_v52  ;;  %v4738_v35 = vmul.f32 0.0078125, %v4684_v1 }
 0x48d   :  { %v4739_v36 = vmul.f32 0.0078125, %v4737_v0  ;;  %v4740_v34 = vmul.f32 %v4738_v35, %v4738_v35 }
 0x48f   :  { %v4741_v39 = vsub.f32 %v4739_v36, %v4740_v34 }
 0x491   :  { %v4743_v23 = vadd.f32 1e-05, %v4741_v39 }
 0x493   :  { %4942 = vrsqrt.f32 %v4743_v23 }
 0x49d   :  { %v4943_v60 = vpop.eup %4942 }
 0x49e   :  { %v4745_v16 = vmul.f32 %v4943_v60, %v4742_v17 }
 0x4a0   :  { %v4747_v27 = vmul.f32 %v4745_v16, %v4738_v35  ;;  %v4753_v41 = vrot.slane %v4745_v16, %v12291_v57 }
 0x4a2   :  { %v4748_v15 = vsub.f32 %v4746_v31, %v4747_v27  ;;  %v4755_v62 = vmul.f32 %v4753_v41, %v10987_v12  ;;  %v4756_v42 = vmul.f32 %v10985_v55, %v4753_v41  ;;  %v4757_v54 = vmul.f32 %v4753_v41, %v11005_v20 }
 0x4a3   :  { %v4758_v10 = vmul.f32 %v11002_v51, %v4753_v41  ;;  %v4759_v18 = vmul.f32 %v4753_v41, %v11022_v24  ;;  %v4760_v37 = vmul.f32 %v11017_v38, %v4753_v41  ;;  %v4761_v9 = vmul.f32 %v4753_v41, %v11040_v59 }
 0x4a4   :  { %v4762_v28 = vmul.f32 %v11035_v50, %v4753_v41  ;;  %v4763_v56 = vmul.f32 %v4753_v41, %v10999_v8  ;;  %v4764_v7 = vmul.f32 %v10993_v25, %v4753_v41  ;;  %v4765_v12 = vmul.f32 %v4753_v41, %v11015_v40 }
 0x4a5   :  { %v4766_v55 = vmul.f32 %v11007_v33, %v4753_v41  ;;  %v4767_v20 = vmul.f32 %v4753_v41, %v11033_v4  ;;  %v4768_v51 = vmul.f32 %v11024_v22, %v4753_v41  ;;  %v4769_v24 = vmul.f32 %v4753_v41, %v11053_v3 }
 0x4a6   :  { %v4770_v38 = vmul.f32 %v11044_v49, %v4753_v41  ;;  %v4775_v59 = vrot.slane %v4748_v15, %v12291_v57 }
 0x4a8   :  { %v4777_v50 = vadd.f32 %v4775_v59, %v4755_v62  ;;  %v4778_v8 = vadd.f32 %v4775_v59, %v4756_v42  ;;  %v4779_v44 = vadd.f32 %v4775_v59, %v4757_v54  ;;  %v4780_v25 = vadd.f32 %v4775_v59, %v4758_v10 }
 0x4a9   :  { %v4781_v45 = vadd.f32 %v4775_v59, %v4759_v18  ;;  %v4782_v40 = vadd.f32 %v4775_v59, %v4760_v37  ;;  %v4783_v30 = vadd.f32 %v4775_v59, %v4761_v9  ;;  %v4784_v33 = vadd.f32 %v4775_v59, %v4762_v28 }
 0x4aa   :  { %v4785_v2 = vadd.f32 %v4775_v59, %v4763_v56  ;;  %v4786_v4 = vadd.f32 %v4775_v59, %v4764_v7  ;;  %v4787_v11 = vadd.f32 %v4775_v59, %v4765_v12  ;;  %v4788_v22 = vadd.f32 %v4775_v59, %v4766_v55  ;;  %4793 = vst.msk [vmem:[#allocation2] sm:$0xff] %vm4647_vm6, %v4777_v50 }
 0x4ab   :  { %4794 = vst.msk [vmem:[#allocation2 + $0x8] sm:$0xff] %vm4647_vm6, %v4778_v8  ;;  %4795 = vst.msk [vmem:[#allocation2 + $0x10] sm:$0xff] %vm4647_vm6, %v4779_v44  ;;  %v4789_v57 = vadd.f32 %v4775_v59, %v4767_v20  ;;  %v4790_v49 = vadd.f32 %v4775_v59, %v4768_v51  ;;  %v4791_v3 = vadd.f32 %v4775_v59, %v4769_v24 }
 0x4ac   :  { %4796 = vst.msk [vmem:[#allocation2 + $0x18] sm:$0xff] %vm4647_vm6, %v4780_v25  ;;  %v4792_v32 = vadd.f32 %v4775_v59, %v4770_v38  ;;  %4797 = vst.msk [vmem:[#allocation2 + $0x20] sm:$0xff] %vm4647_vm6, %v4781_v45 }
 0x4ad   :  { %4798 = vst.msk [vmem:[#allocation2 + $0x28] sm:$0xff] %vm4647_vm6, %v4782_v40  ;;  %4799 = vst.msk [vmem:[#allocation2 + $0x30] sm:$0xff] %vm4647_vm6, %v4783_v30 }
 0x4ae   :  { %4800 = vst.msk [vmem:[#allocation2 + $0x38] sm:$0xff] %vm4647_vm6, %v4784_v33  ;;  %4801 = vst.msk [vmem:[#allocation2 + $0x40] sm:$0xff] %vm4647_vm6, %v4785_v2 }
 0x4af   :  { %4802 = vst.msk [vmem:[#allocation2 + $0x48] sm:$0xff] %vm4647_vm6, %v4786_v4  ;;  %4803 = vst.msk [vmem:[#allocation2 + $0x50] sm:$0xff] %vm4647_vm6, %v4787_v11 }
 0x4b0   :  { %4804 = vst.msk [vmem:[#allocation2 + $0x58] sm:$0xff] %vm4647_vm6, %v4788_v22  ;;  %4805 = vst.msk [vmem:[#allocation2 + $0x60] sm:$0xff] %vm4647_vm6, %v4789_v57 }
 0x4b1   :  { %4806 = vst.msk [vmem:[#allocation2 + $0x68] sm:$0xff] %vm4647_vm6, %v4790_v49  ;;  %4807 = vst.msk [vmem:[#allocation2 + $0x70] sm:$0xff] %vm4647_vm6, %v4791_v3 }
 0x4b2   :  { %4808 = vst.msk [vmem:[#allocation2 + $0x78] sm:$0xff] %vm4647_vm6, %v4792_v32 }
 0x4b3   :  { %5088 = shalt.err (!%p5085_p4)
}
 0x4b4   :  { %s5089_s0 = scalar_lea.hbm %s11168_s12, 2048 }
 0x4b5   :  { %p5090_p5 = scmp.ne.s32.totalorder %s11168_s12, %s5089_s0  ;;  %p5093_p6 = scmp.lt.u32.totalorder %s5089_s0, %s11168_s12 }
 0x4b7   :  { %p5095_p7 = pnand %p5093_p6, %p5090_p5 }
 0x4b9   :  { %5098 = shalt.err (!%p5095_p7)
}
 0x4ba   :  { %s5102_s3 = smov 128   ;;  %s5103_s19 = smov 8  }
 0x4bb   :  { %4820 = dma.vmem_to_hbm [thread:$0]  %s11125_s11, 2048, %s11168_s12, [#allocation3], %s5102_s3, %s5102_s3, %s5103_s19  }
 0x4bc   :  { %5099 = dma.done.wait [#allocation3], 2048  }
 0x4bd   :  { %5100 = vsyncadd [#allocation3], 4294965248 }
 0x4be   :  { %4824 = vsyncpa [#allocation3], 1 }

</bundles_post_ra>
